<compile_context>
chip_gen: v7x
topology: tpu7x:2x2x1
jax: 0.10.0
libtpu: 0.0.40
codegen_flags: <defaults>
</compile_context>

<pallas_src>
import jax
import jax.numpy as jnp
from jax.experimental import pallas as pl
from jax.experimental.pallas import tpu as pltpu


def _silu_f32(z):
    # SiLU in f32; the approximate reciprocal rides the EUP slot, which has slack
    # whenever the VPU / store path is the binding unit.
    return z * pl.reciprocal(1.0 + jnp.exp(-z), approx=True)


def _halo_pad(w):
    # >= W+1 halo rows above/below the flattened (H*W, c) activation, rounded up
    # to a multiple of 16 so the bf16 interior staging store stays tile aligned.
    return ((w + 1 + 15) // 16) * 16


def _vmem_limit_bytes():
    # Size the scoped-VMEM limit per generation instead of hard-coding 32 MiB:
    # ~85% of physical (v7x: ~54 of 64 MiB; v6e/v5e: ~108 of 128 MiB), capped.
    try:
        cap = int(pltpu.get_tpu_info().vmem_capacity_bytes)
        if cap > 0:
            return min(int(cap * 0.85), 112 * 1024 * 1024)
    except Exception:
        pass
    return 48 * 1024 * 1024   # safe fallback on every generation (incl. v7x 64 MiB)


# ----------------------------------------------------------------------------
# Fused C2f_v2 kernel builder
# ----------------------------------------------------------------------------
def _make_c2f_v2_kernel(n, shortcut, H, W, c, pad, act_dtype=jnp.bfloat16):
    HW = H * W

    def kernel(*refs):
        # ---- unpack refs: inputs..., output, scratch ----
        x_ref, w01_ref, b01_ref = refs[0], refs[1], refs[2]
        pos = 3
        m_refs = []
        for _ in range(n):
            m_refs.append(refs[pos:pos + 4])          # (w9_cv1, b_cv1, w9_cv2, b_cv2)
            pos += 4
        w2_refs = refs[pos:pos + 2 + n]
        pos += 2 + n
        b2_ref = refs[pos]
        out_ref = refs[pos + 1]
        hbuf = refs[pos + 2]                          # VMEM scratch (HW + 2*pad, c) bf16

        # Zero ONLY the halo rows; the interior is fully overwritten by every
        # conv's staging store.  (Done every grid step: scratch isn't guaranteed
        # zero and, with megacore sharding, not every core runs grid step 0.)
        zeros_halo = jnp.zeros((pad, c), act_dtype)
        hbuf[pl.ds(0, pad), :] = zeros_halo
        hbuf[pl.ds(pad + HW, pad), :] = zeros_halo

        # ---- cv0 & cv1 fused into one bf16 matmul (weights packed on out-dim) ----
        x = x_ref[0]                                              # (HW, C1) bf16
        y01 = _silu_f32(jnp.dot(x, w01_ref[...],
                                preferred_element_type=jnp.float32) + b01_ref[...])
        y0 = y01[:, :c].astype(act_dtype)
        y1 = y01[:, c:].astype(act_dtype)

        # ---- two column-edge masks shared by every 3x3 conv ----
        # The zero halo rows already handle vertical padding; only the horizontal
        # wrap of the flattened +-1 shift needs masking (dw = -1 / +1 taps).
        col = jax.lax.broadcasted_iota(jnp.int32, (HW, 1), 0) % W
        mask_l = col >= 1            # valid positions for the dw = -1 taps
        mask_r = col <= W - 2        # valid positions for the dw = +1 taps

        def conv3x3_silu(inp, w9_ref, b_ref):
            # inp: (HW, c) bf16.  Stage into the zero-padded halo buffer, build the
            # 9 shifted taps, then accumulate 9 bf16 matmuls in f32 on the MXU.
            hbuf[pl.ds(pad, HW), :] = inp                         # tile-aligned store
            taps = []
            for t in range(9):
                dh, dw = t // 3 - 1, t % 3 - 1
                off = dh * W + dw
                if off == 0:
                    tap = inp                                     # centre tap: reuse value
                else:
                    # NOTE: pad+off is sublane-misaligned for 8/9 taps (perf nit only).
                    tap = hbuf[pl.ds(pad + off, HW), :]
                    if dw == -1:
                        tap = jnp.where(mask_l, tap, 0)
                    elif dw == 1:
                        tap = jnp.where(mask_r, tap, 0)
                taps.append(tap)
            # Keep the dot-accumulate chain free of interleaved VPU work (MRB-friendly).
            acc = jnp.dot(taps[0], w9_ref[0], preferred_element_type=jnp.float32)
            for t in range(1, 9):
                acc = acc + jnp.dot(taps[t], w9_ref[t],
                                    preferred_element_type=jnp.float32)
            return _silu_f32(acc + b_ref[...])                    # f32

        # ---- cv2 accumulated per branch: no channel concat, one f32 accumulator ----
        acc2 = jnp.dot(y0, w2_refs[0][...], preferred_element_type=jnp.float32)
        acc2 = acc2 + jnp.dot(y1, w2_refs[1][...], preferred_element_type=jnp.float32)

        cur = y1
        for i in range(n):
            mw1_ref, mb1_ref, mw2_ref, mb2_ref = m_refs[i]
            h1 = conv3x3_silu(cur, mw1_ref, mb1_ref).astype(act_dtype)
            h2 = conv3x3_silu(h1, mw2_ref, mb2_ref)               # f32
            if shortcut:
                h2 = h2 + cur.astype(jnp.float32)
            h2 = h2.astype(act_dtype)
            acc2 = acc2 + jnp.dot(h2, w2_refs[2 + i][...],
                                  preferred_element_type=jnp.float32)
            cur = h2

        out_ref[0] = _silu_f32(acc2 + b2_ref[...]).astype(out_ref.dtype)

    return kernel


# ----------------------------------------------------------------------------
# Parameter construction (Conv2d weight + fused BatchNorm, deterministic)
# ----------------------------------------------------------------------------
def _fuse_bn(w, gamma, beta, mean, var, eps=1e-3):
    # eps=1e-3 matches ultralytics Conv's BatchNorm2d(eps=0.001).
    scale = gamma / jnp.sqrt(var + eps)
    return w * scale[:, None, None, None], beta - mean * scale


def _init_conv(key, cout, cin, k):
    kw, kg, kb, km, kv = jax.random.split(key, 5)
    w = 0.1 * jax.random.normal(kw, (cout, cin, k, k), jnp.float32)
    gamma = 1.0 + 0.1 * jax.random.normal(kg, (cout,), jnp.float32)
    beta = 0.1 * jax.random.normal(kb, (cout,), jnp.float32)
    mean = 0.1 * jax.random.normal(km, (cout,), jnp.float32)
    var = 1.0 + 0.1 * jnp.abs(jax.random.normal(kv, (cout,), jnp.float32))
    w4, b = _fuse_bn(w, gamma, beta, mean, var)
    p = {"w4": w4, "b": b, "k": k}                               # f32 (reference)
    if k == 1:
        p["wm"] = w4.reshape(cout, cin).T.astype(jnp.bfloat16)   # (cin, cout) bf16
    else:
        # (kh, kw, cin, cout) flattened to (9, cin, cout); tap t = kh*3 + kw.
        p["wm9"] = jnp.transpose(w4, (2, 3, 1, 0)).reshape(k * k, cin, cout) \
                      .astype(jnp.bfloat16)
    return p


def init_c2f_v2_params(key, c1, c2, n=1, e=0.5):
    c = int(c2 * e)
    keys = jax.random.split(key, 3 + 2 * n)
    params = {
        "c": c,
        "cv0": _init_conv(keys[0], c, c1, 1),
        "cv1": _init_conv(keys[1], c, c1, 1),
        "cv2": _init_conv(keys[2], c2, (2 + n) * c, 1),
        "m": [],
    }
    for i in range(n):
        params["m"].append({
            "cv1": _init_conv(keys[3 + 2 * i], c, c, 3),
            "cv2": _init_conv(keys[4 + 2 * i], c, c, 3),
        })
    return params


# ----------------------------------------------------------------------------
# C2f_v2 forward: single fused pallas_call (NHWC in, NHWC f32 out)
# ----------------------------------------------------------------------------
def c2f_v2_forward(x_nhwc, params, shortcut=False):
    c = params["c"]
    n = len(params["m"])

    N, H, W, C1 = x_nhwc.shape
    HW = H * W
    x3d = x_nhwc.astype(jnp.bfloat16).reshape(N, HW, C1)

    # cv0 + cv1 packed into one lane-dense bf16 weight; cv2 weight pre-split per branch.
    w01 = jnp.concatenate([params["cv0"]["wm"], params["cv1"]["wm"]], axis=1)        # (C1, 2c)
    b01 = jnp.concatenate([params["cv0"]["b"], params["cv1"]["b"]]).reshape(1, 2 * c)  # f32
    w2 = params["cv2"]["wm"]                                                          # ((2+n)c, c2)
    c_out = w2.shape[1]
    b2 = params["cv2"]["b"].reshape(1, c_out)

    inputs = [x3d, w01, b01]
    in_specs = [
        pl.BlockSpec((1, HW, C1), lambda b: (b, 0, 0)),
        pl.BlockSpec((C1, 2 * c), lambda b: (0, 0)),
        pl.BlockSpec((1, 2 * c), lambda b: (0, 0)),
    ]
    for blk in params["m"]:
        for name in ("cv1", "cv2"):
            inputs += [blk[name]["wm9"], blk[name]["b"].reshape(1, c)]
            in_specs += [pl.BlockSpec((9, c, c), lambda b: (0, 0, 0)),
                         pl.BlockSpec((1, c), lambda b: (0, 0))]
    for i in range(2 + n):
        inputs.append(w2[i * c:(i + 1) * c, :])
        in_specs.append(pl.BlockSpec((c, c_out), lambda b: (0, 0)))
    inputs.append(b2)
    in_specs.append(pl.BlockSpec((1, c_out), lambda b: (0, 0)))

    pad = _halo_pad(W)
    kernel = _make_c2f_v2_kernel(n=n, shortcut=shortcut, H=H, W=W, c=c, pad=pad)

    out = pl.pallas_call(
        kernel,
        out_shape=jax.ShapeDtypeStruct((N, HW, c_out), jnp.float32),
        grid=(N,),
        in_specs=in_specs,
        out_specs=pl.BlockSpec((1, HW, c_out), lambda b: (b, 0, 0)),
        scratch_shapes=[pltpu.VMEM((HW + 2 * pad, c), jnp.bfloat16)],
        compiler_params=pltpu.CompilerParams(
            dimension_semantics=("parallel",),
            vmem_limit_bytes=_vmem_limit_bytes(),
        ),
    )(*inputs)

    return out.reshape(N, H, W, c_out)


# ----------------------------------------------------------------------------
# Precision-matched pure-JAX reference (lax.conv, NHWC, bf16 storage / f32 acc)
# ----------------------------------------------------------------------------
def _ref_conv_nhwc(x_bf, w4, b, pad):
    w_hwio = jnp.transpose(w4, (2, 3, 1, 0)).astype(jnp.bfloat16)
    out = jax.lax.conv_general_dilated(
        x_bf, w_hwio, (1, 1), [(pad, pad), (pad, pad)],
        dimension_numbers=("NHWC", "HWIO", "NHWC"),
        preferred_element_type=jnp.float32)
    out = out + b[None, None, None, :]
    return out * jax.nn.sigmoid(out)                              # f32


def c2f_v2_reference(x_nhwc, params, shortcut=False):
    xb = x_nhwc.astype(jnp.bfloat16)
    y0 = _ref_conv_nhwc(xb, params["cv0"]["w4"], params["cv0"]["b"], 0).astype(jnp.bfloat16)
    y1 = _ref_conv_nhwc(xb, params["cv1"]["w4"], params["cv1"]["b"], 0).astype(jnp.bfloat16)
    ys = [y0, y1]
    cur = y1
    for blk in params["m"]:
        h1 = _ref_conv_nhwc(cur, blk["cv1"]["w4"], blk["cv1"]["b"], 1).astype(jnp.bfloat16)
        h2 = _ref_conv_nhwc(h1, blk["cv2"]["w4"], blk["cv2"]["b"], 1)
        if shortcut:
            h2 = h2 + cur.astype(jnp.float32)
        h2 = h2.astype(jnp.bfloat16)
        ys.append(h2)
        cur = h2
    cat = jnp.concatenate(ys, axis=-1)
    return _ref_conv_nhwc(cat, params["cv2"]["w4"], params["cv2"]["b"], 0)


# ----------------------------------------------------------------------------
if __name__ == "__main__":
    key = jax.random.PRNGKey(0)
    k_x, k_p = jax.random.split(key)

    # C2f_v2(c1=4, c2=8, n=1, shortcut=False, e=0.5) -> hidden c = 4
    c1, c2, n = 4, 8, 1
    # Module-spec NCHW input; one boundary transpose into NHWC for the kernel
    # (in a real NHWC pipeline this transpose disappears entirely).
    x_nchw = jax.random.normal(k_x, (2, c1, 16, 16), jnp.float32)
    x_nhwc = jnp.transpose(x_nchw, (0, 2, 3, 1))

    params = init_c2f_v2_params(k_p, c1, c2, n=n, e=0.5)

    out_nhwc = jax.block_until_ready(c2f_v2_forward(x_nhwc, params, shortcut=False))
    assert out_nhwc.shape == (2, 16, 16, c2), out_nhwc.shape
    out_nchw = jnp.transpose(out_nhwc, (0, 3, 1, 2))              # back to module layout
    assert out_nchw.shape == (2, c2, 16, 16), out_nchw.shape

    ref_nhwc = jax.block_until_ready(c2f_v2_reference(x_nhwc, params, shortcut=False))
    err = float(jnp.max(jnp.abs(out_nhwc - ref_nhwc)))
    # bf16-storage tolerance (both paths round intermediates to bf16 identically).
    assert jnp.allclose(out_nhwc, ref_nhwc, atol=2e-2, rtol=2e-2), err

    print("KERNEL_OK")
</pallas_src>

<mosaic_0001>
module attributes {stable_mosaic.version = 11 : i64} {
  func.func @kernel(%arg0: i32, %arg1: memref<1x256x4xbf16, #tpu.memory_space<vmem>>, %arg2: memref<4x8xbf16, #tpu.memory_space<vmem>>, %arg3: memref<1x8xf32, #tpu.memory_space<vmem>>, %arg4: memref<9x4x4xbf16, #tpu.memory_space<vmem>>, %arg5: memref<1x4xf32, #tpu.memory_space<vmem>>, %arg6: memref<9x4x4xbf16, #tpu.memory_space<vmem>>, %arg7: memref<1x4xf32, #tpu.memory_space<vmem>>, %arg8: memref<4x8xbf16, #tpu.memory_space<vmem>>, %arg9: memref<4x8xbf16, #tpu.memory_space<vmem>>, %arg10: memref<4x8xbf16, #tpu.memory_space<vmem>>, %arg11: memref<1x8xf32, #tpu.memory_space<vmem>>, %arg12: memref<1x256x8xf32, #tpu.memory_space<vmem>>, %arg13: memref<320x4xbf16, #tpu.memory_space<vmem>>) attributes {dimension_semantics = [#tpu.dimension_semantics<parallel>], iteration_bounds = array<i64: 2>, scalar_prefetch = 0 : i64, scratch_operands = 1 : i64, tpu.core_type = #tpu.core_type<tc>, window_params = [{transform_indices = @transform_0, window_bounds = array<i64: 1, 256, 4>}, {pipeline_mode = #tpu.pipeline_mode<synchronous>, transform_indices = @transform_1, window_bounds = array<i64: 4, 8>}, {pipeline_mode = #tpu.pipeline_mode<synchronous>, transform_indices = @transform_2, window_bounds = array<i64: 1, 8>}, {pipeline_mode = #tpu.pipeline_mode<synchronous>, transform_indices = @transform_3, window_bounds = array<i64: 9, 4, 4>}, {pipeline_mode = #tpu.pipeline_mode<synchronous>, transform_indices = @transform_4, window_bounds = array<i64: 1, 4>}, {pipeline_mode = #tpu.pipeline_mode<synchronous>, transform_indices = @transform_5, window_bounds = array<i64: 9, 4, 4>}, {pipeline_mode = #tpu.pipeline_mode<synchronous>, transform_indices = @transform_6, window_bounds = array<i64: 1, 4>}, {pipeline_mode = #tpu.pipeline_mode<synchronous>, transform_indices = @transform_7, window_bounds = array<i64: 4, 8>}, {pipeline_mode = #tpu.pipeline_mode<synchronous>, transform_indices = @transform_8, window_bounds = array<i64: 4, 8>}, {pipeline_mode = #tpu.pipeline_mode<synchronous>, transform_indices = @transform_9, window_bounds = array<i64: 4, 8>}, {pipeline_mode = #tpu.pipeline_mode<synchronous>, transform_indices = @transform_10, window_bounds = array<i64: 1, 8>}, {transform_indices = @transform_11, window_bounds = array<i64: 1, 256, 8>}]} {
    %cst = arith.constant 0.000000e+00 : bf16
    %0 = vector.broadcast %cst : bf16 to vector<32x4xbf16>
    %c0 = arith.constant 0 : index
    %c0_0 = arith.constant 0 : index
    %1 = vector.load %arg13[%c0, %c0_0] : memref<320x4xbf16, #tpu.memory_space<vmem>>, vector<32x4xbf16>
    tpu.vector_store %arg13[%c0, %c0_0], %0 {strides = array<i32>} : memref<320x4xbf16, #tpu.memory_space<vmem>>, vector<32x4xbf16>,
    %c288 = arith.constant 288 : index
    %c0_1 = arith.constant 0 : index
    %2 = vector.load %arg13[%c288, %c0_1] : memref<320x4xbf16, #tpu.memory_space<vmem>>, vector<32x4xbf16>
    tpu.vector_store %arg13[%c288, %c0_1], %0 {strides = array<i32>} : memref<320x4xbf16, #tpu.memory_space<vmem>>, vector<32x4xbf16>,
    %c0_2 = arith.constant 0 : index
    %c0_3 = arith.constant 0 : index
    %c0_4 = arith.constant 0 : index
    %3 = vector.load %arg1[%c0_2, %c0_3, %c0_4] : memref<1x256x4xbf16, #tpu.memory_space<vmem>>, vector<1x256x4xbf16>
    %4 = vector.shape_cast %3 : vector<1x256x4xbf16> to vector<256x4xbf16>
    %c0_5 = arith.constant 0 : index
    %c0_6 = arith.constant 0 : index
    %5 = vector.load %arg2[%c0_5, %c0_6] : memref<4x8xbf16, #tpu.memory_space<vmem>>, vector<4x8xbf16>
    %cst_7 = arith.constant dense<0.000000e+00> : vector<256x8xf32>
    %6 = tpu.matmul %4, %5, %cst_7 {dimension_numbers = #tpu.dot_dimension_numbers<[1], [0], [0], [1], [0, 0, 1, 1], [], []>} : vector<256x4xbf16>, vector<4x8xbf16>, vector<256x8xf32> -> vector<256x8xf32>
    %c0_8 = arith.constant 0 : index
    %c0_9 = arith.constant 0 : index
    %7 = vector.load %arg3[%c0_8, %c0_9] : memref<1x8xf32, #tpu.memory_space<vmem>>, vector<1x8xf32>
    %8 = vector.broadcast %7 : vector<1x8xf32> to vector<256x8xf32>
    %9 = arith.addf %6, %8 : vector<256x8xf32>
    %cst_10 = arith.constant 0.000000e+00 : f32
    %10 = vector.broadcast %cst_10 : f32 to vector<256x8xf32>
    %11 = arith.subf %10, %9 : vector<256x8xf32>
    %12 = math.exp %11 : vector<256x8xf32>
    %cst_11 = arith.constant 1.000000e+00 : f32
    %13 = vector.broadcast %cst_11 : f32 to vector<256x8xf32>
    %14 = arith.addf %13, %12 : vector<256x8xf32>
    %15 = tpu.reciprocal %14 {approx = true} : vector<256x8xf32> -> vector<256x8xf32>
    %16 = arith.mulf %9, %15 : vector<256x8xf32>
    %17 = vector.extract_strided_slice %16 {offsets = [0, 0], sizes = [256, 4], strides = [1, 1]} : vector<256x8xf32> to vector<256x4xf32>
    %18 = arith.truncf %17 : vector<256x4xf32> to vector<256x4xbf16>
    %19 = vector.extract_strided_slice %16 {offsets = [0, 4], sizes = [256, 4], strides = [1, 1]} : vector<256x8xf32> to vector<256x4xf32>
    %20 = arith.truncf %19 : vector<256x4xf32> to vector<256x4xbf16>
    %21 = tpu.iota {dimensions = array<i32: 0>} : vector<256x1xi32>
    %c16_i32 = arith.constant 16 : i32
    %c0_i32 = arith.constant 0 : i32
    %22 = arith.cmpi eq, %c16_i32, %c0_i32 : i32
    %c1_i32 = arith.constant 1 : i32
    %23 = arith.select %22, %c1_i32, %c16_i32 : i32
    %24 = vector.broadcast %23 : i32 to vector<256x1xi32>
    %25 = arith.remsi %21, %24 : vector<256x1xi32>
    %c0_i32_12 = arith.constant 0 : i32
    %26 = vector.broadcast %c0_i32_12 : i32 to vector<256x1xi32>
    %27 = arith.cmpi ne, %25, %26 : vector<256x1xi32>
    %c0_i32_13 = arith.constant 0 : i32
    %28 = vector.broadcast %c0_i32_13 : i32 to vector<256x1xi32>
    %29 = arith.cmpi slt, %25, %28 : vector<256x1xi32>
    %c0_i32_14 = arith.constant 0 : i32
    %30 = arith.cmpi slt, %23, %c0_i32_14 : i32
    %31 = vector.broadcast %30 : i1 to vector<256x1xi1>
    %32 = vector.broadcast %31 : vector<256x1xi1> to vector<256x1xi1>
    %33 = arith.xori %29, %32 : vector<256x1xi1>
    %34 = arith.andi %33, %27 : vector<256x1xi1>
    %35 = vector.broadcast %23 : i32 to vector<256x1xi32>
    %36 = arith.addi %25, %35 : vector<256x1xi32>
    %37 = arith.select %34, %36, %25 : vector<256x1xi1>, vector<256x1xi32>
    %c1_i32_15 = arith.constant 1 : i32
    %38 = vector.broadcast %c1_i32_15 : i32 to vector<256x1xi32>
    %39 = arith.cmpi sge, %37, %38 : vector<256x1xi32>
    %c14_i32 = arith.constant 14 : i32
    %40 = vector.broadcast %c14_i32 : i32 to vector<256x1xi32>
    %41 = arith.cmpi sle, %37, %40 : vector<256x1xi32>
    %c0_16 = arith.constant 0 : index
    %c0_17 = arith.constant 0 : index
    %42 = vector.load %arg8[%c0_16, %c0_17] : memref<4x8xbf16, #tpu.memory_space<vmem>>, vector<4x8xbf16>
    %cst_18 = arith.constant dense<0.000000e+00> : vector<256x8xf32>
    %43 = tpu.matmul %18, %42, %cst_18 {dimension_numbers = #tpu.dot_dimension_numbers<[1], [0], [0], [1], [0, 0, 1, 1], [], []>} : vector<256x4xbf16>, vector<4x8xbf16>, vector<256x8xf32> -> vector<256x8xf32>
    %c0_19 = arith.constant 0 : index
    %c0_20 = arith.constant 0 : index
    %44 = vector.load %arg9[%c0_19, %c0_20] : memref<4x8xbf16, #tpu.memory_space<vmem>>, vector<4x8xbf16>
    %cst_21 = arith.constant dense<0.000000e+00> : vector<256x8xf32>
    %45 = tpu.matmul %20, %44, %cst_21 {dimension_numbers = #tpu.dot_dimension_numbers<[1], [0], [0], [1], [0, 0, 1, 1], [], []>} : vector<256x4xbf16>, vector<4x8xbf16>, vector<256x8xf32> -> vector<256x8xf32>
    %46 = arith.addf %43, %45 : vector<256x8xf32>
    %c32 = arith.constant 32 : index
    %c0_22 = arith.constant 0 : index
    %47 = vector.load %arg13[%c32, %c0_22] : memref<320x4xbf16, #tpu.memory_space<vmem>>, vector<256x4xbf16>
    tpu.vector_store %arg13[%c32, %c0_22], %20 {strides = array<i32>} : memref<320x4xbf16, #tpu.memory_space<vmem>>, vector<256x4xbf16>,
    %c15 = arith.constant 15 : index
    %c0_23 = arith.constant 0 : index
    %48 = vector.load %arg13[%c15, %c0_23] : memref<320x4xbf16, #tpu.memory_space<vmem>>, vector<256x4xbf16>
    %c0_i32_24 = arith.constant 0 : i32
    %49 = arith.sitofp %c0_i32_24 : i32 to bf16
    %50 = vector.shape_cast %39 : vector<256x1xi1> to vector<256x1xi1>
    %51 = vector.broadcast %50 : vector<256x1xi1> to vector<256x4xi1>
    %52 = vector.broadcast %49 : bf16 to vector<256x4xbf16>
    %53 = arith.select %51, %48, %52 : vector<256x4xi1>, vector<256x4xbf16>
    %c16 = arith.constant 16 : index
    %c0_25 = arith.constant 0 : index
    %54 = vector.load %arg13[%c16, %c0_25] : memref<320x4xbf16, #tpu.memory_space<vmem>>, vector<256x4xbf16>
    %c17 = arith.constant 17 : index
    %c0_26 = arith.constant 0 : index
    %55 = vector.load %arg13[%c17, %c0_26] : memref<320x4xbf16, #tpu.memory_space<vmem>>, vector<256x4xbf16>
    %c0_i32_27 = arith.constant 0 : i32
    %56 = arith.sitofp %c0_i32_27 : i32 to bf16
    %57 = vector.shape_cast %41 : vector<256x1xi1> to vector<256x1xi1>
    %58 = vector.broadcast %57 : vector<256x1xi1> to vector<256x4xi1>
    %59 = vector.broadcast %56 : bf16 to vector<256x4xbf16>
    %60 = arith.select %58, %55, %59 : vector<256x4xi1>, vector<256x4xbf16>
    %c31 = arith.constant 31 : index
    %c0_28 = arith.constant 0 : index
    %61 = vector.load %arg13[%c31, %c0_28] : memref<320x4xbf16, #tpu.memory_space<vmem>>, vector<256x4xbf16>
    %c0_i32_29 = arith.constant 0 : i32
    %62 = arith.sitofp %c0_i32_29 : i32 to bf16
    %63 = vector.shape_cast %39 : vector<256x1xi1> to vector<256x1xi1>
    %64 = vector.broadcast %63 : vector<256x1xi1> to vector<256x4xi1>
    %65 = vector.broadcast %62 : bf16 to vector<256x4xbf16>
    %66 = arith.select %64, %61, %65 : vector<256x4xi1>, vector<256x4xbf16>
    %c33 = arith.constant 33 : index
    %c0_30 = arith.constant 0 : index
    %67 = vector.load %arg13[%c33, %c0_30] : memref<320x4xbf16, #tpu.memory_space<vmem>>, vector<256x4xbf16>
    %c0_i32_31 = arith.constant 0 : i32
    %68 = arith.sitofp %c0_i32_31 : i32 to bf16
    %69 = vector.shape_cast %41 : vector<256x1xi1> to vector<256x1xi1>
    %70 = vector.broadcast %69 : vector<256x1xi1> to vector<256x4xi1>
    %71 = vector.broadcast %68 : bf16 to vector<256x4xbf16>
    %72 = arith.select %70, %67, %71 : vector<256x4xi1>, vector<256x4xbf16>
    %c47 = arith.constant 47 : index
    %c0_32 = arith.constant 0 : index
    %73 = vector.load %arg13[%c47, %c0_32] : memref<320x4xbf16, #tpu.memory_space<vmem>>, vector<256x4xbf16>
    %c0_i32_33 = arith.constant 0 : i32
    %74 = arith.sitofp %c0_i32_33 : i32 to bf16
    %75 = vector.shape_cast %39 : vector<256x1xi1> to vector<256x1xi1>
    %76 = vector.broadcast %75 : vector<256x1xi1> to vector<256x4xi1>
    %77 = vector.broadcast %74 : bf16 to vector<256x4xbf16>
    %78 = arith.select %76, %73, %77 : vector<256x4xi1>, vector<256x4xbf16>
    %c48 = arith.constant 48 : index
    %c0_34 = arith.constant 0 : index
    %79 = vector.load %arg13[%c48, %c0_34] : memref<320x4xbf16, #tpu.memory_space<vmem>>, vector<256x4xbf16>
    %c49 = arith.constant 49 : index
    %c0_35 = arith.constant 0 : index
    %80 = vector.load %arg13[%c49, %c0_35] : memref<320x4xbf16, #tpu.memory_space<vmem>>, vector<256x4xbf16>
    %c0_i32_36 = arith.constant 0 : i32
    %81 = arith.sitofp %c0_i32_36 : i32 to bf16
    %82 = vector.shape_cast %41 : vector<256x1xi1> to vector<256x1xi1>
    %83 = vector.broadcast %82 : vector<256x1xi1> to vector<256x4xi1>
    %84 = vector.broadcast %81 : bf16 to vector<256x4xbf16>
    %85 = arith.select %83, %80, %84 : vector<256x4xi1>, vector<256x4xbf16>
    %c0_37 = arith.constant 0 : index
    %c0_38 = arith.constant 0 : index
    %c0_39 = arith.constant 0 : index
    %86 = vector.load %arg4[%c0_37, %c0_38, %c0_39] : memref<9x4x4xbf16, #tpu.memory_space<vmem>>, vector<1x4x4xbf16>
    %87 = vector.shape_cast %86 : vector<1x4x4xbf16> to vector<4x4xbf16>
    %cst_40 = arith.constant dense<0.000000e+00> : vector<256x4xf32>
    %88 = tpu.matmul %53, %87, %cst_40 {dimension_numbers = #tpu.dot_dimension_numbers<[1], [0], [0], [1], [0, 0, 1, 1], [], []>} : vector<256x4xbf16>, vector<4x4xbf16>, vector<256x4xf32> -> vector<256x4xf32>
    %c1 = arith.constant 1 : index
    %c0_41 = arith.constant 0 : index
    %c0_42 = arith.constant 0 : index
    %89 = vector.load %arg4[%c1, %c0_41, %c0_42] : memref<9x4x4xbf16, #tpu.memory_space<vmem>>, vector<1x4x4xbf16>
    %90 = vector.shape_cast %89 : vector<1x4x4xbf16> to vector<4x4xbf16>
    %cst_43 = arith.constant dense<0.000000e+00> : vector<256x4xf32>
    %91 = tpu.matmul %54, %90, %cst_43 {dimension_numbers = #tpu.dot_dimension_numbers<[1], [0], [0], [1], [0, 0, 1, 1], [], []>} : vector<256x4xbf16>, vector<4x4xbf16>, vector<256x4xf32> -> vector<256x4xf32>
    %92 = arith.addf %88, %91 : vector<256x4xf32>
    %c2 = arith.constant 2 : index
    %c0_44 = arith.constant 0 : index
    %c0_45 = arith.constant 0 : index
    %93 = vector.load %arg4[%c2, %c0_44, %c0_45] : memref<9x4x4xbf16, #tpu.memory_space<vmem>>, vector<1x4x4xbf16>
    %94 = vector.shape_cast %93 : vector<1x4x4xbf16> to vector<4x4xbf16>
    %cst_46 = arith.constant dense<0.000000e+00> : vector<256x4xf32>
    %95 = tpu.matmul %60, %94, %cst_46 {dimension_numbers = #tpu.dot_dimension_numbers<[1], [0], [0], [1], [0, 0, 1, 1], [], []>} : vector<256x4xbf16>, vector<4x4xbf16>, vector<256x4xf32> -> vector<256x4xf32>
    %96 = arith.addf %92, %95 : vector<256x4xf32>
    %c3 = arith.constant 3 : index
    %c0_47 = arith.constant 0 : index
    %c0_48 = arith.constant 0 : index
    %97 = vector.load %arg4[%c3, %c0_47, %c0_48] : memref<9x4x4xbf16, #tpu.memory_space<vmem>>, vector<1x4x4xbf16>
    %98 = vector.shape_cast %97 : vector<1x4x4xbf16> to vector<4x4xbf16>
    %cst_49 = arith.constant dense<0.000000e+00> : vector<256x4xf32>
    %99 = tpu.matmul %66, %98, %cst_49 {dimension_numbers = #tpu.dot_dimension_numbers<[1], [0], [0], [1], [0, 0, 1, 1], [], []>} : vector<256x4xbf16>, vector<4x4xbf16>, vector<256x4xf32> -> vector<256x4xf32>
    %100 = arith.addf %96, %99 : vector<256x4xf32>
    %c4 = arith.constant 4 : index
    %c0_50 = arith.constant 0 : index
    %c0_51 = arith.constant 0 : index
    %101 = vector.load %arg4[%c4, %c0_50, %c0_51] : memref<9x4x4xbf16, #tpu.memory_space<vmem>>, vector<1x4x4xbf16>
    %102 = vector.shape_cast %101 : vector<1x4x4xbf16> to vector<4x4xbf16>
    %cst_52 = arith.constant dense<0.000000e+00> : vector<256x4xf32>
    %103 = tpu.matmul %20, %102, %cst_52 {dimension_numbers = #tpu.dot_dimension_numbers<[1], [0], [0], [1], [0, 0, 1, 1], [], []>} : vector<256x4xbf16>, vector<4x4xbf16>, vector<256x4xf32> -> vector<256x4xf32>
    %104 = arith.addf %100, %103 : vector<256x4xf32>
    %c5 = arith.constant 5 : index
    %c0_53 = arith.constant 0 : index
    %c0_54 = arith.constant 0 : index
    %105 = vector.load %arg4[%c5, %c0_53, %c0_54] : memref<9x4x4xbf16, #tpu.memory_space<vmem>>, vector<1x4x4xbf16>
    %106 = vector.shape_cast %105 : vector<1x4x4xbf16> to vector<4x4xbf16>
    %cst_55 = arith.constant dense<0.000000e+00> : vector<256x4xf32>
    %107 = tpu.matmul %72, %106, %cst_55 {dimension_numbers = #tpu.dot_dimension_numbers<[1], [0], [0], [1], [0, 0, 1, 1], [], []>} : vector<256x4xbf16>, vector<4x4xbf16>, vector<256x4xf32> -> vector<256x4xf32>
    %108 = arith.addf %104, %107 : vector<256x4xf32>
    %c6 = arith.constant 6 : index
    %c0_56 = arith.constant 0 : index
    %c0_57 = arith.constant 0 : index
    %109 = vector.load %arg4[%c6, %c0_56, %c0_57] : memref<9x4x4xbf16, #tpu.memory_space<vmem>>, vector<1x4x4xbf16>
    %110 = vector.shape_cast %109 : vector<1x4x4xbf16> to vector<4x4xbf16>
    %cst_58 = arith.constant dense<0.000000e+00> : vector<256x4xf32>
    %111 = tpu.matmul %78, %110, %cst_58 {dimension_numbers = #tpu.dot_dimension_numbers<[1], [0], [0], [1], [0, 0, 1, 1], [], []>} : vector<256x4xbf16>, vector<4x4xbf16>, vector<256x4xf32> -> vector<256x4xf32>
    %112 = arith.addf %108, %111 : vector<256x4xf32>
    %c7 = arith.constant 7 : index
    %c0_59 = arith.constant 0 : index
    %c0_60 = arith.constant 0 : index
    %113 = vector.load %arg4[%c7, %c0_59, %c0_60] : memref<9x4x4xbf16, #tpu.memory_space<vmem>>, vector<1x4x4xbf16>
    %114 = vector.shape_cast %113 : vector<1x4x4xbf16> to vector<4x4xbf16>
    %cst_61 = arith.constant dense<0.000000e+00> : vector<256x4xf32>
    %115 = tpu.matmul %79, %114, %cst_61 {dimension_numbers = #tpu.dot_dimension_numbers<[1], [0], [0], [1], [0, 0, 1, 1], [], []>} : vector<256x4xbf16>, vector<4x4xbf16>, vector<256x4xf32> -> vector<256x4xf32>
    %116 = arith.addf %112, %115 : vector<256x4xf32>
    %c8 = arith.constant 8 : index
    %c0_62 = arith.constant 0 : index
    %c0_63 = arith.constant 0 : index
    %117 = vector.load %arg4[%c8, %c0_62, %c0_63] : memref<9x4x4xbf16, #tpu.memory_space<vmem>>, vector<1x4x4xbf16>
    %118 = vector.shape_cast %117 : vector<1x4x4xbf16> to vector<4x4xbf16>
    %cst_64 = arith.constant dense<0.000000e+00> : vector<256x4xf32>
    %119 = tpu.matmul %85, %118, %cst_64 {dimension_numbers = #tpu.dot_dimension_numbers<[1], [0], [0], [1], [0, 0, 1, 1], [], []>} : vector<256x4xbf16>, vector<4x4xbf16>, vector<256x4xf32> -> vector<256x4xf32>
    %120 = arith.addf %116, %119 : vector<256x4xf32>
    %c0_65 = arith.constant 0 : index
    %c0_66 = arith.constant 0 : index
    %121 = vector.load %arg5[%c0_65, %c0_66] : memref<1x4xf32, #tpu.memory_space<vmem>>, vector<1x4xf32>
    %122 = vector.broadcast %121 : vector<1x4xf32> to vector<256x4xf32>
    %123 = arith.addf %120, %122 : vector<256x4xf32>
    %cst_67 = arith.constant 0.000000e+00 : f32
    %124 = vector.broadcast %cst_67 : f32 to vector<256x4xf32>
    %125 = arith.subf %124, %123 : vector<256x4xf32>
    %126 = math.exp %125 : vector<256x4xf32>
    %cst_68 = arith.constant 1.000000e+00 : f32
    %127 = vector.broadcast %cst_68 : f32 to vector<256x4xf32>
    %128 = arith.addf %127, %126 : vector<256x4xf32>
    %129 = tpu.reciprocal %128 {approx = true} : vector<256x4xf32> -> vector<256x4xf32>
    %130 = arith.mulf %123, %129 : vector<256x4xf32>
    %131 = arith.truncf %130 : vector<256x4xf32> to vector<256x4xbf16>
    %c32_69 = arith.constant 32 : index
    %c0_70 = arith.constant 0 : index
    %132 = vector.load %arg13[%c32_69, %c0_70] : memref<320x4xbf16, #tpu.memory_space<vmem>>, vector<256x4xbf16>
    tpu.vector_store %arg13[%c32_69, %c0_70], %131 {strides = array<i32>} : memref<320x4xbf16, #tpu.memory_space<vmem>>, vector<256x4xbf16>,
    %c15_71 = arith.constant 15 : index
    %c0_72 = arith.constant 0 : index
    %133 = vector.load %arg13[%c15_71, %c0_72] : memref<320x4xbf16, #tpu.memory_space<vmem>>, vector<256x4xbf16>
    %c0_i32_73 = arith.constant 0 : i32
    %134 = arith.sitofp %c0_i32_73 : i32 to bf16
    %135 = vector.shape_cast %39 : vector<256x1xi1> to vector<256x1xi1>
    %136 = vector.broadcast %135 : vector<256x1xi1> to vector<256x4xi1>
    %137 = vector.broadcast %134 : bf16 to vector<256x4xbf16>
    %138 = arith.select %136, %133, %137 : vector<256x4xi1>, vector<256x4xbf16>
    %c16_74 = arith.constant 16 : index
    %c0_75 = arith.constant 0 : index
    %139 = vector.load %arg13[%c16_74, %c0_75] : memref<320x4xbf16, #tpu.memory_space<vmem>>, vector<256x4xbf16>
    %c17_76 = arith.constant 17 : index
    %c0_77 = arith.constant 0 : index
    %140 = vector.load %arg13[%c17_76, %c0_77] : memref<320x4xbf16, #tpu.memory_space<vmem>>, vector<256x4xbf16>
    %c0_i32_78 = arith.constant 0 : i32
    %141 = arith.sitofp %c0_i32_78 : i32 to bf16
    %142 = vector.shape_cast %41 : vector<256x1xi1> to vector<256x1xi1>
    %143 = vector.broadcast %142 : vector<256x1xi1> to vector<256x4xi1>
    %144 = vector.broadcast %141 : bf16 to vector<256x4xbf16>
    %145 = arith.select %143, %140, %144 : vector<256x4xi1>, vector<256x4xbf16>
    %c31_79 = arith.constant 31 : index
    %c0_80 = arith.constant 0 : index
    %146 = vector.load %arg13[%c31_79, %c0_80] : memref<320x4xbf16, #tpu.memory_space<vmem>>, vector<256x4xbf16>
    %c0_i32_81 = arith.constant 0 : i32
    %147 = arith.sitofp %c0_i32_81 : i32 to bf16
    %148 = vector.shape_cast %39 : vector<256x1xi1> to vector<256x1xi1>
    %149 = vector.broadcast %148 : vector<256x1xi1> to vector<256x4xi1>
    %150 = vector.broadcast %147 : bf16 to vector<256x4xbf16>
    %151 = arith.select %149, %146, %150 : vector<256x4xi1>, vector<256x4xbf16>
    %c33_82 = arith.constant 33 : index
    %c0_83 = arith.constant 0 : index
    %152 = vector.load %arg13[%c33_82, %c0_83] : memref<320x4xbf16, #tpu.memory_space<vmem>>, vector<256x4xbf16>
    %c0_i32_84 = arith.constant 0 : i32
    %153 = arith.sitofp %c0_i32_84 : i32 to bf16
    %154 = vector.shape_cast %41 : vector<256x1xi1> to vector<256x1xi1>
    %155 = vector.broadcast %154 : vector<256x1xi1> to vector<256x4xi1>
    %156 = vector.broadcast %153 : bf16 to vector<256x4xbf16>
    %157 = arith.select %155, %152, %156 : vector<256x4xi1>, vector<256x4xbf16>
    %c47_85 = arith.constant 47 : index
    %c0_86 = arith.constant 0 : index
    %158 = vector.load %arg13[%c47_85, %c0_86] : memref<320x4xbf16, #tpu.memory_space<vmem>>, vector<256x4xbf16>
    %c0_i32_87 = arith.constant 0 : i32
    %159 = arith.sitofp %c0_i32_87 : i32 to bf16
    %160 = vector.shape_cast %39 : vector<256x1xi1> to vector<256x1xi1>
    %161 = vector.broadcast %160 : vector<256x1xi1> to vector<256x4xi1>
    %162 = vector.broadcast %159 : bf16 to vector<256x4xbf16>
    %163 = arith.select %161, %158, %162 : vector<256x4xi1>, vector<256x4xbf16>
    %c48_88 = arith.constant 48 : index
    %c0_89 = arith.constant 0 : index
    %164 = vector.load %arg13[%c48_88, %c0_89] : memref<320x4xbf16, #tpu.memory_space<vmem>>, vector<256x4xbf16>
    %c49_90 = arith.constant 49 : index
    %c0_91 = arith.constant 0 : index
    %165 = vector.load %arg13[%c49_90, %c0_91] : memref<320x4xbf16, #tpu.memory_space<vmem>>, vector<256x4xbf16>
    %c0_i32_92 = arith.constant 0 : i32
    %166 = arith.sitofp %c0_i32_92 : i32 to bf16
    %167 = vector.shape_cast %41 : vector<256x1xi1> to vector<256x1xi1>
    %168 = vector.broadcast %167 : vector<256x1xi1> to vector<256x4xi1>
    %169 = vector.broadcast %166 : bf16 to vector<256x4xbf16>
    %170 = arith.select %168, %165, %169 : vector<256x4xi1>, vector<256x4xbf16>
    %c0_93 = arith.constant 0 : index
    %c0_94 = arith.constant 0 : index
    %c0_95 = arith.constant 0 : index
    %171 = vector.load %arg6[%c0_93, %c0_94, %c0_95] : memref<9x4x4xbf16, #tpu.memory_space<vmem>>, vector<1x4x4xbf16>
    %172 = vector.shape_cast %171 : vector<1x4x4xbf16> to vector<4x4xbf16>
    %cst_96 = arith.constant dense<0.000000e+00> : vector<256x4xf32>
    %173 = tpu.matmul %138, %172, %cst_96 {dimension_numbers = #tpu.dot_dimension_numbers<[1], [0], [0], [1], [0, 0, 1, 1], [], []>} : vector<256x4xbf16>, vector<4x4xbf16>, vector<256x4xf32> -> vector<256x4xf32>
    %c1_97 = arith.constant 1 : index
    %c0_98 = arith.constant 0 : index
    %c0_99 = arith.constant 0 : index
    %174 = vector.load %arg6[%c1_97, %c0_98, %c0_99] : memref<9x4x4xbf16, #tpu.memory_space<vmem>>, vector<1x4x4xbf16>
    %175 = vector.shape_cast %174 : vector<1x4x4xbf16> to vector<4x4xbf16>
    %cst_100 = arith.constant dense<0.000000e+00> : vector<256x4xf32>
    %176 = tpu.matmul %139, %175, %cst_100 {dimension_numbers = #tpu.dot_dimension_numbers<[1], [0], [0], [1], [0, 0, 1, 1], [], []>} : vector<256x4xbf16>, vector<4x4xbf16>, vector<256x4xf32> -> vector<256x4xf32>
    %177 = arith.addf %173, %176 : vector<256x4xf32>
    %c2_101 = arith.constant 2 : index
    %c0_102 = arith.constant 0 : index
    %c0_103 = arith.constant 0 : index
    %178 = vector.load %arg6[%c2_101, %c0_102, %c0_103] : memref<9x4x4xbf16, #tpu.memory_space<vmem>>, vector<1x4x4xbf16>
    %179 = vector.shape_cast %178 : vector<1x4x4xbf16> to vector<4x4xbf16>
    %cst_104 = arith.constant dense<0.000000e+00> : vector<256x4xf32>
    %180 = tpu.matmul %145, %179, %cst_104 {dimension_numbers = #tpu.dot_dimension_numbers<[1], [0], [0], [1], [0, 0, 1, 1], [], []>} : vector<256x4xbf16>, vector<4x4xbf16>, vector<256x4xf32> -> vector<256x4xf32>
    %181 = arith.addf %177, %180 : vector<256x4xf32>
    %c3_105 = arith.constant 3 : index
    %c0_106 = arith.constant 0 : index
    %c0_107 = arith.constant 0 : index
    %182 = vector.load %arg6[%c3_105, %c0_106, %c0_107] : memref<9x4x4xbf16, #tpu.memory_space<vmem>>, vector<1x4x4xbf16>
    %183 = vector.shape_cast %182 : vector<1x4x4xbf16> to vector<4x4xbf16>
    %cst_108 = arith.constant dense<0.000000e+00> : vector<256x4xf32>
    %184 = tpu.matmul %151, %183, %cst_108 {dimension_numbers = #tpu.dot_dimension_numbers<[1], [0], [0], [1], [0, 0, 1, 1], [], []>} : vector<256x4xbf16>, vector<4x4xbf16>, vector<256x4xf32> -> vector<256x4xf32>
    %185 = arith.addf %181, %184 : vector<256x4xf32>
    %c4_109 = arith.constant 4 : index
    %c0_110 = arith.constant 0 : index
    %c0_111 = arith.constant 0 : index
    %186 = vector.load %arg6[%c4_109, %c0_110, %c0_111] : memref<9x4x4xbf16, #tpu.memory_space<vmem>>, vector<1x4x4xbf16>
    %187 = vector.shape_cast %186 : vector<1x4x4xbf16> to vector<4x4xbf16>
    %cst_112 = arith.constant dense<0.000000e+00> : vector<256x4xf32>
    %188 = tpu.matmul %131, %187, %cst_112 {dimension_numbers = #tpu.dot_dimension_numbers<[1], [0], [0], [1], [0, 0, 1, 1], [], []>} : vector<256x4xbf16>, vector<4x4xbf16>, vector<256x4xf32> -> vector<256x4xf32>
    %189 = arith.addf %185, %188 : vector<256x4xf32>
    %c5_113 = arith.constant 5 : index
    %c0_114 = arith.constant 0 : index
    %c0_115 = arith.constant 0 : index
    %190 = vector.load %arg6[%c5_113, %c0_114, %c0_115] : memref<9x4x4xbf16, #tpu.memory_space<vmem>>, vector<1x4x4xbf16>
    %191 = vector.shape_cast %190 : vector<1x4x4xbf16> to vector<4x4xbf16>
    %cst_116 = arith.constant dense<0.000000e+00> : vector<256x4xf32>
    %192 = tpu.matmul %157, %191, %cst_116 {dimension_numbers = #tpu.dot_dimension_numbers<[1], [0], [0], [1], [0, 0, 1, 1], [], []>} : vector<256x4xbf16>, vector<4x4xbf16>, vector<256x4xf32> -> vector<256x4xf32>
    %193 = arith.addf %189, %192 : vector<256x4xf32>
    %c6_117 = arith.constant 6 : index
    %c0_118 = arith.constant 0 : index
    %c0_119 = arith.constant 0 : index
    %194 = vector.load %arg6[%c6_117, %c0_118, %c0_119] : memref<9x4x4xbf16, #tpu.memory_space<vmem>>, vector<1x4x4xbf16>
    %195 = vector.shape_cast %194 : vector<1x4x4xbf16> to vector<4x4xbf16>
    %cst_120 = arith.constant dense<0.000000e+00> : vector<256x4xf32>
    %196 = tpu.matmul %163, %195, %cst_120 {dimension_numbers = #tpu.dot_dimension_numbers<[1], [0], [0], [1], [0, 0, 1, 1], [], []>} : vector<256x4xbf16>, vector<4x4xbf16>, vector<256x4xf32> -> vector<256x4xf32>
    %197 = arith.addf %193, %196 : vector<256x4xf32>
    %c7_121 = arith.constant 7 : index
    %c0_122 = arith.constant 0 : index
    %c0_123 = arith.constant 0 : index
    %198 = vector.load %arg6[%c7_121, %c0_122, %c0_123] : memref<9x4x4xbf16, #tpu.memory_space<vmem>>, vector<1x4x4xbf16>
    %199 = vector.shape_cast %198 : vector<1x4x4xbf16> to vector<4x4xbf16>
    %cst_124 = arith.constant dense<0.000000e+00> : vector<256x4xf32>
    %200 = tpu.matmul %164, %199, %cst_124 {dimension_numbers = #tpu.dot_dimension_numbers<[1], [0], [0], [1], [0, 0, 1, 1], [], []>} : vector<256x4xbf16>, vector<4x4xbf16>, vector<256x4xf32> -> vector<256x4xf32>
    %201 = arith.addf %197, %200 : vector<256x4xf32>
    %c8_125 = arith.constant 8 : index
    %c0_126 = arith.constant 0 : index
    %c0_127 = arith.constant 0 : index
    %202 = vector.load %arg6[%c8_125, %c0_126, %c0_127] : memref<9x4x4xbf16, #tpu.memory_space<vmem>>, vector<1x4x4xbf16>
    %203 = vector.shape_cast %202 : vector<1x4x4xbf16> to vector<4x4xbf16>
    %cst_128 = arith.constant dense<0.000000e+00> : vector<256x4xf32>
    %204 = tpu.matmul %170, %203, %cst_128 {dimension_numbers = #tpu.dot_dimension_numbers<[1], [0], [0], [1], [0, 0, 1, 1], [], []>} : vector<256x4xbf16>, vector<4x4xbf16>, vector<256x4xf32> -> vector<256x4xf32>
    %205 = arith.addf %201, %204 : vector<256x4xf32>
    %c0_129 = arith.constant 0 : index
    %c0_130 = arith.constant 0 : index
    %206 = vector.load %arg7[%c0_129, %c0_130] : memref<1x4xf32, #tpu.memory_space<vmem>>, vector<1x4xf32>
    %207 = vector.broadcast %206 : vector<1x4xf32> to vector<256x4xf32>
    %208 = arith.addf %205, %207 : vector<256x4xf32>
    %cst_131 = arith.constant 0.000000e+00 : f32
    %209 = vector.broadcast %cst_131 : f32 to vector<256x4xf32>
    %210 = arith.subf %209, %208 : vector<256x4xf32>
    %211 = math.exp %210 : vector<256x4xf32>
    %cst_132 = arith.constant 1.000000e+00 : f32
    %212 = vector.broadcast %cst_132 : f32 to vector<256x4xf32>
    %213 = arith.addf %212, %211 : vector<256x4xf32>
    %214 = tpu.reciprocal %213 {approx = true} : vector<256x4xf32> -> vector<256x4xf32>
    %215 = arith.mulf %208, %214 : vector<256x4xf32>
    %216 = arith.truncf %215 : vector<256x4xf32> to vector<256x4xbf16>
    %c0_133 = arith.constant 0 : index
    %c0_134 = arith.constant 0 : index
    %217 = vector.load %arg10[%c0_133, %c0_134] : memref<4x8xbf16, #tpu.memory_space<vmem>>, vector<4x8xbf16>
    %cst_135 = arith.constant dense<0.000000e+00> : vector<256x8xf32>
    %218 = tpu.matmul %216, %217, %cst_135 {dimension_numbers = #tpu.dot_dimension_numbers<[1], [0], [0], [1], [0, 0, 1, 1], [], []>} : vector<256x4xbf16>, vector<4x8xbf16>, vector<256x8xf32> -> vector<256x8xf32>
    %219 = arith.addf %46, %218 : vector<256x8xf32>
    %c0_136 = arith.constant 0 : index
    %c0_137 = arith.constant 0 : index
    %220 = vector.load %arg11[%c0_136, %c0_137] : memref<1x8xf32, #tpu.memory_space<vmem>>, vector<1x8xf32>
    %221 = vector.broadcast %220 : vector<1x8xf32> to vector<256x8xf32>
    %222 = arith.addf %219, %221 : vector<256x8xf32>
    %cst_138 = arith.constant 0.000000e+00 : f32
    %223 = vector.broadcast %cst_138 : f32 to vector<256x8xf32>
    %224 = arith.subf %223, %222 : vector<256x8xf32>
    %225 = math.exp %224 : vector<256x8xf32>
    %cst_139 = arith.constant 1.000000e+00 : f32
    %226 = vector.broadcast %cst_139 : f32 to vector<256x8xf32>
    %227 = arith.addf %226, %225 : vector<256x8xf32>
    %228 = tpu.reciprocal %227 {approx = true} : vector<256x8xf32> -> vector<256x8xf32>
    %229 = arith.mulf %222, %228 : vector<256x8xf32>
    %c0_140 = arith.constant 0 : index
    %c0_141 = arith.constant 0 : index
    %c0_142 = arith.constant 0 : index
    %230 = vector.load %arg12[%c0_140, %c0_141, %c0_142] : memref<1x256x8xf32, #tpu.memory_space<vmem>>, vector<1x256x8xf32>
    %231 = vector.shape_cast %230 : vector<1x256x8xf32> to vector<256x8xf32>
    %232 = vector.shape_cast %229 : vector<256x8xf32> to vector<1x256x8xf32>
    tpu.vector_store %arg12[%c0_140, %c0_141, %c0_142], %232 {strides = array<i32>} : memref<1x256x8xf32, #tpu.memory_space<vmem>>, vector<1x256x8xf32>,
    return
  }
  func.func @transform_0(%arg0: i32) -> (i32, i32, i32) {
    %c0_i32 = arith.constant 0 : i32
    %c0_i32_0 = arith.constant 0 : i32
    %c0_i32_1 = arith.constant 0 : i32
    return %arg0, %c0_i32, %c0_i32_0 : i32, i32, i32
  }
  func.func @transform_1(%arg0: i32) -> (i32, i32) {
    %c0_i32 = arith.constant 0 : i32
    %c0_i32_0 = arith.constant 0 : i32
    %c0_i32_1 = arith.constant 0 : i32
    return %c0_i32, %c0_i32_0 : i32, i32
  }
  func.func @transform_2(%arg0: i32) -> (i32, i32) {
    %c0_i32 = arith.constant 0 : i32
    %c0_i32_0 = arith.constant 0 : i32
    %c0_i32_1 = arith.constant 0 : i32
    return %c0_i32, %c0_i32_0 : i32, i32
  }
  func.func @transform_3(%arg0: i32) -> (i32, i32, i32) {
    %c0_i32 = arith.constant 0 : i32
    %c0_i32_0 = arith.constant 0 : i32
    %c0_i32_1 = arith.constant 0 : i32
    %c0_i32_2 = arith.constant 0 : i32
    return %c0_i32, %c0_i32_0, %c0_i32_1 : i32, i32, i32
  }
  func.func @transform_4(%arg0: i32) -> (i32, i32) {
    %c0_i32 = arith.constant 0 : i32
    %c0_i32_0 = arith.constant 0 : i32
    %c0_i32_1 = arith.constant 0 : i32
    return %c0_i32, %c0_i32_0 : i32, i32
  }
  func.func @transform_5(%arg0: i32) -> (i32, i32, i32) {
    %c0_i32 = arith.constant 0 : i32
    %c0_i32_0 = arith.constant 0 : i32
    %c0_i32_1 = arith.constant 0 : i32
    %c0_i32_2 = arith.constant 0 : i32
    return %c0_i32, %c0_i32_0, %c0_i32_1 : i32, i32, i32
  }
  func.func @transform_6(%arg0: i32) -> (i32, i32) {
    %c0_i32 = arith.constant 0 : i32
    %c0_i32_0 = arith.constant 0 : i32
    %c0_i32_1 = arith.constant 0 : i32
    return %c0_i32, %c0_i32_0 : i32, i32
  }
  func.func @transform_7(%arg0: i32) -> (i32, i32) {
    %c0_i32 = arith.constant 0 : i32
    %c0_i32_0 = arith.constant 0 : i32
    %c0_i32_1 = arith.constant 0 : i32
    return %c0_i32, %c0_i32_0 : i32, i32
  }
  func.func @transform_8(%arg0: i32) -> (i32, i32) {
    %c0_i32 = arith.constant 0 : i32
    %c0_i32_0 = arith.constant 0 : i32
    %c0_i32_1 = arith.constant 0 : i32
    return %c0_i32, %c0_i32_0 : i32, i32
  }
  func.func @transform_9(%arg0: i32) -> (i32, i32) {
    %c0_i32 = arith.constant 0 : i32
    %c0_i32_0 = arith.constant 0 : i32
    %c0_i32_1 = arith.constant 0 : i32
    return %c0_i32, %c0_i32_0 : i32, i32
  }
  func.func @transform_10(%arg0: i32) -> (i32, i32) {
    %c0_i32 = arith.constant 0 : i32
    %c0_i32_0 = arith.constant 0 : i32
    %c0_i32_1 = arith.constant 0 : i32
    return %c0_i32, %c0_i32_0 : i32, i32
  }
  func.func @transform_11(%arg0: i32) -> (i32, i32, i32) {
    %c0_i32 = arith.constant 0 : i32
    %c0_i32_0 = arith.constant 0 : i32
    %c0_i32_1 = arith.constant 0 : i32
    return %arg0, %c0_i32, %c0_i32_0 : i32, i32, i32
  }
}

</mosaic_0001>

<bundles_post_ra>
// kernel: tpu_custom_call.1
= control target key start
LH: loop header
LB: loop body
LE: loop exit
PB: predicated region body
PF: predicated region fallthrough
CT: control target
= control target key end

     0   :  { %s12435_s17 = smov 0   ;;  %s15573_s0 = inlined_call_operand.vmem [shape: bf16[2,256,4], index: 0, kind: input, shape index: {}]   ;;  %s15574_s1 = inlined_call_operand.vmem [shape: bf16[4,8], index: 1, kind: input, shape index: {}]   ;;  %s15575_s2 = inlined_call_operand.vmem [shape: f32[1,8], index: 2, kind: input, shape index: {}]   ;;  %s15576_s3 = inlined_call_operand.vmem [shape: bf16[9,4,4], index: 3, kind: input, shape index: {}]   ;;  %s15577_s4 = inlined_call_operand.vmem [shape: f32[1,4], index: 4, kind: input, shape index: {}]   ;;  %s15578_s5 = inlined_call_operand.vmem [shape: bf16[9,4,4], index: 5, kind: input, shape index: {}]   ;;  %s15579_s6 = inlined_call_operand.vmem [shape: f32[1,4], index: 6, kind: input, shape index: {}]   ;;  %s15580_s7 = inlined_call_operand.vmem [shape: bf16[4,8], index: 7, kind: input, shape index: {}]   ;;  %s15581_s8 = inlined_call_operand.vmem [shape: bf16[4,8], index: 8, kind: input, shape index: {}]   ;;  %s15582_s9 = inlined_call_operand.vmem [shape: bf16[4,8], index: 9, kind: input, shape index: {}]   ;;  %s15583_s10 = inlined_call_operand.vmem [shape: f32[1,8], index: 10, kind: input, shape index: {}]   ;;  %s15584_s11 = inlined_call_operand.vmem [shape: f32[2,256,8], index: 11, kind: output, shape index: {}]  }
   0x1 LB: > { %s9641_s18 = sadd.s32 4294967295, %s12370_s17   ;;  %p9645_p0 = scmp.ge.s32.totalorder %s12370_s17, 1  ;;  %s12370_s17 = sphi %s12435_s17, %s21_s17  }
   0x2   : > { %p337_p1 = scmp.lt.s32.totalorder %s12370_s17, 3 }
   0x4   : > { %p338_p2 = pnand %p9645_p0, %p337_p1 }
   0x6   : > { %341 = sbr.rel (%p338_p2) target bundleno = 2298 (0x8fa), region = 64 }
   0xd   : > { %v427_v0 = vld [vmem:[%s15574_s1] sm:$0x3]  ;;  %vm563_vm0 = vcmask 1041408   ;;  %p377_p3 = scmp.lt.s32.totalorder %s9641_s18, 1  ;;  %vm390_vm1 = vcmask 31744   ;;  %s12373_s14 = smov 124  }
   0xe   : > { %11772 = vmatprep.subr.msk.bf16.mxu0 %vm563_vm0, %v427_v0  ;;  %v565_v1 = vsel %vm563_vm0, %v427_v0, 0  ;;  %v1417_v18 = vld [vmem:[%s15580_s7] sm:$0x3]  ;;  %vm12374_vm4 = vmmov 1  }
   0xf   : > { %10449 = vmatpush3.bf16.msra.mxu0 %v565_v1  ;;  %s16039_s18 = smov (!%p377_p3, %s9641_s18), 1  ;;  %11774 = vmatprep.subr.msk.bf16.mxu1 %vm563_vm0, %v1417_v18  ;;  %v1728_v19 = vsel %vm563_vm0, %v1417_v18, 0  ;;  %v1418_v20 = vld [vmem:[%s15581_s8] sm:$0x3]  ;;  %vm2005_vm5 = vmpackc.low %vm12374_vm4, %vm12374_vm4 }
  0x10   : > { %s10072_s21 = sshll.u32 %s16039_s18, 7  ;;  %10517 = vmatpush3.bf16.msra.mxu1 %v1728_v19  ;;  %11773 = vmatprep.subr.msk.bf16.mxu0 %vm563_vm0, %v1418_v20  ;;  %v1516_v21 = vsel %vm563_vm0, %v1418_v20, 0  ;;  %v12501_v22 = vld [vmem:[%s15575_s2] ss:$0 sm:$0xff]  ;;  %v15585_v19 = vmov 0   ;;  %s10073_s25 = sshll.u32 %s16039_s18, 8 }
  0x11   : > { %s12454_s24 = scalar_lea.vmem %s15573_s0, %s10072_s21  ;;  %392 = vst.msk [vmem:[#allocation2 + $0x8] sm:$0xff] %vm390_vm1, %v15585_v19  ;;  %391 = vst.msk [vmem:[#allocation2] sm:$0xff] %vm390_vm1, %v15585_v19  ;;  %s15390_s27 = scalar_lea.vmem %s15584_s11, %s10073_s25 }
  0x12   : > { %v11805_v2 = vld [vmem:[%s12454_s24] sm:$0xff]   ;;  %v11806_v3 = vld [vmem:[%s12454_s24 + $0x8] sm:$0xff]   ;;  %v11807_v4 = vld [vmem:[%s12454_s24 + $0x10] sm:$0xff]   ;;  %393 = vst.msk [vmem:[#allocation2 + $0x90] sm:$0xff] %vm390_vm1, %v15585_v19 }
  0x13   : > { %10450 = vmatprep.mubr.msk.bf16.mxu0 %vm390_vm1, %v11805_v2  ;;  %v11808_v5 = vld [vmem:[%s12454_s24 + $0x18] sm:$0xff]   ;;  %v11809_v6 = vld [vmem:[%s12454_s24 + $0x20] sm:$0xff]   ;;  %v11810_v7 = vld [vmem:[%s12454_s24 + $0x28] sm:$0xff]   ;;  %394 = vst.msk [vmem:[#allocation2 + $0x98] sm:$0xff] %vm390_vm1, %v15585_v19 }
  0x14   : > { %10451 = vmatmul.mubr.msk.bf16.vlgmr.msra.gmra.mrb[0].mxu0 %vm390_vm1, %v11806_v3  ;;  %v11811_v8 = vld [vmem:[%s12454_s24 + $0x30] sm:$0xff]   ;;  %v11812_v9 = vld [vmem:[%s12454_s24 + $0x38] sm:$0xff]   ;;  %v11813_v10 = vld [vmem:[%s12454_s24 + $0x40] sm:$0xff]  }
  0x15   : > { %10454 = vmatprep.mubr.msk.bf16.mxu0 %vm390_vm1, %v11807_v4  ;;  %v11814_v11 = vld [vmem:[%s12454_s24 + $0x48] sm:$0xff]   ;;  %v11815_v12 = vld [vmem:[%s12454_s24 + $0x50] sm:$0xff]   ;;  %v11816_v13 = vld [vmem:[%s12454_s24 + $0x58] sm:$0xff]   ;;  %10483 = vmatpush3.bf16.msra.mxu0 %v1516_v21 }
  0x16   : > { %v11817_v14 = vld [vmem:[%s12454_s24 + $0x60] sm:$0xff]   ;;  %v11818_v15 = vld [vmem:[%s12454_s24 + $0x68] sm:$0xff]   ;;  %v11819_v16 = vld [vmem:[%s12454_s24 + $0x70] sm:$0xff]  }
  0x17   : > { %v11820_v17 = vld [vmem:[%s12454_s24 + $0x78] sm:$0xff]  }
  0x1c   : > { %10455 = vmatmul.mubr.msk.bf16.gmra.mrb[4].mxu0 %vm390_vm1, %v11808_v5 }
  0x1d   : > { %10458 = vmatprep.mubr.msk.bf16.mxu0 %vm390_vm1, %v11809_v6 }
  0x24   : > { %10459 = vmatmul.mubr.msk.bf16.gmra.mrb[8].mxu0 %vm390_vm1, %v11810_v7 }
  0x25   : > { %10462 = vmatprep.mubr.msk.bf16.mxu0 %vm390_vm1, %v11811_v8 }
  0x2c   : > { %10463 = vmatmul.mubr.msk.bf16.gmra.mrb[12].mxu0 %vm390_vm1, %v11812_v9 }
  0x2d   : > { %10466 = vmatprep.mubr.msk.bf16.mxu0 %vm390_vm1, %v11813_v10 }
  0x34   : > { %10467 = vmatmul.mubr.msk.bf16.gmra.mrb[16].mxu0 %vm390_vm1, %v11814_v11 }
  0x35   : > { %10470 = vmatprep.mubr.msk.bf16.mxu0 %vm390_vm1, %v11815_v12 }
  0x3c   : > { %10471 = vmatmul.mubr.msk.bf16.gmra.mrb[20].mxu0 %vm390_vm1, %v11816_v13 }
  0x3d   : > { %10474 = vmatprep.mubr.msk.bf16.mxu0 %vm390_vm1, %v11817_v14 }
  0x44   : > { %10475 = vmatmul.mubr.msk.bf16.gmra.mrb[24].mxu0 %vm390_vm1, %v11818_v15 }
  0x45   : > { %10478 = vmatprep.mubr.msk.bf16.mxu0 %vm390_vm1, %v11819_v16 }
  0x4c   : > { %10479 = vmatmul.mubr.msk.bf16.gmra.mrb[28].mxu0 %vm390_vm1, %v11820_v17 }
  0xe7   : > { %v10452_v23 = vpop.f32.mrb[0].mxu0 }
  0xe8   : > { %v12504_v24 = vadd.f32 %v10452_v23, %v12501_v22  ;;  %v601_v25 = vpop.f32.mrb[1].mxu0 }
  0xe9   : > { %v12507_v26 = vadd.f32 %v12501_v22, %v601_v25  ;;  %v10453_v27 = vpop.f32.mrb[2].mxu0 }
  0xea   : > { %v730_v28 = vsub.f32 0.0, %v12504_v24  ;;  %v12511_v29 = vadd.f32 %v10453_v27, %v12501_v22  ;;  %v604_v30 = vpop.f32.mrb[3].mxu0  ;;  %v12568_v27 = vld [vmem:[%s15576_s3 + $0x2] sm:$0x3] }
  0xeb   : > { %v728_v31 = vsub.f32 0.0, %v12507_v26  ;;  %v12515_v32 = vadd.f32 %v12501_v22, %v604_v30  ;;  %11775 = vmatprep.subr.msk.bf16.mxu0 %vm563_vm0, %v12568_v27 }
  0xec   : > { %v764_v33 = vmul.f32 1.442695, %v730_v28  ;;  %v731_v34 = vsub.f32 0.0, %v12511_v29 }
  0xed   : > { %v760_v35 = vmul.f32 1.442695, %v728_v31  ;;  %v729_v36 = vsub.f32 0.0, %v12515_v32 }
  0xee   : > { %11821 = vpow2.f32 %v764_v33  ;;  %v766_v37 = vmul.f32 1.442695, %v731_v34 }
  0xef   : > { %11823 = vpow2.f32 %v760_v35  ;;  %v762_v38 = vmul.f32 1.442695, %v729_v36  ;;  %v10456_v39 = vpop.f32.mrb[4].mxu0 }
  0xf0   : > { %11825 = vpow2.f32 %v766_v37  ;;  %v12520_v40 = vadd.f32 %v10456_v39, %v12501_v22  ;;  %v617_v41 = vpop.f32.mrb[5].mxu0 }
  0xf1   : > { %11827 = vpow2.f32 %v762_v38  ;;  %v12523_v42 = vadd.f32 %v12501_v22, %v617_v41  ;;  %v10457_v43 = vpop.f32.mrb[6].mxu0 }
  0xf2   : > { %v734_v44 = vsub.f32 0.0, %v12520_v40  ;;  %v12527_v45 = vadd.f32 %v10457_v43, %v12501_v22  ;;  %v620_v46 = vpop.f32.mrb[7].mxu0 }
  0xf3   : > { %v732_v47 = vsub.f32 0.0, %v12523_v42  ;;  %v12531_v48 = vadd.f32 %v12501_v22, %v620_v46 }
  0xf4   : > { %v772_v49 = vmul.f32 1.442695, %v734_v44  ;;  %v735_v50 = vsub.f32 0.0, %v12527_v45 }
  0xf5   : > { %v768_v51 = vmul.f32 1.442695, %v732_v47  ;;  %v733_v52 = vsub.f32 0.0, %v12531_v48 }
  0xf6   : > { %11829 = vpow2.f32 %v772_v49  ;;  %v774_v53 = vmul.f32 1.442695, %v735_v50 }
  0xf7   : > { %11831 = vpow2.f32 %v768_v51  ;;  %v770_v54 = vmul.f32 1.442695, %v733_v52  ;;  %v10460_v55 = vpop.f32.mrb[8].mxu0 }
  0xf8   : > { %v11822_v56 = vpop.eup %11821  ;;  %11833 = vpow2.f32 %v774_v53  ;;  %v12536_v57 = vadd.f32 %v10460_v55, %v12501_v22  ;;  %v633_v58 = vpop.f32.mrb[9].mxu0 }
  0xf9   : > { %v11824_v59 = vpop.eup %11823  ;;  %v826_v60 = vadd.f32 1.0, %v11822_v56  ;;  %11835 = vpow2.f32 %v770_v54  ;;  %v12539_v61 = vadd.f32 %v12501_v22, %v633_v58  ;;  %v10461_v62 = vpop.f32.mrb[10].mxu0 }
  0xfa   : > { %v11826_v63 = vpop.eup %11825  ;;  %v824_v0 = vadd.f32 1.0, %v11824_v59  ;;  %v738_v1 = vsub.f32 0.0, %v12536_v57  ;;  %v12543_v2 = vadd.f32 %v10461_v62, %v12501_v22  ;;  %v636_v3 = vpop.f32.mrb[11].mxu0 }
  0xfb   : > { %v11828_v4 = vpop.eup %11827  ;;  %11837 = vrcp.f32 %v826_v60  ;;  %v827_v5 = vadd.f32 1.0, %v11826_v63  ;;  %v736_v6 = vsub.f32 0.0, %v12539_v61  ;;  %v12547_v7 = vadd.f32 %v12501_v22, %v636_v3 }
  0xfc   : > { %11839 = vrcp.f32 %v824_v0  ;;  %v825_v8 = vadd.f32 1.0, %v11828_v4  ;;  %v780_v9 = vmul.f32 1.442695, %v738_v1  ;;  %v739_v10 = vsub.f32 0.0, %v12543_v2 }
  0xfd   : > { %11841 = vrcp.f32 %v827_v5  ;;  %v776_v11 = vmul.f32 1.442695, %v736_v6  ;;  %v737_v12 = vsub.f32 0.0, %v12547_v7 }
  0xfe   : > { %11843 = vrcp.f32 %v825_v8  ;;  %v782_v13 = vmul.f32 1.442695, %v739_v10 }
  0xff   : > { %11845 = vpow2.f32 %v780_v9  ;;  %v778_v14 = vmul.f32 1.442695, %v737_v12  ;;  %v10464_v15 = vpop.f32.mrb[12].mxu0 }
 0x100   : > { %v11830_v16 = vpop.eup %11829  ;;  %11847 = vpow2.f32 %v776_v11  ;;  %v12552_v17 = vadd.f32 %v10464_v15, %v12501_v22  ;;  %v649_v18 = vpop.f32.mrb[13].mxu0 }
 0x101   : > { %v11832_v20 = vpop.eup %11831  ;;  %v830_v21 = vadd.f32 1.0, %v11830_v16  ;;  %11849 = vpow2.f32 %v782_v13  ;;  %v12563_v23 = vadd.f32 %v12501_v22, %v649_v18  ;;  %v10465_v25 = vpop.f32.mrb[14].mxu0 }
 0x102   : > { %v11834_v28 = vpop.eup %11833  ;;  %v828_v30 = vadd.f32 1.0, %v11832_v20  ;;  %11851 = vpow2.f32 %v778_v14  ;;  %v742_v31 = vsub.f32 0.0, %v12552_v17  ;;  %v12572_v33 = vadd.f32 %v10465_v25, %v12501_v22  ;;  %v652_v34 = vpop.f32.mrb[15].mxu0 }
 0x103   : > { %v11836_v35 = vpop.eup %11835  ;;  %11853 = vrcp.f32 %v830_v21  ;;  %v831_v36 = vadd.f32 1.0, %v11834_v28  ;;  %v740_v37 = vsub.f32 0.0, %v12563_v23  ;;  %v12578_v38 = vadd.f32 %v12501_v22, %v652_v34 }
 0x104   : > { %11855 = vrcp.f32 %v828_v30  ;;  %v829_v39 = vadd.f32 1.0, %v11836_v35  ;;  %v788_v41 = vmul.f32 1.442695, %v742_v31  ;;  %v743_v43 = vsub.f32 0.0, %v12572_v33 }
 0x105   : > { %v11838_v44 = vpop.eup %11837  ;;  %11857 = vrcp.f32 %v831_v36  ;;  %v784_v46 = vmul.f32 1.442695, %v740_v37  ;;  %v741_v47 = vsub.f32 0.0, %v12578_v38 }
 0x106   : > { %v11840_v49 = vpop.eup %11839  ;;  %11859 = vrcp.f32 %v829_v39  ;;  %v790_v50 = vmul.f32 1.442695, %v743_v43  ;;  %v890_v55 = vmul.f32 %v11838_v44, %v12504_v24 }
 0x107   : > { %v11842_v51 = vpop.eup %11841  ;;  %11861 = vpow2.f32 %v788_v41  ;;  %v786_v52 = vmul.f32 1.442695, %v741_v47  ;;  %v10468_v53 = vpop.f32.mrb[16].mxu0  ;;  %v888_v62 = vmul.f32 %v11840_v49, %v12507_v26 }
 0x108   : > { %v11844_v54 = vpop.eup %11843  ;;  %v891_v56 = vmul.f32 %v11842_v51, %v12511_v29  ;;  %11863 = vpow2.f32 %v784_v46  ;;  %v12585_v58 = vadd.f32 %v10468_v53, %v12501_v22  ;;  %v665_v59 = vpop.f32.mrb[17].mxu0 }
 0x109   : > { %v11846_v60 = vpop.eup %11845  ;;  %v889_v63 = vmul.f32 %v11844_v54, %v12515_v32  ;;  %11865 = vpow2.f32 %v790_v50  ;;  %v12590_v0 = vadd.f32 %v12501_v22, %v665_v59  ;;  %v10469_v1 = vpop.f32.mrb[18].mxu0 }
 0x10a   : > { %v11848_v3 = vpop.eup %11847  ;;  %v921_v4 = vpack.c.bf16 %v891_v56, %v890_v55  ;;  %v834_v24 = vadd.f32 1.0, %v11846_v60  ;;  %11867 = vpow2.f32 %v786_v52  ;;  %v746_v29 = vsub.f32 0.0, %v12585_v58  ;;  %v668_v5 = vpop.f32.mrb[19].mxu0 }
 0x10b   : > { %v11850_v6 = vpop.eup %11849  ;;  %v832_v8 = vadd.f32 1.0, %v11848_v3  ;;  %v744_v9 = vsub.f32 0.0, %v12590_v0  ;;  %v12595_v26 = vadd.f32 %v10469_v1, %v12501_v22  ;;  %v12598_v32 = vadd.f32 %v12501_v22, %v668_v5 }
 0x10c   : > { %v11852_v10 = vpop.eup %11851  ;;  %11869 = vrcp.f32 %v834_v24  ;;  %v835_v11 = vadd.f32 1.0, %v11850_v6  ;;  %v796_v12 = vmul.f32 1.442695, %v746_v29  ;;  %v920_v13 = vpack.c.bf16 %v889_v63, %v888_v62 }
 0x10d   : > { %v11854_v14 = vpop.eup %11853  ;;  %11871 = vrcp.f32 %v832_v8  ;;  %v833_v15 = vadd.f32 1.0, %v11852_v10  ;;  %v792_v16 = vmul.f32 1.442695, %v744_v9  ;;  %v747_v18 = vsub.f32 0.0, %v12595_v26 }
 0x10e   : > { %v11856_v20 = vpop.eup %11855  ;;  %11873 = vrcp.f32 %v835_v11  ;;  %v745_v21 = vsub.f32 0.0, %v12598_v32  ;;  %1435 = vrot.lane.b32.xlu0 %v920_v13, %s12373_s14  ;;  %10518 = vmatprep.mubr.msk.bf16.mxu1 %vm390_vm1, %v920_v13  ;;  %v894_v28 = vmul.f32 %v11854_v14, %v12520_v40 }
 0x10f   : > { %v11858_v25 = vpop.eup %11857  ;;  %11875 = vrcp.f32 %v833_v15  ;;  %v798_v30 = vmul.f32 1.442695, %v747_v18  ;;  %10519 = vmatmul.mubr.msk.bf16.vlgmr.msra.gmra.mrb[0].mxu1 %vm390_vm1, %v921_v4  ;;  %v10472_v31 = vpop.f32.mrb[20].mxu0  ;;  %v892_v43 = vmul.f32 %v11856_v20, %v12523_v42 }
 0x110   : > { %v11860_v34 = vpop.eup %11859  ;;  %v895_v35 = vmul.f32 %v11858_v25, %v12527_v45  ;;  %11877 = vpow2.f32 %v796_v12  ;;  %v794_v36 = vmul.f32 1.442695, %v745_v21  ;;  %v12608_v37 = vadd.f32 %v10472_v31, %v12501_v22  ;;  %v681_v39 = vpop.f32.mrb[21].mxu0 }
 0x111   : > { %v11862_v41 = vpop.eup %11861  ;;  %v893_v44 = vmul.f32 %v11860_v34, %v12531_v48  ;;  %11879 = vpow2.f32 %v792_v16  ;;  %v12613_v40 = vadd.f32 %v12501_v22, %v681_v39  ;;  %v10473_v46 = vpop.f32.mrb[22].mxu0 }
 0x112   : > { %v11864_v47 = vpop.eup %11863  ;;  %v923_v49 = vpack.c.bf16 %v895_v35, %v894_v28  ;;  %v838_v50 = vadd.f32 1.0, %v11862_v41  ;;  %11881 = vpow2.f32 %v798_v30  ;;  %v750_v45 = vsub.f32 0.0, %v12608_v37  ;;  %1437 = vrot.lane.b32.xlu0 %v921_v4, %s12373_s14  ;;  %v684_v51 = vpop.f32.mrb[23].mxu0 }
 0x113   : > { %v11866_v52 = vpop.eup %11865  ;;  %v836_v53 = vadd.f32 1.0, %v11864_v47  ;;  %11883 = vpow2.f32 %v794_v36  ;;  %v748_v42 = vsub.f32 0.0, %v12613_v40  ;;  %v12619_v48 = vadd.f32 %v10473_v46, %v12501_v22 }
 0x114   : > { %v11868_v54 = vpop.eup %11867  ;;  %11885 = vrcp.f32 %v838_v50  ;;  %v839_v55 = vadd.f32 1.0, %v11866_v52  ;;  %v804_v56 = vmul.f32 1.442695, %v750_v45  ;;  %v12622_v59 = vadd.f32 %v12501_v22, %v684_v51 }
 0x115   : > { %11887 = vrcp.f32 %v836_v53  ;;  %v837_v60 = vadd.f32 1.0, %v11868_v54  ;;  %v800_v62 = vmul.f32 1.442695, %v748_v42  ;;  %v751_v63 = vsub.f32 0.0, %v12619_v48 }
 0x116   : > { %v11870_v1 = vpop.eup %11869  ;;  %11889 = vrcp.f32 %v839_v55  ;;  %v749_v3 = vsub.f32 0.0, %v12622_v59  ;;  %v922_v4 = vpack.c.bf16 %v893_v44, %v892_v43 }
 0x117   : > { %v11872_v24 = vpop.eup %11871  ;;  %11891 = vrcp.f32 %v837_v60  ;;  %v806_v29 = vmul.f32 1.442695, %v751_v63  ;;  %v10476_v5 = vpop.f32.mrb[24].mxu0  ;;  %v898_v12 = vmul.f32 %v11870_v1, %v12536_v57 }
 0x118   : > { %v11874_v6 = vpop.eup %11873  ;;  %11893 = vpow2.f32 %v804_v56  ;;  %v802_v8 = vmul.f32 1.442695, %v749_v3  ;;  %1439 = vrot.lane.b32.xlu1 %v922_v4, %s12373_s14  ;;  %10522 = vmatprep.mubr.msk.bf16.mxu1 %vm390_vm1, %v922_v4  ;;  %v12629_v9 = vadd.f32 %v10476_v5, %v12501_v22  ;;  %v697_v10 = vpop.f32.mrb[25].mxu0  ;;  %v896_v34 = vmul.f32 %v11872_v24, %v12539_v61 }
 0x119   : > { %v11876_v11 = vpop.eup %11875  ;;  %v899_v13 = vmul.f32 %v11874_v6, %v12543_v2  ;;  %11895 = vpow2.f32 %v800_v62  ;;  %10523 = vmatmul.mubr.msk.bf16.gmra.mrb[4].mxu1 %vm390_vm1, %v923_v49  ;;  %v12635_v14 = vadd.f32 %v12501_v22, %v697_v10  ;;  %v10477_v15 = vpop.f32.mrb[26].mxu0 }
 0x11a   : > { %v11878_v16 = vpop.eup %11877  ;;  %v897_v18 = vmul.f32 %v11876_v11, %v12547_v7  ;;  %11897 = vpow2.f32 %v806_v29  ;;  %v754_v20 = vsub.f32 0.0, %v12629_v9  ;;  %v12640_v21 = vadd.f32 %v10477_v15, %v12501_v22  ;;  %v700_v25 = vpop.f32.mrb[27].mxu0 }
 0x11b   : > { %v11880_v57 = vpop.eup %11879  ;;  %v842_v28 = vadd.f32 1.0, %v11878_v16  ;;  %11899 = vpow2.f32 %v802_v8  ;;  %v752_v2 = vsub.f32 0.0, %v12635_v14  ;;  %v12644_v30 = vadd.f32 %v12501_v22, %v700_v25 }
 0x11c   : > { %v11882_v31 = vpop.eup %11881  ;;  %v840_v35 = vadd.f32 1.0, %v11880_v57  ;;  %v755_v7 = vsub.f32 0.0, %v12640_v21  ;;  %1441 = vrot.lane.b32.xlu1 %v923_v49, %s12373_s14  ;;  %v925_v36 = vpack.c.bf16 %v899_v13, %v898_v12  ;;  %v812_v43 = vmul.f32 1.442695, %v754_v20 }
 0x11d   : > { %v11884_v39 = vpop.eup %11883  ;;  %11901 = vrcp.f32 %v842_v28  ;;  %v843_v41 = vadd.f32 1.0, %v11882_v31  ;;  %v753_v44 = vsub.f32 0.0, %v12644_v30  ;;  %v808_v50 = vmul.f32 1.442695, %v752_v2 }
 0x11e   : > { %v11886_v46 = vpop.eup %11885  ;;  %11903 = vrcp.f32 %v840_v35  ;;  %v841_v47 = vadd.f32 1.0, %v11884_v39  ;;  %v924_v45 = vpack.c.bf16 %v897_v18, %v896_v34  ;;  %v814_v61 = vmul.f32 1.442695, %v755_v7 }
 0x11f   : > { %v11888_v51 = vpop.eup %11887  ;;  %11905 = vrcp.f32 %v843_v41  ;;  %v10480_v52 = vpop.f32.mrb[28].mxu0  ;;  %v810_v42 = vmul.f32 1.442695, %v753_v44  ;;  %v902_v56 = vmul.f32 %v11886_v46, %v12552_v17 }
 0x120   : > { %v11890_v53 = vpop.eup %11889  ;;  %11907 = vrcp.f32 %v841_v47  ;;  %1445 = vrot.lane.b32.xlu1 %v925_v36, %s12373_s14  ;;  %1443 = vrot.lane.b32.xlu0 %v924_v45, %s12373_s14  ;;  %v12653_v49 = vadd.f32 %v10480_v52, %v12501_v22  ;;  %v713_v54 = vpop.f32.mrb[29].mxu0 }
 0x121   : > { %v11892_v55 = vpop.eup %11891  ;;  %v903_v60 = vmul.f32 %v11890_v53, %v12572_v33  ;;  %11909 = vpow2.f32 %v812_v43  ;;  %10526 = vmatprep.mubr.msk.bf16.mxu1 %vm390_vm1, %v924_v45  ;;  %v12659_v62 = vadd.f32 %v12501_v22, %v713_v54  ;;  %v10481_v63 = vpop.f32.mrb[30].mxu0 }
 0x122   : > { %v11894_v1 = vpop.eup %11893  ;;  %v901_v3 = vmul.f32 %v11892_v55, %v12578_v38  ;;  %11911 = vpow2.f32 %v808_v50  ;;  %10527 = vmatmul.mubr.msk.bf16.gmra.mrb[8].mxu1 %vm390_vm1, %v925_v36  ;;  %v758_v4 = vsub.f32 0.0, %v12653_v49  ;;  %v12665_v24 = vadd.f32 %v10481_v63, %v12501_v22  ;;  %v716_v17 = vpop.f32.mrb[31].mxu0 }
 0x123   : > { %v11896_v33 = vpop.eup %11895  ;;  %v846_v29 = vadd.f32 1.0, %v11894_v1  ;;  %11913 = vpow2.f32 %v814_v61  ;;  %v756_v5 = vsub.f32 0.0, %v12659_v62  ;;  %v12669_v6 = vadd.f32 %v12501_v22, %v716_v17 }
 0x124   : > { %v11898_v8 = vpop.eup %11897  ;;  %v900_v38 = vmul.f32 %v11888_v51, %v12563_v23  ;;  %v844_v10 = vadd.f32 1.0, %v11896_v33  ;;  %11915 = vpow2.f32 %v810_v42  ;;  %v759_v11 = vsub.f32 0.0, %v12665_v24 }
 0x125   : > { %v11900_v12 = vpop.eup %11899  ;;  %11917 = vrcp.f32 %v846_v29  ;;  %v847_v13 = vadd.f32 1.0, %v11898_v8  ;;  %v820_v15 = vmul.f32 1.442695, %v758_v4  ;;  %v757_v16 = vsub.f32 0.0, %v12669_v6 }
 0x126   : > { %11919 = vrcp.f32 %v844_v10  ;;  %v845_v18 = vadd.f32 1.0, %v11900_v12  ;;  %v816_v20 = vmul.f32 1.442695, %v756_v5  ;;  %v927_v25 = vpack.c.bf16 %v903_v60, %v902_v56 }
 0x127   : > { %v11902_v57 = vpop.eup %11901  ;;  %11921 = vrcp.f32 %v847_v13  ;;  %v822_v22 = vmul.f32 1.442695, %v759_v11  ;;  %v926_v28 = vpack.c.bf16 %v901_v3, %v900_v38  ;;  %v818_v23 = vmul.f32 1.442695, %v757_v16 }
 0x128   : > { %v11904_v2 = vpop.eup %11903  ;;  %11923 = vrcp.f32 %v845_v18  ;;  %1449 = vrot.lane.b32.xlu1 %v927_v25, %s12373_s14  ;;  %v906_v35 = vmul.f32 %v11902_v57, %v12585_v58 }
 0x129   : > { %v11906_v31 = vpop.eup %11905  ;;  %11925 = vpow2.f32 %v820_v15  ;;  %1447 = vrot.lane.b32.xlu0 %v926_v28, %s12373_s14  ;;  %10530 = vmatprep.mubr.msk.bf16.mxu1 %vm390_vm1, %v926_v28  ;;  %v904_v39 = vmul.f32 %v11904_v2, %v12590_v0 }
 0x12a   : > { %v11908_v34 = vpop.eup %11907  ;;  %v907_v7 = vmul.f32 %v11906_v31, %v12595_v26  ;;  %11927 = vpow2.f32 %v816_v20  ;;  %10531 = vmatmul.mubr.msk.bf16.gmra.mrb[12].mxu1 %vm390_vm1, %v927_v25 }
 0x12b   : > { %v11910_v36 = vpop.eup %11909  ;;  %v905_v41 = vmul.f32 %v11908_v34, %v12598_v32  ;;  %11929 = vpow2.f32 %v822_v22 }
 0x12c   : > { %v11912_v43 = vpop.eup %11911  ;;  %v850_v44 = vadd.f32 1.0, %v11910_v36  ;;  %11931 = vpow2.f32 %v818_v23  ;;  %v929_v46 = vpack.c.bf16 %v907_v7, %v906_v35 }
 0x12d   : > { %v11914_v47 = vpop.eup %11913  ;;  %v848_v50 = vadd.f32 1.0, %v11912_v43  ;;  %v928_v45 = vpack.c.bf16 %v905_v41, %v904_v39 }
 0x12e   : > { %v11916_v51 = vpop.eup %11915  ;;  %11933 = vrcp.f32 %v850_v44  ;;  %v851_v58 = vadd.f32 1.0, %v11914_v47  ;;  %1453 = vrot.lane.b32.xlu1 %v929_v46, %s12373_s14  ;;  %v936_v47 = vlaneseq }
 0x12f   : > { %v11918_v26 = vpop.eup %11917  ;;  %11935 = vrcp.f32 %v848_v50  ;;  %v849_v61 = vadd.f32 1.0, %v11916_v51  ;;  %1451 = vrot.lane.b32.xlu0 %v928_v45, %s12373_s14  ;;  %10534 = vmatprep.mubr.msk.bf16.mxu1 %vm390_vm1, %v928_v45  ;;  %v12822_v51 = vld [vmem:[%s15576_s3 + $0x4] sm:$0x3] }
 0x130   : > { %v11920_v0 = vpop.eup %11919  ;;  %11937 = vrcp.f32 %v851_v58  ;;  %v910_v53 = vmul.f32 %v11918_v26, %v12608_v37  ;;  %v12828_v26 = vshrl.u32 %v936_v47, 7 }
 0x131   : > { %v11922_v32 = vpop.eup %11921  ;;  %11939 = vrcp.f32 %v849_v61  ;;  %v908_v55 = vmul.f32 %v11920_v0, %v12613_v40 }
 0x132   : > { %v11924_v52 = vpop.eup %11923  ;;  %v911_v42 = vmul.f32 %v11922_v32, %v12619_v48  ;;  %10535 = vmatmul.mubr.msk.bf16.gmra.mrb[16].mxu1 %vm390_vm1, %v929_v46  ;;  %v12812_v46 = vld [vmem:[#allocation2 + $0x8] sm:$0xff]  ;;  %v973_v61 = vand.u32 15, %v12828_v26  ;;  %v939_v0 = vadd.s32 16, %v12828_v26 }
 0x133   : > { %v11926_v54 = vpop.eup %11925  ;;  %v909_v56 = vmul.f32 %v11924_v52, %v12622_v59 }
 0x134   : > { %v11928_v60 = vpop.eup %11927  ;;  %v854_v63 = vadd.f32 1.0, %v11926_v54  ;;  %v931_v1 = vpack.c.bf16 %v911_v42, %v910_v53  ;;  %vm1353_vm2 = vcmp.ge.s32.totalorder %v973_v61, 1  ;;  %v938_v53 = vadd.s32 8, %v12828_v26 }
 0x135   : > { %v11930_v3 = vpop.eup %11929  ;;  %v852_v4 = vadd.f32 1.0, %v11928_v60  ;;  %v930_v17 = vpack.c.bf16 %v909_v56, %v908_v55  ;;  %v987_v42 = vand.u32 15, %v939_v0  ;;  %vm2004_vm3 = vmpackc.low %vm1353_vm2, %vm1353_vm2  ;;  %v941_v54 = vadd.s32 32, %v12828_v26 }
 0x136   : > { %v11932_v33 = vpop.eup %11931  ;;  %11941 = vrcp.f32 %v854_v63  ;;  %v855_v29 = vadd.f32 1.0, %v11930_v3  ;;  %1457 = vrot.lane.b32.xlu1 %v931_v1, %s12373_s14  ;;  %v943_v55 = vadd.s32 48, %v12828_v26  ;;  %v980_v56 = vand.u32 15, %v938_v53 }
 0x137   : > { %11943 = vrcp.f32 %v852_v4  ;;  %v853_v37 = vadd.f32 1.0, %v11932_v33  ;;  %1455 = vrot.lane.b32.xlu0 %v930_v17, %s12373_s14  ;;  %10538 = vmatprep.mubr.msk.bf16.mxu1 %vm390_vm1, %v930_v17  ;;  %vm12847_vm6 = vcmp.ge.s32.totalorder %v987_v42, 1  ;;  %v2036_v63 = vsel %vm2004_vm3, 65537, %v15585_v19 }
 0x138   : > { %v11934_v40 = vpop.eup %11933  ;;  %11945 = vrcp.f32 %v855_v29  ;;  %v1001_v3 = vand.u32 15, %v941_v54  ;;  %v1015_v33 = vand.u32 15, %v943_v55  ;;  %vm12861_vm7 = vcmp.le.s32.totalorder %v980_v56, 14  ;;  %vm2006_vm8 = vmpackc.low %vm12847_vm6, %vm12847_vm6 }
 0x139   : > { %v11936_v48 = vpop.eup %11935  ;;  %11947 = vrcp.f32 %v853_v37  ;;  %v914_v8 = vmul.f32 %v11934_v40, %v12629_v9  ;;  %v945_v40 = vadd.s32 64, %v12828_v26  ;;  %vm2344_vm10 = vmpackc.low %vm12861_vm7, %vm12861_vm7  ;;  %v953_v54 = vadd.s32 128, %v12828_v26 }
 0x13a   : > { %v11938_v59 = vpop.eup %11937  ;;  %10539 = vmatmul.mubr.msk.bf16.gmra.mrb[20].mxu1 %vm390_vm1, %v931_v1  ;;  %v912_v10 = vmul.f32 %v11936_v48, %v12635_v14  ;;  %v12853_v1 = vsel %vm2005_vm5, 65537, %v15585_v19  ;;  %vm12872_vm9 = vcmp.ge.s32.totalorder %v1001_v3, 1  ;;  %vm12881_vm11 = vcmp.ge.s32.totalorder %v1015_v33, 1 }
 0x13b   : > { %v11940_v5 = vpop.eup %11939  ;;  %v915_v38 = vmul.f32 %v11938_v59, %v12640_v21  ;;  %v9715_v37 = vcombine.low %v2036_v63, %v12853_v1  ;;  %v947_v59 = vadd.s32 80, %v12828_v26  ;;  %vm2008_vm12 = vmpackc.low %vm12872_vm9, %vm12872_vm9  ;;  %vm2116_vm5 = vsmask.f32 7424 }
 0x13c   : > { %v913_v11 = vmul.f32 %v11940_v5, %v12644_v30  ;;  %v2038_v5 = vsel %vm2006_vm8, 65537, %v15585_v19  ;;  %vm2010_vm13 = vmpackc.low %vm12881_vm11, %vm12881_vm11 }
 0x13d   : > { %v933_v12 = vpack.c.bf16 %v915_v38, %v914_v8  ;;  %v2118_v38 = vshll.u32 %v9715_v37, 16 }
 0x13e   : > { %v932_v13 = vpack.c.bf16 %v913_v11, %v912_v10  ;;  %v1029_v10 = vand.u32 15, %v945_v40  ;;  %v949_v11 = vadd.s32 96, %v12828_v26 }
 0x13f   : > { %1461 = vrot.lane.b32.xlu1 %v933_v12, %s12373_s14 }
 0x140   : > { %v11942_v15 = vpop.eup %11941  ;;  %1459 = vrot.lane.b32.xlu0 %v932_v13, %s12373_s14  ;;  %10542 = vmatprep.mubr.msk.bf16.mxu1 %vm390_vm1, %v932_v13  ;;  %v9716_v13 = vcombine.low %v2038_v5, %v12853_v1  ;;  %vm12905_vm14 = vcmp.ge.s32.totalorder %v1029_v10, 1  ;;  %v1085_v10 = vand.u32 15, %v953_v54  ;;  %v959_v5 = vadd.s32 176, %v12828_v26 }
 0x141   : > { %v11944_v16 = vpop.eup %11943  ;;  %v918_v21 = vmul.f32 %v11942_v15, %v12653_v49  ;;  %v2743_v49 = vsel %vm563_vm0, %v12568_v27, 0  ;;  %vm2012_vm2 = vmpackc.low %vm12905_vm14, %vm12905_vm14 }
 0x142   : > { %v11946_v18 = vpop.eup %11945  ;;  %10543 = vmatmul.mubr.msk.bf16.gmra.mrb[24].mxu1 %vm390_vm1, %v933_v12  ;;  %v916_v30 = vmul.f32 %v11944_v16, %v12659_v62  ;;  %v1043_v12 = vand.u32 15, %v947_v59  ;;  %v2121_v16 = vshrl.u32 %v9715_v37, 16  ;;  %v2044_v3 = vsel %vm2012_vm2, 65537, %v15585_v19 }
 0x143   : > { %v11948_v9 = vpop.eup %11947  ;;  %v919_v14 = vmul.f32 %v11946_v18, %v12665_v24  ;;  %v2691_v24 = vld [vmem:[%s15576_s3] sm:$0x3]  ;;  %v2376_v18 = vsel %vm2344_vm10, 65537, %v15585_v19  ;;  %v2129_v33 = vshrl.u32 %v9716_v13, 16  ;;  %vm12972_vm10 = vcmp.ge.s32.totalorder %v1085_v10, 1 }
 0x144   : > { %v917_v20 = vmul.f32 %v11948_v9, %v12669_v6  ;;  %v3087_v50 = vsel %vm563_vm0, %v2691_v24, 0  ;;  %vm12911_vm15 = vcmp.ge.s32.totalorder %v1043_v12, 1  ;;  %v9731_v47 = vcombine.low %v12853_v1, %v2376_v18 }
 0x145   : > { %v935_v25 = vpack.c.bf16 %v919_v14, %v918_v21  ;;  %v2040_v21 = vsel %vm2008_vm12, 65537, %v15585_v19  ;;  %v12901_v14 = vrot.slane %v2118_v38, 1  ;;  %vm2014_vm3 = vmpackc.low %vm12911_vm15, %vm12911_vm15  ;;  %v9719_v38 = vcombine.low %v2044_v3, %v12853_v1  ;;  %v1923_v3 = vld [vmem:[#allocation2] sm:$0x80] }
 0x146   : > { %v934_v57 = vpack.c.bf16 %v917_v20, %v916_v30  ;;  %v1057_v20 = vand.u32 15, %v949_v11  ;;  %v2457_v56 = vshrl.u32 %v9731_v47, 16  ;;  %v2046_v37 = vsel %vm2014_vm3, 65537, %v15585_v19  ;;  %vm2020_vm12 = vmpackc.low %vm12972_vm10, %vm12972_vm10 }
 0x147   : > { %1465 = vrot.lane.b32.xlu1 %v935_v25, %s12373_s14  ;;  %v2123_v61 = vor.u32 %v2121_v16, %v12901_v14  ;;  %v2460_v8 = vshll.u32 %v9731_v47, 16  ;;  %v955_v11 = vadd.s32 144, %v12828_v26  ;;  %v9720_v16 = vcombine.low %v2046_v37, %v12853_v1 }
 0x148   : > { %1463 = vrot.lane.b32.xlu0 %v934_v57, %s12373_s14  ;;  %10546 = vmatprep.mubr.msk.bf16.mxu1 %vm390_vm1, %v934_v57  ;;  %v2042_v57 = vsel %vm2010_vm13, 65537, %v15585_v19  ;;  %vm12927_vm4 = vcmp.ge.s32.totalorder %v1057_v20, 1  ;;  %v12955_v12 = vrot.slane %v2457_v56, 7  ;;  %vm2244_vm11 = vcmp.ne.s16.totalorder %v12901_v14, 0 }
 0x149   : > { %v12922_v0 = vcombine.low %v2042_v57, %v12853_v1  ;;  %vm2016_vm6 = vmpackc.low %vm12927_vm4, %vm12927_vm4  ;;  %v957_v57 = vadd.s32 160, %v12828_v26  ;;  %v2157_v54 = vshll.u32 %v9720_v16, 16  ;;  %v2153_v37 = vshrl.u32 %v9719_v38, 16 }
 0x14a   : > { %10547 = vmatmul.mubr.msk.bf16.gmra.mrb[28].mxu1 %vm390_vm1, %v935_v25  ;;  %v951_v25 = vadd.s32 112, %v12828_v26  ;;  %v2048_v18 = vsel %vm2016_vm6, 65537, %v15585_v19  ;;  %vm2455_vm3 = vsmask.f32 256 }
 0x14b   : > { %v2141_v59 = vshll.u32 %v12922_v0, 16 }
 0x14c   : > { %v1071_v42 = vand.u32 15, %v951_v25 }
 0x14d   : > { %v2143_v25 = vrot.slane %v2141_v59, 1  ;;  %v1113_v59 = vand.u32 15, %v957_v57 }
 0x14e   : > { %vm12949_vm7 = vcmp.ge.s32.totalorder %v1071_v42, 1  ;;  %v2145_v42 = vshrl.u32 %v12922_v0, 16 }
 0x14f   : > { %vm2018_vm9 = vmpackc.low %vm12949_vm7, %vm12949_vm7  ;;  %vm13019_vm6 = vcmp.ge.s32.totalorder %v1113_v59, 1 }
 0x150   : > { %vm2024_vm7 = vmpackc.low %vm13019_vm6, %vm13019_vm6 }
 0x180   : > { %v12710_v22 = vpop.permute.xlu0 %1435 }
 0x181   : > { %15677 = vst [vmem:[#allocation3_spill] sm:$0xff] %v12710_v22  ;;  %1907 = vst.msk [vmem:[#allocation2 + $0x10] sm:$0xff] %vm390_vm1, %v12710_v22  ;;  %10484 = vmatprep.mubr.msk.bf16.mxu0 %vm390_vm1, %v12710_v22 }
 0x184   : > { %v12718_v62 = vpop.permute.xlu0 %1437 }
 0x185   : > { %15678 = vst [vmem:[#allocation4_spill] sm:$0xff] %v12718_v62  ;;  %1908 = vst.msk [vmem:[#allocation2 + $0x18] sm:$0xff] %vm390_vm1, %v12718_v62  ;;  %10485 = vmatmul.mubr.msk.bf16.vlgmr.msra.gmra.mrb[32].mxu0 %vm390_vm1, %v12718_v62 }
 0x186   : > { %10551 = vmatpush3.bf16.msra.mxu0 %v2743_v49  ;;  %v2149_v49 = vshll.u32 %v9719_v38, 16 }
 0x187   : > { %11776 = vmatprep.subr.msk.bf16.mxu0 %vm563_vm0, %v2691_v24  ;;  %v2125_v24 = vshll.u32 %v9716_v13, 16 }
 0x188   : > { %v12817_v45 = vld [vmem:[#allocation2 + $0x10] sm:$0xff] }
 0x189   : > { %v2127_v55 = vrot.slane %v2125_v24, 1  ;;  %v12970_v24 = vcombine.low %v2048_v18, %v12853_v1  ;;  %v2159_v18 = vrot.slane %v2157_v54, 1 }
 0x18a   : > { %v12728_v6 = vpop.permute.xlu1 %1439 }
 0x18b   : > { %15679 = vst [vmem:[#allocation5_spill] sm:$0xff] %v12728_v6  ;;  %1909 = vst.msk [vmem:[#allocation2 + $0x20] sm:$0xff] %vm390_vm1, %v12728_v6  ;;  %10488 = vmatprep.mubr.msk.bf16.mxu0 %vm390_vm1, %v12728_v6  ;;  %v12944_v40 = vsel %vm2116_vm5, %v2123_v61, %v2127_v55  ;;  %v12977_v61 = vor.u32 %v2460_v8, %v12955_v12  ;;  %v2151_v8 = vrot.slane %v2149_v49, 1  ;;  %v2165_v10 = vshll.u32 %v12970_v24, 16 }
 0x18c   : > { %v12826_v58 = vld [vmem:[#allocation2 + $0x18] sm:$0xff]  ;;  %15707 = vst [vmem:[#allocation19_spill] sm:$0xff] %v12944_v40  ;;  %vm2245_vm8 = vcmp.ne.s16.totalorder %v12944_v40, 0  ;;  %v2169_v54 = vshrl.u32 %v12970_v24, 16 }
 0x18d   : > { %v12966_v30 = vsel %vm2245_vm8, %v12812_v46, 0  ;;  %15712 = vst [vmem:[#allocation20_spill] sm:$0xff] %v12977_v61  ;;  %vm15599_vm14 = vcmp.ne.s16.totalorder %v12977_v61, 0 }
 0x18e   : > { %v12734_v27 = vpop.permute.xlu1 %1441  ;;  %v2911_v56 = vshrl.u32 %v12966_v30, 16  ;;  %v2914_v57 = vshll.u32 %v12966_v30, 16  ;;  %v13028_v30 = vsel %vm15599_vm14, %v12812_v46, 0 }
 0x18f   : > { %15680 = vst [vmem:[#allocation6_spill] sm:$0xff] %v12734_v27  ;;  %1910 = vst.msk [vmem:[#allocation2 + $0x28] sm:$0xff] %vm390_vm1, %v12734_v27  ;;  %10489 = vmatmul.mubr.msk.bf16.gmra.mrb[36].mxu0 %vm390_vm1, %v12734_v27 }
 0x192   : > { %v12740_v28 = vpop.permute.xlu1 %1445  ;;  %v12742_v2 = vpop.permute.xlu0 %1443  ;;  %v12836_v32 = vld [vmem:[#allocation2 + $0x20] sm:$0xff] }
 0x193   : > { %15681 = vst [vmem:[#allocation7_spill] sm:$0xff] %v12740_v28  ;;  %15682 = vst [vmem:[#allocation8_spill] sm:$0xff] %v12742_v2  ;;  %10492 = vmatprep.mubr.msk.bf16.mxu0 %vm390_vm1, %v12742_v2 }
 0x194   : > { %1912 = vst.msk [vmem:[#allocation2 + $0x38] sm:$0xff] %vm390_vm1, %v12740_v28  ;;  %1911 = vst.msk [vmem:[#allocation2 + $0x30] sm:$0xff] %vm390_vm1, %v12742_v2 }
 0x196   : > { %v12840_v52 = vld [vmem:[#allocation2 + $0x28] sm:$0xff] }
 0x197   : > { %10493 = vmatmul.mubr.msk.bf16.gmra.mrb[40].mxu0 %vm390_vm1, %v12740_v28 }
 0x19a   : > { %v12752_v23 = vpop.permute.xlu1 %1449 }
 0x19b   : > { %15683 = vst [vmem:[#allocation9_spill] sm:$0xff] %v12752_v23  ;;  %1914 = vst.msk [vmem:[#allocation2 + $0x48] sm:$0xff] %vm390_vm1, %v12752_v23  ;;  %v12756_v31 = vpop.permute.xlu0 %1447  ;;  %v12855_v4 = vld [vmem:[#allocation2 + $0x30] sm:$0xff]  ;;  %v12859_v17 = vld [vmem:[#allocation2 + $0x38] sm:$0xff] }
 0x19c   : > { %15684 = vst [vmem:[#allocation10_spill] sm:$0xff] %v12756_v31  ;;  %1913 = vst.msk [vmem:[#allocation2 + $0x40] sm:$0xff] %vm390_vm1, %v12756_v31  ;;  %10496 = vmatprep.mubr.msk.bf16.mxu0 %vm390_vm1, %v12756_v31 }
 0x19f   : > { %10497 = vmatmul.mubr.msk.bf16.gmra.mrb[44].mxu0 %vm390_vm1, %v12752_v23 }
 0x1a0   : > { %v12764_v34 = vpop.permute.xlu1 %1453 }
 0x1a1   : > { %15685 = vst [vmem:[#allocation11_spill] sm:$0xff] %v12764_v34  ;;  %1916 = vst.msk [vmem:[#allocation2 + $0x58] sm:$0xff] %vm390_vm1, %v12764_v34  ;;  %v12768_v35 = vpop.permute.xlu0 %1451 }
 0x1a2   : > { %15686 = vst [vmem:[#allocation12_spill] sm:$0xff] %v12768_v35  ;;  %1915 = vst.msk [vmem:[#allocation2 + $0x50] sm:$0xff] %vm390_vm1, %v12768_v35  ;;  %10500 = vmatprep.mubr.msk.bf16.mxu0 %vm390_vm1, %v12768_v35  ;;  %v12898_v9 = vld [vmem:[#allocation2 + $0x48] sm:$0xff] }
 0x1a3   : > { %v12890_v15 = vld [vmem:[#allocation2 + $0x40] sm:$0xff] }
 0x1a7   : > { %10501 = vmatmul.mubr.msk.bf16.gmra.mrb[48].mxu0 %vm390_vm1, %v12764_v34 }
 0x1a8   : > { %v12776_v7 = vpop.permute.xlu1 %1457  ;;  %v12937_v29 = vld [vmem:[#allocation2 + $0x58] sm:$0xff] }
 0x1a9   : > { %15687 = vst [vmem:[#allocation13_spill] sm:$0xff] %v12776_v7  ;;  %1918 = vst.msk [vmem:[#allocation2 + $0x68] sm:$0xff] %vm390_vm1, %v12776_v7  ;;  %v12780_v36 = vpop.permute.xlu0 %1455  ;;  %v12932_v60 = vld [vmem:[#allocation2 + $0x50] sm:$0xff] }
 0x1aa   : > { %15688 = vst [vmem:[#allocation14_spill] sm:$0xff] %v12780_v36  ;;  %1917 = vst.msk [vmem:[#allocation2 + $0x60] sm:$0xff] %vm390_vm1, %v12780_v36  ;;  %10504 = vmatprep.mubr.msk.bf16.mxu0 %vm390_vm1, %v12780_v36 }
 0x1af   : > { %10505 = vmatmul.mubr.msk.bf16.gmra.mrb[52].mxu0 %vm390_vm1, %v12776_v7 }
 0x1b1   : > { %v12788_v39 = vpop.permute.xlu1 %1461  ;;  %v12979_v53 = vld [vmem:[#allocation2 + $0x60] sm:$0xff] }
 0x1b2   : > { %15689 = vst [vmem:[#allocation15_spill] sm:$0xff] %v12788_v39  ;;  %1920 = vst.msk [vmem:[#allocation2 + $0x78] sm:$0xff] %vm390_vm1, %v12788_v39  ;;  %v12792_v41 = vpop.permute.xlu0 %1459 }
 0x1b3   : > { %15690 = vst [vmem:[#allocation16_spill] sm:$0xff] %v12792_v41  ;;  %1919 = vst.msk [vmem:[#allocation2 + $0x70] sm:$0xff] %vm390_vm1, %v12792_v41  ;;  %10508 = vmatprep.mubr.msk.bf16.mxu0 %vm390_vm1, %v12792_v41 }
 0x1b7   : > { %10509 = vmatmul.mubr.msk.bf16.gmra.mrb[56].mxu0 %vm390_vm1, %v12788_v39  ;;  %v15720_v39 = vmov 0  }
 0x1b8   : > { %v2056_v61 = vsel %vm2024_vm7, 65537, %v15720_v39 }
 0x1b9   : > { %v12800_v43 = vpop.permute.xlu1 %1465  ;;  %v13040_v24 = vld [vmem:[#allocation2 + $0x78] sm:$0xff] }
 0x1ba   : > { %15691 = vst [vmem:[#allocation17_spill] sm:$0xff] %v12800_v43  ;;  %1922 = vst.msk [vmem:[#allocation2 + $0x88] sm:$0xff] %vm390_vm1, %v12800_v43  ;;  %v12804_v44 = vpop.permute.xlu0 %1463 }
 0x1bb   : > { %15692 = vst [vmem:[#allocation18_spill] sm:$0xff] %v12804_v44  ;;  %1921 = vst.msk [vmem:[#allocation2 + $0x80] sm:$0xff] %vm390_vm1, %v12804_v44  ;;  %10512 = vmatprep.mubr.msk.bf16.mxu0 %vm390_vm1, %v12804_v44 }
 0x1bf   : > { %10513 = vmatmul.mubr.msk.bf16.gmra.mrb[60].mxu0 %vm390_vm1, %v12800_v43 }
 0x1c0   : > { %10552 = vmatprep.mubr.msk.bf16.mxu0 %vm390_vm1, %v12812_v46 }
 0x1c7   : > { %10553 = vmatmul.mubr.msk.bf16.vlgmr.msra.gmra.mrb[64].mxu0 %vm390_vm1, %v12817_v45 }
 0x1c8   : > { %10585 = vmatpush3.bf16.msra.mxu0 %v3087_v50  ;;  %10556 = vmatprep.mubr.msk.bf16.mxu0 %vm390_vm1, %v12826_v58  ;;  %v9717_v50 = vcombine.low %v2040_v21, %v12853_v1  ;;  %v2131_v21 = vor.u32 %v2129_v33, %v2127_v55  ;;  %v2050_v55 = vsel %vm2018_vm9, 65537, %v15585_v19 }
 0x1c9   : > { %11777 = vmatprep.subr.msk.bf16.mxu0 %vm563_vm0, %v12822_v51 }
 0x1ca   : > { %v2133_v63 = vshll.u32 %v9717_v50, 16  ;;  %v2137_v48 = vshrl.u32 %v9717_v50, 16  ;;  %v1099_v50 = vand.u32 15, %v955_v11  ;;  %v13003_v11 = vcombine.low %v2050_v55, %v12853_v1 }
 0x1cc   : > { %v2135_v13 = vrot.slane %v2133_v63, 1  ;;  %v12986_v63 = vld [vmem:[#allocation2 + $0x68] sm:$0xff]  ;;  %vm13005_vm13 = vcmp.ge.s32.totalorder %v1099_v50, 1  ;;  %v2173_v55 = vshll.u32 %v13003_v11, 16 }
 0x1cd   : > { %vm2022_vm4 = vmpackc.low %vm13005_vm13, %vm13005_vm13 }
 0x1ce   : > { %v2139_v20 = vor.u32 %v2137_v48, %v2135_v13  ;;  %v12990_v33 = vsel %vm2116_vm5, %v2131_v21, %v2135_v13  ;;  %v2161_v48 = vshrl.u32 %v9720_v16, 16  ;;  %v2261_v13 = vsel %vm2244_vm11, %v1923_v3, 0 }
 0x1cf   : > { %10557 = vmatmul.mubr.msk.bf16.gmra.mrb[68].mxu0 %vm390_vm1, %v12836_v32  ;;  %v2147_v16 = vor.u32 %v2145_v42, %v2143_v25  ;;  %vm2246_vm15 = vcmp.ne.s16.totalorder %v12990_v33, 0  ;;  %v2155_v21 = vor.u32 %v2153_v37, %v2151_v8  ;;  %v2907_v50 = vshrl.u32 %v2261_v13, 16  ;;  %v13032_v37 = vld [vmem:[#allocation2 + $0x70] sm:$0xff] }
 0x1d0   : > { %10560 = vmatprep.mubr.msk.bf16.mxu0 %vm390_vm1, %v12840_v52  ;;  %v12995_v0 = vsel %vm2116_vm5, %v2139_v20, %v2143_v25  ;;  %v2052_v20 = vsel %vm2020_vm12, 65537, %v15585_v19  ;;  %v2163_v49 = vor.u32 %v2161_v48, %v2159_v18  ;;  %v1127_v25 = vand.u32 15, %v959_v5 }
 0x1d1   : > { %15713 = vst [vmem:[#allocation21_spill] sm:$0xff] %v12995_v0  ;;  %vm15641_vm2 = vcmp.ne.s16.totalorder %v12995_v0, 0  ;;  %v2167_v42 = vrot.slane %v2165_v10, 1  ;;  %v13030_v3 = vrot.slane %v2911_v56, 7  ;;  %v13035_v48 = vsel %vm2116_vm5, %v2147_v16, %v2151_v8 }
 0x1d2   : > { %v9723_v59 = vcombine.low %v2052_v20, %v12853_v1  ;;  %v2263_v5 = vsel %vm2246_vm15, %v12817_v45, 0  ;;  %v13046_v46 = vsel %vm2116_vm5, %v2155_v21, %v2159_v18  ;;  %v2054_v56 = vsel %vm2022_vm4, 65537, %v15585_v19 }
 0x1d3   : > { %v961_v8 = vadd.s32 192, %v12828_v26  ;;  %v2264_v10 = vsel %vm15641_vm2, %v12826_v58, 0  ;;  %v13064_v13 = vsel %vm2116_vm5, %v2163_v49, %v2167_v42  ;;  %vm13066_vm9 = vcmp.ge.s32.totalorder %v1127_v25, 1 }
 0x1d4   : > { %v963_v16 = vadd.s32 208, %v12828_v26  ;;  %v2909_v18 = vrot.slane %v2907_v50, 7  ;;  %v2916_v21 = vor.u32 %v2914_v57, %v13030_v3  ;;  %v2171_v20 = vor.u32 %v2169_v54, %v2167_v42  ;;  %vm2026_vm12 = vmpackc.low %vm13066_vm9, %vm13066_vm9 }
 0x1d5   : > { %v2175_v47 = vrot.slane %v2173_v55, 1  ;;  %v2919_v19 = vshrl.u32 %v2263_v5, 16  ;;  %v2181_v43 = vshll.u32 %v9723_v59, 16  ;;  %v9724_v44 = vcombine.low %v2054_v56, %v12853_v1  ;;  %v13087_v56 = vld [vmem:[#allocation2 + $0x80] sm:$0xff] }
 0x1d6   : > { %v2927_v41 = vshrl.u32 %v2264_v10, 16  ;;  %vm15642_vm10 = vcmp.ne.s16.totalorder %v13035_v48, 0  ;;  %v2177_v49 = vshrl.u32 %v13003_v11, 16  ;;  %v1141_v25 = vand.u32 15, %v961_v8 }
 0x1d7   : > { %10561 = vmatmul.mubr.msk.bf16.gmra.mrb[72].mxu0 %vm390_vm1, %v12855_v4  ;;  %vm15601_vm13 = vcmp.ne.s16.totalorder %v13046_v46, 0  ;;  %vm15603_vm4 = vcmp.ne.s16.totalorder %v13064_v13, 0  ;;  %v2185_v57 = vshrl.u32 %v9723_v59, 16  ;;  %v965_v50 = vadd.s32 224, %v12828_v26 }
 0x1d8   : > { %10564 = vmatprep.mubr.msk.bf16.mxu0 %vm390_vm1, %v12859_v17  ;;  %v2917_v42 = vsel %vm2455_vm3, %v2909_v18, %v2916_v21  ;;  %v13084_v54 = vsel %vm2116_vm5, %v2171_v20, %v2175_v47  ;;  %v9725_v55 = vcombine.low %v2056_v61, %v12853_v1  ;;  %v1155_v11 = vand.u32 15, %v963_v16 }
 0x1d9   : > { %v2921_v38 = vrot.slane %v2919_v19, 7  ;;  %v2183_v7 = vrot.slane %v2181_v43, 1  ;;  %v2189_v8 = vshll.u32 %v9724_v44, 16  ;;  %v2058_v36 = vsel %vm2026_vm12, 65537, %v15720_v39 }
 0x1da   : > { %v13092_v59 = vrot.slane %v2927_v41, 7  ;;  %v2265_v18 = vsel %vm15642_vm10, %v12836_v32, 0  ;;  %v2179_v21 = vor.u32 %v2177_v49, %v2175_v47  ;;  %vm13097_vm6 = vcmp.ge.s32.totalorder %v1141_v25, 1 }
 0x1db   : > { %v2922_v19 = vshll.u32 %v2263_v5, 16  ;;  %v2266_v43 = vsel %vm15601_vm13, %v12840_v52, 0  ;;  %v1169_v16 = vand.u32 15, %v965_v50  ;;  %v967_v41 = vadd.s32 240, %v12828_v26  ;;  %vm2028_vm7 = vmpackc.low %vm13097_vm6, %vm13097_vm6 }
 0x1dc   : > { %v2930_v20 = vshll.u32 %v2264_v10, 16  ;;  %v2193_v34 = vshrl.u32 %v9724_v44, 16  ;;  %v2197_v35 = vshll.u32 %v9725_v55, 16  ;;  %v9726_v23 = vcombine.low %v2058_v36, %v12853_v1 }
 0x1dd   : > { %v2924_v47 = vor.u32 %v2922_v19, %v2921_v38  ;;  %v2935_v49 = vshrl.u32 %v2265_v18, 16  ;;  %v2187_v25 = vor.u32 %v2185_v57, %v2183_v7  ;;  %v2191_v31 = vrot.slane %v2189_v8, 1 }
 0x1de   : > { %v2932_v5 = vor.u32 %v2930_v20, %v13092_v59  ;;  %vm15602_vm9 = vcmp.ne.s16.totalorder %v13084_v54, 0  ;;  %vm13112_vm12 = vcmp.ge.s32.totalorder %v1155_v11, 1  ;;  %v13117_v44 = vsel %vm2116_vm5, %v2179_v21, %v2183_v7 }
 0x1df   : > { %10565 = vmatmul.mubr.msk.bf16.gmra.mrb[76].mxu0 %vm390_vm1, %v12890_v15  ;;  %v2201_v36 = vshrl.u32 %v9725_v55, 16  ;;  %vm13119_vm14 = vcmp.ge.s32.totalorder %v1169_v16, 1  ;;  %v1183_v57 = vand.u32 15, %v967_v41  ;;  %v3433_v8 = vsel %vm563_vm0, %v12822_v51, 0  ;;  %vm2030_vm6 = vmpackc.low %vm13112_vm12, %vm13112_vm12  ;;  %v13137_v51 = vld [vmem:[%s15576_s3 + $0x6] sm:$0x3] }
 0x1e0   : > { %10568 = vmatprep.mubr.msk.bf16.mxu0 %vm390_vm1, %v12898_v9  ;;  %v2199_v61 = vrot.slane %v2197_v35, 1  ;;  %v2205_v19 = vshll.u32 %v9726_v23, 16  ;;  %v2060_v20 = vsel %vm2028_vm7, 65537, %v15720_v39  ;;  %v2925_v11 = vsel %vm2455_vm3, %v13030_v3, %v2924_v47  ;;  %vm2032_vm7 = vmpackc.low %vm13119_vm14, %vm13119_vm14 }
 0x1e1   : > { %v2937_v28 = vrot.slane %v2935_v49, 7  ;;  %v13129_v7 = vsel %vm2116_vm5, %v2187_v25, %v2191_v31  ;;  %v2195_v55 = vor.u32 %v2193_v34, %v2191_v31  ;;  %v2933_v35 = vsel %vm2455_vm3, %v2921_v38, %v2932_v5 }
 0x1e2   : > { %v2267_v3 = vsel %vm15603_vm4, %v12855_v4, 0  ;;  %v940_v31 = vadd.s32 24, %v12828_v26  ;;  %v2938_v34 = vshll.u32 %v2265_v18, 16  ;;  %v2268_v38 = vsel %vm15602_vm9, %v12859_v17, 0 }
 0x1e3   : > { %v9727_v16 = vcombine.low %v2060_v20, %v12853_v1  ;;  %vm13155_vm13 = vcmp.ge.s32.totalorder %v1183_v57, 1  ;;  %v2946_v47 = vshll.u32 %v2266_v43, 16  ;;  %v2203_v49 = vor.u32 %v2201_v36, %v2199_v61 }
 0x1e4   : > { %v2207_v25 = vrot.slane %v2205_v19, 1  ;;  %v2209_v5 = vshrl.u32 %v9726_v23, 16  ;;  %v2062_v18 = vsel %vm2030_vm6, 65537, %v15720_v39  ;;  %v2959_v36 = vshrl.u32 %v2268_v38, 16  ;;  %vm2034_vm4 = vmpackc.low %vm13155_vm13, %vm13155_vm13 }
 0x1e5   : > { %vm15643_vm9 = vcmp.ne.s16.totalorder %v13117_v44, 0  ;;  %v994_v57 = vand.u32 15, %v940_v31  ;;  %vm15611_vm12 = vcmp.ne.s16.totalorder %v13129_v7, 0  ;;  %v13180_v50 = vsel %vm2116_vm5, %v2195_v55, %v2199_v61 }
 0x1e6   : > { %v2213_v19 = vshll.u32 %v9727_v16, 16  ;;  %v942_v10 = vadd.s32 40, %v12828_v26  ;;  %v13184_v20 = vsel %vm2116_vm5, %v2203_v49, %v2207_v25  ;;  %v2066_v2 = vsel %vm2034_vm4, 65537, %v15720_v39 }
 0x1e7   : > { %10569 = vmatmul.mubr.msk.bf16.gmra.mrb[80].mxu0 %vm390_vm1, %v12932_v60  ;;  %15729 = vst [vmem:[#allocation22_spill] sm:$0xff] %v13184_v20  ;;  %v13193_v55 = vrot.slane %v2959_v36, 7  ;;  %v2269_v49 = vsel %vm15643_vm9, %v12890_v15, 0  ;;  %vm13198_vm14 = vcmp.le.s32.totalorder %v994_v57, 14  ;;  %vm15610_vm13 = vcmp.ne.s16.totalorder %v13180_v50, 0 }
 0x1e8   : > { %10572 = vmatprep.mubr.msk.bf16.mxu0 %vm390_vm1, %v12937_v29  ;;  %vm15609_vm4 = vcmp.ne.s16.totalorder %v13184_v20, 0  ;;  %v13209_v36 = vcombine.low %v2066_v2, %v12853_v1  ;;  %vm2346_vm6 = vmpackc.low %vm13198_vm14, %vm13198_vm14  ;;  %v946_v2 = vadd.s32 72, %v12828_v26 }
 0x1e9   : > { %v2378_v6 = vsel %vm2346_vm6, 65537, %v15720_v39 }
 0x1ea   : > { %v2237_v62 = vshll.u32 %v13209_v36, 16 }
 0x1ec   : > { %v13247_v22 = vrot.slane %v2237_v62, 1 }
 0x1ef   : > { %10573 = vmatmul.mubr.msk.bf16.gmra.mrb[84].mxu0 %vm390_vm1, %v12979_v53 }
 0x1f0   : > { %10576 = vmatprep.mubr.msk.bf16.mxu0 %vm390_vm1, %v12986_v63 }
 0x1f7   : > { %10577 = vmatmul.mubr.msk.bf16.gmra.mrb[88].mxu0 %vm390_vm1, %v13032_v37 }
 0x1f8   : > { %10580 = vmatprep.mubr.msk.bf16.mxu0 %vm390_vm1, %v13040_v24 }
 0x1ff   : > { %10581 = vmatmul.mubr.msk.bf16.gmra.mrb[92].mxu0 %vm390_vm1, %v13087_v56 }
 0x200   : > { %10586 = vmatprep.mubr.msk.bf16.mxu0 %vm390_vm1, %v2917_v42  ;;  %v2943_v42 = vshrl.u32 %v2266_v43, 16  ;;  %v2064_v43 = vsel %vm2032_vm7, 65537, %v15720_v39 }
 0x202   : > { %v13141_v21 = vrot.slane %v2943_v42, 7  ;;  %v2940_v42 = vor.u32 %v2938_v34, %v2937_v28  ;;  %v9729_v34 = vcombine.low %v2064_v43, %v12853_v1 }
 0x204   : > { %v2948_v23 = vor.u32 %v2946_v47, %v13141_v21  ;;  %v2941_v41 = vsel %vm2455_vm3, %v13092_v59, %v2940_v42  ;;  %v2211_v47 = vor.u32 %v2209_v5, %v2207_v25  ;;  %v2954_v59 = vshll.u32 %v2267_v3, 16 }
 0x205   : > { %v2270_v25 = vsel %vm15611_vm12, %v12898_v9, 0  ;;  %v2215_v5 = vrot.slane %v2213_v19, 1  ;;  %v1008_v42 = vand.u32 15, %v942_v10  ;;  %v2233_v27 = vshrl.u32 %v9729_v34, 16 }
 0x206   : > { %v2949_v61 = vsel %vm2455_vm3, %v2937_v28, %v2948_v23  ;;  %v2962_v28 = vshll.u32 %v2268_v38, 16  ;;  %v2967_v23 = vshrl.u32 %v2269_v49, 16  ;;  %v2975_v57 = vshrl.u32 %v2270_v25, 16 }
 0x207   : > { %10587 = vmatmul.mubr.msk.bf16.vlgmr.msra.gmra.mrb[64].mxu0 %vm390_vm1, %v2925_v11  ;;  %v9728_v11 = vcombine.low %v2062_v18, %v12853_v1  ;;  %v2229_v18 = vshll.u32 %v9729_v34, 16  ;;  %v944_v38 = vadd.s32 56, %v12828_v26  ;;  %v13217_v10 = vsel %vm2116_vm5, %v2211_v47, %v2215_v5 }
 0x208   : > { %10619 = vmatpush3.bf16.msra.mxu0 %v3433_v8  ;;  %10590 = vmatprep.mubr.msk.bf16.mxu0 %vm390_vm1, %v2933_v35  ;;  %v2951_v8 = vshrl.u32 %v2267_v3, 16  ;;  %v2217_v35 = vshrl.u32 %v9727_v16, 16  ;;  %v2964_v3 = vor.u32 %v2962_v28, %v13193_v55  ;;  %15732 = vst [vmem:[#allocation23_spill] sm:$0xff] %v13217_v10  ;;  %vm13219_vm7 = vcmp.le.s32.totalorder %v1008_v42, 14 }
 0x209   : > { %11778 = vmatprep.subr.msk.bf16.mxu0 %vm563_vm0, %v13137_v51  ;;  %v2225_v19 = vshrl.u32 %v9728_v11, 16  ;;  %v2231_v16 = vrot.slane %v2229_v18, 1  ;;  %v2969_v28 = vrot.slane %v2967_v23, 7  ;;  %v948_v47 = vadd.s32 88, %v12828_v26  ;;  %vm2348_vm14 = vmpackc.low %vm13219_vm7, %vm13219_vm7 }
 0x20a   : > { %v2953_v31 = vrot.slane %v2951_v8, 7  ;;  %v2221_v8 = vshll.u32 %v9728_v11, 16  ;;  %v2271_v34 = vsel %vm15610_vm13, %v12932_v60, 0  ;;  %v2970_v42 = vshll.u32 %v2269_v49, 16 }
 0x20b   : > { %v1036_v18 = vand.u32 15, %v946_v2  ;;  %vm15617_vm7 = vcmp.ne.s16.totalorder %v13217_v10, 0  ;;  %v1050_v62 = vand.u32 15, %v948_v47  ;;  %v950_v2 = vadd.s32 104, %v12828_v26 }
 0x20c   : > { %v2956_v43 = vor.u32 %v2954_v59, %v2953_v31  ;;  %v2223_v59 = vrot.slane %v2221_v8, 1  ;;  %v2272_v8 = vsel %vm15609_vm4, %v12937_v29, 0  ;;  %v952_v47 = vadd.s32 120, %v12828_v26 }
 0x20d   : > { %v2991_v29 = vshrl.u32 %v2272_v8, 16  ;;  %vm13257_vm4 = vcmp.le.s32.totalorder %v1036_v18, 14  ;;  %v2241_v49 = vshrl.u32 %v13209_v36, 16 }
 0x20e   : > { %v2957_v11 = vsel %vm2455_vm3, %v13141_v21, %v2956_v43  ;;  %v1022_v21 = vand.u32 15, %v944_v38  ;;  %v2978_v43 = vshll.u32 %v2270_v25, 16  ;;  %v2380_v38 = vsel %vm2348_vm14, 65537, %v15720_v39  ;;  %vm2352_vm12 = vmpackc.low %vm13257_vm4, %vm13257_vm4 }
 0x20f   : > { %10591 = vmatmul.mubr.msk.bf16.gmra.mrb[68].mxu0 %vm390_vm1, %v2941_v41  ;;  %v2219_v41 = vor.u32 %v2217_v35, %v2215_v5  ;;  %v2965_v35 = vsel %vm2455_vm3, %v2953_v31, %v2964_v3  ;;  %v13231_v5 = vrot.slane %v2975_v57, 7  ;;  %v9732_v31 = vcombine.low %v12853_v1, %v2378_v6 }
 0x210   : > { %10594 = vmatprep.mubr.msk.bf16.mxu0 %vm390_vm1, %v2949_v61  ;;  %v2227_v3 = vor.u32 %v2225_v19, %v2223_v59  ;;  %v2235_v57 = vor.u32 %v2233_v27, %v2231_v16  ;;  %v2972_v61 = vor.u32 %v2970_v42, %v2969_v28  ;;  %vm13252_vm6 = vcmp.le.s32.totalorder %v1022_v21, 14 }
 0x211   : > { %v13245_v23 = vsel %vm2116_vm5, %v2219_v41, %v2223_v59  ;;  %v2464_v25 = vshrl.u32 %v9732_v31, 16  ;;  %v9733_v41 = vcombine.low %v12853_v1, %v2380_v38  ;;  %vm2350_vm14 = vmpackc.low %vm13252_vm6, %vm13252_vm6  ;;  %v13279_v18 = vrot.slane %v2991_v29, 7 }
 0x212   : > { %15735 = vst [vmem:[#allocation24_spill] sm:$0xff] %v13245_v23  ;;  %vm15612_vm13 = vcmp.ne.s16.totalorder %v13245_v23, 0  ;;  %v13263_v19 = vsel %vm2116_vm5, %v2227_v3, %v2231_v16  ;;  %v2973_v59 = vsel %vm2455_vm3, %v13193_v55, %v2972_v61  ;;  %v13271_v42 = vsel %vm2116_vm5, %v2235_v57, %v13247_v22 }
 0x213   : > { %15740 = vst [vmem:[#allocation25_spill] sm:$0xff] %v13263_v19  ;;  %15741 = vst [vmem:[#allocation26_spill] sm:$0xff] %v13271_v42  ;;  %v2273_v55 = vsel %vm15617_vm7, %v12979_v53, 0  ;;  %v2986_v3 = vshll.u32 %v2271_v34, 16  ;;  %v2274_v57 = vsel %vm15612_vm13, %v12986_v63, 0  ;;  %v2466_v61 = vrot.slane %v2464_v25, 7 }
 0x214   : > { %vm13291_vm6 = vcmp.le.s32.totalorder %v1050_v62, 14  ;;  %v2472_v38 = vshrl.u32 %v9733_v41, 16  ;;  %v2999_v6 = vshrl.u32 %v2273_v55, 16  ;;  %v2384_v27 = vsel %vm2352_vm12, 65537, %v15720_v39 }
 0x215   : > { %vm2354_vm4 = vmpackc.low %vm13291_vm6, %vm13291_vm6  ;;  %vm15616_vm13 = vcmp.ne.s16.totalorder %v13263_v19, 0  ;;  %v2475_v25 = vshll.u32 %v9733_v41, 16 }
 0x216   : > { %v2386_v23 = vsel %vm2354_vm4, 65537, %v15720_v39 }
 0x217   : > { %10595 = vmatmul.mubr.msk.bf16.gmra.mrb[72].mxu0 %vm390_vm1, %v2957_v11  ;;  %v2983_v11 = vshrl.u32 %v2271_v34, 16 }
 0x218   : > { %10598 = vmatprep.mubr.msk.bf16.mxu0 %vm390_vm1, %v2965_v35  ;;  %v2980_v35 = vor.u32 %v2978_v43, %v13231_v5  ;;  %v2467_v43 = vshll.u32 %v9732_v31, 16  ;;  %v2382_v31 = vsel %vm2350_vm14, 65537, %v15720_v39  ;;  %vm15615_vm14 = vcmp.ne.s16.totalorder %v13271_v42, 0 }
 0x219   : > { %v2985_v21 = vrot.slane %v2983_v11, 7  ;;  %v2994_v11 = vshll.u32 %v2272_v8, 16  ;;  %v954_v8 = vadd.s32 136, %v12828_v26  ;;  %v9734_v62 = vcombine.low %v12853_v1, %v2382_v31 }
 0x21a   : > { %v2981_v16 = vsel %vm2455_vm3, %v2969_v28, %v2980_v35  ;;  %v1064_v35 = vand.u32 15, %v950_v2  ;;  %v2469_v2 = vor.u32 %v2467_v43, %v2466_v61  ;;  %v2275_v31 = vsel %vm15616_vm13, %v13032_v37, 0 }
 0x21b   : > { %v2988_v29 = vor.u32 %v2986_v3, %v2985_v21  ;;  %v2996_v34 = vor.u32 %v2994_v11, %v13279_v18  ;;  %v13309_v3 = vcombine.low %v12853_v1, %v2384_v27  ;;  %v3001_v11 = vrot.slane %v2999_v6, 7 }
 0x21c   : > { %vm13311_vm12 = vcmp.le.s32.totalorder %v1064_v35, 14  ;;  %v1092_v35 = vand.u32 15, %v954_v8  ;;  %v13334_v6 = vor.u32 %v2241_v49, %v13247_v22  ;;  %v2480_v27 = vshrl.u32 %v9734_v62, 16 }
 0x21d   : > { %v2989_v28 = vsel %vm2455_vm3, %v13231_v5, %v2988_v29  ;;  %v2997_v43 = vsel %vm2455_vm3, %v2985_v21, %v2996_v34  ;;  %v3002_v5 = vshll.u32 %v2273_v55, 16  ;;  %v2276_v29 = vsel %vm15615_vm14, %v13040_v24, 0  ;;  %vm2356_vm4 = vmpackc.low %vm13311_vm12, %vm13311_vm12 }
 0x21e   : > { %15748 = vst [vmem:[#allocation27_spill] sm:$0xff] %v13334_v6  ;;  %v3010_v21 = vshll.u32 %v2274_v57, 16  ;;  %v9736_v34 = vcombine.low %v12853_v1, %v2386_v23  ;;  %v956_v55 = vadd.s32 152, %v12828_v26  ;;  %v3015_v8 = vshrl.u32 %v2275_v31, 16 }
 0x21f   : > { %10599 = vmatmul.mubr.msk.bf16.gmra.mrb[76].mxu0 %vm390_vm1, %v2973_v59  ;;  %v1078_v59 = vand.u32 15, %v952_v47  ;;  %v13306_v47 = vrot.slane %v2472_v38, 7  ;;  %v2488_v22 = vshrl.u32 %v13309_v3, 16  ;;  %vm13352_vm12 = vcmp.le.s32.totalorder %v1092_v35, 14 }
 0x220   : > { %10602 = vmatprep.mubr.msk.bf16.mxu0 %vm390_vm1, %v2981_v16  ;;  %v3007_v16 = vshrl.u32 %v2274_v57, 16  ;;  %v3023_v57 = vshrl.u32 %v2276_v29, 16  ;;  %vm15633_vm13 = vcmp.ne.s16.totalorder %v13334_v6, 0  ;;  %v2482_v23 = vrot.slane %v2480_v27, 7 }
 0x221   : > { %vm13318_vm6 = vcmp.le.s32.totalorder %v1078_v59, 14  ;;  %v13341_v59 = vsel %vm2455_vm3, %v12955_v12, %v2469_v2  ;;  %v2388_v12 = vsel %vm2356_vm4, 65537, %v15720_v39  ;;  %v2491_v36 = vshll.u32 %v13309_v3, 16 }
 0x222   : > { %v13324_v38 = vrot.slane %v3007_v16, 7  ;;  %15749 = vst [vmem:[#allocation28_spill] sm:$0xff] %v13341_v59  ;;  %v3004_v16 = vor.u32 %v3002_v5, %v3001_v11  ;;  %vm2358_vm14 = vmpackc.low %vm13318_vm6, %vm13318_vm6  ;;  %vm15631_vm7 = vcmp.ne.s16.totalorder %v13341_v59, 0  ;;  %v2496_v41 = vshrl.u32 %v9736_v34, 16 }
 0x223   : > { %v1106_v5 = vand.u32 15, %v956_v55  ;;  %v3017_v42 = vrot.slane %v3015_v8, 7  ;;  %v9737_v19 = vcombine.low %v12853_v1, %v2388_v12  ;;  %vm2360_vm6 = vmpackc.low %vm13352_vm12, %vm13352_vm12  ;;  %v13371_v3 = vrot.slane %v3023_v57, 7 }
 0x224   : > { %v3012_v49 = vor.u32 %v3010_v21, %v13324_v38  ;;  %v3005_v21 = vsel %vm2455_vm3, %v13279_v18, %v3004_v16  ;;  %v2277_v18 = vsel %vm15633_vm13, %v13087_v56, 0  ;;  %v2490_v27 = vrot.slane %v2488_v22, 7 }
 0x225   : > { %v2499_v16 = vshll.u32 %v9736_v34, 16  ;;  %v13378_v12 = vrot.slane %v2496_v41, 7  ;;  %v2392_v2 = vsel %vm2360_vm6, 65537, %v15720_v39  ;;  %v3031_v57 = vshrl.u32 %v2277_v18, 16 }
 0x226   : > { %v958_v22 = vadd.s32 168, %v12828_v26  ;;  %v15754_v34 = vshll.u32 %v13028_v30, 16  ;;  %v960_v41 = vadd.s32 184, %v12828_v26 }
 0x227   : > { %10603 = vmatmul.mubr.msk.bf16.gmra.mrb[80].mxu0 %vm390_vm1, %v2989_v28  ;;  %v2477_v28 = vor.u32 %v2475_v25, %v13306_v47  ;;  %v2483_v25 = vshll.u32 %v9734_v62, 16  ;;  %v3013_v62 = vsel %vm2455_vm3, %v3001_v11, %v3012_v49  ;;  %v3033_v59 = vrot.slane %v3031_v57, 7 }
 0x228   : > { %10606 = vmatprep.mubr.msk.bf16.mxu0 %vm390_vm1, %v2997_v43  ;;  %v2390_v43 = vsel %vm2358_vm14, 65537, %v15720_v39  ;;  %vm13381_vm14 = vcmp.le.s32.totalorder %v1106_v5, 14  ;;  %v1120_v10 = vand.u32 15, %v958_v22  ;;  %v968_v22 = vadd.s32 248, %v12828_v26 }
 0x229   : > { %v13363_v35 = vsel %vm2455_vm3, %v2466_v61, %v2477_v28  ;;  %v3018_v61 = vshll.u32 %v2275_v31, 16  ;;  %v2485_v55 = vor.u32 %v2483_v25, %v2482_v23  ;;  %v9738_v8 = vcombine.low %v12853_v1, %v2390_v43  ;;  %vm2362_vm12 = vmpackc.low %vm13381_vm14, %vm13381_vm14 }
 0x22a   : > { %v3026_v28 = vshll.u32 %v2276_v29, 16  ;;  %v3253_v31 = vshrl.u32 %v13028_v30, 16  ;;  %v3257_v25 = vrot.slane %v15754_v34, 1  ;;  %v13394_v43 = vsel %vm15631_vm7, %v12817_v45, 0 }
 0x22b   : > { %v3020_v49 = vor.u32 %v3018_v61, %v3017_v42  ;;  %vm15630_vm4 = vcmp.ne.s16.totalorder %v13363_v35, 0  ;;  %v2512_v5 = vshrl.u32 %v9738_v8, 16  ;;  %v13403_v30 = vsel %vm2455_vm3, %v13306_v47, %v2485_v55 }
 0x22c   : > { %v3028_v29 = vor.u32 %v3026_v28, %v13371_v3  ;;  %v2493_v61 = vor.u32 %v2491_v36, %v2490_v27  ;;  %v2501_v28 = vor.u32 %v2499_v16, %v13378_v12  ;;  %v2507_v34 = vshll.u32 %v9737_v19, 16 }
 0x22d   : > { %v3021_v45 = vsel %vm2455_vm3, %v13324_v38, %v3020_v49  ;;  %v3260_v11 = vshll.u32 %v13394_v43, 16  ;;  %v2394_v20 = vsel %vm2362_vm12, 65537, %v15720_v39  ;;  %v1134_v47 = vand.u32 15, %v960_v41 }
 0x22e   : > { %v3034_v36 = vshll.u32 %v2277_v18, 16  ;;  %v13413_v55 = vrot.slane %v2512_v5, 7  ;;  %v3258_v38 = vor.u32 %v3257_v25, %v3253_v31  ;;  %vm15632_vm6 = vcmp.ne.s16.totalorder %v13403_v30, 0 }
 0x22f   : > { %10607 = vmatmul.mubr.msk.bf16.gmra.mrb[84].mxu0 %vm390_vm1, %v3005_v21  ;;  %v2504_v21 = vshrl.u32 %v9737_v19, 16  ;;  %v2515_v19 = vshll.u32 %v9738_v8, 16  ;;  %v13417_v49 = vsel %vm2455_vm3, %v2482_v23, %v2493_v61  ;;  %v9740_v18 = vcombine.low %v12853_v1, %v2394_v20 }
 0x230   : > { %10610 = vmatprep.mubr.msk.bf16.mxu0 %vm390_vm1, %v3013_v62  ;;  %v9739_v62 = vcombine.low %v12853_v1, %v2392_v2  ;;  %v3029_v2 = vsel %vm2455_vm3, %v3017_v42, %v3028_v29  ;;  %v13420_v42 = vsel %vm2455_vm3, %v2490_v27, %v2501_v28  ;;  %v3036_v57 = vor.u32 %v3034_v36, %v3033_v59 }
 0x231   : > { %v2506_v6 = vrot.slane %v2504_v21, 7  ;;  %v2602_v21 = vsel %vm15630_vm4, %v12826_v58, 0  ;;  %vm13426_vm14 = vcmp.le.s32.totalorder %v1120_v10, 14  ;;  %v3262_v8 = vrot.slane %v3260_v11, 1 }
 0x232   : > { %v2520_v16 = vshrl.u32 %v9739_v62, 16  ;;  %vm13430_vm12 = vcmp.le.s32.totalorder %v1134_v47, 14  ;;  %v962_v23 = vadd.s32 200, %v12828_v26  ;;  %v13438_v59 = vsel %vm15632_vm6, %v12836_v32, 0  ;;  %vm2364_vm4 = vmpackc.low %vm13426_vm14, %vm13426_vm14 }
 0x233   : > { %v2509_v31 = vor.u32 %v2507_v34, %v2506_v6  ;;  %v2517_v58 = vor.u32 %v2515_v19, %v13413_v55  ;;  %v2523_v10 = vshll.u32 %v9739_v62, 16  ;;  %v3268_v27 = vshll.u32 %v2602_v21, 16  ;;  %vm2366_vm6 = vmpackc.low %vm13430_vm12, %vm13430_vm12 }
 0x234   : > { %v13441_v20 = vrot.slane %v2520_v16, 7  ;;  %v964_v29 = vadd.s32 216, %v12828_v26  ;;  %v3037_v41 = vsel %vm2455_vm3, %v13371_v3, %v3036_v57  ;;  %vm15635_vm7 = vcmp.ne.s16.totalorder %v13417_v49, 0 }
 0x235   : > { %v2528_v5 = vshrl.u32 %v9740_v18, 16  ;;  %v3263_v32 = vsel %vm2116_vm5, %v3258_v38, %v3262_v8  ;;  %v3276_v62 = vshll.u32 %v13438_v59, 16  ;;  %vm15634_vm13 = vcmp.ne.s16.totalorder %v13420_v42, 0 }
 0x236   : > { %v1148_v61 = vand.u32 15, %v962_v23  ;;  %v13460_v3 = vsel %vm2455_vm3, %v13378_v12, %v2509_v31  ;;  %v13463_v28 = vsel %vm2455_vm3, %v2506_v6, %v2517_v58  ;;  %v2525_v34 = vor.u32 %v2523_v10, %v13441_v20 }
 0x237   : > { %10611 = vmatmul.mubr.msk.bf16.gmra.mrb[88].mxu0 %vm390_vm1, %v3021_v45  ;;  %v2531_v45 = vshll.u32 %v9740_v18, 16  ;;  %v2396_v11 = vsel %vm2364_vm4, 65537, %v15720_v39  ;;  %v2398_v47 = vsel %vm2366_vm6, 65537, %v15720_v39  ;;  %v1162_v36 = vand.u32 15, %v964_v29 }
 0x238   : > { %10614 = vmatprep.mubr.msk.bf16.mxu0 %vm390_vm1, %v3029_v2  ;;  %v3270_v2 = vrot.slane %v3268_v27, 1  ;;  %v3264_v12 = vshrl.u32 %v13394_v43, 16  ;;  %v2604_v6 = vsel %vm15635_vm7, %v12840_v52, 0  ;;  %v13477_v19 = vrot.slane %v2528_v5, 7 }
 0x239   : > { %v966_v16 = vadd.s32 232, %v12828_v26  ;;  %v3272_v38 = vshrl.u32 %v2602_v21, 16  ;;  %v3278_v57 = vrot.slane %v3276_v62, 1  ;;  %vm13480_vm12 = vcmp.le.s32.totalorder %v1148_v61, 14 }
 0x23a   : > { %v3266_v31 = vor.u32 %v3264_v12, %v3262_v8  ;;  %v2605_v43 = vsel %vm15634_vm13, %v12855_v4, 0  ;;  %v9741_v25 = vcombine.low %v12853_v1, %v2396_v11  ;;  %v9742_v52 = vcombine.low %v12853_v1, %v2398_v47  ;;  %vm2368_vm6 = vmpackc.low %vm13480_vm12, %vm13480_vm12  ;;  %v13503_v4 = vld [vmem:[%s15576_s3 + $0x8] sm:$0x3] }
 0x23b   : > { %v3811_v23 = vsel %vm563_vm0, %v13137_v51, 0  ;;  %v3274_v21 = vor.u32 %v3272_v38, %v3270_v2  ;;  %v3284_v58 = vshll.u32 %v2604_v6, 16  ;;  %vm13492_vm4 = vcmp.le.s32.totalorder %v1162_v36, 14 }
 0x23c   : > { %v3271_v26 = vsel %vm2116_vm5, %v3266_v31, %v3270_v2  ;;  %v3292_v8 = vshll.u32 %v2605_v43, 16  ;;  %vm15637_vm14 = vcmp.ne.s16.totalorder %v13460_v3, 0  ;;  %v1176_v27 = vand.u32 15, %v966_v16  ;;  %vm2370_vm7 = vmpackc.low %vm13492_vm4, %vm13492_vm4 }
 0x23d   : > { %v3279_v51 = vsel %vm2116_vm5, %v3274_v21, %v3278_v57  ;;  %vm15636_vm13 = vcmp.ne.s16.totalorder %v13463_v28, 0  ;;  %v13512_v29 = vsel %vm2455_vm3, %v13413_v55, %v2525_v34  ;;  %v2536_v5 = vshrl.u32 %v9741_v25, 16 }
 0x23e   : > { %v2544_v62 = vshrl.u32 %v9742_v52, 16  ;;  %v2400_v61 = vsel %vm2368_vm6, 65537, %v15720_v39  ;;  %v1190_v2 = vand.u32 15, %v968_v22  ;;  %v3280_v55 = vshrl.u32 %v13438_v59, 16 }
 0x23f   : > { %10615 = vmatmul.mubr.msk.bf16.gmra.mrb[92].mxu0 %vm390_vm1, %v3037_v41  ;;  %v2533_v41 = vor.u32 %v2531_v45, %v13477_v19  ;;  %v2606_v34 = vsel %vm15637_vm14, %v12859_v17, 0  ;;  %v2539_v45 = vshll.u32 %v9741_v25, 16  ;;  %v2547_v11 = vshll.u32 %v9742_v52, 16 }
 0x240   : > { %10620 = vmatprep.mubr.msk.bf16.mxu0 %vm390_vm1, %v3263_v32  ;;  %v3286_v32 = vrot.slane %v3284_v58, 1  ;;  %v3288_v47 = vshrl.u32 %v2604_v6, 16  ;;  %v3294_v36 = vrot.slane %v3292_v8, 1  ;;  %v2402_v12 = vsel %vm2370_vm7, 65537, %v15720_v39 }
 0x241   : > { %vm13531_vm4 = vcmp.le.s32.totalorder %v1176_v27, 14  ;;  %v3282_v38 = vor.u32 %v3280_v55, %v3278_v57  ;;  %v2607_v18 = vsel %vm15636_vm13, %v12890_v15, 0  ;;  %v2538_v59 = vrot.slane %v2536_v5, 7 }
 0x242   : > { %v9743_v22 = vcombine.low %v12853_v1, %v2400_v61  ;;  %v3290_v31 = vor.u32 %v3288_v47, %v3286_v32  ;;  %v3300_v17 = vshll.u32 %v2606_v34, 16  ;;  %v2546_v25 = vrot.slane %v2544_v62, 7  ;;  %vm2372_vm7 = vmpackc.low %vm13531_vm4, %vm13531_vm4 }
 0x243   : > { %vm13539_vm12 = vcmp.le.s32.totalorder %v1190_v2, 14  ;;  %v3287_v52 = vsel %vm2116_vm5, %v3282_v38, %v3286_v32  ;;  %v9744_v57 = vcombine.low %v12853_v1, %v2402_v12  ;;  %v3308_v21 = vshll.u32 %v2607_v18, 16 }
 0x244   : > { %v3295_v15 = vsel %vm2116_vm5, %v3290_v31, %v3294_v36  ;;  %vm2591_vm6 = vcmp.ne.s16.totalorder %v13512_v29, 0  ;;  %v3296_v58 = vshrl.u32 %v2605_v43, 16  ;;  %v2541_v10 = vor.u32 %v2539_v45, %v2538_v59  ;;  %vm2374_vm13 = vmpackc.low %vm13539_vm12, %vm13539_vm12 }
 0x245   : > { %v2404_v8 = vsel %vm2372_vm7, 65537, %v15720_v39  ;;  %v2560_v5 = vshrl.u32 %v9744_v57, 16  ;;  %v3304_v32 = vshrl.u32 %v2606_v34, 16  ;;  %v3310_v43 = vrot.slane %v3308_v21, 1 }
 0x246   : > { %v3298_v27 = vor.u32 %v3296_v58, %v3294_v36  ;;  %v2555_v62 = vshll.u32 %v9743_v22, 16  ;;  %v2406_v61 = vsel %vm2374_vm13, 65537, %v15720_v39  ;;  %v13570_v55 = vsel %vm2455_vm3, %v13477_v19, %v2541_v10 }
 0x247   : > { %10621 = vmatmul.mubr.msk.bf16.vlgmr.msra.gmra.mrb[64].mxu0 %vm390_vm1, %v3271_v26  ;;  %v2552_v26 = vshrl.u32 %v9743_v22, 16  ;;  %v2562_v12 = vrot.slane %v2560_v5, 7  ;;  %v2563_v39 = vshll.u32 %v9744_v57, 16  ;;  %v9746_v16 = vcombine.low %v12853_v1, %v2406_v61  ;;  %v13589_v57 = vld [vmem:[#allocation2 + $0x58] sm:$0xff] }
 0x248   : > { %10653 = vmatpush3.bf16.msra.mxu0 %v3811_v23  ;;  %10624 = vmatprep.mubr.msk.bf16.mxu0 %vm390_vm1, %v3279_v51  ;;  %v13546_v23 = vsel %vm2455_vm3, %v13441_v20, %v2533_v41  ;;  %v3302_v20 = vrot.slane %v3300_v17, 1  ;;  %v2549_v51 = vor.u32 %v2547_v11, %v2546_v25  ;;  %v2608_v41 = vsel %vm2591_vm6, %v12898_v9, 0 }
 0x249   : > { %11779 = vmatprep.subr.msk.bf16.mxu0 %vm563_vm0, %v13503_v4  ;;  %vm2592_vm14 = vcmp.ne.s16.totalorder %v13546_v23, 0  ;;  %v2554_v45 = vrot.slane %v2552_v26, 7  ;;  %v9745_v11 = vcombine.low %v12853_v1, %v2404_v8  ;;  %v3316_v36 = vshll.u32 %v2608_v41, 16 }
 0x24a   : > { %v2609_v2 = vsel %vm2592_vm14, %v12932_v60, 0  ;;  %v3306_v47 = vor.u32 %v3304_v32, %v3302_v20  ;;  %v13574_v9 = vsel %vm2455_vm3, %v2538_v59, %v2549_v51  ;;  %v3303_v34 = vsel %vm2116_vm5, %v3298_v27, %v3302_v20 }
 0x24b   : > { %15767 = vst [vmem:[#allocation29_spill] sm:$0xff] %v13574_v9  ;;  %v3324_v19 = vshll.u32 %v2609_v2, 16  ;;  %vm2593_vm13 = vcmp.ne.s16.totalorder %v13570_v55, 0  ;;  %v3312_v22 = vshrl.u32 %v2607_v18, 16  ;;  %v2557_v59 = vor.u32 %v2555_v62, %v2554_v45 }
 0x24c   : > { %v3311_v60 = vsel %vm2116_vm5, %v3306_v47, %v3310_v43  ;;  %v2568_v31 = vshrl.u32 %v9745_v11, 16  ;;  %v3318_v6 = vrot.slane %v3316_v36, 1  ;;  %vm2594_vm4 = vcmp.ne.s16.totalorder %v13574_v9, 0 }
 0x24d   : > { %v2565_v21 = vor.u32 %v2563_v39, %v2562_v12  ;;  %v2576_v58 = vshrl.u32 %v9746_v16, 16  ;;  %v3320_v18 = vshrl.u32 %v2608_v41, 16  ;;  %v3326_v26 = vrot.slane %v3324_v19, 1 }
 0x24e   : > { %v2611_v20 = vsel %vm2594_vm4, %v12979_v53, 0  ;;  %v13600_v51 = vsel %vm2455_vm3, %v2546_v25, %v2557_v59  ;;  %v2570_v8 = vrot.slane %v2568_v31, 7  ;;  %v2571_v27 = vshll.u32 %v9745_v11, 16 }
 0x24f   : > { %10625 = vmatmul.mubr.msk.bf16.gmra.mrb[68].mxu0 %vm390_vm1, %v3287_v52  ;;  %v3314_v52 = vor.u32 %v3312_v22, %v3310_v43  ;;  %15772 = vst [vmem:[#allocation34_spill] sm:$0xff] %v13600_v51  ;;  %v3322_v5 = vor.u32 %v3320_v18, %v3318_v6  ;;  %v13604_v62 = vsel %vm2455_vm3, %v2554_v45, %v2565_v21  ;;  %v13606_v61 = vrot.slane %v2576_v58, 7 }
 0x250   : > { %10628 = vmatprep.mubr.msk.bf16.mxu0 %vm390_vm1, %v3295_v15  ;;  %v2610_v15 = vsel %vm2593_vm13, %v13589_v57, 0  ;;  %15773 = vst [vmem:[#allocation35_spill] sm:$0xff] %v13604_v62  ;;  %v2579_v41 = vshll.u32 %v9746_v16, 16  ;;  %v3340_v53 = vshll.u32 %v2611_v20, 16  ;;  %vm15638_vm12 = vcmp.ne.s16.totalorder %v13600_v51, 0 }
 0x251   : > { %v3332_v32 = vshll.u32 %v2610_v15, 16  ;;  %v3319_v43 = vsel %vm2116_vm5, %v3314_v52, %v3318_v6  ;;  %15774 = vst [vmem:[#allocation36_spill] sm:$0xff] %v13606_v61  ;;  %v3327_v47 = vsel %vm2116_vm5, %v3322_v5, %v3326_v26  ;;  %v3328_v25 = vshrl.u32 %v2609_v2, 16 }
 0x252   : > { %v2573_v11 = vor.u32 %v2571_v27, %v2570_v8  ;;  %vm15639_vm7 = vcmp.ne.s16.totalorder %v13604_v62, 0  ;;  %v2612_v39 = vsel %vm15638_vm12, %v12986_v63, 0  ;;  %v2581_v16 = vor.u32 %v2579_v41, %v13606_v61 }
 0x253   : > { %v3334_v36 = vrot.slane %v3332_v32, 1  ;;  %v3330_v45 = vor.u32 %v3328_v25, %v3326_v26  ;;  %v3336_v19 = vshrl.u32 %v2610_v15, 16  ;;  %v3342_v22 = vrot.slane %v3340_v53, 1 }
 0x254   : > { %v2613_v2 = vsel %vm15639_vm7, %v13032_v37, 0  ;;  %v13627_v31 = vsel %vm2455_vm3, %v2562_v12, %v2573_v11  ;;  %v3348_v21 = vshll.u32 %v2612_v39, 16  ;;  %v13633_v58 = vsel %vm2455_vm3, %v2570_v8, %v2581_v16 }
 0x255   : > { %15778 = vst [vmem:[#allocation40_spill] sm:$0xff] %v13627_v31  ;;  %v3338_v52 = vor.u32 %v3336_v19, %v3334_v36  ;;  %v3335_v63 = vsel %vm2116_vm5, %v3330_v45, %v3334_v36  ;;  %15780 = vst [vmem:[#allocation42_spill] sm:$0xff] %v13633_v58  ;;  %v3356_v18 = vshll.u32 %v2613_v2, 16  ;;  %vm2597_vm12 = vcmp.ne.s16.totalorder %v13627_v31, 0  ;;  %v2617_v19 = vld [vmem:[#allocation2 + $0x8] sm:$0x80] }
 0x256   : > { %v3344_v37 = vshrl.u32 %v2611_v20, 16  ;;  %v3350_v12 = vrot.slane %v3348_v21, 1  ;;  %vm15640_vm7 = vcmp.ne.s16.totalorder %v13633_v58, 0  ;;  %v2614_v8 = vsel %vm2597_vm12, %v13040_v24, 0  ;;  %v2278_v21 = vld [vmem:[#allocation2 + $0x88] sm:$0x1] }
 0x257   : > { %10629 = vmatmul.mubr.msk.bf16.gmra.mrb[72].mxu0 %vm390_vm1, %v3303_v34  ;;  %v3343_v15 = vsel %vm2116_vm5, %v3338_v52, %v3342_v22  ;;  %v3352_v32 = vshrl.u32 %v2612_v39, 16  ;;  %v2615_v20 = vsel %vm15640_vm7, %v13087_v56, 0  ;;  %v3364_v25 = vshll.u32 %v2614_v8, 16  ;;  %v13658_v39 = vld [vmem:[#allocation2 + $0x10] sm:$0xff] }
 0x258   : > { %10632 = vmatprep.mubr.msk.bf16.mxu0 %vm390_vm1, %v3311_v60  ;;  %v13582_v38 = vpop.f32.mrb[32].mxu0  ;;  %v3346_v27 = vor.u32 %v3344_v37, %v3342_v22  ;;  %v3372_v36 = vshll.u32 %v2615_v20, 16  ;;  %v3360_v45 = vshrl.u32 %v2613_v2, 16  ;;  %v2620_v56 = vsel %vm2245_vm8, %v13658_v39, 0 }
 0x259   : > { %15768 = vst [vmem:[#allocation30_spill] sm:$0xff] %v13582_v38  ;;  %v13584_v17 = vpop.f32.mrb[33].mxu0  ;;  %v3354_v53 = vor.u32 %v3352_v32, %v3350_v12  ;;  %v3366_v16 = vrot.slane %v3364_v25, 1  ;;  %vm2599_vm7 = vcmp.ne.s16.totalorder %v13606_v61, 0  ;;  %v3635_v37 = vshrl.u32 %v2620_v56, 16 }
 0x25a   : > { %15769 = vst [vmem:[#allocation31_spill] sm:$0xff] %v13584_v17  ;;  %v13587_v1 = vpop.f32.mrb[34].mxu0  ;;  %v3351_v11 = vsel %vm2116_vm5, %v3346_v27, %v3350_v12  ;;  %v2619_v12 = vsel %vm2244_vm11, %v2617_v19, 0 }
 0x25b   : > { %15770 = vst [vmem:[#allocation32_spill] sm:$0xff] %v13587_v1  ;;  %v13594_v10 = vpop.f32.mrb[35].mxu0 }
 0x25c   : > { %15771 = vst [vmem:[#allocation33_spill] sm:$0xff] %v13594_v10  ;;  %v15816_v10 = vld [vmem:[#allocation25_spill] sm:$0xff] }
 0x25f   : > { %10633 = vmatmul.mubr.msk.bf16.gmra.mrb[76].mxu0 %vm390_vm1, %v3319_v43  ;;  %v3358_v43 = vrot.slane %v3356_v18, 1  ;;  %v3374_v18 = vrot.slane %v3372_v36, 1 }
 0x260   : > { %10636 = vmatprep.mubr.msk.bf16.mxu0 %vm390_vm1, %v3327_v47 }
 0x261   : > { %v3359_v24 = vsel %vm2116_vm5, %v3354_v53, %v3358_v43  ;;  %v3362_v52 = vor.u32 %v3360_v45, %v3358_v43  ;;  %v2616_v53 = vsel %vm2599_vm7, %v2278_v21, 0  ;;  %v3376_v45 = vshrl.u32 %v2615_v20, 16 }
 0x262   : > { %v13613_v34 = vpop.f32.mrb[36].mxu0  ;;  %v3380_v19 = vshll.u32 %v2616_v53, 16 }
 0x263   : > { %15775 = vst [vmem:[#allocation37_spill] sm:$0xff] %v13613_v34  ;;  %v13619_v60 = vpop.f32.mrb[37].mxu0  ;;  %v3367_v43 = vsel %vm2116_vm5, %v3362_v52, %v3366_v16  ;;  %v3638_v52 = vshll.u32 %v2620_v56, 16 }
 0x264   : > { %15776 = vst [vmem:[#allocation38_spill] sm:$0xff] %v13619_v60  ;;  %v13621_v59 = vpop.f32.mrb[38].mxu0  ;;  %v3382_v20 = vrot.slane %v3380_v19, 1  ;;  %v13707_v19 = vld [vmem:[#allocation2 + $0x30] sm:$0xff] }
 0x265   : > { %15777 = vst [vmem:[#allocation39_spill] sm:$0xff] %v13621_v59  ;;  %v13629_v6 = vpop.f32.mrb[39].mxu0 }
 0x266   : > { %15779 = vst [vmem:[#allocation41_spill] sm:$0xff] %v13629_v6  ;;  %v15812_v6 = vld [vmem:[#allocation23_spill] sm:$0xff] }
 0x267   : > { %10637 = vmatmul.mubr.msk.bf16.gmra.mrb[80].mxu0 %vm390_vm1, %v3335_v63 }
 0x268   : > { %10640 = vmatprep.mubr.msk.bf16.mxu0 %vm390_vm1, %v3343_v15  ;;  %v3368_v15 = vshrl.u32 %v2614_v8, 16  ;;  %v3631_v8 = vshrl.u32 %v2619_v12, 16 }
 0x26a   : > { %v13640_v26 = vpop.f32.mrb[40].mxu0  ;;  %v3370_v32 = vor.u32 %v3368_v15, %v3366_v16  ;;  %v13685_v15 = vld [vmem:[#allocation2 + $0x20] sm:$0xff] }
 0x26b   : > { %15781 = vst [vmem:[#allocation43_spill] sm:$0xff] %v13640_v26  ;;  %v13645_v5 = vpop.f32.mrb[41].mxu0  ;;  %v2622_v16 = vsel %vm15641_vm2, %v13685_v15, 0  ;;  %vm15793_vm2 = vcmp.ne.s16.totalorder %v13046_v46, 0 }
 0x26c   : > { %15782 = vst [vmem:[#allocation44_spill] sm:$0xff] %v13645_v5  ;;  %v13647_v41 = vpop.f32.mrb[42].mxu0  ;;  %v3375_v25 = vsel %vm2116_vm5, %v3370_v32, %v3374_v18  ;;  %v13754_v5 = vld [vmem:[#allocation2 + $0x48] sm:$0xff] }
 0x26d   : > { %15783 = vst [vmem:[#allocation45_spill] sm:$0xff] %v13647_v41  ;;  %v13652_v47 = vpop.f32.mrb[43].mxu0 }
 0x26e   : > { %15784 = vst [vmem:[#allocation46_spill] sm:$0xff] %v13652_v47 }
 0x26f   : > { %10641 = vmatmul.mubr.msk.bf16.gmra.mrb[84].mxu0 %vm390_vm1, %v3351_v11  ;;  %v3637_v11 = vrot.slane %v3635_v37, 7  ;;  %v3378_v37 = vor.u32 %v3376_v45, %v3374_v18  ;;  %v13701_v18 = vld [vmem:[#allocation2 + $0x28] sm:$0xff] }
 0x270   : > { %10644 = vmatprep.mubr.msk.bf16.mxu0 %vm390_vm1, %v3359_v24  ;;  %v13679_v24 = vld [vmem:[#allocation2 + $0x18] sm:$0xff] }
 0x271   : > { %v2621_v36 = vsel %vm2246_vm15, %v13679_v24, 0 }
 0x272   : > { %v13663_v22 = vpop.f32.mrb[44].mxu0  ;;  %v3643_v12 = vshrl.u32 %v2621_v36, 16  ;;  %v3646_v45 = vshll.u32 %v2621_v36, 16  ;;  %v4009_v36 = vsel %vm563_vm0, %v13503_v4, 0 }
 0x273   : > { %15785 = vst [vmem:[#allocation47_spill] sm:$0xff] %v13663_v22  ;;  %v13666_v63 = vpop.f32.mrb[45].mxu0 }
 0x274   : > { %15786 = vst [vmem:[#allocation48_spill] sm:$0xff] %v13666_v63  ;;  %v13668_v2 = vpop.f32.mrb[46].mxu0  ;;  %v3645_v22 = vrot.slane %v3643_v12, 7 }
 0x275   : > { %15787 = vst [vmem:[#allocation49_spill] sm:$0xff] %v13668_v2  ;;  %v13672_v27 = vpop.f32.mrb[47].mxu0  ;;  %v3651_v2 = vshrl.u32 %v2622_v16, 16 }
 0x276   : > { %15788 = vst [vmem:[#allocation50_spill] sm:$0xff] %v13672_v27  ;;  %v3640_v27 = vor.u32 %v3638_v52, %v3637_v11  ;;  %v2624_v52 = vsel %vm15793_vm2, %v13707_v19, 0  ;;  %vm15798_vm2 = vcmp.ne.s16.totalorder %v13064_v13, 0 }
 0x277   : > { %10645 = vmatmul.mubr.msk.bf16.gmra.mrb[88].mxu0 %vm390_vm1, %v3367_v43  ;;  %v3633_v43 = vrot.slane %v3631_v8, 7  ;;  %v2623_v8 = vsel %vm15642_vm10, %v13701_v18, 0  ;;  %vm15799_vm10 = vcmp.ne.s16.totalorder %v13084_v54, 0 }
 0x278   : > { %10648 = vmatprep.mubr.msk.bf16.mxu0 %vm390_vm1, %v3375_v25  ;;  %v3383_v25 = vsel %vm2116_vm5, %v3378_v37, %v3382_v20  ;;  %v3654_v37 = vshll.u32 %v2622_v16, 16  ;;  %v13726_v16 = vld [vmem:[%s15576_s3 + $0xa] sm:$0x3]  ;;  %v3662_v4 = vshll.u32 %v2623_v8, 16 }
 0x279   : > { %v3641_v56 = vsel %vm2455_vm3, %v3633_v43, %v3640_v27  ;;  %v3648_v27 = vor.u32 %v3646_v45, %v3645_v22 }
 0x27a   : > { %v13690_v21 = vpop.f32.mrb[48].mxu0 }
 0x27b   : > { %15789 = vst [vmem:[#allocation51_spill] sm:$0xff] %v13690_v21  ;;  %v13692_v32 = vpop.f32.mrb[49].mxu0  ;;  %v3653_v21 = vrot.slane %v3651_v2, 7  ;;  %v3659_v2 = vshrl.u32 %v2623_v8, 16 }
 0x27c   : > { %15790 = vst [vmem:[#allocation52_spill] sm:$0xff] %v13692_v32  ;;  %v13694_v63 = vpop.f32.mrb[50].mxu0 }
 0x27d   : > { %15791 = vst [vmem:[#allocation53_spill] sm:$0xff] %v13694_v63  ;;  %v13696_v53 = vpop.f32.mrb[51].mxu0  ;;  %v3656_v20 = vor.u32 %v3654_v37, %v3653_v21  ;;  %v3661_v32 = vrot.slane %v3659_v2, 7  ;;  %v3670_v2 = vshll.u32 %v2624_v52, 16 }
 0x27e   : > { %15792 = vst [vmem:[#allocation54_spill] sm:$0xff] %v13696_v53 }
 0x27f   : > { %10649 = vmatmul.mubr.msk.bf16.gmra.mrb[92].mxu0 %vm390_vm1, %v3383_v25  ;;  %v3667_v25 = vshrl.u32 %v2624_v52, 16  ;;  %v3657_v45 = vsel %vm2455_vm3, %v3645_v22, %v3656_v20  ;;  %v3664_v20 = vor.u32 %v3662_v4, %v3661_v32  ;;  %v2627_v4 = vsel %vm15643_vm9, %v13754_v5, 0 }
 0x280   : > { %10654 = vmatprep.mubr.msk.bf16.mxu0 %vm390_vm1, %v3641_v56  ;;  %v3649_v56 = vsel %vm2455_vm3, %v3637_v11, %v3648_v27  ;;  %v13736_v11 = vld [vmem:[#allocation2 + $0x40] sm:$0xff]  ;;  %vm15841_vm9 = vcmp.ne.s16.totalorder %v13363_v35, 0 }
 0x281   : > { %v3669_v37 = vrot.slane %v3667_v25, 7  ;;  %v2626_v27 = vsel %vm15799_vm10, %v13736_v11, 0  ;;  %vm15804_vm10 = vcmp.ne.s16.totalorder %v13129_v7, 0 }
 0x282   : > { %v13712_v12 = vpop.f32.mrb[52].mxu0 }
 0x283   : > { %15794 = vst [vmem:[#allocation55_spill] sm:$0xff] %v13712_v12  ;;  %v13714_v43 = vpop.f32.mrb[53].mxu0  ;;  %v3665_v12 = vsel %vm2455_vm3, %v3653_v21, %v3664_v20  ;;  %v3686_v20 = vshll.u32 %v2626_v27, 16 }
 0x284   : > { %15795 = vst [vmem:[#allocation56_spill] sm:$0xff] %v13714_v43  ;;  %v13716_v53 = vpop.f32.mrb[54].mxu0  ;;  %v13730_v43 = vld [vmem:[#allocation2 + $0x38] sm:$0xff] }
 0x285   : > { %15796 = vst [vmem:[#allocation57_spill] sm:$0xff] %v13716_v53  ;;  %v13718_v63 = vpop.f32.mrb[55].mxu0  ;;  %v3683_v53 = vshrl.u32 %v2626_v27, 16 }
 0x286   : > { %15797 = vst [vmem:[#allocation58_spill] sm:$0xff] %v13718_v63  ;;  %v2625_v63 = vsel %vm15798_vm2, %v13730_v43, 0  ;;  %vm15809_vm2 = vcmp.ne.s16.totalorder %v13180_v50, 0 }
 0x287   : > { %10655 = vmatmul.mubr.msk.bf16.vlgmr.msra.gmra.mrb[64].mxu0 %vm390_vm1, %v3649_v56  ;;  %v3675_v25 = vshrl.u32 %v2625_v63, 16  ;;  %v3685_v41 = vrot.slane %v3683_v53, 7  ;;  %v3691_v53 = vshrl.u32 %v2627_v4, 16 }
 0x288   : > { %10687 = vmatpush3.bf16.msra.mxu0 %v4009_v36  ;;  %10658 = vmatprep.mubr.msk.bf16.mxu0 %vm390_vm1, %v3657_v45  ;;  %v3672_v36 = vor.u32 %v3670_v2, %v3669_v37  ;;  %v3678_v2 = vshll.u32 %v2625_v63, 16 }
 0x289   : > { %11780 = vmatprep.subr.msk.bf16.mxu0 %vm563_vm0, %v13726_v16  ;;  %v3677_v47 = vrot.slane %v3675_v25, 7 }
 0x28a   : > { %v13743_v22 = vpop.f32.mrb[56].mxu0  ;;  %v3673_v52 = vsel %vm2455_vm3, %v3661_v32, %v3672_v36  ;;  %v3688_v36 = vor.u32 %v3686_v20, %v3685_v41  ;;  %v3694_v20 = vshll.u32 %v2627_v4, 16  ;;  %v13788_v4 = vld [vmem:[#allocation2 + $0x68] sm:$0xff] }
 0x28b   : > { %15800 = vst [vmem:[#allocation59_spill] sm:$0xff] %v13743_v22  ;;  %v13745_v56 = vpop.f32.mrb[57].mxu0  ;;  %v3680_v32 = vor.u32 %v3678_v2, %v3677_v47  ;;  %v2629_v2 = vsel %vm15809_vm2, %v13589_v57, 0  ;;  %vm15813_vm2 = vcmp.ne.s16.totalorder %v15812_v6, 0 }
 0x28c   : > { %15801 = vst [vmem:[#allocation60_spill] sm:$0xff] %v13745_v56  ;;  %v13747_v45 = vpop.f32.mrb[58].mxu0  ;;  %v3689_v26 = vsel %vm2455_vm3, %v3677_v47, %v3688_v36  ;;  %v2631_v59 = vsel %vm15813_vm2, %v13788_v4, 0  ;;  %vm15817_vm2 = vcmp.ne.s16.totalorder %v15816_v10, 0  ;;  %v15820_v10 = vld [vmem:[#allocation27_spill] sm:$0xff] }
 0x28d   : > { %15802 = vst [vmem:[#allocation61_spill] sm:$0xff] %v13747_v45  ;;  %v13749_v8 = vpop.f32.mrb[59].mxu0  ;;  %v13760_v45 = vld [vmem:[#allocation2 + $0x50] sm:$0xff]  ;;  %v3681_v63 = vsel %vm2455_vm3, %v3669_v37, %v3680_v32 }
 0x28e   : > { %15803 = vst [vmem:[#allocation62_spill] sm:$0xff] %v13749_v8  ;;  %v2628_v21 = vsel %vm15804_vm10, %v13760_v45, 0 }
 0x28f   : > { %10659 = vmatmul.mubr.msk.bf16.gmra.mrb[68].mxu0 %vm390_vm1, %v3665_v12  ;;  %v3699_v8 = vshrl.u32 %v2628_v21, 16  ;;  %v3702_v37 = vshll.u32 %v2628_v21, 16  ;;  %v3710_v21 = vshll.u32 %v2629_v2, 16 }
 0x290   : > { %10662 = vmatprep.mubr.msk.bf16.mxu0 %vm390_vm1, %v3673_v52  ;;  %v3693_v52 = vrot.slane %v3691_v53, 7  ;;  %v3707_v53 = vshrl.u32 %v2629_v2, 16  ;;  %v13802_v2 = vld [vmem:[#allocation2 + $0x78] sm:$0xff] }
 0x291   : > { %v3701_v27 = vrot.slane %v3699_v8, 7  ;;  %v2633_v1 = vsel %vm15817_vm2, %v13802_v2, 0  ;;  %vm15821_vm2 = vcmp.ne.s16.totalorder %v15820_v10, 0 }
 0x292   : > { %v13765_v12 = vpop.f32.mrb[60].mxu0  ;;  %v3696_v32 = vor.u32 %v3694_v20, %v3693_v52  ;;  %v3709_v8 = vrot.slane %v3707_v53, 7  ;;  %v13794_v20 = vld [vmem:[#allocation2 + $0x70] sm:$0xff] }
 0x293   : > { %15805 = vst [vmem:[#allocation63_spill] sm:$0xff] %v13765_v12  ;;  %v13767_v25 = vpop.f32.mrb[61].mxu0 }
 0x294   : > { %15806 = vst [vmem:[#allocation64_spill] sm:$0xff] %v13767_v25  ;;  %v13769_v56 = vpop.f32.mrb[62].mxu0  ;;  %v13780_v25 = vld [vmem:[#allocation2 + $0x60] sm:$0xff]  ;;  %v3697_v47 = vsel %vm2455_vm3, %v3685_v41, %v3696_v32  ;;  %v3712_v53 = vor.u32 %v3710_v21, %v3709_v8 }
 0x295   : > { %15807 = vst [vmem:[#allocation65_spill] sm:$0xff] %v13769_v56  ;;  %v13771_v22 = vpop.f32.mrb[63].mxu0  ;;  %v15810_v56 = vld [vmem:[#allocation22_spill] sm:$0xff]  ;;  %v13808_v21 = vld [vmem:[#allocation2 + $0x80] sm:$0xff] }
 0x296   : > { %15808 = vst [vmem:[#allocation66_spill] sm:$0xff] %v13771_v22  ;;  %vm15811_vm10 = vcmp.ne.s16.totalorder %v15810_v56, 0 }
 0x297   : > { %10663 = vmatmul.mubr.msk.bf16.gmra.mrb[72].mxu0 %vm390_vm1, %v3681_v63  ;;  %v2630_v22 = vsel %vm15811_vm10, %v13780_v25, 0  ;;  %v3704_v63 = vor.u32 %v3702_v37, %v3701_v27  ;;  %v15814_v37 = vld [vmem:[#allocation24_spill] sm:$0xff] }
 0x298   : > { %10666 = vmatprep.mubr.msk.bf16.mxu0 %vm390_vm1, %v3689_v26  ;;  %v3715_v12 = vshrl.u32 %v2630_v22, 16  ;;  %vm15815_vm10 = vcmp.ne.s16.totalorder %v15814_v37, 0  ;;  %v3718_v32 = vshll.u32 %v2630_v22, 16  ;;  %v3726_v22 = vshll.u32 %v2631_v59, 16 }
 0x299   : > { %v3705_v36 = vsel %vm2455_vm3, %v3693_v52, %v3704_v63  ;;  %v2632_v41 = vsel %vm15815_vm10, %v13794_v20, 0  ;;  %v3713_v63 = vsel %vm2455_vm3, %v3701_v27, %v3712_v53 }
 0x29a   : > { %v3717_v26 = vrot.slane %v3715_v12, 7  ;;  %v3731_v12 = vshrl.u32 %v2632_v41, 16  ;;  %v3734_v53 = vshll.u32 %v2632_v41, 16  ;;  %v3742_v41 = vshll.u32 %v2633_v1, 16 }
 0x29c   : > { %v3720_v52 = vor.u32 %v3718_v32, %v3717_v26  ;;  %v15818_v32 = vld [vmem:[#allocation26_spill] sm:$0xff] }
 0x29d   : > { %vm15819_vm10 = vcmp.ne.s16.totalorder %v15818_v32, 0 }
 0x29e   : > { %v3721_v34 = vsel %vm2455_vm3, %v3709_v8, %v3720_v52  ;;  %v2634_v27 = vsel %vm15819_vm10, %v13808_v21, 0 }
 0x29f   : > { %10667 = vmatmul.mubr.msk.bf16.gmra.mrb[76].mxu0 %vm390_vm1, %v3697_v47  ;;  %v3723_v47 = vshrl.u32 %v2631_v59, 16  ;;  %v3747_v52 = vshrl.u32 %v2634_v27, 16 }
 0x2a0   : > { %10670 = vmatprep.mubr.msk.bf16.mxu0 %vm390_vm1, %v3705_v36  ;;  %v3733_v36 = vrot.slane %v3731_v12, 7  ;;  %v13813_v12 = vld [vmem:[#allocation2 + $0x88] sm:$0xff] }
 0x2a1   : > { %v3725_v60 = vrot.slane %v3723_v47, 7  ;;  %v3749_v59 = vrot.slane %v3747_v52, 7  ;;  %v2635_v32 = vsel %vm15821_vm2, %v13813_v12, 0  ;;  %v15830_v52 = vld [vmem:[#allocation12_spill] sm:$0xff] }
 0x2a2   : > { %v3736_v8 = vor.u32 %v3734_v53, %v3733_v36  ;;  %v3755_v37 = vshrl.u32 %v2635_v32, 16 }
 0x2a3   : > { %v3728_v47 = vor.u32 %v3726_v22, %v3725_v60  ;;  %v3750_v22 = vshll.u32 %v2634_v27, 16  ;;  %v4387_v27 = vsel %vm563_vm0, %v13726_v16, 0  ;;  %v15827_v16 = vld [vmem:[#allocation7_spill] sm:$0xff] }
 0x2a5   : > { %v3729_v17 = vsel %vm2455_vm3, %v3717_v26, %v3728_v47  ;;  %v3752_v6 = vor.u32 %v3750_v22, %v3749_v59  ;;  %v3757_v26 = vrot.slane %v3755_v37, 7  ;;  %v15823_v37 = vld [vmem:[#allocation4_spill] sm:$0xff] }
 0x2a6   : > { %v15834_v22 = vld [vmem:[#allocation16_spill] sm:$0xff] }
 0x2a7   : > { %10671 = vmatmul.mubr.msk.bf16.gmra.mrb[80].mxu0 %vm390_vm1, %v3713_v63  ;;  %v3739_v63 = vshrl.u32 %v2633_v1, 16  ;;  %v15822_v1 = vld [vmem:[#allocation3_spill] sm:$0xff] }
 0x2a8   : > { %10674 = vmatprep.mubr.msk.bf16.mxu0 %vm390_vm1, %v3721_v34  ;;  %v3737_v34 = vsel %vm2455_vm3, %v3725_v60, %v3736_v8  ;;  %v3758_v60 = vshll.u32 %v2635_v32, 16  ;;  %v15828_v32 = vld [vmem:[#allocation10_spill] sm:$0xff]  ;;  %v15829_v8 = vld [vmem:[#allocation9_spill] sm:$0xff] }
 0x2a9   : > { %v3741_v38 = vrot.slane %v3739_v63, 7 }
 0x2aa   : > { %v3760_v47 = vor.u32 %v3758_v60, %v3757_v26 }
 0x2ab   : > { %v3744_v53 = vor.u32 %v3742_v41, %v3741_v38  ;;  %v15833_v41 = vld [vmem:[#allocation13_spill] sm:$0xff] }
 0x2ac   : > { %v3761_v63 = vsel %vm2455_vm3, %v3749_v59, %v3760_v47  ;;  %v15832_v59 = vld [vmem:[#allocation14_spill] sm:$0xff] }
 0x2ad   : > { %v3745_v56 = vsel %vm2455_vm3, %v3733_v36, %v3744_v53  ;;  %v15826_v36 = vld [vmem:[#allocation8_spill] sm:$0xff] }
 0x2ae   : > { %v15835_v53 = vld [vmem:[#allocation20_spill] sm:$0xff] }
 0x2af   : > { %10675 = vmatmul.mubr.msk.bf16.gmra.mrb[84].mxu0 %vm390_vm1, %v3729_v17  ;;  %v3753_v17 = vsel %vm2455_vm3, %v3741_v38, %v3752_v6  ;;  %v15824_v38 = vld [vmem:[#allocation5_spill] sm:$0xff]  ;;  %v15825_v6 = vld [vmem:[#allocation6_spill] sm:$0xff]  ;;  %vm15836_vm10 = vcmp.ne.s16.totalorder %v15835_v53, 0 }
 0x2b0   : > { %10678 = vmatprep.mubr.msk.bf16.mxu0 %vm390_vm1, %v3737_v34  ;;  %v15831_v34 = vld [vmem:[#allocation11_spill] sm:$0xff]  ;;  %v2637_v26 = vsel %vm15836_vm10, %v13658_v39, 0  ;;  %vm15842_vm10 = vcmp.ne.s16.totalorder %v13403_v30, 0 }
 0x2b1   : > { %v4209_v47 = vshll.u32 %v2637_v26, 16  ;;  %v2640_v39 = vsel %vm15842_vm10, %v13701_v18, 0  ;;  %vm15846_vm10 = vcmp.ne.s16.totalorder %v13460_v3, 0 }
 0x2b7   : > { %10679 = vmatmul.mubr.msk.bf16.gmra.mrb[88].mxu0 %vm390_vm1, %v3745_v56  ;;  %v9848_v56 = vld [vmem:[%s15576_s3 + $0xc] sm:$0x3] }
 0x2b8   : > { %10682 = vmatprep.mubr.msk.bf16.mxu0 %vm390_vm1, %v3753_v17  ;;  %v15837_v17 = vld [vmem:[#allocation28_spill] sm:$0xff] }
 0x2b9   : > { %vm15838_vm2 = vcmp.ne.s16.totalorder %v15837_v17, 0 }
 0x2ba   : > { %v2638_v60 = vsel %vm15838_vm2, %v13679_v24, 0  ;;  %vm15844_vm2 = vcmp.ne.s16.totalorder %v13417_v49, 0 }
 0x2bf   : > { %10683 = vmatmul.mubr.msk.bf16.gmra.mrb[92].mxu0 %vm390_vm1, %v3761_v63  ;;  %v15839_v63 = vld [vmem:[#allocation15_spill] sm:$0xff] }
 0x2c0   : > { %10688 = vmatprep.mubr.msk.bf16.mxu0 %vm390_vm1, %v15822_v1  ;;  %v4214_v1 = vshll.u32 %v2638_v60, 16 }
 0x2c7   : > { %10689 = vmatmul.mubr.msk.bf16.vlgmr.msra.gmra.mrb[64].mxu0 %vm390_vm1, %v15823_v37  ;;  %v4211_v37 = vrot.slane %v4209_v47, 1 }
 0x2c8   : > { %10721 = vmatpush3.bf16.msra.mxu0 %v4387_v27  ;;  %10692 = vmatprep.mubr.msk.bf16.mxu0 %vm390_vm1, %v15824_v38  ;;  %v15840_v27 = vld [vmem:[#allocation18_spill] sm:$0xff]  ;;  %v2639_v38 = vsel %vm15841_vm9, %v13685_v15, 0  ;;  %vm15845_vm9 = vcmp.ne.s16.totalorder %v13420_v42, 0 }
 0x2c9   : > { %11781 = vmatprep.subr.msk.bf16.mxu0 %vm563_vm0, %v9848_v56 }
 0x2cf   : > { %10693 = vmatmul.mubr.msk.bf16.gmra.mrb[68].mxu0 %vm390_vm1, %v15825_v6  ;;  %v4207_v6 = vshrl.u32 %v2637_v26, 16  ;;  %v4226_v26 = vshrl.u32 %v2639_v38, 16 }
 0x2d0   : > { %10696 = vmatprep.mubr.msk.bf16.mxu0 %vm390_vm1, %v15826_v36  ;;  %v4216_v36 = vrot.slane %v4214_v1, 1 }
 0x2d7   : > { %10697 = vmatmul.mubr.msk.bf16.gmra.mrb[72].mxu0 %vm390_vm1, %v15827_v16  ;;  %v4212_v16 = vor.u32 %v4211_v37, %v4207_v6 }
 0x2d8   : > { %10700 = vmatprep.mubr.msk.bf16.mxu0 %vm390_vm1, %v15828_v32  ;;  %v4222_v32 = vshll.u32 %v2639_v38, 16 }
 0x2df   : > { %10701 = vmatmul.mubr.msk.bf16.gmra.mrb[76].mxu0 %vm390_vm1, %v15829_v8  ;;  %v15843_v8 = vld [vmem:[#allocation17_spill] sm:$0xff] }
 0x2e0   : > { %10704 = vmatprep.mubr.msk.bf16.mxu0 %vm390_vm1, %v15830_v52  ;;  %v4217_v52 = vsel %vm2116_vm5, %v4212_v16, %v4216_v36  ;;  %v2642_v16 = vsel %vm15845_vm9, %v13730_v43, 0  ;;  %vm15848_vm9 = vcmp.ne.s16.totalorder %v13600_v51, 0 }
 0x2e7   : > { %10705 = vmatmul.mubr.msk.bf16.gmra.mrb[80].mxu0 %vm390_vm1, %v15831_v34  ;;  %v4230_v34 = vshll.u32 %v2640_v39, 16 }
 0x2e8   : > { %10708 = vmatprep.mubr.msk.bf16.mxu0 %vm390_vm1, %v15832_v59  ;;  %v2641_v59 = vsel %vm15844_vm2, %v13707_v19, 0  ;;  %vm15847_vm2 = vcmp.ne.s16.totalorder %v13463_v28, 0 }
 0x2e9   : > { %v4232_v47 = vrot.slane %v4230_v34, 1 }
 0x2ef   : > { %10709 = vmatmul.mubr.msk.bf16.gmra.mrb[84].mxu0 %vm390_vm1, %v15833_v41  ;;  %v4224_v41 = vrot.slane %v4222_v32, 1  ;;  %v4246_v32 = vshll.u32 %v2642_v16, 16 }
 0x2f0   : > { %10712 = vmatprep.mubr.msk.bf16.mxu0 %vm390_vm1, %v15834_v22  ;;  %v4218_v22 = vshrl.u32 %v2638_v60, 16 }
 0x2f1   : > { %v4228_v37 = vor.u32 %v4226_v26, %v4224_v41  ;;  %v4248_v26 = vrot.slane %v4246_v32, 1 }
 0x2f2   : > { %v4220_v1 = vor.u32 %v4218_v22, %v4216_v36  ;;  %v4242_v36 = vshrl.u32 %v2641_v59, 16 }
 0x2f3   : > { %v4233_v60 = vsel %vm2116_vm5, %v4228_v37, %v4232_v47 }
 0x2f4   : > { %v4225_v6 = vsel %vm2116_vm5, %v4220_v1, %v4224_v41 }
 0x2f7   : > { %10713 = vmatmul.mubr.msk.bf16.gmra.mrb[88].mxu0 %vm390_vm1, %v15839_v63  ;;  %v4238_v63 = vshll.u32 %v2641_v59, 16 }
 0x2f8   : > { %10716 = vmatprep.mubr.msk.bf16.mxu0 %vm390_vm1, %v15840_v27  ;;  %v4765_v27 = vsel %vm563_vm0, %v9848_v56, 0  ;;  %v2643_v56 = vsel %vm15846_vm10, %v13736_v11, 0  ;;  %vm15849_vm10 = vcmp.ne.s16.totalorder %v13604_v62, 0 }
 0x2f9   : > { %v4240_v38 = vrot.slane %v4238_v63, 1  ;;  %v4254_v41 = vshll.u32 %v2643_v56, 16  ;;  %v2644_v63 = vsel %vm15847_vm2, %v13754_v5, 0  ;;  %v4258_v37 = vshrl.u32 %v2643_v56, 16 }
 0x2fa   : > { %vm15850_vm2 = vcmp.ne.s16.totalorder %v13633_v58, 0 }
 0x2fb   : > { %v4244_v34 = vor.u32 %v4242_v36, %v4240_v38  ;;  %v4256_v59 = vrot.slane %v4254_v41, 1 }
 0x2ff   : > { %10717 = vmatmul.mubr.msk.bf16.gmra.mrb[92].mxu0 %vm390_vm1, %v15843_v8  ;;  %v13891_v8 = vld [vmem:[%s15576_s3 + $0xe] sm:$0x3] }
 0x300   : > { %10722 = vmatprep.mubr.msk.bf16.mxu0 %vm390_vm1, %v4217_v52  ;;  %v4234_v52 = vshrl.u32 %v2640_v39, 16  ;;  %v2645_v39 = vsel %vm2591_vm6, %v13760_v45, 0 }
 0x301   : > { %v4274_v56 = vshrl.u32 %v2645_v39, 16 }
 0x302   : > { %v4236_v22 = vor.u32 %v4234_v52, %v4232_v47  ;;  %v4262_v47 = vshll.u32 %v2644_v63, 16 }
 0x304   : > { %v4241_v1 = vsel %vm2116_vm5, %v4236_v22, %v4240_v38  ;;  %v4270_v38 = vshll.u32 %v2645_v39, 16  ;;  %v4264_v32 = vrot.slane %v4262_v47, 1 }
 0x306   : > { %v4272_v22 = vrot.slane %v4270_v38, 1 }
 0x307   : > { %10723 = vmatmul.mubr.msk.bf16.vlgmr.msra.gmra.mrb[64].mxu0 %vm390_vm1, %v4225_v6  ;;  %v4250_v6 = vshrl.u32 %v2642_v16, 16  ;;  %v2647_v16 = vsel %vm2593_vm13, %v13780_v25, 0 }
 0x308   : > { %10755 = vmatpush3.bf16.msra.mxu0 %v4765_v27  ;;  %10726 = vmatprep.mubr.msk.bf16.mxu0 %vm390_vm1, %v4233_v60  ;;  %v4249_v27 = vsel %vm2116_vm5, %v4244_v34, %v4248_v26  ;;  %v4260_v60 = vor.u32 %v4258_v37, %v4256_v59  ;;  %v2646_v34 = vsel %vm2592_vm14, %v13589_v57, 0  ;;  %v4290_v39 = vshrl.u32 %v2647_v16, 16 }
 0x309   : > { %11782 = vmatprep.subr.msk.bf16.mxu0 %vm563_vm0, %v13891_v8  ;;  %v4252_v36 = vor.u32 %v4250_v6, %v4248_v26  ;;  %v4278_v26 = vshll.u32 %v2646_v34, 16 }
 0x30a   : > { %v4265_v41 = vsel %vm2116_vm5, %v4260_v60, %v4264_v32  ;;  %v2648_v60 = vsel %vm2594_vm4, %v13788_v4, 0 }
 0x30b   : > { %v4257_v52 = vsel %vm2116_vm5, %v4252_v36, %v4256_v59  ;;  %v4286_v59 = vshll.u32 %v2647_v16, 16  ;;  %v4280_v47 = vrot.slane %v4278_v26, 1 }
 0x30d   : > { %v4288_v36 = vrot.slane %v4286_v59, 1 }
 0x30f   : > { %10727 = vmatmul.mubr.msk.bf16.gmra.mrb[68].mxu0 %vm390_vm1, %v4241_v1  ;;  %v4266_v1 = vshrl.u32 %v2644_v63, 16  ;;  %v2649_v63 = vsel %vm15848_vm9, %v13794_v20, 0  ;;  %vm15851_vm9 = vcmp.ne.s16.totalorder %v12995_v0, 0 }
 0x310   : > { %10730 = vmatprep.mubr.msk.bf16.mxu0 %vm390_vm1, %v4249_v27  ;;  %v4276_v27 = vor.u32 %v4274_v56, %v4272_v22  ;;  %v4306_v16 = vshrl.u32 %v2649_v63, 16 }
 0x311   : > { %v4268_v37 = vor.u32 %v4266_v1, %v4264_v32  ;;  %v4294_v32 = vshll.u32 %v2648_v60, 16 }
 0x312   : > { %v4281_v38 = vsel %vm2116_vm5, %v4276_v27, %v4280_v47  ;;  %v2650_v27 = vsel %vm15849_vm10, %v13802_v2, 0  ;;  %vm15852_vm10 = vcmp.ne.s16.totalorder %v13035_v48, 0 }
 0x313   : > { %v4273_v6 = vsel %vm2116_vm5, %v4268_v37, %v4272_v22  ;;  %v4302_v22 = vshll.u32 %v2649_v63, 16  ;;  %v4296_v26 = vrot.slane %v4294_v32, 1  ;;  %v2636_v63 = vld [vmem:[#allocation2 + $0x90] sm:$0x1]  ;;  %v2660_v0 = vsel %vm15852_vm10, %v13707_v19, 0 }
 0x314   : > { %vm15855_vm10 = vcmp.ne.s16.totalorder %v13084_v54, 0 }
 0x315   : > { %v4304_v37 = vrot.slane %v4302_v22, 1 }
 0x317   : > { %10731 = vmatmul.mubr.msk.bf16.gmra.mrb[72].mxu0 %vm390_vm1, %v4257_v52  ;;  %v4282_v52 = vshrl.u32 %v2646_v34, 16  ;;  %v2651_v34 = vsel %vm2597_vm12, %v13808_v21, 0 }
 0x318   : > { %10734 = vmatprep.mubr.msk.bf16.mxu0 %vm390_vm1, %v4265_v41  ;;  %v4292_v41 = vor.u32 %v4290_v39, %v4288_v36 }
 0x319   : > { %v4284_v56 = vor.u32 %v4282_v52, %v4280_v47  ;;  %v4310_v47 = vshll.u32 %v2650_v27, 16 }
 0x31a   : > { %v4297_v59 = vsel %vm2116_vm5, %v4292_v41, %v4296_v26  ;;  %v2652_v41 = vsel %vm15850_vm2, %v13813_v12, 0  ;;  %vm15853_vm2 = vcmp.ne.s16.totalorder %v13046_v46, 0 }
 0x31b   : > { %v4289_v1 = vsel %vm2116_vm5, %v4284_v56, %v4288_v36  ;;  %v4318_v36 = vshll.u32 %v2651_v34, 16  ;;  %v4312_v32 = vrot.slane %v4310_v47, 1  ;;  %v2654_v47 = vld [vmem:[#allocation2 + $0x10] sm:$0x80] }
 0x31d   : > { %v4320_v56 = vrot.slane %v4318_v36, 1 }
 0x31f   : > { %10735 = vmatmul.mubr.msk.bf16.gmra.mrb[76].mxu0 %vm390_vm1, %v4273_v6  ;;  %v4298_v6 = vshrl.u32 %v2648_v60, 16  ;;  %v2657_v60 = vsel %vm2245_vm8, %v13679_v24, 0 }
 0x320   : > { %10738 = vmatprep.mubr.msk.bf16.mxu0 %vm390_vm1, %v4281_v38  ;;  %v4308_v38 = vor.u32 %v4306_v16, %v4304_v37  ;;  %v2653_v16 = vsel %vm2599_vm7, %v2636_v63, 0  ;;  %v4330_v63 = vshrl.u32 %v2652_v41, 16 }
 0x321   : > { %v4300_v39 = vor.u32 %v4298_v6, %v4296_v26  ;;  %v4322_v26 = vshrl.u32 %v2651_v34, 16  ;;  %v4589_v6 = vshrl.u32 %v2657_v60, 16  ;;  %v4334_v36 = vshll.u32 %v2653_v16, 16 }
 0x322   : > { %v4313_v22 = vsel %vm2116_vm5, %v4308_v38, %v4312_v32 }
 0x323   : > { %v4305_v52 = vsel %vm2116_vm5, %v4300_v39, %v4304_v37  ;;  %v4324_v37 = vor.u32 %v4322_v26, %v4320_v56  ;;  %v4591_v40 = vrot.slane %v4589_v6, 7  ;;  %v4592_v26 = vshll.u32 %v2657_v60, 16 }
 0x327   : > { %10739 = vmatmul.mubr.msk.bf16.gmra.mrb[80].mxu0 %vm390_vm1, %v4289_v1  ;;  %v4326_v1 = vshll.u32 %v2652_v41, 16 }
 0x328   : > { %10742 = vmatprep.mubr.msk.bf16.mxu0 %vm390_vm1, %v4297_v59  ;;  %v4314_v59 = vshrl.u32 %v2650_v27, 16  ;;  %v2658_v27 = vsel %vm2246_vm15, %v13685_v15, 0 }
 0x329   : > { %v4597_v16 = vshrl.u32 %v2658_v27, 16  ;;  %v4600_v60 = vshll.u32 %v2658_v27, 16 }
 0x32a   : > { %v4316_v39 = vor.u32 %v4314_v59, %v4312_v32  ;;  %v2659_v32 = vsel %vm15851_vm9, %v13701_v18, 0  ;;  %v4336_v59 = vrot.slane %v4334_v36, 1  ;;  %vm15854_vm9 = vcmp.ne.s16.totalorder %v13064_v13, 0 }
 0x32b   : > { %v4608_v36 = vshll.u32 %v2659_v32, 16 }
 0x32c   : > { %v4321_v38 = vsel %vm2116_vm5, %v4316_v39, %v4320_v56  ;;  %v4605_v39 = vshrl.u32 %v2659_v32, 16 }
 0x32e   : > { %v4607_v41 = vrot.slane %v4605_v39, 7  ;;  %v2662_v39 = vsel %vm15854_vm9, %v13736_v11, 0  ;;  %vm15857_vm9 = vcmp.ne.s16.totalorder %v13129_v7, 0 }
 0x32f   : > { %10743 = vmatmul.mubr.msk.bf16.gmra.mrb[84].mxu0 %vm390_vm1, %v4305_v52  ;;  %v4328_v52 = vrot.slane %v4326_v1, 1 }
 0x330   : > { %10746 = vmatprep.mubr.msk.bf16.mxu0 %vm390_vm1, %v4313_v22  ;;  %v2656_v22 = vsel %vm2244_vm11, %v2654_v47, 0  ;;  %v4594_v47 = vor.u32 %v4592_v26, %v4591_v40 }
 0x331   : > { %v4329_v34 = vsel %vm2116_vm5, %v4324_v37, %v4328_v52  ;;  %v4585_v56 = vshrl.u32 %v2656_v22, 16  ;;  %v4332_v1 = vor.u32 %v4330_v63, %v4328_v52  ;;  %v2661_v52 = vsel %vm15853_vm2, %v13730_v43, 0 }
 0x332   : > { %v4613_v63 = vshrl.u32 %v2660_v0, 16  ;;  %v4621_v26 = vshrl.u32 %v2661_v52, 16  ;;  %vm15856_vm2 = vcmp.ne.s16.totalorder %v13117_v44, 0 }
 0x333   : > { %v4587_v37 = vrot.slane %v4585_v56, 7  ;;  %v4337_v6 = vsel %vm2116_vm5, %v4332_v1, %v4336_v59  ;;  %v4610_v56 = vor.u32 %v4608_v36, %v4607_v41  ;;  %v4969_v1 = vsel %vm563_vm0, %v13891_v8, 0 }
 0x334   : > { %v4623_v32 = vrot.slane %v4621_v26, 7  ;;  %v4616_v8 = vshll.u32 %v2660_v0, 16  ;;  %v2665_v26 = vsel %vm15857_vm9, %v13589_v57, 0 }
 0x337   : > { %10747 = vmatmul.mubr.msk.bf16.gmra.mrb[88].mxu0 %vm390_vm1, %v4321_v38  ;;  %v4599_v38 = vrot.slane %v4597_v16, 7  ;;  %v4615_v16 = vrot.slane %v4613_v63, 7 }
 0x338   : > { %10750 = vmatprep.mubr.msk.bf16.mxu0 %vm390_vm1, %v4329_v34  ;;  %v4595_v34 = vsel %vm2455_vm3, %v4587_v37, %v4594_v47  ;;  %v13981_v47 = vld [vmem:[%s15576_s3 + $0x10] sm:$0x3]  ;;  %v4624_v37 = vshll.u32 %v2661_v52, 16  ;;  %v4632_v52 = vshll.u32 %v2662_v39, 16 }
 0x339   : > { %v4602_v22 = vor.u32 %v4600_v60, %v4599_v38  ;;  %v4611_v27 = vsel %vm2455_vm3, %v4599_v38, %v4610_v56  ;;  %v2664_v56 = vsel %vm15856_vm2, %v13760_v45, 0 }
 0x33a   : > { %v4626_v38 = vor.u32 %v4624_v37, %v4623_v32 }
 0x33b   : > { %v4603_v59 = vsel %vm2455_vm3, %v4591_v40, %v4602_v22  ;;  %v2663_v40 = vsel %vm15855_vm10, %v13754_v5, 0  ;;  %vm15858_vm10 = vcmp.ne.s16.totalorder %v13180_v50, 0 }
 0x33c   : > { %v4637_v60 = vshrl.u32 %v2663_v40, 16  ;;  %v4627_v63 = vsel %vm2455_vm3, %v4615_v16, %v4626_v38  ;;  %v4648_v38 = vshll.u32 %v2664_v56, 16 }
 0x33e   : > { %v4639_v0 = vrot.slane %v4637_v60, 7 }
 0x33f   : > { %10751 = vmatmul.mubr.msk.bf16.gmra.mrb[92].mxu0 %vm390_vm1, %v4337_v6  ;;  %v4618_v6 = vor.u32 %v4616_v8, %v4615_v16  ;;  %v4653_v8 = vshrl.u32 %v2665_v26, 16 }
 0x340   : > { %10756 = vmatprep.mubr.msk.bf16.mxu0 %vm390_vm1, %v4595_v34  ;;  %v4629_v34 = vshrl.u32 %v2662_v39, 16  ;;  %v2666_v39 = vsel %vm15858_vm10, %v13780_v25, 0 }
 0x341   : > { %v4619_v36 = vsel %vm2455_vm3, %v4607_v41, %v4618_v6  ;;  %v4645_v41 = vshrl.u32 %v2664_v56, 16 }
 0x342   : > { %v4631_v22 = vrot.slane %v4629_v34, 7  ;;  %v4655_v34 = vrot.slane %v4653_v8, 7  ;;  %v15861_v8 = vld [vmem:[#allocation23_spill] sm:$0xff] }
 0x343   : > { %v4647_v16 = vrot.slane %v4645_v41, 7  ;;  %vm15862_vm9 = vcmp.ne.s16.totalorder %v15861_v8, 0 }
 0x344   : > { %v2668_v56 = vsel %vm15862_vm9, %v13794_v20, 0 }
 0x347   : > { %10757 = vmatmul.mubr.msk.bf16.vlgmr.msra.gmra.mrb[64].mxu0 %vm390_vm1, %v4603_v59  ;;  %v4634_v59 = vor.u32 %v4632_v52, %v4631_v22 }
 0x348   : > { %10789 = vmatpush3.bf16.msra.mxu0 %v4969_v1  ;;  %10760 = vmatprep.mubr.msk.bf16.mxu0 %vm390_vm1, %v4611_v27  ;;  %v4640_v1 = vshll.u32 %v2663_v40, 16  ;;  %v15859_v40 = vld [vmem:[#allocation22_spill] sm:$0xff] }
 0x349   : > { %11783 = vmatprep.subr.msk.bf16.mxu0 %vm563_vm0, %v13981_v47  ;;  %v4635_v37 = vsel %vm2455_vm3, %v4623_v32, %v4634_v59  ;;  %vm15860_vm2 = vcmp.ne.s16.totalorder %v15859_v40, 0  ;;  %v4661_v32 = vshrl.u32 %v2666_v39, 16 }
 0x34a   : > { %v4642_v27 = vor.u32 %v4640_v1, %v4639_v0  ;;  %v2667_v60 = vsel %vm15860_vm2, %v13788_v4, 0 }
 0x34b   : > { %v4669_v1 = vshrl.u32 %v2667_v60, 16 }
 0x34c   : > { %v4643_v6 = vsel %vm2455_vm3, %v4631_v22, %v4642_v27  ;;  %v4663_v22 = vrot.slane %v4661_v32, 7 }
 0x34d   : > { %v4671_v27 = vrot.slane %v4669_v1, 7 }
 0x34f   : > { %10761 = vmatmul.mubr.msk.bf16.gmra.mrb[68].mxu0 %vm390_vm1, %v4619_v36  ;;  %v4656_v36 = vshll.u32 %v2665_v26, 16  ;;  %v15863_v26 = vld [vmem:[#allocation24_spill] sm:$0xff] }
 0x350   : > { %10764 = vmatprep.mubr.msk.bf16.mxu0 %vm390_vm1, %v4627_v63  ;;  %v4650_v63 = vor.u32 %v4648_v38, %v4647_v16  ;;  %vm15864_vm10 = vcmp.ne.s16.totalorder %v15863_v26, 0  ;;  %v4672_v38 = vshll.u32 %v2667_v60, 16  ;;  %v4680_v26 = vshll.u32 %v2668_v56, 16  ;;  %v15867_v60 = vld [vmem:[#allocation26_spill] sm:$0xff] }
 0x351   : > { %v4658_v52 = vor.u32 %v4656_v36, %v4655_v34  ;;  %vm15868_vm9 = vcmp.ne.s16.totalorder %v15867_v60, 0 }
 0x352   : > { %v4651_v59 = vsel %vm2455_vm3, %v4639_v0, %v4650_v63  ;;  %v4677_v0 = vshrl.u32 %v2668_v56, 16  ;;  %v4674_v63 = vor.u32 %v4672_v38, %v4671_v27 }
 0x353   : > { %v4659_v41 = vsel %vm2455_vm3, %v4647_v16, %v4658_v52 }
 0x354   : > { %v4679_v16 = vrot.slane %v4677_v0, 7  ;;  %v4675_v52 = vsel %vm2455_vm3, %v4663_v22, %v4674_v63 }
 0x356   : > { %v4682_v8 = vor.u32 %v4680_v26, %v4679_v16 }
 0x357   : > { %10765 = vmatmul.mubr.msk.bf16.gmra.mrb[72].mxu0 %vm390_vm1, %v4635_v37  ;;  %v4664_v37 = vshll.u32 %v2666_v39, 16 }
 0x358   : > { %10768 = vmatprep.mubr.msk.bf16.mxu0 %vm390_vm1, %v4643_v6  ;;  %v2669_v6 = vsel %vm15864_vm10, %v13802_v2, 0  ;;  %vm15869_vm10 = vcmp.ne.s16.totalorder %v15820_v10, 0 }
 0x359   : > { %v4666_v36 = vor.u32 %v4664_v37, %v4663_v22  ;;  %v4685_v32 = vshrl.u32 %v2669_v6, 16  ;;  %v2671_v37 = vsel %vm15868_vm9, %v13813_v12, 0  ;;  %v4688_v38 = vshll.u32 %v2669_v6, 16 }
 0x35a   : > { %v4701_v0 = vshrl.u32 %v2671_v37, 16  ;;  %v4683_v22 = vsel %vm2455_vm3, %v4671_v27, %v4682_v8  ;;  %v4704_v6 = vshll.u32 %v2671_v37, 16  ;;  %vm15871_vm9 = vcmp.ne.s16.totalorder %v15837_v17, 0 }
 0x35b   : > { %v4687_v1 = vrot.slane %v4685_v32, 7 }
 0x35f   : > { %10769 = vmatmul.mubr.msk.bf16.gmra.mrb[76].mxu0 %vm390_vm1, %v4651_v59  ;;  %v4667_v59 = vsel %vm2455_vm3, %v4655_v34, %v4666_v36  ;;  %v4690_v36 = vor.u32 %v4688_v38, %v4687_v1 }
 0x360   : > { %10772 = vmatprep.mubr.msk.bf16.mxu0 %vm390_vm1, %v4659_v41  ;;  %v15865_v41 = vld [vmem:[#allocation25_spill] sm:$0xff] }
 0x361   : > { %vm15866_vm2 = vcmp.ne.s16.totalorder %v15865_v41, 0  ;;  %v4691_v32 = vsel %vm2455_vm3, %v4679_v16, %v4690_v36 }
 0x362   : > { %v2670_v39 = vsel %vm15866_vm2, %v13808_v21, 0  ;;  %vm15870_vm2 = vcmp.ne.s16.totalorder %v15835_v53, 0 }
 0x363   : > { %v4693_v34 = vshrl.u32 %v2670_v39, 16  ;;  %v4696_v26 = vshll.u32 %v2670_v39, 16  ;;  %v9900_v39 = vld [vmem:[%s15578_s5 + $0x2] sm:$0x3] }
 0x364   : > { %11784 = vmatprep.subr.msk.bf16.mxu1 %vm563_vm0, %v9900_v39 }
 0x365   : > { %v4695_v63 = vrot.slane %v4693_v34, 7 }
 0x367   : > { %10773 = vmatmul.mubr.msk.bf16.gmra.mrb[80].mxu0 %vm390_vm1, %v4667_v59  ;;  %v14034_v59 = vld [vmem:[#allocation2 + $0x90] sm:$0xff]  ;;  %v4698_v38 = vor.u32 %v4696_v26, %v4695_v63 }
 0x368   : > { %10776 = vmatprep.mubr.msk.bf16.mxu0 %vm390_vm1, %v4675_v52  ;;  %v4703_v52 = vrot.slane %v4701_v0, 7  ;;  %v2672_v56 = vsel %vm15869_vm10, %v14034_v59, 0  ;;  %vm15872_vm10 = vcmp.ne.s16.totalorder %v13363_v35, 0 }
 0x369   : > { %v4709_v60 = vshrl.u32 %v2672_v56, 16  ;;  %v4699_v40 = vsel %vm2455_vm3, %v4687_v1, %v4698_v38  ;;  %v4712_v8 = vshll.u32 %v2672_v56, 16  ;;  %v5347_v1 = vsel %vm563_vm0, %v13981_v47, 0 }
 0x36a   : > { %v4706_v41 = vor.u32 %v4704_v6, %v4703_v52  ;;  %v2674_v47 = vsel %vm15870_vm2, %v13679_v24, 0  ;;  %v2676_v0 = vsel %vm15872_vm10, %v13701_v18, 0  ;;  %vm15873_vm2 = vcmp.ne.s16.totalorder %v13403_v30, 0 }
 0x36b   : > { %v4711_v27 = vrot.slane %v4709_v60, 7  ;;  %v5186_v38 = vshrl.u32 %v2676_v0, 16  ;;  %vm15875_vm10 = vcmp.ne.s16.totalorder %v13420_v42, 0 }
 0x36c   : > { %v4707_v16 = vsel %vm2455_vm3, %v4695_v63, %v4706_v41  ;;  %v5169_v41 = vshll.u32 %v2674_v47, 16 }
 0x36d   : > { %v4714_v34 = vor.u32 %v4712_v8, %v4711_v27 }
 0x36e   : > { %v5171_v37 = vrot.slane %v5169_v41, 1 }
 0x36f   : > { %10777 = vmatmul.mubr.msk.bf16.gmra.mrb[84].mxu0 %vm390_vm1, %v4683_v22  ;;  %v4715_v36 = vsel %vm2455_vm3, %v4703_v52, %v4714_v34  ;;  %v5167_v22 = vshrl.u32 %v2674_v47, 16 }
 0x370   : > { %10780 = vmatprep.mubr.msk.bf16.mxu0 %vm390_vm1, %v4691_v32  ;;  %v5182_v32 = vshll.u32 %v2676_v0, 16 }
 0x372   : > { %v5184_v26 = vrot.slane %v5182_v32, 1 }
 0x377   : > { %10781 = vmatmul.mubr.msk.bf16.gmra.mrb[88].mxu0 %vm390_vm1, %v4699_v40  ;;  %v5983_v40 = vsel %vm563_vm0, %v9900_v39, 0 }
 0x378   : > { %10784 = vmatprep.mubr.msk.bf16.mxu0 %vm390_vm1, %v4707_v16  ;;  %10857 = vmatpush3.bf16.msra.mxu1 %v5983_v40  ;;  %v5188_v16 = vor.u32 %v5186_v38, %v5184_v26 }
 0x37f   : > { %10785 = vmatmul.mubr.msk.bf16.gmra.mrb[92].mxu0 %vm390_vm1, %v4715_v36 }
 0x380   : > { %10790 = vmatprep.mubr.msk.bf16.mxu0 %vm390_vm1, %v13679_v24  ;;  %v2677_v24 = vsel %vm15873_vm2, %v13707_v19, 0  ;;  %vm15876_vm2 = vcmp.ne.s16.totalorder %v13460_v3, 0 }
 0x381   : > { %v5190_v56 = vshll.u32 %v2677_v24, 16 }
 0x383   : > { %v5192_v27 = vrot.slane %v5190_v56, 1 }
 0x385   : > { %v5193_v39 = vsel %vm2116_vm5, %v5188_v16, %v5192_v27 }
 0x387   : > { %10791 = vmatmul.mubr.msk.bf16.vlgmr.msra.gmra.mrb[64].mxu0 %vm390_vm1, %v13685_v15 }
 0x388   : > { %10823 = vmatpush3.bf16.msra.mxu0 %v5347_v1  ;;  %10794 = vmatprep.mubr.msk.bf16.mxu0 %vm390_vm1, %v13701_v18  ;;  %v5194_v1 = vshrl.u32 %v2677_v24, 16 }
 0x38a   : > { %v5196_v47 = vor.u32 %v5194_v1, %v5192_v27  ;;  %v2685_v1 = vsel %vm2594_vm4, %v13794_v20, 0 }
 0x38f   : > { %10795 = vmatmul.mubr.msk.bf16.gmra.mrb[68].mxu0 %vm390_vm1, %v13707_v19  ;;  %v2679_v19 = vsel %vm15875_vm10, %v13736_v11, 0  ;;  %vm15878_vm10 = vcmp.ne.s16.totalorder %v13600_v51, 0 }
 0x390   : > { %10798 = vmatprep.mubr.msk.bf16.mxu0 %vm390_vm1, %v13730_v43  ;;  %v5206_v40 = vshll.u32 %v2679_v19, 16 }
 0x397   : > { %10799 = vmatmul.mubr.msk.bf16.gmra.mrb[72].mxu0 %vm390_vm1, %v13736_v11  ;;  %v5208_v11 = vrot.slane %v5206_v40, 1 }
 0x398   : > { %10802 = vmatprep.mubr.msk.bf16.mxu0 %vm390_vm1, %v13754_v5 }
 0x39f   : > { %10803 = vmatmul.mubr.msk.bf16.gmra.mrb[76].mxu0 %vm390_vm1, %v13760_v45 }
 0x3a0   : > { %10806 = vmatprep.mubr.msk.bf16.mxu0 %vm390_vm1, %v13589_v57  ;;  %v2675_v57 = vsel %vm15871_vm9, %v13685_v15, 0  ;;  %v5172_v15 = vor.u32 %v5171_v37, %v5167_v22  ;;  %vm15874_vm9 = vcmp.ne.s16.totalorder %v13417_v49, 0 }
 0x3a1   : > { %v5174_v60 = vshll.u32 %v2675_v57, 16  ;;  %v5178_v6 = vshrl.u32 %v2675_v57, 16  ;;  %v2678_v18 = vsel %vm15874_vm9, %v13730_v43, 0  ;;  %v2680_v57 = vsel %vm15876_vm2, %v13754_v5, 0 }
 0x3a2   : > { %v5198_v34 = vshll.u32 %v2678_v18, 16  ;;  %v5202_v41 = vshrl.u32 %v2678_v18, 16  ;;  %vm15877_vm9 = vcmp.ne.s16.totalorder %v13463_v28, 0  ;;  %v5214_v0 = vshll.u32 %v2680_v57, 16 }
 0x3a3   : > { %v5176_v63 = vrot.slane %v5174_v60, 1  ;;  %v2681_v60 = vsel %vm15877_vm9, %v13760_v45, 0  ;;  %vm15879_vm2 = vcmp.ne.s16.totalorder %v13604_v62, 0  ;;  %vm15880_vm9 = vcmp.ne.s16.totalorder %v13633_v58, 0 }
 0x3a4   : > { %v5200_v43 = vrot.slane %v5198_v34, 1  ;;  %v5222_v24 = vshll.u32 %v2681_v60, 16  ;;  %v5216_v32 = vrot.slane %v5214_v0, 1  ;;  %v5226_v16 = vshrl.u32 %v2681_v60, 16 }
 0x3a5   : > { %v5177_v52 = vsel %vm2116_vm5, %v5172_v15, %v5176_v63  ;;  %v5180_v8 = vor.u32 %v5178_v6, %v5176_v63  ;;  %v5210_v15 = vshrl.u32 %v2679_v19, 16  ;;  %v2683_v6 = vsel %vm2592_vm14, %v13780_v25, 0 }
 0x3a6   : > { %v5204_v37 = vor.u32 %v5202_v41, %v5200_v43  ;;  %v5201_v22 = vsel %vm2116_vm5, %v5196_v47, %v5200_v43  ;;  %v5224_v45 = vrot.slane %v5222_v24, 1  ;;  %v5238_v19 = vshll.u32 %v2683_v6, 16 }
 0x3a7   : > { %10807 = vmatmul.mubr.msk.bf16.gmra.mrb[80].mxu0 %vm390_vm1, %v13780_v25  ;;  %v5185_v36 = vsel %vm2116_vm5, %v5180_v8, %v5184_v26  ;;  %v5212_v5 = vor.u32 %v5210_v15, %v5208_v11  ;;  %v5218_v26 = vshrl.u32 %v2680_v57, 16  ;;  %v5242_v60 = vshrl.u32 %v2683_v6, 16 }
 0x3a8   : > { %10810 = vmatprep.mubr.msk.bf16.mxu0 %vm390_vm1, %v13788_v4  ;;  %v5209_v63 = vsel %vm2116_vm5, %v5204_v37, %v5208_v11  ;;  %v5240_v25 = vrot.slane %v5238_v19, 1  ;;  %v5254_v11 = vshll.u32 %v2685_v1, 16  ;;  %v2686_v0 = vsel %vm15878_vm10, %v13802_v2, 0  ;;  %v2673_v19 = vld [vmem:[#allocation2 + $0x98] sm:$0x1] }
 0x3a9   : > { %v5220_v18 = vor.u32 %v5218_v26, %v5216_v32  ;;  %v5217_v27 = vsel %vm2116_vm5, %v5212_v5, %v5216_v32  ;;  %v5262_v15 = vshll.u32 %v2686_v0, 16  ;;  %v5266_v6 = vshrl.u32 %v2686_v0, 16  ;;  %v14174_v0 = vld [vmem:[%s15578_s5] sm:$0x3] }
 0x3aa   : > { %11785 = vmatprep.subr.msk.bf16.mxu1 %vm563_vm0, %v14174_v0 }
 0x3ab   : > { %v5225_v8 = vsel %vm2116_vm5, %v5220_v18, %v5224_v45  ;;  %v5264_v26 = vrot.slane %v5262_v15, 1 }
 0x3af   : > { %10811 = vmatmul.mubr.msk.bf16.gmra.mrb[84].mxu0 %vm390_vm1, %v13794_v20  ;;  %v5256_v20 = vrot.slane %v5254_v11, 1 }
 0x3b0   : > { %10814 = vmatprep.mubr.msk.bf16.mxu0 %vm390_vm1, %v13802_v2  ;;  %v2688_v2 = vsel %vm2597_vm12, %v13813_v12, 0 }
 0x3b1   : > { %v5278_v18 = vshll.u32 %v2688_v2, 16 }
 0x3b7   : > { %10815 = vmatmul.mubr.msk.bf16.gmra.mrb[88].mxu0 %vm390_vm1, %v13808_v21 }
 0x3b8   : > { %10818 = vmatprep.mubr.msk.bf16.mxu0 %vm390_vm1, %v13813_v12 }
 0x3bf   : > { %10819 = vmatmul.mubr.msk.bf16.gmra.mrb[92].mxu0 %vm390_vm1, %v14034_v59 }
 0x3c0   : > { %10824 = vmatprep.mubr.msk.bf16.mxu0 %vm390_vm1, %v5177_v52  ;;  %v12348_v52 = vld [vmem:[#allocation2 + $0x58] sm:$0xff] }
 0x3c1   : > { %v2682_v56 = vsel %vm2591_vm6, %v12348_v52, 0 }
 0x3c2   : > { %v5230_v38 = vshll.u32 %v2682_v56, 16  ;;  %v5234_v40 = vshrl.u32 %v2682_v56, 16  ;;  %v5258_v56 = vshrl.u32 %v2685_v1, 16 }
 0x3c4   : > { %v5232_v34 = vrot.slane %v5230_v38, 1  ;;  %v2689_v38 = vsel %vm15880_vm9, %v14034_v59, 0  ;;  %vm15901_vm9 = vcmp.ne.s16.totalorder %v13046_v46, 0 }
 0x3c6   : > { %v5236_v43 = vor.u32 %v5234_v40, %v5232_v34  ;;  %v2690_v40 = vsel %vm2599_vm7, %v2673_v19, 0 }
 0x3c7   : > { %10825 = vmatmul.mubr.msk.bf16.vlgmr.msra.gmra.mrb[64].mxu0 %vm390_vm1, %v5185_v36  ;;  %v5228_v36 = vor.u32 %v5226_v16, %v5224_v45  ;;  %v5260_v45 = vor.u32 %v5258_v56, %v5256_v20 }
 0x3c8   : > { %10828 = vmatprep.mubr.msk.bf16.mxu0 %vm390_vm1, %v5193_v39  ;;  %v2684_v39 = vsel %vm2593_vm13, %v13788_v4, 0  ;;  %v5241_v41 = vsel %vm2116_vm5, %v5236_v43, %v5240_v25  ;;  %v5244_v4 = vor.u32 %v5242_v60, %v5240_v25  ;;  %v5290_v43 = vshrl.u32 %v2689_v38, 16 }
 0x3c9   : > { %v5246_v47 = vshll.u32 %v2684_v39, 16  ;;  %v5233_v57 = vsel %vm2116_vm5, %v5228_v36, %v5232_v34  ;;  %v5280_v34 = vrot.slane %v5278_v18, 1  ;;  %v5286_v36 = vshll.u32 %v2689_v38, 16 }
 0x3cb   : > { %v5248_v37 = vrot.slane %v5246_v47, 1  ;;  %v5288_v59 = vrot.slane %v5286_v36, 1  ;;  %v5294_v47 = vshll.u32 %v2690_v40, 16 }
 0x3cd   : > { %v5249_v32 = vsel %vm2116_vm5, %v5244_v4, %v5248_v37  ;;  %v5292_v11 = vor.u32 %v5290_v43, %v5288_v59  ;;  %v5296_v60 = vrot.slane %v5294_v47, 1  ;;  %v14169_v4 = vld [vmem:[#allocation2 + $0x8] sm:$0xff] }
 0x3ce   : > { %10858 = vmatprep.mubr.msk.bf16.mxu1 %vm390_vm1, %v14169_v4 }
 0x3cf   : > { %10829 = vmatmul.mubr.msk.bf16.gmra.mrb[68].mxu0 %vm390_vm1, %v5201_v22  ;;  %v5250_v22 = vshrl.u32 %v2684_v39, 16  ;;  %v5282_v39 = vshrl.u32 %v2688_v2, 16 }
 0x3d0   : > { %10832 = vmatprep.mubr.msk.bf16.mxu0 %vm390_vm1, %v5209_v63  ;;  %v2687_v63 = vsel %vm15879_vm2, %v13808_v21, 0  ;;  %vm15900_vm2 = vcmp.ne.s16.totalorder %v13035_v48, 0 }
 0x3d1   : > { %v5252_v24 = vor.u32 %v5250_v22, %v5248_v37  ;;  %v5270_v52 = vshll.u32 %v2687_v63, 16  ;;  %v5274_v12 = vshrl.u32 %v2687_v63, 16  ;;  %v5284_v1 = vor.u32 %v5282_v39, %v5280_v34  ;;  %v14183_v22 = vld [vmem:[%s15577_s4] ss:$0 sm:$0xff] }
 0x3d2   : > { %v5297_v37 = vsel %vm2116_vm5, %v5292_v11, %v5296_v60 }
 0x3d3   : > { %v5257_v5 = vsel %vm2116_vm5, %v5252_v24, %v5256_v20  ;;  %v5272_v21 = vrot.slane %v5270_v52, 1 }
 0x3d5   : > { %v5276_v25 = vor.u32 %v5274_v12, %v5272_v21 }
 0x3d7   : > { %10833 = vmatmul.mubr.msk.bf16.gmra.mrb[72].mxu0 %vm390_vm1, %v5217_v27  ;;  %v5268_v27 = vor.u32 %v5266_v6, %v5264_v26 }
 0x3d8   : > { %10836 = vmatprep.mubr.msk.bf16.mxu0 %vm390_vm1, %v5225_v8  ;;  %v5265_v8 = vsel %vm2116_vm5, %v5260_v45, %v5264_v26 }
 0x3d9   : > { %v5273_v16 = vsel %vm2116_vm5, %v5268_v27, %v5272_v21 }
 0x3df   : > { %10837 = vmatmul.mubr.msk.bf16.gmra.mrb[76].mxu0 %vm390_vm1, %v5233_v57  ;;  %v5281_v57 = vsel %vm2116_vm5, %v5276_v25, %v5280_v34 }
 0x3e0   : > { %10840 = vmatprep.mubr.msk.bf16.mxu0 %vm390_vm1, %v5241_v41  ;;  %v5289_v41 = vsel %vm2116_vm5, %v5284_v1, %v5288_v59 }
 0x3e7   : > { %10841 = vmatmul.mubr.msk.bf16.gmra.mrb[80].mxu0 %vm390_vm1, %v5249_v32 }
 0x3e8   : > { %10844 = vmatprep.mubr.msk.bf16.mxu0 %vm390_vm1, %v5257_v5 }
 0x3ef   : > { %10845 = vmatmul.mubr.msk.bf16.gmra.mrb[84].mxu0 %vm390_vm1, %v5265_v8 }
 0x3f0   : > { %10848 = vmatprep.mubr.msk.bf16.mxu0 %vm390_vm1, %v5273_v16 }
 0x3f7   : > { %10849 = vmatmul.mubr.msk.bf16.gmra.mrb[88].mxu0 %vm390_vm1, %v5281_v57 }
 0x3f8   : > { %10852 = vmatprep.mubr.msk.bf16.mxu0 %vm390_vm1, %v5289_v41 }
 0x3ff   : > { %10853 = vmatmul.mubr.msk.bf16.gmra.mrb[92].mxu0 %vm390_vm1, %v5297_v37 }
 0x49a   : > { %v10826_v20 = vpop.f32.mrb[64].mxu0 }
 0x49b   : > { %v14186_v63 = vadd.f32 %v10826_v20, %v14183_v22  ;;  %v5383_v24 = vpop.f32.mrb[65].mxu0 }
 0x49c   : > { %v14189_v15 = vadd.f32 %v14183_v22, %v5383_v24  ;;  %v10827_v32 = vpop.f32.mrb[66].mxu0 }
 0x49d   : > { %v5583_v5 = vsub.f32 0.0, %v14186_v63  ;;  %v14193_v52 = vadd.f32 %v10827_v32, %v14183_v22  ;;  %v5386_v56 = vpop.f32.mrb[67].mxu0 }
 0x49e   : > { %v5581_v2 = vsub.f32 0.0, %v14189_v15  ;;  %v14197_v26 = vadd.f32 %v14183_v22, %v5386_v56 }
 0x49f   : > { %v5617_v45 = vmul.f32 1.442695, %v5583_v5  ;;  %v5584_v6 = vsub.f32 0.0, %v14193_v52 }
 0x4a0   : > { %v5613_v21 = vmul.f32 1.442695, %v5581_v2  ;;  %v5582_v18 = vsub.f32 0.0, %v14197_v26 }
 0x4a1   : > { %11949 = vpow2.f32 %v5617_v45  ;;  %v5619_v38 = vmul.f32 1.442695, %v5584_v6 }
 0x4a2   : > { %11951 = vpow2.f32 %v5613_v21  ;;  %v5615_v27 = vmul.f32 1.442695, %v5582_v18  ;;  %v10830_v8 = vpop.f32.mrb[68].mxu0 }
 0x4a3   : > { %11953 = vpow2.f32 %v5619_v38  ;;  %v14202_v19 = vadd.f32 %v10830_v8, %v14183_v22  ;;  %v5399_v16 = vpop.f32.mrb[69].mxu0 }
 0x4a4   : > { %11955 = vpow2.f32 %v5615_v27  ;;  %v14205_v34 = vadd.f32 %v14183_v22, %v5399_v16  ;;  %v10831_v36 = vpop.f32.mrb[70].mxu0 }
 0x4a5   : > { %v5587_v12 = vsub.f32 0.0, %v14202_v19  ;;  %v14209_v39 = vadd.f32 %v10831_v36, %v14183_v22  ;;  %v5402_v40 = vpop.f32.mrb[71].mxu0 }
 0x4a6   : > { %v5585_v25 = vsub.f32 0.0, %v14205_v34  ;;  %v14213_v1 = vadd.f32 %v14183_v22, %v5402_v40 }
 0x4a7   : > { %v5625_v59 = vmul.f32 1.442695, %v5587_v12  ;;  %v5588_v43 = vsub.f32 0.0, %v14209_v39 }
 0x4a8   : > { %v5621_v47 = vmul.f32 1.442695, %v5585_v25  ;;  %v5586_v57 = vsub.f32 0.0, %v14213_v1 }
 0x4a9   : > { %11957 = vpow2.f32 %v5625_v59  ;;  %v5627_v41 = vmul.f32 1.442695, %v5588_v43 }
 0x4aa   : > { %11959 = vpow2.f32 %v5621_v47  ;;  %v5623_v11 = vmul.f32 1.442695, %v5586_v57  ;;  %v10834_v60 = vpop.f32.mrb[72].mxu0 }
 0x4ab   : > { %v11950_v37 = vpop.eup %11949  ;;  %11961 = vpow2.f32 %v5627_v41  ;;  %v14218_v20 = vadd.f32 %v10834_v60, %v14183_v22  ;;  %v5415_v24 = vpop.f32.mrb[73].mxu0 }
 0x4ac   : > { %v11952_v32 = vpop.eup %11951  ;;  %v5679_v5 = vadd.f32 1.0, %v11950_v37  ;;  %11963 = vpow2.f32 %v5623_v11  ;;  %v14221_v56 = vadd.f32 %v14183_v22, %v5415_v24  ;;  %v10835_v2 = vpop.f32.mrb[74].mxu0 }
 0x4ad   : > { %v11954_v45 = vpop.eup %11953  ;;  %v5677_v6 = vadd.f32 1.0, %v11952_v32  ;;  %v5591_v21 = vsub.f32 0.0, %v14218_v20  ;;  %v14225_v18 = vadd.f32 %v10835_v2, %v14183_v22  ;;  %v5418_v38 = vpop.f32.mrb[75].mxu0 }
 0x4ae   : > { %v11956_v27 = vpop.eup %11955  ;;  %11965 = vrcp.f32 %v5679_v5  ;;  %v5680_v8 = vadd.f32 1.0, %v11954_v45  ;;  %v5589_v16 = vsub.f32 0.0, %v14221_v56  ;;  %v14229_v36 = vadd.f32 %v14183_v22, %v5418_v38 }
 0x4af   : > { %11967 = vrcp.f32 %v5677_v6  ;;  %v5678_v12 = vadd.f32 1.0, %v11956_v27  ;;  %v5633_v40 = vmul.f32 1.442695, %v5591_v21  ;;  %v5592_v25 = vsub.f32 0.0, %v14225_v18 }
 0x4b0   : > { %11969 = vrcp.f32 %v5680_v8  ;;  %v5629_v59 = vmul.f32 1.442695, %v5589_v16  ;;  %v5590_v43 = vsub.f32 0.0, %v14229_v36 }
 0x4b1   : > { %11971 = vrcp.f32 %v5678_v12  ;;  %v5635_v47 = vmul.f32 1.442695, %v5592_v25 }
 0x4b2   : > { %11973 = vpow2.f32 %v5633_v40  ;;  %v5631_v57 = vmul.f32 1.442695, %v5590_v43  ;;  %v10838_v41 = vpop.f32.mrb[76].mxu0 }
 0x4b3   : > { %v11958_v11 = vpop.eup %11957  ;;  %11975 = vpow2.f32 %v5629_v59  ;;  %v14234_v60 = vadd.f32 %v10838_v41, %v14183_v22  ;;  %v5431_v37 = vpop.f32.mrb[77].mxu0 }
 0x4b4   : > { %v11960_v24 = vpop.eup %11959  ;;  %v5683_v32 = vadd.f32 1.0, %v11958_v11  ;;  %11977 = vpow2.f32 %v5635_v47  ;;  %v14237_v5 = vadd.f32 %v14183_v22, %v5431_v37  ;;  %v10839_v2 = vpop.f32.mrb[78].mxu0 }
 0x4b5   : > { %v11962_v45 = vpop.eup %11961  ;;  %v5681_v6 = vadd.f32 1.0, %v11960_v24  ;;  %11979 = vpow2.f32 %v5631_v57  ;;  %v5595_v21 = vsub.f32 0.0, %v14234_v60  ;;  %v14241_v38 = vadd.f32 %v10839_v2, %v14183_v22  ;;  %v5434_v27 = vpop.f32.mrb[79].mxu0 }
 0x4b6   : > { %v11964_v8 = vpop.eup %11963  ;;  %11981 = vrcp.f32 %v5683_v32  ;;  %v5684_v16 = vadd.f32 1.0, %v11962_v45  ;;  %v5593_v12 = vsub.f32 0.0, %v14237_v5  ;;  %v14245_v40 = vadd.f32 %v14183_v22, %v5434_v27 }
 0x4b7   : > { %11983 = vrcp.f32 %v5681_v6  ;;  %v5682_v25 = vadd.f32 1.0, %v11964_v8  ;;  %v5641_v59 = vmul.f32 1.442695, %v5595_v21  ;;  %v5596_v43 = vsub.f32 0.0, %v14241_v38 }
 0x4b8   : > { %v11966_v47 = vpop.eup %11965  ;;  %11985 = vrcp.f32 %v5684_v16  ;;  %v5637_v57 = vmul.f32 1.442695, %v5593_v12  ;;  %v5594_v41 = vsub.f32 0.0, %v14245_v40 }
 0x4b9   : > { %v11968_v11 = vpop.eup %11967  ;;  %11987 = vrcp.f32 %v5682_v25  ;;  %v5643_v37 = vmul.f32 1.442695, %v5596_v43  ;;  %v5743_v27 = vmul.f32 %v11966_v47, %v14186_v63 }
 0x4ba   : > { %v11970_v24 = vpop.eup %11969  ;;  %11989 = vpow2.f32 %v5641_v59  ;;  %v5639_v32 = vmul.f32 1.442695, %v5594_v41  ;;  %v10842_v2 = vpop.f32.mrb[80].mxu0  ;;  %v5741_v12 = vmul.f32 %v11968_v11, %v14189_v15 }
 0x4bb   : > { %v11972_v45 = vpop.eup %11971  ;;  %v5744_v6 = vmul.f32 %v11970_v24, %v14193_v52  ;;  %11991 = vpow2.f32 %v5637_v57  ;;  %v14252_v21 = vadd.f32 %v10842_v2, %v14183_v22  ;;  %v5447_v8 = vpop.f32.mrb[81].mxu0 }
 0x4bc   : > { %v11974_v16 = vpop.eup %11973  ;;  %v5742_v25 = vmul.f32 %v11972_v45, %v14197_v26  ;;  %11993 = vpow2.f32 %v5643_v37  ;;  %v14257_v59 = vadd.f32 %v14183_v22, %v5447_v8  ;;  %v10843_v43 = vpop.f32.mrb[82].mxu0 }
 0x4bd   : > { %v11976_v41 = vpop.eup %11975  ;;  %v14259_v61 = vpack.c.bf16 %v5744_v6, %v5743_v27  ;;  %v5687_v63 = vadd.f32 1.0, %v11974_v16  ;;  %11995 = vpow2.f32 %v5639_v32  ;;  %v5599_v52 = vsub.f32 0.0, %v14252_v21  ;;  %v5450_v47 = vpop.f32.mrb[83].mxu0 }
 0x4be   : > { %v11978_v57 = vpop.eup %11977  ;;  %v14262_v24 = vpack.c.bf16 %v5742_v25, %v5741_v12  ;;  %v5685_v2 = vadd.f32 1.0, %v11976_v41  ;;  %v5597_v15 = vsub.f32 0.0, %v14257_v59  ;;  %v14266_v26 = vadd.f32 %v10843_v43, %v14183_v22 }
 0x4bf   : > { %15881 = vst [vmem:[#allocation27_spill] sm:$0xff] %v14259_v61  ;;  %v11980_v11 = vpop.eup %11979  ;;  %5790 = vst.msk [vmem:[#allocation2 + $0x18] sm:$0xff] %vm390_vm1, %v14259_v61  ;;  %11997 = vrcp.f32 %v5687_v63  ;;  %v5688_v37 = vadd.f32 1.0, %v11978_v57  ;;  %v5649_v45 = vmul.f32 1.442695, %v5599_v52  ;;  %v14271_v32 = vadd.f32 %v14183_v22, %v5450_v47 }
 0x4c0   : > { %15882 = vst [vmem:[#allocation3_spill] sm:$0xff] %v14262_v24  ;;  %v11982_v27 = vpop.eup %11981  ;;  %5789 = vst.msk [vmem:[#allocation2 + $0x10] sm:$0xff] %vm390_vm1, %v14262_v24  ;;  %11999 = vrcp.f32 %v5685_v2  ;;  %v5686_v6 = vadd.f32 1.0, %v11980_v11  ;;  %v5645_v8 = vmul.f32 1.442695, %v5597_v15  ;;  %v5600_v16 = vsub.f32 0.0, %v14266_v26 }
 0x4c1   : > { %v11984_v12 = vpop.eup %11983  ;;  %12001 = vrcp.f32 %v5688_v37  ;;  %v5598_v25 = vsub.f32 0.0, %v14271_v32  ;;  %v5747_v41 = vmul.f32 %v11982_v27, %v14202_v19  ;;  %v6327_v47 = vsel %vm563_vm0, %v14174_v0, 0 }
 0x4c2   : > { %v11986_v43 = vpop.eup %11985  ;;  %12003 = vrcp.f32 %v5686_v6  ;;  %v5651_v63 = vmul.f32 1.442695, %v5600_v16  ;;  %v10846_v52 = vpop.f32.mrb[84].mxu0  ;;  %v5745_v24 = vmul.f32 %v11984_v12, %v14205_v34 }
 0x4c3   : > { %v11988_v57 = vpop.eup %11987  ;;  %v5748_v2 = vmul.f32 %v11986_v43, %v14209_v39  ;;  %12005 = vpow2.f32 %v5649_v45  ;;  %v5647_v15 = vmul.f32 1.442695, %v5598_v25  ;;  %v14282_v11 = vadd.f32 %v10846_v52, %v14183_v22  ;;  %v5463_v37 = vpop.f32.mrb[85].mxu0 }
 0x4c4   : > { %v11990_v61 = vpop.eup %11989  ;;  %v5746_v19 = vmul.f32 %v11988_v57, %v14213_v1  ;;  %12007 = vpow2.f32 %v5645_v8  ;;  %v14287_v27 = vadd.f32 %v14183_v22, %v5463_v37  ;;  %v10847_v6 = vpop.f32.mrb[86].mxu0 }
 0x4c5   : > { %v11992_v0 = vpop.eup %11991  ;;  %v14289_v16 = vpack.c.bf16 %v5748_v2, %v5747_v41  ;;  %v5691_v39 = vadd.f32 1.0, %v11990_v61  ;;  %12009 = vpow2.f32 %v5651_v63  ;;  %v5603_v45 = vsub.f32 0.0, %v14282_v11  ;;  %v5466_v25 = vpop.f32.mrb[87].mxu0 }
 0x4c6   : > { %v11994_v43 = vpop.eup %11993  ;;  %v14292_v52 = vpack.c.bf16 %v5746_v19, %v5745_v24  ;;  %v5689_v58 = vadd.f32 1.0, %v11992_v0  ;;  %12011 = vpow2.f32 %v5647_v15  ;;  %v5601_v34 = vsub.f32 0.0, %v14287_v27  ;;  %v14305_v24 = vld [vmem:[%s15578_s5 + $0x4] sm:$0x3]  ;;  %v14314_v15 = vld [vmem:[#allocation2 + $0x18] sm:$0xff] }
 0x4c7   : > { %15883 = vst [vmem:[#allocation4_spill] sm:$0xff] %v14289_v16  ;;  %v11996_v1 = vpop.eup %11995  ;;  %5792 = vst.msk [vmem:[#allocation2 + $0x28] sm:$0xff] %vm390_vm1, %v14289_v16  ;;  %12013 = vrcp.f32 %v5691_v39  ;;  %v5692_v8 = vadd.f32 1.0, %v11994_v43  ;;  %v5657_v12 = vmul.f32 1.442695, %v5603_v45  ;;  %v14298_v61 = vadd.f32 %v10847_v6, %v14183_v22  ;;  %v14300_v41 = vld [vmem:[#allocation2 + $0x10] sm:$0xff] }
 0x4c8   : > { %15884 = vst [vmem:[#allocation5_spill] sm:$0xff] %v14292_v52  ;;  %5791 = vst.msk [vmem:[#allocation2 + $0x20] sm:$0xff] %vm390_vm1, %v14292_v52  ;;  %12015 = vrcp.f32 %v5689_v58  ;;  %v5690_v63 = vadd.f32 1.0, %v11996_v1  ;;  %v5653_v57 = vmul.f32 1.442695, %v5601_v34  ;;  %v14310_v2 = vadd.f32 %v14183_v22, %v5466_v25  ;;  %10859 = vmatmul.mubr.msk.bf16.vlgmr.msra.gmra.mrb[32].mxu1 %vm390_vm1, %v14300_v41 }
 0x4c9   : > { %v11998_v37 = vpop.eup %11997  ;;  %12017 = vrcp.f32 %v5692_v8  ;;  %v5604_v19 = vsub.f32 0.0, %v14298_v61  ;;  %10891 = vmatpush3.bf16.msra.mxu1 %v6327_v47  ;;  %10862 = vmatprep.mubr.msk.bf16.mxu1 %vm390_vm1, %v14314_v15 }
 0x4ca   : > { %v12000_v6 = vpop.eup %11999  ;;  %v5751_v58 = vmul.f32 %v11998_v37, %v14218_v20  ;;  %12019 = vrcp.f32 %v5690_v63  ;;  %v5602_v0 = vsub.f32 0.0, %v14310_v2  ;;  %v10850_v39 = vpop.f32.mrb[88].mxu0  ;;  %11786 = vmatprep.subr.msk.bf16.mxu1 %vm563_vm0, %v14305_v24 }
 0x4cb   : > { %v12002_v45 = vpop.eup %12001  ;;  %v5749_v25 = vmul.f32 %v12000_v6, %v14221_v56  ;;  %12021 = vpow2.f32 %v5657_v12  ;;  %v5659_v43 = vmul.f32 1.442695, %v5604_v19  ;;  %v14325_v47 = vadd.f32 %v10850_v39, %v14183_v22  ;;  %v5479_v34 = vpop.f32.mrb[89].mxu0 }
 0x4cc   : > { %v12004_v1 = vpop.eup %12003  ;;  %v5752_v8 = vmul.f32 %v12002_v45, %v14225_v18  ;;  %12023 = vpow2.f32 %v5653_v57  ;;  %v5655_v20 = vmul.f32 1.442695, %v5602_v0  ;;  %v14329_v63 = vadd.f32 %v14183_v22, %v5479_v34  ;;  %v10851_v37 = vpop.f32.mrb[90].mxu0 }
 0x4cd   : > { %v12006_v16 = vpop.eup %12005  ;;  %v5750_v52 = vmul.f32 %v12004_v1, %v14229_v36  ;;  %12025 = vpow2.f32 %v5659_v43  ;;  %v5607_v56 = vsub.f32 0.0, %v14325_v47  ;;  %v14334_v12 = vadd.f32 %v10851_v37, %v14183_v22  ;;  %v5482_v19 = vpop.f32.mrb[91].mxu0 }
 0x4ce   : > { %v12008_v6 = vpop.eup %12007  ;;  %v14336_v39 = vpack.c.bf16 %v5752_v8, %v5751_v58  ;;  %v5695_v18 = vadd.f32 1.0, %v12006_v16  ;;  %12027 = vpow2.f32 %v5655_v20  ;;  %v5605_v57 = vsub.f32 0.0, %v14329_v63 }
 0x4cf   : > { %v12010_v0 = vpop.eup %12009  ;;  %v14339_v45 = vpack.c.bf16 %v5750_v52, %v5749_v25  ;;  %v5693_v34 = vadd.f32 1.0, %v12008_v6  ;;  %v5608_v36 = vsub.f32 0.0, %v14334_v12  ;;  %v14342_v43 = vld [vmem:[#allocation2 + $0x20] sm:$0xff]  ;;  %v5665_v58 = vmul.f32 1.442695, %v5607_v56  ;;  %v14351_v52 = vld [vmem:[#allocation2 + $0x28] sm:$0xff] }
 0x4d0   : > { %15885 = vst [vmem:[#allocation6_spill] sm:$0xff] %v14336_v39  ;;  %v12012_v1 = vpop.eup %12011  ;;  %5794 = vst.msk [vmem:[#allocation2 + $0x38] sm:$0xff] %vm390_vm1, %v14336_v39  ;;  %12029 = vrcp.f32 %v5695_v18  ;;  %v5696_v37 = vadd.f32 1.0, %v12010_v0  ;;  %v14347_v16 = vadd.f32 %v14183_v22, %v5482_v19  ;;  %10863 = vmatmul.mubr.msk.bf16.gmra.mrb[36].mxu1 %vm390_vm1, %v14342_v43  ;;  %v5661_v20 = vmul.f32 1.442695, %v5605_v57 }
 0x4d1   : > { %15886 = vst [vmem:[#allocation8_spill] sm:$0xff] %v14339_v45  ;;  %v12014_v25 = vpop.eup %12013  ;;  %5793 = vst.msk [vmem:[#allocation2 + $0x30] sm:$0xff] %vm390_vm1, %v14339_v45  ;;  %12031 = vrcp.f32 %v5693_v34  ;;  %v5694_v8 = vadd.f32 1.0, %v12012_v1  ;;  %10866 = vmatprep.mubr.msk.bf16.mxu1 %vm390_vm1, %v14351_v52  ;;  %v5667_v56 = vmul.f32 1.442695, %v5608_v36 }
 0x4d2   : > { %v12016_v6 = vpop.eup %12015  ;;  %12033 = vrcp.f32 %v5696_v37  ;;  %v5606_v19 = vsub.f32 0.0, %v14347_v16  ;;  %v10854_v18 = vpop.f32.mrb[92].mxu0  ;;  %v5755_v39 = vmul.f32 %v12014_v25, %v14234_v60 }
 0x4d3   : > { %v12018_v0 = vpop.eup %12017  ;;  %v5753_v31 = vmul.f32 %v12016_v6, %v14237_v5  ;;  %12035 = vrcp.f32 %v5694_v8  ;;  %v14361_v45 = vadd.f32 %v10854_v18, %v14183_v22  ;;  %v5495_v34 = vpop.f32.mrb[93].mxu0 }
 0x4d4   : > { %v12020_v57 = vpop.eup %12019  ;;  %v5756_v1 = vmul.f32 %v12018_v0, %v14241_v38  ;;  %12037 = vpow2.f32 %v5665_v58  ;;  %v5663_v62 = vmul.f32 1.442695, %v5606_v19  ;;  %v14365_v36 = vadd.f32 %v14183_v22, %v5495_v34  ;;  %v10855_v37 = vpop.f32.mrb[94].mxu0 }
 0x4d5   : > { %v12022_v51 = vpop.eup %12021  ;;  %v5754_v9 = vmul.f32 %v12020_v57, %v14245_v40  ;;  %12039 = vpow2.f32 %v5661_v20  ;;  %v5611_v60 = vsub.f32 0.0, %v14361_v45  ;;  %v14370_v5 = vadd.f32 %v10855_v37, %v14183_v22  ;;  %v5498_v25 = vpop.f32.mrb[95].mxu0 }
 0x4d6   : > { %v12024_v8 = vpop.eup %12023  ;;  %v14372_v6 = vpack.c.bf16 %v5756_v1, %v5755_v39  ;;  %v5699_v38 = vadd.f32 1.0, %v12022_v51  ;;  %12041 = vpow2.f32 %v5667_v56  ;;  %v5609_v58 = vsub.f32 0.0, %v14365_v36 }
 0x4d7   : > { %v12026_v19 = vpop.eup %12025  ;;  %v14375_v18 = vpack.c.bf16 %v5754_v9, %v5753_v31  ;;  %v5697_v0 = vadd.f32 1.0, %v12024_v8  ;;  %12043 = vpow2.f32 %v5663_v62  ;;  %v5673_v34 = vmul.f32 1.442695, %v5611_v60  ;;  %v14389_v62 = vld [vmem:[#allocation2 + $0x38] sm:$0xff] }
 0x4d8   : > { %15887 = vst [vmem:[#allocation7_spill] sm:$0xff] %v14372_v6  ;;  %v12028_v40 = vpop.eup %12027  ;;  %5796 = vst.msk [vmem:[#allocation2 + $0x48] sm:$0xff] %vm390_vm1, %v14372_v6  ;;  %12045 = vrcp.f32 %v5699_v38  ;;  %v5700_v20 = vadd.f32 1.0, %v12026_v19  ;;  %v5612_v57 = vsub.f32 0.0, %v14370_v5  ;;  %v14380_v39 = vld [vmem:[#allocation2 + $0x30] sm:$0xff]  ;;  %v14385_v31 = vadd.f32 %v14183_v22, %v5498_v25 }
 0x4d9   : > { %15888 = vst [vmem:[#allocation10_spill] sm:$0xff] %v14375_v18  ;;  %5795 = vst.msk [vmem:[#allocation2 + $0x40] sm:$0xff] %vm390_vm1, %v14375_v18  ;;  %12047 = vrcp.f32 %v5697_v0  ;;  %v5698_v51 = vadd.f32 1.0, %v12028_v40  ;;  %v5669_v9 = vmul.f32 1.442695, %v5609_v58  ;;  %10867 = vmatmul.mubr.msk.bf16.gmra.mrb[40].mxu1 %vm390_vm1, %v14380_v39 }
 0x4da   : > { %v12030_v56 = vpop.eup %12029  ;;  %12049 = vrcp.f32 %v5700_v20  ;;  %v5675_v1 = vmul.f32 1.442695, %v5612_v57  ;;  %10870 = vmatprep.mubr.msk.bf16.mxu1 %vm390_vm1, %v14389_v62  ;;  %v5610_v60 = vsub.f32 0.0, %v14385_v31 }
 0x4db   : > { %v12032_v37 = vpop.eup %12031  ;;  %12051 = vrcp.f32 %v5698_v51  ;;  %v5759_v22 = vmul.f32 %v12030_v56, %v14252_v21 }
 0x4dc   : > { %v12034_v8 = vpop.eup %12033  ;;  %12053 = vpow2.f32 %v5673_v34  ;;  %v5671_v58 = vmul.f32 1.442695, %v5610_v60  ;;  %v5757_v0 = vmul.f32 %v12032_v37, %v14257_v59 }
 0x4dd   : > { %v12036_v38 = vpop.eup %12035  ;;  %v5760_v25 = vmul.f32 %v12034_v8, %v14266_v26  ;;  %12055 = vpow2.f32 %v5669_v9 }
 0x4de   : > { %v12038_v19 = vpop.eup %12037  ;;  %v5758_v40 = vmul.f32 %v12036_v38, %v14271_v32  ;;  %12057 = vpow2.f32 %v5675_v1 }
 0x4df   : > { %v12040_v20 = vpop.eup %12039  ;;  %v14398_v57 = vpack.c.bf16 %v5760_v25, %v5759_v22  ;;  %v5703_v51 = vadd.f32 1.0, %v12038_v19  ;;  %12059 = vpow2.f32 %v5671_v58  ;;  %v14408_v32 = vld [vmem:[#allocation2 + $0x48] sm:$0xff] }
 0x4e0   : > { %v12042_v6 = vpop.eup %12041  ;;  %v14400_v34 = vpack.c.bf16 %v5758_v40, %v5757_v0  ;;  %v5701_v18 = vadd.f32 1.0, %v12040_v20  ;;  %v14402_v21 = vld [vmem:[#allocation2 + $0x40] sm:$0xff] }
 0x4e1   : > { %15889 = vst [vmem:[#allocation9_spill] sm:$0xff] %v14398_v57  ;;  %v12044_v26 = vpop.eup %12043  ;;  %5798 = vst.msk [vmem:[#allocation2 + $0x58] sm:$0xff] %vm390_vm1, %v14398_v57  ;;  %12061 = vrcp.f32 %v5703_v51  ;;  %v5704_v59 = vadd.f32 1.0, %v12042_v6  ;;  %10871 = vmatmul.mubr.msk.bf16.gmra.mrb[44].mxu1 %vm390_vm1, %v14402_v21 }
 0x4e2   : > { %15890 = vst [vmem:[#allocation12_spill] sm:$0xff] %v14400_v34  ;;  %v12046_v9 = vpop.eup %12045  ;;  %5797 = vst.msk [vmem:[#allocation2 + $0x50] sm:$0xff] %vm390_vm1, %v14400_v34  ;;  %12063 = vrcp.f32 %v5701_v18  ;;  %v5702_v56 = vadd.f32 1.0, %v12044_v26  ;;  %10874 = vmatprep.mubr.msk.bf16.mxu1 %vm390_vm1, %v14408_v32 }
 0x4e3   : > { %v12048_v1 = vpop.eup %12047  ;;  %12065 = vrcp.f32 %v5704_v59  ;;  %v5763_v6 = vmul.f32 %v12046_v9, %v14282_v11 }
 0x4e4   : > { %v12050_v37 = vpop.eup %12049  ;;  %12067 = vrcp.f32 %v5702_v56  ;;  %v5761_v22 = vmul.f32 %v12048_v1, %v14287_v27 }
 0x4e5   : > { %v12052_v60 = vpop.eup %12051  ;;  %v5764_v8 = vmul.f32 %v12050_v37, %v14298_v61 }
 0x4e6   : > { %v12054_v38 = vpop.eup %12053  ;;  %v5762_v25 = vmul.f32 %v12052_v60, %v14310_v2 }
 0x4e7   : > { %v12056_v58 = vpop.eup %12055  ;;  %v14418_v18 = vpack.c.bf16 %v5764_v8, %v5763_v6  ;;  %v5707_v19 = vadd.f32 1.0, %v12054_v38 }
 0x4e8   : > { %v12058_v0 = vpop.eup %12057  ;;  %v14420_v40 = vpack.c.bf16 %v5762_v25, %v5761_v22  ;;  %v5705_v20 = vadd.f32 1.0, %v12056_v58  ;;  %v14430_v2 = vld [vmem:[#allocation2 + $0x58] sm:$0xff]  ;;  %v5823_v58 = vsel %vm2245_vm8, %v14169_v4, 0 }
 0x4e9   : > { %15891 = vst [vmem:[#allocation11_spill] sm:$0xff] %v14418_v18  ;;  %v12060_v51 = vpop.eup %12059  ;;  %5800 = vst.msk [vmem:[#allocation2 + $0x68] sm:$0xff] %vm390_vm1, %v14418_v18  ;;  %12069 = vrcp.f32 %v5707_v19  ;;  %v5708_v11 = vadd.f32 1.0, %v12058_v0  ;;  %v14424_v61 = vld [vmem:[#allocation2 + $0x50] sm:$0xff] }
 0x4ea   : > { %15892 = vst [vmem:[#allocation14_spill] sm:$0xff] %v14420_v40  ;;  %5799 = vst.msk [vmem:[#allocation2 + $0x60] sm:$0xff] %vm390_vm1, %v14420_v40  ;;  %12071 = vrcp.f32 %v5705_v20  ;;  %v5706_v27 = vadd.f32 1.0, %v12060_v51  ;;  %10875 = vmatmul.mubr.msk.bf16.gmra.mrb[48].mxu1 %vm390_vm1, %v14424_v61 }
 0x4eb   : > { %v12062_v26 = vpop.eup %12061  ;;  %12073 = vrcp.f32 %v5708_v11  ;;  %10878 = vmatprep.mubr.msk.bf16.mxu1 %vm390_vm1, %v14430_v2 }
 0x4ec   : > { %v12064_v59 = vpop.eup %12063  ;;  %12075 = vrcp.f32 %v5706_v27  ;;  %v5767_v1 = vmul.f32 %v12062_v26, %v14325_v47  ;;  %v6151_v27 = vshrl.u32 %v5823_v58, 16 }
 0x4ed   : > { %v12066_v9 = vpop.eup %12065  ;;  %v5765_v60 = vmul.f32 %v12064_v59, %v14329_v63  ;;  %v5805_v63 = vld [vmem:[#allocation2] sm:$0x80] }
 0x4ee   : > { %v12068_v56 = vpop.eup %12067  ;;  %v5768_v37 = vmul.f32 %v12066_v9, %v14334_v12  ;;  %v5822_v11 = vsel %vm2244_vm11, %v5805_v63, 0 }
 0x4ef   : > { %v5766_v6 = vmul.f32 %v12068_v56, %v14347_v16  ;;  %v6154_v56 = vshll.u32 %v5823_v58, 16 }
 0x4f0   : > { %v14438_v8 = vpack.c.bf16 %v5768_v37, %v5767_v1  ;;  %v14448_v25 = vld [vmem:[#allocation2 + $0x68] sm:$0xff]  ;;  %v6147_v37 = vshrl.u32 %v5822_v11, 16  ;;  %v5826_v11 = vsel %vm15900_vm2, %v14342_v43, 0  ;;  %vm15903_vm2 = vcmp.ne.s16.totalorder %v13084_v54, 0 }
 0x4f1   : > { %v14440_v38 = vpack.c.bf16 %v5766_v6, %v5765_v60  ;;  %v14442_v22 = vld [vmem:[#allocation2 + $0x60] sm:$0xff]  ;;  %v5824_v60 = vsel %vm2246_vm15, %v14300_v41, 0 }
 0x4f2   : > { %15893 = vst [vmem:[#allocation13_spill] sm:$0xff] %v14438_v8  ;;  %5802 = vst.msk [vmem:[#allocation2 + $0x78] sm:$0xff] %vm390_vm1, %v14438_v8  ;;  %10879 = vmatmul.mubr.msk.bf16.gmra.mrb[52].mxu1 %vm390_vm1, %v14442_v22 }
 0x4f3   : > { %15894 = vst [vmem:[#allocation16_spill] sm:$0xff] %v14440_v38  ;;  %v12070_v47 = vpop.eup %12069  ;;  %5801 = vst.msk [vmem:[#allocation2 + $0x70] sm:$0xff] %vm390_vm1, %v14440_v38  ;;  %10882 = vmatprep.mubr.msk.bf16.mxu1 %vm390_vm1, %v14448_v25 }
 0x4f4   : > { %v12072_v12 = vpop.eup %12071  ;;  %v5771_v20 = vmul.f32 %v12070_v47, %v14361_v45  ;;  %v6149_v47 = vrot.slane %v6147_v37, 7  ;;  %v6175_v37 = vshrl.u32 %v5826_v11, 16 }
 0x4f5   : > { %v12074_v19 = vpop.eup %12073  ;;  %v5769_v26 = vmul.f32 %v12072_v12, %v14365_v36  ;;  %v6159_v12 = vshrl.u32 %v5824_v60, 16 }
 0x4f6   : > { %v12076_v0 = vpop.eup %12075  ;;  %v5772_v51 = vmul.f32 %v12074_v19, %v14370_v5  ;;  %v6153_v5 = vrot.slane %v6151_v27, 7  ;;  %v6162_v27 = vshll.u32 %v5824_v60, 16 }
 0x4f7   : > { %v5770_v59 = vmul.f32 %v12076_v0, %v14385_v31  ;;  %v15898_v31 = vld [vmem:[#allocation21_spill] sm:$0xff] }
 0x4f8   : > { %v14463_v9 = vpack.c.bf16 %v5772_v51, %v5771_v20  ;;  %vm15899_vm10 = vcmp.ne.s16.totalorder %v15898_v31, 0  ;;  %v6156_v63 = vor.u32 %v6154_v56, %v6153_v5  ;;  %v6161_v20 = vrot.slane %v6159_v12, 7 }
 0x4f9   : > { %v14465_v1 = vpack.c.bf16 %v5770_v59, %v5769_v26  ;;  %v14478_v36 = vld [vmem:[#allocation2 + $0x78] sm:$0xff]  ;;  %v5825_v6 = vsel %vm15899_vm10, %v14314_v15, 0  ;;  %v5827_v26 = vsel %vm15901_vm9, %v14351_v52, 0  ;;  %v6673_v12 = vsel %vm563_vm0, %v14305_v24, 0 }
 0x4fa   : > { %15896 = vst [vmem:[#allocation20_spill] sm:$0xff] %v14463_v9  ;;  %5804 = vst.msk [vmem:[#allocation2 + $0x88] sm:$0xff] %vm390_vm1, %v14463_v9  ;;  %v14469_v45 = vld [vmem:[#allocation2 + $0x70] sm:$0xff]  ;;  %v6167_v58 = vshrl.u32 %v5825_v6, 16  ;;  %v6157_v19 = vsel %vm2455_vm3, %v6149_v47, %v6156_v63  ;;  %v6170_v59 = vshll.u32 %v5825_v6, 16  ;;  %v6164_v56 = vor.u32 %v6162_v27, %v6161_v20 }
 0x4fb   : > { %15897 = vst [vmem:[#allocation15_spill] sm:$0xff] %v14465_v1  ;;  %5803 = vst.msk [vmem:[#allocation2 + $0x80] sm:$0xff] %vm390_vm1, %v14465_v1  ;;  %10883 = vmatmul.mubr.msk.bf16.gmra.mrb[56].mxu1 %vm390_vm1, %v14469_v45  ;;  %v6183_v63 = vshrl.u32 %v5827_v26, 16  ;;  %v6177_v9 = vrot.slane %v6175_v37, 7  ;;  %vm15902_vm10 = vcmp.ne.s16.totalorder %v13064_v13, 0  ;;  %v6178_v24 = vshll.u32 %v5826_v11, 16 }
 0x4fc   : > { %10886 = vmatprep.mubr.msk.bf16.mxu1 %vm390_vm1, %v14478_v36  ;;  %v6169_v51 = vrot.slane %v6167_v58, 7  ;;  %v6165_v58 = vsel %vm2455_vm3, %v6153_v5, %v6164_v56  ;;  %v5828_v27 = vsel %vm15902_vm10, %v14380_v39, 0  ;;  %v5829_v5 = vsel %vm15903_vm2, %v14389_v62, 0 }
 0x4fd   : > { %v6185_v6 = vrot.slane %v6183_v63, 7  ;;  %v6180_v56 = vor.u32 %v6178_v24, %v6177_v9  ;;  %v6191_v37 = vshrl.u32 %v5828_v27, 16  ;;  %vm15904_vm9 = vcmp.ne.s16.totalorder %v13117_v44, 0 }
 0x4fe   : > { %v6172_v47 = vor.u32 %v6170_v59, %v6169_v51  ;;  %v6186_v59 = vshll.u32 %v5827_v26, 16  ;;  %v6194_v26 = vshll.u32 %v5828_v27, 16  ;;  %vm15905_vm10 = vcmp.ne.s16.totalorder %v13129_v7, 0 }
 0x4ff   : > { %v6181_v63 = vsel %vm2455_vm3, %v6169_v51, %v6180_v56  ;;  %v5831_v24 = vsel %vm15905_vm10, %v14408_v32, 0  ;;  %vm15906_vm2 = vcmp.ne.s16.totalorder %v13180_v50, 0 }
 0x500   : > { %v6173_v60 = vsel %vm2455_vm3, %v6161_v20, %v6172_v47  ;;  %v6188_v20 = vor.u32 %v6186_v59, %v6185_v6  ;;  %v6199_v47 = vshrl.u32 %v5829_v5, 16  ;;  %v6202_v59 = vshll.u32 %v5829_v5, 16  ;;  %v15907_v5 = vld [vmem:[#allocation22_spill] sm:$0xff] }
 0x501   : > { %v5832_v27 = vsel %vm15906_vm2, %v14424_v61, 0 }
 0x502   : > { %v14486_v0 = vld [vmem:[#allocation2 + $0x80] sm:$0xff]  ;;  %v6201_v11 = vrot.slane %v6199_v47, 7  ;;  %v6226_v38 = vshll.u32 %v5832_v27, 16 }
 0x503   : > { %10887 = vmatmul.mubr.msk.bf16.gmra.mrb[60].mxu1 %vm390_vm1, %v14486_v0 }
 0x504   : > { %10892 = vmatprep.mubr.msk.bf16.mxu1 %vm390_vm1, %v6157_v19  ;;  %v14503_v19 = vld [vmem:[%s15578_s5 + $0x6] sm:$0x3]  ;;  %v6204_v56 = vor.u32 %v6202_v59, %v6201_v11  ;;  %v6218_v59 = vshll.u32 %v5831_v24, 16 }
 0x50b   : > { %10893 = vmatmul.mubr.msk.bf16.vlgmr.msra.gmra.mrb[32].mxu1 %vm390_vm1, %v6165_v58  ;;  %v6193_v58 = vrot.slane %v6191_v37, 7  ;;  %v6215_v37 = vshrl.u32 %v5831_v24, 16  ;;  %v15911_v24 = vld [vmem:[#allocation24_spill] sm:$0xff] }
 0x50c   : > { %10925 = vmatpush3.bf16.msra.mxu1 %v6673_v12  ;;  %10896 = vmatprep.mubr.msk.bf16.mxu1 %vm390_vm1, %v6173_v60  ;;  %v6189_v12 = vsel %vm2455_vm3, %v6177_v9, %v6188_v20  ;;  %v5830_v60 = vsel %vm15904_vm9, %v14402_v21, 0  ;;  %vm15908_vm9 = vcmp.ne.s16.totalorder %v15907_v5, 0  ;;  %vm15912_vm2 = vcmp.ne.s16.totalorder %v15911_v24, 0 }
 0x50d   : > { %11787 = vmatprep.subr.msk.bf16.mxu1 %vm563_vm0, %v14503_v19  ;;  %v6196_v1 = vor.u32 %v6194_v26, %v6193_v58  ;;  %v6207_v51 = vshrl.u32 %v5830_v60, 16  ;;  %v6205_v20 = vsel %vm2455_vm3, %v6193_v58, %v6204_v56  ;;  %v6217_v47 = vrot.slane %v6215_v37, 7 }
 0x50e   : > { %v5833_v26 = vsel %vm15908_vm9, %v14430_v2, 0 }
 0x50f   : > { %v6209_v9 = vrot.slane %v6207_v51, 7  ;;  %v6231_v51 = vshrl.u32 %v5833_v26, 16 }
 0x511   : > { %v6233_v37 = vrot.slane %v6231_v51, 7 }
 0x513   : > { %10897 = vmatmul.mubr.msk.bf16.gmra.mrb[36].mxu1 %vm390_vm1, %v6181_v63  ;;  %v6197_v63 = vsel %vm2455_vm3, %v6185_v6, %v6196_v1  ;;  %v6223_v1 = vshrl.u32 %v5832_v27, 16  ;;  %v6220_v6 = vor.u32 %v6218_v59, %v6217_v47  ;;  %v6234_v59 = vshll.u32 %v5833_v26, 16 }
 0x514   : > { %10900 = vmatprep.mubr.msk.bf16.mxu1 %vm390_vm1, %v6189_v12  ;;  %v6210_v12 = vshll.u32 %v5830_v60, 16 }
 0x515   : > { %v6225_v58 = vrot.slane %v6223_v1, 7  ;;  %v6221_v56 = vsel %vm2455_vm3, %v6209_v9, %v6220_v6 }
 0x516   : > { %v6212_v8 = vor.u32 %v6210_v12, %v6209_v9  ;;  %v5835_v12 = vsel %vm15912_vm2, %v14448_v25, 0  ;;  %vm15917_vm2 = vcmp.ne.s16.totalorder %v15820_v10, 0 }
 0x517   : > { %v6228_v18 = vor.u32 %v6226_v38, %v6225_v58  ;;  %v6247_v1 = vshrl.u32 %v5835_v12, 16  ;;  %v15915_v38 = vld [vmem:[#allocation26_spill] sm:$0xff] }
 0x519   : > { %v6249_v51 = vrot.slane %v6247_v1, 7 }
 0x51b   : > { %10901 = vmatmul.mubr.msk.bf16.gmra.mrb[40].mxu1 %vm390_vm1, %v6197_v63  ;;  %v6213_v63 = vsel %vm2455_vm3, %v6201_v11, %v6212_v8  ;;  %v6236_v11 = vor.u32 %v6234_v59, %v6233_v37  ;;  %v6250_v59 = vshll.u32 %v5835_v12, 16 }
 0x51c   : > { %10904 = vmatprep.mubr.msk.bf16.mxu1 %vm390_vm1, %v6205_v20  ;;  %v15909_v20 = vld [vmem:[#allocation23_spill] sm:$0xff] }
 0x51d   : > { %vm15910_vm10 = vcmp.ne.s16.totalorder %v15909_v20, 0  ;;  %v6237_v6 = vsel %vm2455_vm3, %v6225_v58, %v6236_v11 }
 0x51e   : > { %v5834_v60 = vsel %vm15910_vm10, %v14442_v22, 0  ;;  %vm15916_vm10 = vcmp.ne.s16.totalorder %v15915_v38, 0 }
 0x51f   : > { %v6239_v8 = vshrl.u32 %v5834_v60, 16  ;;  %v6242_v40 = vshll.u32 %v5834_v60, 16  ;;  %v5837_v26 = vsel %vm15916_vm10, %v14478_v36, 0  ;;  %v5838_v60 = vsel %vm15917_vm2, %v14486_v0, 0 }
 0x520   : > { %vm15919_vm10 = vcmp.ne.s16.totalorder %v15837_v17, 0  ;;  %vm15920_vm2 = vcmp.ne.s16.totalorder %v13363_v35, 0 }
 0x521   : > { %v6241_v9 = vrot.slane %v6239_v8, 7  ;;  %v6263_v8 = vshrl.u32 %v5837_v26, 16 }
 0x523   : > { %10905 = vmatmul.mubr.msk.bf16.gmra.mrb[44].mxu1 %vm390_vm1, %v6213_v63  ;;  %v6229_v63 = vsel %vm2455_vm3, %v6217_v47, %v6228_v18  ;;  %v6244_v57 = vor.u32 %v6242_v40, %v6241_v9  ;;  %v6252_v47 = vor.u32 %v6250_v59, %v6249_v51  ;;  %v6265_v1 = vrot.slane %v6263_v8, 7 }
 0x524   : > { %10908 = vmatprep.mubr.msk.bf16.mxu1 %vm390_vm1, %v6221_v56  ;;  %v15913_v56 = vld [vmem:[#allocation25_spill] sm:$0xff] }
 0x525   : > { %vm15914_vm9 = vcmp.ne.s16.totalorder %v15913_v56, 0  ;;  %v6253_v11 = vsel %vm2455_vm3, %v6241_v9, %v6252_v47  ;;  %v5841_v9 = vsel %vm15919_vm10, %v14300_v41, 0  ;;  %vm15922_vm10 = vcmp.ne.s16.totalorder %v13417_v49, 0 }
 0x526   : > { %v5836_v27 = vsel %vm15914_vm9, %v14469_v45, 0  ;;  %vm15918_vm9 = vcmp.ne.s16.totalorder %v15835_v53, 0 }
 0x527   : > { %v6255_v18 = vshrl.u32 %v5836_v27, 16  ;;  %v5840_v12 = vsel %vm15918_vm9, %v14169_v4, 0  ;;  %v6258_v40 = vshll.u32 %v5836_v27, 16  ;;  %v6274_v27 = vshll.u32 %v5838_v60, 16 }
 0x528   : > { %vm15921_vm9 = vcmp.ne.s16.totalorder %v13403_v30, 0 }
 0x529   : > { %v6257_v58 = vrot.slane %v6255_v18, 7 }
 0x52b   : > { %10909 = vmatmul.mubr.msk.bf16.gmra.mrb[48].mxu1 %vm390_vm1, %v6229_v63  ;;  %v6245_v63 = vsel %vm2455_vm3, %v6233_v37, %v6244_v57  ;;  %v6260_v59 = vor.u32 %v6258_v40, %v6257_v58  ;;  %v6271_v57 = vshrl.u32 %v5838_v60, 16  ;;  %v6495_v37 = vshll.u32 %v5840_v12, 16 }
 0x52c   : > { %10912 = vmatprep.mubr.msk.bf16.mxu1 %vm390_vm1, %v6237_v6  ;;  %v6266_v6 = vshll.u32 %v5837_v26, 16  ;;  %v5842_v40 = vsel %vm15920_vm2, %v14314_v15, 0  ;;  %v6504_v60 = vshrl.u32 %v5841_v9, 16  ;;  %vm15923_vm2 = vcmp.ne.s16.totalorder %v13420_v42, 0 }
 0x52d   : > { %v6261_v47 = vsel %vm2455_vm3, %v6249_v51, %v6260_v59  ;;  %v6273_v8 = vrot.slane %v6271_v57, 7  ;;  %v6497_v34 = vrot.slane %v6495_v37, 1  ;;  %v5843_v51 = vsel %vm15921_vm9, %v14342_v43, 0 }
 0x52e   : > { %v6268_v18 = vor.u32 %v6266_v6, %v6265_v1  ;;  %v6516_v57 = vshll.u32 %v5843_v51, 16  ;;  %vm15924_vm9 = vcmp.ne.s16.totalorder %v13460_v3, 0 }
 0x52f   : > { %v6276_v26 = vor.u32 %v6274_v27, %v6273_v8 }
 0x530   : > { %v6269_v4 = vsel %vm2455_vm3, %v6257_v58, %v6268_v18  ;;  %v6518_v8 = vrot.slane %v6516_v57, 1 }
 0x531   : > { %v6277_v59 = vsel %vm2455_vm3, %v6265_v1, %v6276_v26  ;;  %v5845_v1 = vsel %vm15923_vm2, %v14380_v39, 0 }
 0x532   : > { %v6532_v26 = vshll.u32 %v5845_v1, 16 }
 0x533   : > { %10913 = vmatmul.mubr.msk.bf16.gmra.mrb[52].mxu1 %vm390_vm1, %v6245_v63  ;;  %v6493_v63 = vshrl.u32 %v5840_v12, 16  ;;  %v6508_v12 = vshll.u32 %v5842_v40, 16 }
 0x534   : > { %10916 = vmatprep.mubr.msk.bf16.mxu1 %vm390_vm1, %v6253_v11  ;;  %v6500_v11 = vshll.u32 %v5841_v9, 16 }
 0x535   : > { %v6498_v6 = vor.u32 %v6497_v34, %v6493_v63  ;;  %v6510_v37 = vrot.slane %v6508_v12, 1  ;;  %v5844_v34 = vsel %vm15922_vm10, %v14351_v52, 0  ;;  %v7051_v63 = vsel %vm563_vm0, %v14503_v19, 0 }
 0x536   : > { %v6502_v17 = vrot.slane %v6500_v11, 1  ;;  %v6524_v11 = vshll.u32 %v5844_v34, 16  ;;  %v5846_v12 = vsel %vm15924_vm9, %v14389_v62, 0  ;;  %vm15925_vm10 = vcmp.ne.s16.totalorder %v13463_v28, 0 }
 0x537   : > { %v5847_v57 = vsel %vm15925_vm10, %v14402_v21, 0 }
 0x538   : > { %v6503_v58 = vsel %vm2116_vm5, %v6498_v6, %v6502_v17  ;;  %v6506_v18 = vor.u32 %v6504_v60, %v6502_v17  ;;  %v14595_v17 = vld [vmem:[%s15578_s5 + $0x8] sm:$0x3]  ;;  %v6526_v6 = vrot.slane %v6524_v11, 1  ;;  %v6544_v11 = vshrl.u32 %v5846_v12, 16 }
 0x53a   : > { %v6511_v9 = vsel %vm2116_vm5, %v6506_v18, %v6510_v37 }
 0x53b   : > { %10917 = vmatmul.mubr.msk.bf16.gmra.mrb[56].mxu1 %vm390_vm1, %v6261_v47  ;;  %v6512_v47 = vshrl.u32 %v5842_v40, 16  ;;  %v6520_v40 = vshrl.u32 %v5843_v51, 16 }
 0x53c   : > { %10920 = vmatprep.mubr.msk.bf16.mxu1 %vm390_vm1, %v6269_v4 }
 0x53d   : > { %v6514_v4 = vor.u32 %v6512_v47, %v6510_v37  ;;  %v6522_v19 = vor.u32 %v6520_v40, %v6518_v8  ;;  %v6540_v37 = vshll.u32 %v5846_v12, 16  ;;  %v6548_v47 = vshll.u32 %v5847_v57, 16 }
 0x53e   : > { %v5850_v12 = vsel %vm2593_vm13, %v14430_v2, 0 }
 0x53f   : > { %v6519_v27 = vsel %vm2116_vm5, %v6514_v4, %v6518_v8  ;;  %v6527_v18 = vsel %vm2116_vm5, %v6522_v19, %v6526_v6  ;;  %v6536_v8 = vshrl.u32 %v5845_v1, 16 }
 0x543   : > { %10921 = vmatmul.mubr.msk.bf16.gmra.mrb[60].mxu1 %vm390_vm1, %v6277_v59  ;;  %v6528_v59 = vshrl.u32 %v5844_v34, 16  ;;  %v5848_v34 = vsel %vm2591_vm6, %v14408_v32, 0 }
 0x544   : > { %10926 = vmatprep.mubr.msk.bf16.mxu1 %vm390_vm1, %v6503_v58  ;;  %v6534_v58 = vrot.slane %v6532_v26, 1  ;;  %v6556_v40 = vshll.u32 %v5848_v34, 16 }
 0x545   : > { %v6530_v60 = vor.u32 %v6528_v59, %v6526_v6  ;;  %v6552_v59 = vshrl.u32 %v5847_v57, 16 }
 0x546   : > { %v6538_v4 = vor.u32 %v6536_v8, %v6534_v58 }
 0x547   : > { %v6535_v51 = vsel %vm2116_vm5, %v6530_v60, %v6534_v58  ;;  %v6558_v58 = vrot.slane %v6556_v40, 1 }
 0x54b   : > { %10927 = vmatmul.mubr.msk.bf16.vlgmr.msra.gmra.mrb[32].mxu1 %vm390_vm1, %v6511_v9  ;;  %v6550_v9 = vrot.slane %v6548_v47, 1  ;;  %v5851_v47 = vsel %vm2594_vm4, %v14442_v22, 0 }
 0x54c   : > { %10959 = vmatpush3.bf16.msra.mxu1 %v7051_v63  ;;  %10930 = vmatprep.mubr.msk.bf16.mxu1 %vm390_vm1, %v6519_v27  ;;  %v6542_v63 = vrot.slane %v6540_v37, 1  ;;  %v5849_v27 = vsel %vm2592_vm14, %v14424_v61, 0  ;;  %v6560_v37 = vshrl.u32 %v5848_v34, 16  ;;  %v15927_v34 = vld [vmem:[#allocation34_spill] sm:$0xff] }
 0x54d   : > { %11788 = vmatprep.subr.msk.bf16.mxu1 %vm563_vm0, %v14595_v17  ;;  %v6564_v19 = vshll.u32 %v5849_v27, 16  ;;  %v6554_v60 = vor.u32 %v6552_v59, %v6550_v9  ;;  %vm15928_vm2 = vcmp.ne.s16.totalorder %v15927_v34, 0  ;;  %v15929_v59 = vld [vmem:[#allocation35_spill] sm:$0xff] }
 0x54e   : > { %v6546_v26 = vor.u32 %v6544_v11, %v6542_v63  ;;  %v6543_v6 = vsel %vm2116_vm5, %v6538_v4, %v6542_v63  ;;  %v6562_v8 = vor.u32 %v6560_v37, %v6558_v58  ;;  %v6572_v63 = vshll.u32 %v5850_v12, 16 }
 0x54f   : > { %v6559_v4 = vsel %vm2116_vm5, %v6554_v60, %v6558_v58  ;;  %v6580_v11 = vshll.u32 %v5851_v47, 16  ;;  %vm15930_vm9 = vcmp.ne.s16.totalorder %v15929_v59, 0 }
 0x550   : > { %v6551_v1 = vsel %vm2116_vm5, %v6546_v26, %v6550_v9  ;;  %v6568_v9 = vshrl.u32 %v5849_v27, 16  ;;  %v6574_v26 = vrot.slane %v6572_v63, 1  ;;  %v5853_v58 = vsel %vm15930_vm9, %v14469_v45, 0 }
 0x551   : > { %v6596_v63 = vshll.u32 %v5853_v58, 16  ;;  %vm15936_vm9 = vcmp.ne.s16.totalorder %v13035_v48, 0 }
 0x553   : > { %10931 = vmatmul.mubr.msk.bf16.gmra.mrb[36].mxu1 %vm390_vm1, %v6527_v18  ;;  %v6566_v18 = vrot.slane %v6564_v19, 1  ;;  %v6582_v19 = vrot.slane %v6580_v11, 1  ;;  %v5854_v11 = vsel %vm2597_vm12, %v14478_v36, 0  ;;  %v6598_v59 = vrot.slane %v6596_v63, 1  ;;  %v5857_v63 = vld [vmem:[#allocation2 + $0x8] sm:$0x80] }
 0x554   : > { %10934 = vmatprep.mubr.msk.bf16.mxu1 %vm390_vm1, %v6535_v51 }
 0x555   : > { %v6567_v57 = vsel %vm2116_vm5, %v6562_v8, %v6566_v18  ;;  %v6570_v40 = vor.u32 %v6568_v9, %v6566_v18  ;;  %v6584_v18 = vshrl.u32 %v5851_v47, 16 }
 0x557   : > { %v6575_v8 = vsel %vm2116_vm5, %v6570_v40, %v6574_v26 }
 0x55b   : > { %10935 = vmatmul.mubr.msk.bf16.gmra.mrb[40].mxu1 %vm390_vm1, %v6543_v6  ;;  %v5852_v6 = vsel %vm15928_vm2, %v14448_v25, 0  ;;  %vm15935_vm2 = vcmp.ne.s16.totalorder %v15898_v31, 0 }
 0x55c   : > { %10938 = vmatprep.mubr.msk.bf16.mxu1 %vm390_vm1, %v6551_v1  ;;  %v6576_v1 = vshrl.u32 %v5850_v12, 16  ;;  %v6588_v37 = vshll.u32 %v5852_v6, 16  ;;  %v6592_v9 = vshrl.u32 %v5852_v6, 16  ;;  %v5860_v6 = vsel %vm2245_vm8, %v14300_v41, 0 }
 0x55d   : > { %v6875_v34 = vshrl.u32 %v5860_v6, 16 }
 0x55e   : > { %v6578_v60 = vor.u32 %v6576_v1, %v6574_v26  ;;  %v15932_v1 = vld [vmem:[#allocation42_spill] sm:$0xff] }
 0x55f   : > { %vm15933_vm10 = vcmp.ne.s16.totalorder %v15932_v1, 0  ;;  %v5839_v1 = vld [vmem:[#allocation2 + $0x88] sm:$0x1] }
 0x560   : > { %v6583_v27 = vsel %vm2116_vm5, %v6578_v60, %v6582_v19  ;;  %v5855_v26 = vsel %vm15933_vm10, %v14486_v0, 0  ;;  %vm15937_vm10 = vcmp.ne.s16.totalorder %v13046_v46, 0 }
 0x563   : > { %10939 = vmatmul.mubr.msk.bf16.gmra.mrb[44].mxu1 %vm390_vm1, %v6559_v4  ;;  %v6590_v4 = vrot.slane %v6588_v37, 1  ;;  %v6612_v37 = vshll.u32 %v5855_v26, 16 }
 0x564   : > { %10942 = vmatprep.mubr.msk.bf16.mxu1 %vm390_vm1, %v6567_v57  ;;  %v6586_v57 = vor.u32 %v6584_v18, %v6582_v19  ;;  %v6600_v19 = vshrl.u32 %v5853_v58, 16 }
 0x565   : > { %v6594_v40 = vor.u32 %v6592_v9, %v6590_v4  ;;  %v6608_v9 = vshrl.u32 %v5854_v11, 16  ;;  %v6614_v12 = vrot.slane %v6612_v37, 1 }
 0x566   : > { %v6591_v60 = vsel %vm2116_vm5, %v6586_v57, %v6590_v4  ;;  %v6602_v18 = vor.u32 %v6600_v19, %v6598_v59  ;;  %v5859_v4 = vsel %vm2244_vm11, %v5857_v63, 0  ;;  %v6878_v19 = vshll.u32 %v5860_v6, 16 }
 0x567   : > { %v6599_v47 = vsel %vm2116_vm5, %v6594_v40, %v6598_v59  ;;  %v5861_v59 = vsel %vm2246_vm15, %v14314_v15, 0  ;;  %v15125_v40 = vld [vmem:[%s15579_s6] ss:$0 sm:$0xff] }
 0x568   : > { %v6883_v63 = vshrl.u32 %v5861_v59, 16 }
 0x56b   : > { %10943 = vmatmul.mubr.msk.bf16.gmra.mrb[48].mxu1 %vm390_vm1, %v6575_v8  ;;  %v6604_v8 = vshll.u32 %v5854_v11, 16  ;;  %v6616_v11 = vshrl.u32 %v5855_v26, 16 }
 0x56c   : > { %10946 = vmatprep.mubr.msk.bf16.mxu1 %vm390_vm1, %v6583_v27 }
 0x56d   : > { %v6606_v27 = vrot.slane %v6604_v8, 1  ;;  %v6871_v8 = vshrl.u32 %v5859_v4, 16 }
 0x56f   : > { %v6610_v57 = vor.u32 %v6608_v9, %v6606_v27  ;;  %v6607_v58 = vsel %vm2116_vm5, %v6602_v18, %v6606_v27  ;;  %v6618_v27 = vor.u32 %v6616_v11, %v6614_v12  ;;  %v6873_v18 = vrot.slane %v6871_v8, 7 }
 0x571   : > { %v6615_v41 = vsel %vm2116_vm5, %v6610_v57, %v6614_v12  ;;  %v5864_v12 = vsel %vm15937_vm10, %v14380_v39, 0  ;;  %vm15940_vm10 = vcmp.ne.s16.totalorder %v13117_v44, 0 }
 0x573   : > { %10947 = vmatmul.mubr.msk.bf16.gmra.mrb[52].mxu1 %vm390_vm1, %v6591_v60  ;;  %v5856_v60 = vsel %vm2599_vm7, %v5839_v1, 0  ;;  %v5862_v1 = vsel %vm15935_vm2, %v14342_v43, 0  ;;  %v6886_v43 = vshll.u32 %v5861_v59, 16  ;;  %vm15938_vm2 = vcmp.ne.s16.totalorder %v13064_v13, 0 }
 0x574   : > { %10950 = vmatprep.mubr.msk.bf16.mxu1 %vm390_vm1, %v6599_v47  ;;  %v6877_v47 = vrot.slane %v6875_v34, 7  ;;  %v6620_v37 = vshll.u32 %v5856_v60, 16  ;;  %v6891_v57 = vshrl.u32 %v5862_v1, 16  ;;  %v5863_v60 = vsel %vm15936_vm9, %v14351_v52, 0  ;;  %v14685_v52 = vld [vmem:[%s15578_s5 + $0xa] sm:$0x3] }
 0x575   : > { %v6894_v6 = vshll.u32 %v5862_v1, 16  ;;  %v6899_v8 = vshrl.u32 %v5863_v60, 16  ;;  %vm15939_vm9 = vcmp.ne.s16.totalorder %v13084_v54, 0 }
 0x576   : > { %v6880_v9 = vor.u32 %v6878_v19, %v6877_v47  ;;  %v6622_v4 = vrot.slane %v6620_v37, 1  ;;  %v6893_v26 = vrot.slane %v6891_v57, 7  ;;  %v6907_v37 = vshrl.u32 %v5864_v12, 16 }
 0x577   : > { %v7297_v19 = vsel %vm563_vm0, %v14595_v17, 0  ;;  %v6902_v17 = vshll.u32 %v5863_v60, 16 }
 0x578   : > { %v6623_v34 = vsel %vm2116_vm5, %v6618_v27, %v6622_v4  ;;  %v6881_v15 = vsel %vm2455_vm3, %v6873_v18, %v6880_v9  ;;  %v6896_v11 = vor.u32 %v6894_v6, %v6893_v26  ;;  %v6909_v1 = vrot.slane %v6907_v37, 7 }
 0x579   : > { %v5865_v18 = vsel %vm15938_vm2, %v14389_v62, 0  ;;  %v6910_v9 = vshll.u32 %v5864_v12, 16  ;;  %vm15941_vm2 = vcmp.ne.s16.totalorder %v13129_v7, 0 }
 0x57a   : > { %v6915_v4 = vshrl.u32 %v5865_v18, 16  ;;  %v6918_v12 = vshll.u32 %v5865_v18, 16 }
 0x57b   : > { %10951 = vmatmul.mubr.msk.bf16.gmra.mrb[56].mxu1 %vm390_vm1, %v6607_v58  ;;  %v6885_v58 = vrot.slane %v6883_v63, 7  ;;  %v6901_v63 = vrot.slane %v6899_v8, 7  ;;  %v5868_v8 = vsel %vm15941_vm2, %v14424_v61, 0  ;;  %vm15944_vm2 = vcmp.ne.s16.totalorder %v15909_v20, 0 }
 0x57c   : > { %10954 = vmatprep.mubr.msk.bf16.mxu1 %vm390_vm1, %v6615_v41 }
 0x57d   : > { %v6888_v41 = vor.u32 %v6886_v43, %v6885_v58  ;;  %v6897_v59 = vsel %vm2455_vm3, %v6885_v58, %v6896_v11  ;;  %v6904_v57 = vor.u32 %v6902_v17, %v6901_v63  ;;  %v6917_v43 = vrot.slane %v6915_v4, 7 }
 0x57e   : > { %v6942_v4 = vshll.u32 %v5868_v8, 16 }
 0x57f   : > { %v6889_v27 = vsel %vm2455_vm3, %v6877_v47, %v6888_v41  ;;  %v5866_v47 = vsel %vm15939_vm9, %v14402_v21, 0  ;;  %v5867_v41 = vsel %vm15940_vm10, %v14408_v32, 0  ;;  %v6920_v37 = vor.u32 %v6918_v12, %v6917_v43 }
 0x580   : > { %v6923_v58 = vshrl.u32 %v5866_v47, 16  ;;  %v6926_v11 = vshll.u32 %v5866_v47, 16  ;;  %vm15942_vm9 = vcmp.ne.s16.totalorder %v13180_v50, 0  ;;  %vm15943_vm10 = vcmp.ne.s16.totalorder %v15907_v5, 0 }
 0x581   : > { %v5869_v18 = vsel %vm15942_vm9, %v14430_v2, 0  ;;  %v5870_v47 = vsel %vm15943_vm10, %v14442_v22, 0  ;;  %vm15945_vm9 = vcmp.ne.s16.totalorder %v15911_v24, 0  ;;  %vm15946_vm10 = vcmp.ne.s16.totalorder %v15913_v56, 0 }
 0x582   : > { %v6925_v60 = vrot.slane %v6923_v58, 7 }
 0x583   : > { %10955 = vmatmul.mubr.msk.bf16.gmra.mrb[60].mxu1 %vm390_vm1, %v6623_v34  ;;  %v6912_v34 = vor.u32 %v6910_v9, %v6909_v1 }
 0x584   : > { %10960 = vmatprep.mubr.msk.bf16.mxu1 %vm390_vm1, %v6881_v15  ;;  %v6905_v15 = vsel %vm2455_vm3, %v6893_v26, %v6904_v57  ;;  %v6931_v26 = vshrl.u32 %v5867_v41, 16  ;;  %v6934_v57 = vshll.u32 %v5867_v41, 16  ;;  %v5871_v41 = vsel %vm15944_vm2, %v14448_v25, 0 }
 0x585   : > { %v6913_v6 = vsel %vm2455_vm3, %v6901_v63, %v6912_v34  ;;  %vm15947_vm2 = vcmp.ne.s16.totalorder %v15915_v38, 0 }
 0x586   : > { %v6933_v63 = vrot.slane %v6931_v26, 7  ;;  %v6958_v26 = vshll.u32 %v5870_v47, 16 }
 0x588   : > { %v6936_v34 = vor.u32 %v6934_v57, %v6933_v63 }
 0x58b   : > { %10961 = vmatmul.mubr.msk.bf16.vlgmr.msra.gmra.mrb[32].mxu1 %vm390_vm1, %v6889_v27  ;;  %v6939_v27 = vshrl.u32 %v5868_v8, 16  ;;  %v5872_v8 = vsel %vm15945_vm9, %v14469_v45, 0  ;;  %vm15948_vm9 = vcmp.ne.s16.totalorder %v15820_v10, 0 }
 0x58c   : > { %10993 = vmatpush3.bf16.msra.mxu1 %v7297_v19  ;;  %10964 = vmatprep.mubr.msk.bf16.mxu1 %vm390_vm1, %v6897_v59  ;;  %v6928_v19 = vor.u32 %v6926_v11, %v6925_v60  ;;  %v6921_v59 = vsel %vm2455_vm3, %v6909_v1, %v6920_v37  ;;  %v6947_v1 = vshrl.u32 %v5869_v18, 16  ;;  %v6950_v37 = vshll.u32 %v5869_v18, 16 }
 0x58d   : > { %11789 = vmatprep.subr.msk.bf16.mxu1 %vm563_vm0, %v14685_v52  ;;  %v6941_v9 = vrot.slane %v6939_v27, 7  ;;  %v5873_v18 = vsel %vm15946_vm10, %v14478_v36, 0  ;;  %vm15962_vm10 = vcmp.ne.s16.totalorder %v15835_v53, 0 }
 0x58e   : > { %v6929_v17 = vsel %vm2455_vm3, %v6917_v43, %v6928_v19  ;;  %v6949_v43 = vrot.slane %v6947_v1, 7  ;;  %v6974_v1 = vshll.u32 %v5872_v8, 16 }
 0x58f   : > { %v6944_v58 = vor.u32 %v6942_v4, %v6941_v9 }
 0x590   : > { %v6952_v19 = vor.u32 %v6950_v37, %v6949_v43 }
 0x591   : > { %v6945_v12 = vsel %vm2455_vm3, %v6933_v63, %v6944_v58 }
 0x593   : > { %10965 = vmatmul.mubr.msk.bf16.gmra.mrb[36].mxu1 %vm390_vm1, %v6905_v15  ;;  %v6955_v15 = vshrl.u32 %v5870_v47, 16  ;;  %v5874_v47 = vsel %vm15947_vm2, %v14486_v0, 0 }
 0x594   : > { %10968 = vmatprep.mubr.msk.bf16.mxu1 %vm390_vm1, %v6913_v6  ;;  %v6937_v6 = vsel %vm2455_vm3, %v6925_v60, %v6936_v34  ;;  %v6963_v60 = vshrl.u32 %v5871_v41, 16  ;;  %v6966_v34 = vshll.u32 %v5871_v41, 16 }
 0x595   : > { %v6957_v11 = vrot.slane %v6955_v15, 7 }
 0x596   : > { %v6965_v63 = vrot.slane %v6963_v60, 7  ;;  %v6990_v60 = vshll.u32 %v5874_v47, 16 }
 0x597   : > { %v6960_v27 = vor.u32 %v6958_v26, %v6957_v11 }
 0x598   : > { %v6968_v58 = vor.u32 %v6966_v34, %v6965_v63 }
 0x599   : > { %v6961_v57 = vsel %vm2455_vm3, %v6949_v43, %v6960_v27 }
 0x59a   : > { %v6969_v43 = vsel %vm2455_vm3, %v6957_v11, %v6968_v58 }
 0x59b   : > { %10969 = vmatmul.mubr.msk.bf16.gmra.mrb[40].mxu1 %vm390_vm1, %v6921_v59  ;;  %v6971_v59 = vshrl.u32 %v5872_v8, 16  ;;  %v6982_v8 = vshll.u32 %v5873_v18, 16 }
 0x59c   : > { %10972 = vmatprep.mubr.msk.bf16.mxu1 %vm390_vm1, %v6929_v17  ;;  %v6953_v17 = vsel %vm2455_vm3, %v6941_v9, %v6952_v19  ;;  %v6979_v9 = vshrl.u32 %v5873_v18, 16  ;;  %v15949_v18 = vld [vmem:[#allocation3_spill] sm:$0xff] }
 0x59d   : > { %v6973_v4 = vrot.slane %v6971_v59, 7 }
 0x59e   : > { %v6981_v37 = vrot.slane %v6979_v9, 7  ;;  %v15950_v9 = vld [vmem:[#allocation27_spill] sm:$0xff] }
 0x59f   : > { %v6976_v15 = vor.u32 %v6974_v1, %v6973_v4 }
 0x5a0   : > { %v6984_v27 = vor.u32 %v6982_v8, %v6981_v37  ;;  %v15959_v8 = vld [vmem:[#allocation14_spill] sm:$0xff] }
 0x5a1   : > { %v6977_v26 = vsel %vm2455_vm3, %v6965_v63, %v6976_v15  ;;  %v15951_v15 = vld [vmem:[#allocation5_spill] sm:$0xff] }
 0x5a3   : > { %10973 = vmatmul.mubr.msk.bf16.gmra.mrb[44].mxu1 %vm390_vm1, %v6937_v6  ;;  %v6987_v6 = vshrl.u32 %v5874_v47, 16  ;;  %v7675_v47 = vsel %vm563_vm0, %v14685_v52, 0  ;;  %v15954_v52 = vld [vmem:[#allocation6_spill] sm:$0xff] }
 0x5a4   : > { %10976 = vmatprep.mubr.msk.bf16.mxu1 %vm390_vm1, %v6945_v12  ;;  %v14738_v12 = vld [vmem:[#allocation2 + $0x88] sm:$0xff] }
 0x5a5   : > { %v6989_v19 = vrot.slane %v6987_v6, 7  ;;  %v5875_v41 = vsel %vm15948_vm9, %v14738_v12, 0  ;;  %v15952_v6 = vld [vmem:[#allocation4_spill] sm:$0xff]  ;;  %vm15967_vm9 = vcmp.ne.s16.totalorder %v13363_v35, 0 }
 0x5a6   : > { %v6995_v59 = vshrl.u32 %v5875_v41, 16  ;;  %v6998_v63 = vshll.u32 %v5875_v41, 16  ;;  %v15958_v41 = vld [vmem:[#allocation9_spill] sm:$0xff] }
 0x5a8   : > { %v6997_v11 = vrot.slane %v6995_v59, 7  ;;  %v12349_v59 = vld [vmem:[#allocation2 + $0x10] sm:$0xff] }
 0x5aa   : > { %v7000_v1 = vor.u32 %v6998_v63, %v6997_v11  ;;  %v14787_v11 = vld [vmem:[#allocation2 + $0x18] sm:$0xff] }
 0x5ab   : > { %10977 = vmatmul.mubr.msk.bf16.gmra.mrb[48].mxu1 %vm390_vm1, %v6953_v17  ;;  %v6992_v17 = vor.u32 %v6990_v60, %v6989_v19  ;;  %v15960_v60 = vld [vmem:[#allocation11_spill] sm:$0xff] }
 0x5ac   : > { %10980 = vmatprep.mubr.msk.bf16.mxu1 %vm390_vm1, %v6961_v57  ;;  %v6985_v57 = vsel %vm2455_vm3, %v6973_v4, %v6984_v27  ;;  %v7001_v58 = vsel %vm2455_vm3, %v6989_v19, %v7000_v1  ;;  %v10001_v4 = vld [vmem:[%s15578_s5 + $0xc] sm:$0x3]  ;;  %v15965_v1 = vld [vmem:[#allocation13_spill] sm:$0xff] }
 0x5ad   : > { %v6993_v34 = vsel %vm2455_vm3, %v6981_v37, %v6992_v17  ;;  %v15955_v37 = vld [vmem:[#allocation10_spill] sm:$0xff]  ;;  %v15957_v19 = vld [vmem:[#allocation12_spill] sm:$0xff]  ;;  %v5877_v17 = vsel %vm15962_vm10, %v12349_v59, 0  ;;  %vm15968_vm10 = vcmp.ne.s16.totalorder %v13403_v30, 0 }
 0x5ae   : > { %v15961_v27 = vld [vmem:[#allocation16_spill] sm:$0xff] }
 0x5b3   : > { %10981 = vmatmul.mubr.msk.bf16.gmra.mrb[52].mxu1 %vm390_vm1, %v6969_v43  ;;  %v15953_v43 = vld [vmem:[#allocation8_spill] sm:$0xff] }
 0x5b4   : > { %10984 = vmatprep.mubr.msk.bf16.mxu1 %vm390_vm1, %v6977_v26  ;;  %v15956_v26 = vld [vmem:[#allocation7_spill] sm:$0xff] }
 0x5bb   : > { %10985 = vmatmul.mubr.msk.bf16.gmra.mrb[56].mxu1 %vm390_vm1, %v6985_v57  ;;  %v7497_v57 = vshll.u32 %v5877_v17, 16 }
 0x5bc   : > { %10988 = vmatprep.mubr.msk.bf16.mxu1 %vm390_vm1, %v6993_v34  ;;  %v15963_v34 = vld [vmem:[#allocation28_spill] sm:$0xff] }
 0x5bd   : > { %vm15964_vm2 = vcmp.ne.s16.totalorder %v15963_v34, 0 }
 0x5be   : > { %v5878_v63 = vsel %vm15964_vm2, %v14787_v11, 0  ;;  %vm15970_vm2 = vcmp.ne.s16.totalorder %v13417_v49, 0 }
 0x5c3   : > { %10989 = vmatmul.mubr.msk.bf16.gmra.mrb[60].mxu1 %vm390_vm1, %v7001_v58  ;;  %v7499_v58 = vrot.slane %v7497_v57, 1  ;;  %v7506_v57 = vshrl.u32 %v5878_v63, 16 }
 0x5c4   : > { %10994 = vmatprep.mubr.msk.bf16.mxu1 %vm390_vm1, %v15949_v18  ;;  %v15966_v18 = vld [vmem:[#allocation15_spill] sm:$0xff] }
 0x5cb   : > { %10995 = vmatmul.mubr.msk.bf16.vlgmr.msra.gmra.mrb[32].mxu1 %vm390_vm1, %v15950_v9 }
 0x5cc   : > { %11027 = vmatpush3.bf16.msra.mxu1 %v7675_v47  ;;  %10998 = vmatprep.mubr.msk.bf16.mxu1 %vm390_vm1, %v15951_v15  ;;  %v14796_v47 = vld [vmem:[#allocation2 + $0x20] sm:$0xff]  ;;  %v7495_v15 = vshrl.u32 %v5877_v17, 16 }
 0x5cd   : > { %11790 = vmatprep.subr.msk.bf16.mxu1 %vm563_vm0, %v10001_v4  ;;  %v5879_v9 = vsel %vm15967_vm9, %v14796_v47, 0  ;;  %vm15971_vm9 = vcmp.ne.s16.totalorder %v13420_v42, 0 }
 0x5ce   : > { %v7514_v59 = vshrl.u32 %v5879_v9, 16 }
 0x5d3   : > { %10999 = vmatmul.mubr.msk.bf16.gmra.mrb[36].mxu1 %vm390_vm1, %v15952_v6  ;;  %v7502_v6 = vshll.u32 %v5878_v63, 16 }
 0x5d4   : > { %11002 = vmatprep.mubr.msk.bf16.mxu1 %vm390_vm1, %v15953_v43  ;;  %v7500_v43 = vor.u32 %v7499_v58, %v7495_v15  ;;  %v8053_v15 = vsel %vm563_vm0, %v10001_v4, 0 }
 0x5db   : > { %11003 = vmatmul.mubr.msk.bf16.gmra.mrb[40].mxu1 %vm390_vm1, %v15954_v52  ;;  %v7510_v52 = vshll.u32 %v5879_v9, 16 }
 0x5dc   : > { %11006 = vmatprep.mubr.msk.bf16.mxu1 %vm390_vm1, %v15955_v37  ;;  %v7504_v37 = vrot.slane %v7502_v6, 1 }
 0x5e3   : > { %11007 = vmatmul.mubr.msk.bf16.gmra.mrb[44].mxu1 %vm390_vm1, %v15956_v26  ;;  %v14801_v26 = vld [vmem:[#allocation2 + $0x28] sm:$0xff] }
 0x5e4   : > { %11010 = vmatprep.mubr.msk.bf16.mxu1 %vm390_vm1, %v15957_v19  ;;  %v5880_v19 = vsel %vm15968_vm10, %v14801_v26, 0  ;;  %vm15972_vm10 = vcmp.ne.s16.totalorder %v13460_v3, 0 }
 0x5e5   : > { %v7518_v17 = vshll.u32 %v5880_v19, 16  ;;  %v5883_v4 = vsel %vm15972_vm10, %v14402_v21, 0 }
 0x5e7   : > { %v7520_v6 = vrot.slane %v7518_v17, 1 }
 0x5eb   : > { %11011 = vmatmul.mubr.msk.bf16.gmra.mrb[48].mxu1 %vm390_vm1, %v15958_v41  ;;  %v15969_v41 = vld [vmem:[#allocation20_spill] sm:$0xff] }
 0x5ec   : > { %11014 = vmatprep.mubr.msk.bf16.mxu1 %vm390_vm1, %v15959_v8  ;;  %v7505_v8 = vsel %vm2116_vm5, %v7500_v43, %v7504_v37  ;;  %v5882_v43 = vsel %vm15971_vm9, %v14389_v62, 0  ;;  %v7522_v62 = vshrl.u32 %v5880_v19, 16  ;;  %v5885_v19 = vsel %vm2591_vm6, %v14424_v61, 0 }
 0x5ed   : > { %v5887_v61 = vsel %vm2593_vm13, %v14442_v22, 0  ;;  %v15974_v22 = vld [vmem:[#allocation34_spill] sm:$0xff] }
 0x5ee   : > { %vm15975_vm9 = vcmp.ne.s16.totalorder %v15974_v22, 0 }
 0x5f3   : > { %11015 = vmatmul.mubr.msk.bf16.gmra.mrb[52].mxu1 %vm390_vm1, %v15960_v60  ;;  %v7512_v60 = vrot.slane %v7510_v52, 1  ;;  %v14821_v52 = vld [vmem:[%s15578_s5 + $0xe] sm:$0x3] }
 0x5f4   : > { %11018 = vmatprep.mubr.msk.bf16.mxu1 %vm390_vm1, %v15961_v27  ;;  %v5881_v27 = vsel %vm15970_vm2, %v14380_v39, 0  ;;  %vm15973_vm2 = vcmp.ne.s16.totalorder %v13463_v28, 0 }
 0x5f5   : > { %v7526_v58 = vshll.u32 %v5881_v27, 16  ;;  %v7530_v9 = vshrl.u32 %v5881_v27, 16 }
 0x5f7   : > { %v7528_v63 = vrot.slane %v7526_v58, 1  ;;  %v7546_v58 = vshrl.u32 %v5883_v4, 16 }
 0x5fb   : > { %11019 = vmatmul.mubr.msk.bf16.gmra.mrb[56].mxu1 %vm390_vm1, %v15965_v1  ;;  %v7516_v1 = vor.u32 %v7514_v59, %v7512_v60  ;;  %v7524_v59 = vor.u32 %v7522_v62, %v7520_v6 }
 0x5fc   : > { %11022 = vmatprep.mubr.msk.bf16.mxu1 %vm390_vm1, %v15966_v18  ;;  %v7508_v18 = vor.u32 %v7506_v57, %v7504_v37  ;;  %v7534_v37 = vshll.u32 %v5882_v43, 16 }
 0x5fd   : > { %v7521_v39 = vsel %vm2116_vm5, %v7516_v1, %v7520_v6  ;;  %v7529_v57 = vsel %vm2116_vm5, %v7524_v59, %v7528_v63  ;;  %v5884_v1 = vsel %vm15973_vm2, %v14408_v32, 0  ;;  %v7574_v59 = vshll.u32 %v5887_v61, 16 }
 0x5fe   : > { %v7536_v17 = vrot.slane %v7534_v37, 1 }
 0x603   : > { %11023 = vmatmul.mubr.msk.bf16.gmra.mrb[60].mxu1 %vm390_vm1, %v15969_v41  ;;  %v7513_v41 = vsel %vm2116_vm5, %v7508_v18, %v7512_v60  ;;  %v7542_v60 = vshll.u32 %v5883_v4, 16  ;;  %v7550_v18 = vshll.u32 %v5884_v1, 16 }
 0x604   : > { %11028 = vmatprep.mubr.msk.bf16.mxu1 %vm390_vm1, %v7505_v8  ;;  %v7532_v8 = vor.u32 %v7530_v9, %v7528_v63  ;;  %v5886_v9 = vsel %vm2592_vm14, %v14430_v2, 0 }
 0x605   : > { %v7544_v27 = vrot.slane %v7542_v60, 1  ;;  %v7552_v63 = vrot.slane %v7550_v18, 1  ;;  %v7566_v4 = vshll.u32 %v5886_v9, 16 }
 0x606   : > { %v7537_v21 = vsel %vm2116_vm5, %v7532_v8, %v7536_v17  ;;  %v7554_v8 = vshrl.u32 %v5884_v1, 16  ;;  %v5889_v1 = vsel %vm15975_vm9, %v14469_v45, 0  ;;  %vm15984_vm9 = vcmp.ne.s16.totalorder %v13064_v13, 0 }
 0x607   : > { %v7548_v6 = vor.u32 %v7546_v58, %v7544_v27  ;;  %v7576_v58 = vrot.slane %v7574_v59, 1 }
 0x609   : > { %v7553_v37 = vsel %vm2116_vm5, %v7548_v6, %v7552_v63 }
 0x60b   : > { %11029 = vmatmul.mubr.msk.bf16.vlgmr.msra.gmra.mrb[32].mxu1 %vm390_vm1, %v7513_v41  ;;  %v7558_v41 = vshll.u32 %v5885_v19, 16 }
 0x60c   : > { %11061 = vmatpush3.bf16.msra.mxu1 %v8053_v15  ;;  %11032 = vmatprep.mubr.msk.bf16.mxu1 %vm390_vm1, %v7521_v39  ;;  %v7538_v15 = vshrl.u32 %v5882_v43, 16  ;;  %v7562_v43 = vshrl.u32 %v5885_v19, 16  ;;  %v7578_v19 = vshrl.u32 %v5887_v61, 16  ;;  %v7594_v61 = vshrl.u32 %v5889_v1, 16 }
 0x60d   : > { %11791 = vmatprep.subr.msk.bf16.mxu1 %vm563_vm0, %v14821_v52  ;;  %v7560_v62 = vrot.slane %v7558_v41, 1  ;;  %v7590_v41 = vshll.u32 %v5889_v1, 16 }
 0x60e   : > { %v7540_v39 = vor.u32 %v7538_v15, %v7536_v17  ;;  %v7556_v17 = vor.u32 %v7554_v8, %v7552_v63  ;;  %v7570_v15 = vshrl.u32 %v5886_v9, 16  ;;  %v7580_v6 = vor.u32 %v7578_v19, %v7576_v58 }
 0x60f   : > { %v7564_v60 = vor.u32 %v7562_v43, %v7560_v62  ;;  %v7592_v43 = vrot.slane %v7590_v41, 1  ;;  %v5891_v9 = vsel %vm2597_vm12, %v14486_v0, 0  ;;  %v5876_v0 = vld [vmem:[#allocation2 + $0x90] sm:$0x1] }
 0x610   : > { %v7545_v32 = vsel %vm2116_vm5, %v7540_v39, %v7544_v27  ;;  %v7561_v2 = vsel %vm2116_vm5, %v7556_v17, %v7560_v62  ;;  %v7606_v59 = vshll.u32 %v5891_v9, 16  ;;  %v7610_v1 = vshrl.u32 %v5891_v9, 16 }
 0x612   : > { %v7608_v19 = vrot.slane %v7606_v59, 1 }
 0x613   : > { %11033 = vmatmul.mubr.msk.bf16.gmra.mrb[36].mxu1 %vm390_vm1, %v7529_v57  ;;  %v7568_v57 = vrot.slane %v7566_v4, 1 }
 0x614   : > { %11036 = vmatprep.mubr.msk.bf16.mxu1 %vm390_vm1, %v7537_v21  ;;  %v5888_v21 = vsel %vm2594_vm4, %v14448_v25, 0  ;;  %v7612_v41 = vor.u32 %v7610_v1, %v7608_v19 }
 0x615   : > { %v7569_v27 = vsel %vm2116_vm5, %v7564_v60, %v7568_v57  ;;  %v7582_v18 = vshll.u32 %v5888_v21, 16  ;;  %v7572_v39 = vor.u32 %v7570_v15, %v7568_v57  ;;  %v7586_v8 = vshrl.u32 %v5888_v21, 16  ;;  %v5894_v15 = vld [vmem:[#allocation2 + $0x10] sm:$0x80] }
 0x616   : > { %v7596_v60 = vor.u32 %v7594_v61, %v7592_v43  ;;  %v5897_v21 = vsel %vm2245_vm8, %v14787_v11, 0  ;;  %vm15981_vm8 = vcmp.ne.s16.totalorder %v15898_v31, 0 }
 0x617   : > { %v7584_v63 = vrot.slane %v7582_v18, 1  ;;  %v7577_v25 = vsel %vm2116_vm5, %v7572_v39, %v7576_v58  ;;  %v5893_v39 = vsel %vm2599_vm7, %v5876_v0, 0  ;;  %v5899_v14 = vsel %vm15981_vm8, %v14801_v26, 0 }
 0x618   : > { %v7880_v59 = vshll.u32 %v5897_v21, 16  ;;  %v7893_v0 = vshrl.u32 %v5899_v14, 16  ;;  %vm15987_vm8 = vcmp.ne.s16.totalorder %v13129_v7, 0 }
 0x619   : > { %v7585_v62 = vsel %vm2116_vm5, %v7580_v6, %v7584_v63  ;;  %v7588_v17 = vor.u32 %v7586_v8, %v7584_v63  ;;  %v7877_v63 = vshrl.u32 %v5897_v21, 16 }
 0x61b   : > { %11037 = vmatmul.mubr.msk.bf16.gmra.mrb[40].mxu1 %vm390_vm1, %v7545_v32  ;;  %v15976_v32 = vld [vmem:[#allocation35_spill] sm:$0xff]  ;;  %v7879_v8 = vrot.slane %v7877_v63, 7 }
 0x61c   : > { %11040 = vmatprep.mubr.msk.bf16.mxu1 %vm390_vm1, %v7553_v37  ;;  %vm15977_vm10 = vcmp.ne.s16.totalorder %v15976_v32, 0 }
 0x61d   : > { %v5890_v37 = vsel %vm15977_vm10, %v14478_v36, 0  ;;  %v7593_v36 = vsel %vm2116_vm5, %v7588_v17, %v7592_v43  ;;  %vm15985_vm10 = vcmp.ne.s16.totalorder %v13084_v54, 0 }
 0x61e   : > { %v7598_v4 = vshll.u32 %v5890_v37, 16  ;;  %v7602_v6 = vshrl.u32 %v5890_v37, 16  ;;  %v5898_v37 = vsel %vm2246_vm15, %v14796_v47, 0  ;;  %vm15983_vm15 = vcmp.ne.s16.totalorder %v13046_v46, 0 }
 0x61f   : > { %v7888_v21 = vshll.u32 %v5898_v37, 16 }
 0x620   : > { %v7600_v57 = vrot.slane %v7598_v4, 1  ;;  %v7622_v4 = vshll.u32 %v5893_v39, 16  ;;  %v7896_v39 = vshll.u32 %v5899_v14, 16 }
 0x622   : > { %v7601_v58 = vsel %vm2116_vm5, %v7596_v60, %v7600_v57 }
 0x623   : > { %11041 = vmatmul.mubr.msk.bf16.gmra.mrb[44].mxu1 %vm390_vm1, %v7561_v2  ;;  %v15979_v2 = vld [vmem:[#allocation42_spill] sm:$0xff] }
 0x624   : > { %11044 = vmatprep.mubr.msk.bf16.mxu1 %vm390_vm1, %v7569_v27  ;;  %vm15980_vm2 = vcmp.ne.s16.totalorder %v15979_v2, 0 }
 0x625   : > { %v5892_v27 = vsel %vm15980_vm2, %v14738_v12, 0  ;;  %vm15986_vm2 = vcmp.ne.s16.totalorder %v13117_v44, 0 }
 0x626   : > { %v7614_v18 = vshll.u32 %v5892_v27, 16  ;;  %v7618_v60 = vshrl.u32 %v5892_v27, 16  ;;  %v14898_v27 = vld [vmem:[#allocation2 + $0x30] sm:$0xff] }
 0x628   : > { %v7616_v43 = vrot.slane %v7614_v18, 1 }
 0x62a   : > { %v7617_v16 = vsel %vm2116_vm5, %v7612_v41, %v7616_v43  ;;  %v7620_v17 = vor.u32 %v7618_v60, %v7616_v43 }
 0x62b   : > { %11045 = vmatmul.mubr.msk.bf16.gmra.mrb[48].mxu1 %vm390_vm1, %v7577_v25  ;;  %v7604_v25 = vor.u32 %v7602_v6, %v7600_v57  ;;  %v7624_v57 = vrot.slane %v7622_v4, 1  ;;  %v14904_v6 = vld [vmem:[#allocation2 + $0x38] sm:$0xff] }
 0x62c   : > { %11048 = vmatprep.mubr.msk.bf16.mxu1 %vm390_vm1, %v7585_v62  ;;  %v5896_v62 = vsel %vm2244_vm11, %v5894_v15, 0  ;;  %v7895_v15 = vrot.slane %v7893_v0, 7  ;;  %vm15982_vm11 = vcmp.ne.s16.totalorder %v13035_v48, 0  ;;  %v5901_v41 = vsel %vm15983_vm15, %v14904_v6, 0 }
 0x62d   : > { %v7609_v61 = vsel %vm2116_vm5, %v7604_v25, %v7608_v19  ;;  %v7873_v9 = vshrl.u32 %v5896_v62, 16  ;;  %v7882_v19 = vor.u32 %v7880_v59, %v7879_v8  ;;  %v7625_v1 = vsel %vm2116_vm5, %v7620_v17, %v7624_v57 }
 0x62e   : > { %v5900_v31 = vsel %vm15982_vm11, %v14898_v27, 0  ;;  %v7898_v62 = vor.u32 %v7896_v39, %v7895_v15  ;;  %v7909_v43 = vshrl.u32 %v5901_v41, 16  ;;  %v7912_v59 = vshll.u32 %v5901_v41, 16 }
 0x62f   : > { %v7901_v25 = vshrl.u32 %v5900_v31, 16  ;;  %vm15988_vm11 = vcmp.ne.s16.totalorder %v13180_v50, 0  ;;  %vm15989_vm15 = vcmp.ne.s16.totalorder %v15907_v5, 0 }
 0x631   : > { %v7903_v4 = vrot.slane %v7901_v25, 7 }
 0x633   : > { %11049 = vmatmul.mubr.msk.bf16.gmra.mrb[52].mxu1 %vm390_vm1, %v7593_v36  ;;  %v7885_v36 = vshrl.u32 %v5898_v37, 16  ;;  %v14919_v37 = vld [vmem:[#allocation2 + $0x40] sm:$0xff] }
 0x634   : > { %11052 = vmatprep.mubr.msk.bf16.mxu1 %vm390_vm1, %v7601_v58  ;;  %v7875_v58 = vrot.slane %v7873_v9, 7  ;;  %v7911_v9 = vrot.slane %v7909_v43, 7  ;;  %v5902_v60 = vsel %vm15984_vm9, %v14919_v37, 0  ;;  %vm15990_vm9 = vcmp.ne.s16.totalorder %v15909_v20, 0 }
 0x635   : > { %v7887_v18 = vrot.slane %v7885_v36, 7  ;;  %v7917_v57 = vshrl.u32 %v5902_v60, 16 }
 0x636   : > { %v7883_v33 = vsel %vm2455_vm3, %v7875_v58, %v7882_v19  ;;  %v7914_v36 = vor.u32 %v7912_v59, %v7911_v9 }
 0x637   : > { %v7890_v63 = vor.u32 %v7888_v21, %v7887_v18  ;;  %v7899_v46 = vsel %vm2455_vm3, %v7887_v18, %v7898_v62  ;;  %v7919_v19 = vrot.slane %v7917_v57, 7  ;;  %v14935_v18 = vld [vmem:[#allocation2 + $0x50] sm:$0xff] }
 0x638   : > { %v7915_v0 = vsel %vm2455_vm3, %v7903_v4, %v7914_v36  ;;  %v5904_v54 = vsel %vm15986_vm2, %v14935_v18, 0  ;;  %vm15992_vm2 = vcmp.ne.s16.totalorder %v15913_v56, 0 }
 0x639   : > { %v7891_v48 = vsel %vm2455_vm3, %v7879_v8, %v7890_v63  ;;  %v14925_v8 = vld [vmem:[#allocation2 + $0x48] sm:$0xff]  ;;  %v7933_v39 = vshrl.u32 %v5904_v54, 16 }
 0x63a   : > { %v5903_v14 = vsel %vm15985_vm10, %v14925_v8, 0  ;;  %vm15991_vm10 = vcmp.ne.s16.totalorder %v15911_v24, 0 }
 0x63b   : > { %11053 = vmatmul.mubr.msk.bf16.gmra.mrb[56].mxu1 %vm390_vm1, %v7609_v61  ;;  %v8257_v61 = vsel %vm563_vm0, %v14821_v52, 0  ;;  %v7904_v52 = vshll.u32 %v5900_v31, 16  ;;  %v7925_v58 = vshrl.u32 %v5903_v14, 16  ;;  %v14941_v31 = vld [vmem:[#allocation2 + $0x58] sm:$0xff]  ;;  %v7928_v21 = vshll.u32 %v5903_v14, 16 }
 0x63c   : > { %11056 = vmatprep.mubr.msk.bf16.mxu1 %vm390_vm1, %v7617_v16  ;;  %v14915_v16 = vld [vmem:[%s15578_s5 + $0x10] sm:$0x3]  ;;  %v7935_v43 = vrot.slane %v7933_v39, 7 }
 0x63d   : > { %v7906_v17 = vor.u32 %v7904_v52, %v7903_v4  ;;  %v7936_v4 = vshll.u32 %v5904_v54, 16 }
 0x63f   : > { %v7907_v13 = vsel %vm2455_vm3, %v7895_v15, %v7906_v17  ;;  %v5905_v15 = vsel %vm15987_vm8, %v14941_v31, 0  ;;  %v7938_v52 = vor.u32 %v7936_v4, %v7935_v43  ;;  %vm15993_vm8 = vcmp.ne.s16.totalorder %v15915_v38, 0 }
 0x640   : > { %v7941_v25 = vshrl.u32 %v5905_v15, 16 }
 0x643   : > { %11057 = vmatmul.mubr.msk.bf16.gmra.mrb[60].mxu1 %vm390_vm1, %v7625_v1  ;;  %v7927_v1 = vrot.slane %v7925_v58, 7 }
 0x644   : > { %11062 = vmatprep.mubr.msk.bf16.mxu1 %vm390_vm1, %v7883_v33  ;;  %v7920_v33 = vshll.u32 %v5902_v60, 16  ;;  %v7944_v60 = vshll.u32 %v5905_v15, 16 }
 0x645   : > { %v7930_v63 = vor.u32 %v7928_v21, %v7927_v1  ;;  %v7939_v57 = vsel %vm2455_vm3, %v7927_v1, %v7938_v52  ;;  %v14986_v52 = vld [vmem:[#allocation2 + $0x90] sm:$0xff] }
 0x646   : > { %v7922_v41 = vor.u32 %v7920_v33, %v7919_v19 }
 0x647   : > { %v7931_v44 = vsel %vm2455_vm3, %v7919_v19, %v7930_v63 }
 0x648   : > { %v7923_v62 = vsel %vm2455_vm3, %v7911_v9, %v7922_v41 }
 0x64b   : > { %11063 = vmatmul.mubr.msk.bf16.vlgmr.msra.gmra.mrb[32].mxu1 %vm390_vm1, %v7891_v48  ;;  %v14949_v48 = vld [vmem:[#allocation2 + $0x60] sm:$0xff] }
 0x64c   : > { %11095 = vmatpush3.bf16.msra.mxu1 %v8257_v61  ;;  %11066 = vmatprep.mubr.msk.bf16.mxu1 %vm390_vm1, %v7899_v46  ;;  %v7943_v61 = vrot.slane %v7941_v25, 7  ;;  %v5906_v7 = vsel %vm15988_vm11, %v14949_v48, 0  ;;  %v14955_v46 = vld [vmem:[#allocation2 + $0x68] sm:$0xff]  ;;  %vm15994_vm11 = vcmp.ne.s16.totalorder %v15820_v10, 0 }
 0x64d   : > { %11792 = vmatprep.subr.msk.bf16.mxu1 %vm563_vm0, %v14915_v16  ;;  %v5907_v9 = vsel %vm15989_vm15, %v14955_v46, 0  ;;  %v7949_v14 = vshrl.u32 %v5906_v7, 16  ;;  %v7952_v19 = vshll.u32 %v5906_v7, 16  ;;  %v5912_v38 = vsel %vm15994_vm11, %v14986_v52, 0 }
 0x64e   : > { %v7946_v59 = vor.u32 %v7944_v60, %v7943_v61  ;;  %v7957_v17 = vshrl.u32 %v5907_v9, 16  ;;  %v7960_v54 = vshll.u32 %v5907_v9, 16  ;;  %vm15996_vm15 = vcmp.ne.s16.totalorder %v15963_v34, 0 }
 0x64f   : > { %v7951_v36 = vrot.slane %v7949_v14, 7  ;;  %vm16001_vm11 = vcmp.ne.s16.totalorder %v13460_v3, 0 }
 0x650   : > { %v7947_v50 = vsel %vm2455_vm3, %v7935_v43, %v7946_v59  ;;  %v7959_v58 = vrot.slane %v7957_v17, 7 }
 0x651   : > { %v7954_v33 = vor.u32 %v7952_v19, %v7951_v36 }
 0x652   : > { %v7962_v21 = vor.u32 %v7960_v54, %v7959_v58  ;;  %v8000_v54 = vshll.u32 %v5912_v38, 16 }
 0x653   : > { %11067 = vmatmul.mubr.msk.bf16.gmra.mrb[36].mxu1 %vm390_vm1, %v7907_v13  ;;  %v14963_v13 = vld [vmem:[#allocation2 + $0x70] sm:$0xff]  ;;  %v7955_v39 = vsel %vm2455_vm3, %v7943_v61, %v7954_v33 }
 0x654   : > { %11070 = vmatprep.mubr.msk.bf16.mxu1 %vm390_vm1, %v7915_v0  ;;  %v5908_v5 = vsel %vm15990_vm9, %v14963_v13, 0  ;;  %v14969_v0 = vld [vmem:[#allocation2 + $0x78] sm:$0xff]  ;;  %v7963_v20 = vsel %vm2455_vm3, %v7951_v36, %v7962_v21  ;;  %v8635_v21 = vsel %vm563_vm0, %v14915_v16, 0  ;;  %vm15997_vm9 = vcmp.ne.s16.totalorder %v13363_v35, 0 }
 0x655   : > { %v5909_v1 = vsel %vm15991_vm10, %v14969_v0, 0  ;;  %v7965_v15 = vshrl.u32 %v5908_v5, 16  ;;  %v7968_v43 = vshll.u32 %v5908_v5, 16  ;;  %v7997_v5 = vshrl.u32 %v5912_v38, 16 }
 0x656   : > { %v7973_v41 = vshrl.u32 %v5909_v1, 16  ;;  %v7976_v61 = vshll.u32 %v5909_v1, 16  ;;  %vm15998_vm10 = vcmp.ne.s16.totalorder %v13403_v30, 0 }
 0x657   : > { %v7967_v63 = vrot.slane %v7965_v15, 7 }
 0x658   : > { %v7975_v25 = vrot.slane %v7973_v41, 7  ;;  %v9077_v41 = vld [vmem:[%s15582_s9] sm:$0x3] }
 0x659   : > { %v7970_v7 = vor.u32 %v7968_v43, %v7967_v63 }
 0x65a   : > { %v7978_v9 = vor.u32 %v7976_v61, %v7975_v25 }
 0x65b   : > { %11071 = vmatmul.mubr.msk.bf16.gmra.mrb[40].mxu1 %vm390_vm1, %v7923_v62  ;;  %v14977_v62 = vld [vmem:[#allocation2 + $0x80] sm:$0xff]  ;;  %v7971_v14 = vsel %vm2455_vm3, %v7959_v58, %v7970_v7  ;;  %v7999_v58 = vrot.slane %v7997_v5, 7 }
 0x65c   : > { %11074 = vmatprep.mubr.msk.bf16.mxu1 %vm390_vm1, %v7931_v44  ;;  %v5910_v24 = vsel %vm15992_vm2, %v14977_v62, 0  ;;  %v5911_v44 = vsel %vm15993_vm8, %v14738_v12, 0  ;;  %v7979_v56 = vsel %vm2455_vm3, %v7967_v63, %v7978_v9  ;;  %vm15999_vm2 = vcmp.ne.s16.totalorder %v13417_v49, 0 }
 0x65d   : > { %v7981_v4 = vshrl.u32 %v5910_v24, 16  ;;  %v7989_v60 = vshrl.u32 %v5911_v44, 16  ;;  %v7992_v36 = vshll.u32 %v5911_v44, 16  ;;  %v8002_v15 = vor.u32 %v8000_v54, %v7999_v58 }
 0x65e   : > { %vm16000_vm8 = vcmp.ne.s16.totalorder %v13420_v42, 0  ;;  %v5920_v42 = vsel %vm16001_vm11, %v14925_v8, 0 }
 0x65f   : > { %v7983_v59 = vrot.slane %v7981_v4, 7  ;;  %v7991_v17 = vrot.slane %v7989_v60, 7 }
 0x661   : > { %v7994_v19 = vor.u32 %v7992_v36, %v7991_v17  ;;  %v8003_v10 = vsel %vm2455_vm3, %v7991_v17, %v8002_v15  ;;  %v5922_v15 = vsel %vm2591_vm6, %v14941_v31, 0  ;;  %vm16004_vm6 = vcmp.ne.s16.totalorder %v15976_v32, 0 }
 0x662   : > { %v8522_v23 = vshrl.u32 %v5922_v15, 16 }
 0x663   : > { %11075 = vmatmul.mubr.msk.bf16.gmra.mrb[44].mxu1 %vm390_vm1, %v7939_v57  ;;  %v7984_v57 = vshll.u32 %v5910_v24, 16  ;;  %v7995_v33 = vsel %vm2455_vm3, %v7983_v59, %v7994_v19  ;;  %v5916_v24 = vsel %vm15997_vm9, %v14801_v26, 0  ;;  %v8502_v19 = vshll.u32 %v5920_v42, 16 }
 0x664   : > { %11078 = vmatprep.mubr.msk.bf16.mxu1 %vm390_vm1, %v7947_v50  ;;  %v8474_v9 = vshrl.u32 %v5916_v24, 16 }
 0x665   : > { %v7986_v50 = vor.u32 %v7984_v57, %v7983_v59  ;;  %v9127_v59 = vsel %vm563_vm0, %v9077_v41, 0  ;;  %v8504_v3 = vrot.slane %v8502_v19, 1 }
 0x667   : > { %v7987_v1 = vsel %vm2455_vm3, %v7975_v25, %v7986_v50  ;;  %vm15995_vm3 = vcmp.ne.s16.totalorder %v15835_v53, 0 }
 0x668   : > { %v5914_v16 = vsel %vm15995_vm3, %v14787_v11, 0 }
 0x669   : > { %v8457_v63 = vshll.u32 %v5914_v16, 16  ;;  %v8455_v43 = vshrl.u32 %v5914_v16, 16 }
 0x66b   : > { %11079 = vmatmul.mubr.msk.bf16.gmra.mrb[48].mxu1 %vm390_vm1, %v7955_v39  ;;  %v5915_v39 = vsel %vm15996_vm15, %v14796_v47, 0  ;;  %v8459_v25 = vrot.slane %v8457_v63, 1 }
 0x66c   : > { %11082 = vmatprep.mubr.msk.bf16.mxu1 %vm390_vm1, %v7963_v20  ;;  %v8462_v20 = vshll.u32 %v5915_v39, 16  ;;  %v8466_v7 = vshrl.u32 %v5915_v39, 16 }
 0x66d   : > { %v8460_v34 = vor.u32 %v8459_v25, %v8455_v43  ;;  %v5924_v25 = vsel %vm2593_vm13, %v14955_v46, 0  ;;  %vm16005_vm13 = vcmp.ne.s16.totalorder %v15979_v2, 0 }
 0x66e   : > { %v8464_v53 = vrot.slane %v8462_v20, 1  ;;  %v8538_v51 = vshrl.u32 %v5924_v25, 16 }
 0x670   : > { %v8465_v44 = vsel %vm2116_vm5, %v8460_v34, %v8464_v53  ;;  %v8468_v35 = vor.u32 %v8466_v7, %v8464_v53  ;;  %v8534_v53 = vshll.u32 %v5924_v25, 16  ;;  %v5927_v7 = vsel %vm16004_vm6, %v14977_v62, 0 }
 0x672   : > { %v8536_v55 = vrot.slane %v8534_v53, 1 }
 0x673   : > { %11083 = vmatmul.mubr.msk.bf16.gmra.mrb[52].mxu1 %vm390_vm1, %v7971_v14 }
 0x674   : > { %11086 = vmatprep.mubr.msk.bf16.mxu1 %vm390_vm1, %v7979_v56 }
 0x67b   : > { %11087 = vmatmul.mubr.msk.bf16.gmra.mrb[56].mxu1 %vm390_vm1, %v7987_v1 }
 0x67c   : > { %11090 = vmatprep.mubr.msk.bf16.mxu1 %vm390_vm1, %v7995_v33 }
 0x683   : > { %11091 = vmatmul.mubr.msk.bf16.gmra.mrb[60].mxu1 %vm390_vm1, %v8003_v10  ;;  %v5923_v10 = vsel %vm2592_vm14, %v14949_v48, 0  ;;  %vm16003_vm14 = vcmp.ne.s16.totalorder %v15974_v22, 0  ;;  %v5928_v22 = vsel %vm2597_vm12, %v14738_v12, 0 }
 0x684   : > { %11096 = vmatprep.mubr.msk.bf16.mxu1 %vm390_vm1, %v14787_v11  ;;  %v5917_v11 = vsel %vm15998_vm10, %v14898_v27, 0  ;;  %v8526_v63 = vshll.u32 %v5923_v10, 16 }
 0x685   : > { %v8478_v61 = vshll.u32 %v5917_v11, 16  ;;  %v8482_v49 = vshrl.u32 %v5917_v11, 16 }
 0x687   : > { %v8480_v30 = vrot.slane %v8478_v61, 1  ;;  %v5926_v61 = vsel %vm16003_vm14, %v14969_v0, 0 }
 0x688   : > { %v8554_v32 = vshrl.u32 %v5926_v61, 16 }
 0x689   : > { %v8484_v57 = vor.u32 %v8482_v49, %v8480_v30 }
 0x68b   : > { %11097 = vmatmul.mubr.msk.bf16.vlgmr.msra.gmra.mrb[32].mxu1 %vm390_vm1, %v14796_v47  ;;  %v8470_v47 = vshll.u32 %v5916_v24, 16  ;;  %v5925_v24 = vsel %vm2594_vm4, %v14963_v13, 0 }
 0x68c   : > { %11129 = vmatpush3.bf16.msra.mxu1 %v8635_v21  ;;  %11100 = vmatprep.mubr.msk.bf16.mxu1 %vm390_vm1, %v14801_v26  ;;  %v5918_v26 = vsel %vm15999_vm2, %v14904_v6, 0 }
 0x68d   : > { %11793 = vmatprep.subr.msk.bf16.mxu1 %vm563_vm0, %v9077_v41  ;;  %v8472_v4 = vrot.slane %v8470_v47, 1  ;;  %v8486_v14 = vshll.u32 %v5918_v26, 16  ;;  %vm16002_vm0 = vcmp.ne.s16.totalorder %v13463_v28, 0  ;;  %v8506_v28 = vshrl.u32 %v5920_v42, 16 }
 0x68e   : > { %v5921_v50 = vsel %vm16002_vm0, %v14935_v18, 0  ;;  %v8518_v41 = vshll.u32 %v5922_v15, 16  ;;  %v8542_v47 = vshll.u32 %v5925_v24, 16 }
 0x68f   : > { %v8476_v60 = vor.u32 %v8474_v9, %v8472_v4  ;;  %v8473_v56 = vsel %vm2116_vm5, %v8468_v35, %v8472_v4  ;;  %v8510_v54 = vshll.u32 %v5921_v50, 16  ;;  %v8508_v21 = vor.u32 %v8506_v28, %v8504_v3 }
 0x690   : > { %v8514_v20 = vshrl.u32 %v5921_v50, 16  ;;  %v8520_v29 = vrot.slane %v8518_v41, 1  ;;  %v8540_v4 = vor.u32 %v8538_v51, %v8536_v55  ;;  %v8550_v35 = vshll.u32 %v5926_v61, 16 }
 0x691   : > { %v8481_v17 = vsel %vm2116_vm5, %v8476_v60, %v8480_v30  ;;  %v8558_v30 = vshll.u32 %v5927_v7, 16 }
 0x692   : > { %v8524_v43 = vor.u32 %v8522_v23, %v8520_v29 }
 0x693   : > { %11101 = vmatmul.mubr.msk.bf16.gmra.mrb[36].mxu1 %vm390_vm1, %v14898_v27  ;;  %v5919_v27 = vsel %vm16000_vm8, %v14919_v37, 0 }
 0x694   : > { %11104 = vmatprep.mubr.msk.bf16.mxu1 %vm390_vm1, %v14904_v6  ;;  %v8494_v38 = vshll.u32 %v5919_v27, 16  ;;  %v8488_v6 = vrot.slane %v8486_v14, 1  ;;  %v8498_v33 = vshrl.u32 %v5919_v27, 16  ;;  %v8546_v27 = vshrl.u32 %v5925_v24, 16 }
 0x695   : > { %v8566_v14 = vshll.u32 %v5928_v22, 16 }
 0x696   : > { %v8496_v36 = vrot.slane %v8494_v38, 1  ;;  %v8489_v1 = vsel %vm2116_vm5, %v8484_v57, %v8488_v6  ;;  %v5913_v38 = vld [vmem:[#allocation2 + $0x98] sm:$0x1]  ;;  %v8570_v57 = vshrl.u32 %v5928_v22, 16 }
 0x697   : > { %v5930_v42 = vsel %vm2599_vm7, %v5913_v38, 0 }
 0x698   : > { %v8582_v50 = vshll.u32 %v5930_v42, 16 }
 0x69b   : > { %11105 = vmatmul.mubr.msk.bf16.gmra.mrb[40].mxu1 %vm390_vm1, %v14919_v37  ;;  %v8490_v37 = vshrl.u32 %v5918_v26, 16 }
 0x69c   : > { %11108 = vmatprep.mubr.msk.bf16.mxu1 %vm390_vm1, %v14925_v8  ;;  %v8500_v8 = vor.u32 %v8498_v33, %v8496_v36 }
 0x69d   : > { %v8492_v5 = vor.u32 %v8490_v37, %v8488_v6  ;;  %v8568_v6 = vrot.slane %v8566_v14, 1 }
 0x69e   : > { %v8505_v16 = vsel %vm2116_vm5, %v8500_v8, %v8504_v3 }
 0x69f   : > { %v8497_v58 = vsel %vm2116_vm5, %v8492_v5, %v8496_v36  ;;  %v8572_v2 = vor.u32 %v8570_v57, %v8568_v6 }
 0x6a3   : > { %11109 = vmatmul.mubr.msk.bf16.gmra.mrb[44].mxu1 %vm390_vm1, %v14935_v18  ;;  %v8512_v18 = vrot.slane %v8510_v54, 1 }
 0x6a4   : > { %11112 = vmatprep.mubr.msk.bf16.mxu1 %vm390_vm1, %v14941_v31 }
 0x6a5   : > { %v8513_v39 = vsel %vm2116_vm5, %v8508_v21, %v8512_v18  ;;  %v8516_v31 = vor.u32 %v8514_v20, %v8512_v18 }
 0x6a7   : > { %v8521_v11 = vsel %vm2116_vm5, %v8516_v31, %v8520_v29 }
 0x6ab   : > { %11113 = vmatmul.mubr.msk.bf16.gmra.mrb[48].mxu1 %vm390_vm1, %v14949_v48  ;;  %v8528_v48 = vrot.slane %v8526_v63, 1 }
 0x6ac   : > { %11116 = vmatprep.mubr.msk.bf16.mxu1 %vm390_vm1, %v14955_v46 }
 0x6ad   : > { %v8529_v34 = vsel %vm2116_vm5, %v8524_v43, %v8528_v48 }
 0x6b3   : > { %11117 = vmatmul.mubr.msk.bf16.gmra.mrb[52].mxu1 %vm390_vm1, %v14963_v13  ;;  %v8544_v13 = vrot.slane %v8542_v47, 1 }
 0x6b4   : > { %11120 = vmatprep.mubr.msk.bf16.mxu1 %vm390_vm1, %v14969_v0  ;;  %v8552_v0 = vrot.slane %v8550_v35, 1 }
 0x6b5   : > { %v8545_v9 = vsel %vm2116_vm5, %v8540_v4, %v8544_v13  ;;  %v8548_v60 = vor.u32 %v8546_v27, %v8544_v13 }
 0x6bb   : > { %11121 = vmatmul.mubr.msk.bf16.gmra.mrb[56].mxu1 %vm390_vm1, %v14977_v62  ;;  %v8560_v62 = vrot.slane %v8558_v30, 1 }
 0x6bc   : > { %11124 = vmatprep.mubr.msk.bf16.mxu1 %vm390_vm1, %v14738_v12  ;;  %v8562_v12 = vshrl.u32 %v5927_v7, 16 }
 0x6be   : > { %v8564_v37 = vor.u32 %v8562_v12, %v8560_v62 }
 0x6c0   : > { %v8569_v5 = vsel %vm2116_vm5, %v8564_v37, %v8568_v6 }
 0x6c3   : > { %11125 = vmatmul.mubr.msk.bf16.gmra.mrb[60].mxu1 %vm390_vm1, %v14986_v52 }
 0x6c4   : > { %11130 = vmatprep.mubr.msk.bf16.mxu1 %vm390_vm1, %v8465_v44  ;;  %v8530_v44 = vshrl.u32 %v5923_v10, 16 }
 0x6c6   : > { %v8532_v46 = vor.u32 %v8530_v44, %v8528_v48 }
 0x6c8   : > { %v8537_v26 = vsel %vm2116_vm5, %v8532_v46, %v8536_v55 }
 0x6cb   : > { %11131 = vmatmul.mubr.msk.bf16.vlgmr.msra.gmra.mrb[32].mxu1 %vm390_vm1, %v8473_v56  ;;  %v8556_v56 = vor.u32 %v8554_v32, %v8552_v0 }
 0x6cc   : > { %11134 = vmatprep.mubr.msk.bf16.mxu1 %vm390_vm1, %v8481_v17  ;;  %11163 = vmatpush3.bf16.msra.mxu1 %v9127_v59  ;;  %v5929_v59 = vsel %vm16005_vm13, %v14986_v52, 0  ;;  %v8553_v17 = vsel %vm2116_vm5, %v8548_v60, %v8552_v0 }
 0x6cd   : > { %v8561_v49 = vsel %vm2116_vm5, %v8556_v56, %v8560_v62  ;;  %v8574_v45 = vshll.u32 %v5929_v59, 16  ;;  %v8578_v36 = vshrl.u32 %v5929_v59, 16 }
 0x6cf   : > { %v8576_v52 = vrot.slane %v8574_v45, 1 }
 0x6d1   : > { %v8577_v19 = vsel %vm2116_vm5, %v8572_v2, %v8576_v52 }
 0x6d3   : > { %11135 = vmatmul.mubr.msk.bf16.gmra.mrb[36].mxu1 %vm390_vm1, %v8489_v1  ;;  %v8580_v1 = vor.u32 %v8578_v36, %v8576_v52 }
 0x6d4   : > { %11138 = vmatprep.mubr.msk.bf16.mxu1 %vm390_vm1, %v8497_v58  ;;  %v8584_v58 = vrot.slane %v8582_v50, 1 }
 0x6d6   : > { %v8585_v54 = vsel %vm2116_vm5, %v8580_v1, %v8584_v58 }
 0x6db   : > { %11139 = vmatmul.mubr.msk.bf16.gmra.mrb[40].mxu1 %vm390_vm1, %v8505_v16 }
 0x6dc   : > { %11142 = vmatprep.mubr.msk.bf16.mxu1 %vm390_vm1, %v8513_v39 }
 0x6e3   : > { %11143 = vmatmul.mubr.msk.bf16.gmra.mrb[44].mxu1 %vm390_vm1, %v8521_v11 }
 0x6e4   : > { %11146 = vmatprep.mubr.msk.bf16.mxu1 %vm390_vm1, %v8529_v34 }
 0x6eb   : > { %11147 = vmatmul.mubr.msk.bf16.gmra.mrb[48].mxu1 %vm390_vm1, %v8537_v26 }
 0x6ec   : > { %11150 = vmatprep.mubr.msk.bf16.mxu1 %vm390_vm1, %v8545_v9 }
 0x6f3   : > { %11151 = vmatmul.mubr.msk.bf16.gmra.mrb[52].mxu1 %vm390_vm1, %v8553_v17 }
 0x6f4   : > { %11154 = vmatprep.mubr.msk.bf16.mxu1 %vm390_vm1, %v8561_v49 }
 0x6fb   : > { %11155 = vmatmul.mubr.msk.bf16.gmra.mrb[56].mxu1 %vm390_vm1, %v8569_v5 }
 0x6fc   : > { %11158 = vmatprep.mubr.msk.bf16.mxu1 %vm390_vm1, %v8577_v19 }
 0x703   : > { %11159 = vmatmul.mubr.msk.bf16.gmra.mrb[60].mxu1 %vm390_vm1, %v8585_v54 }
 0x79e   : > { %v11132_v33 = vpop.f32.mrb[32].mxu1 }
 0x79f   : > { %v15128_v3 = vadd.f32 %v11132_v33, %v15125_v40  ;;  %v8671_v8 = vpop.f32.mrb[33].mxu1 }
 0x7a0   : > { %v15131_v15 = vadd.f32 %v15125_v40, %v8671_v8  ;;  %v11133_v28 = vpop.f32.mrb[34].mxu1 }
 0x7a1   : > { %v8871_v18 = vsub.f32 0.0, %v15128_v3  ;;  %v15135_v10 = vadd.f32 %v11133_v28, %v15125_v40  ;;  %v8674_v21 = vpop.f32.mrb[35].mxu1 }
 0x7a2   : > { %v8869_v41 = vsub.f32 0.0, %v15131_v15  ;;  %v15139_v16 = vadd.f32 %v15125_v40, %v8674_v21 }
 0x7a3   : > { %v8905_v39 = vmul.f32 1.442695, %v8871_v18  ;;  %v8872_v63 = vsub.f32 0.0, %v15135_v10 }
 0x7a4   : > { %v8901_v20 = vmul.f32 1.442695, %v8869_v41  ;;  %v8870_v29 = vsub.f32 0.0, %v15139_v16 }
 0x7a5   : > { %12077 = vpow2.f32 %v8905_v39  ;;  %v8907_v31 = vmul.f32 1.442695, %v8872_v63 }
 0x7a6   : > { %12079 = vpow2.f32 %v8901_v20  ;;  %v8903_v25 = vmul.f32 1.442695, %v8870_v29  ;;  %v11136_v23 = vpop.f32.mrb[36].mxu1 }
 0x7a7   : > { %12081 = vpow2.f32 %v8907_v31  ;;  %v15144_v48 = vadd.f32 %v11136_v23, %v15125_v40  ;;  %v8687_v24 = vpop.f32.mrb[37].mxu1 }
 0x7a8   : > { %12083 = vpow2.f32 %v8903_v25  ;;  %v15147_v43 = vadd.f32 %v15125_v40, %v8687_v24  ;;  %v11137_v53 = vpop.f32.mrb[38].mxu1 }
 0x7a9   : > { %v8875_v11 = vsub.f32 0.0, %v15144_v48  ;;  %v15151_v34 = vadd.f32 %v11137_v53, %v15125_v40  ;;  %v8690_v47 = vpop.f32.mrb[39].mxu1 }
 0x7aa   : > { %v8873_v44 = vsub.f32 0.0, %v15147_v43  ;;  %v15155_v55 = vadd.f32 %v15125_v40, %v8690_v47 }
 0x7ab   : > { %v8913_v46 = vmul.f32 1.442695, %v8875_v11  ;;  %v8876_v61 = vsub.f32 0.0, %v15151_v34 }
 0x7ac   : > { %v8909_v51 = vmul.f32 1.442695, %v8873_v44  ;;  %v8874_v13 = vsub.f32 0.0, %v15155_v55 }
 0x7ad   : > { %12085 = vpow2.f32 %v8913_v46  ;;  %v8915_v7 = vmul.f32 1.442695, %v8876_v61 }
 0x7ae   : > { %12087 = vpow2.f32 %v8909_v51  ;;  %v8911_v4 = vmul.f32 1.442695, %v8874_v13  ;;  %v11140_v35 = vpop.f32.mrb[40].mxu1 }
 0x7af   : > { %v12078_v26 = vpop.eup %12077  ;;  %12089 = vpow2.f32 %v8915_v7  ;;  %v15160_v9 = vadd.f32 %v11140_v35, %v15125_v40  ;;  %v8703_v30 = vpop.f32.mrb[41].mxu1 }
 0x7b0   : > { %v12080_v27 = vpop.eup %12079  ;;  %v8967_v22 = vadd.f32 1.0, %v12078_v26  ;;  %12091 = vpow2.f32 %v8911_v4  ;;  %v15163_v0 = vadd.f32 %v15125_v40, %v8703_v30  ;;  %v11141_v60 = vpop.f32.mrb[42].mxu1 }
 0x7b1   : > { %v12082_v32 = vpop.eup %12081  ;;  %v8965_v62 = vadd.f32 1.0, %v12080_v27  ;;  %v8879_v14 = vsub.f32 0.0, %v15160_v9  ;;  %v15167_v59 = vadd.f32 %v11141_v60, %v15125_v40  ;;  %v8706_v56 = vpop.f32.mrb[43].mxu1 }
 0x7b2   : > { %v12084_v17 = vpop.eup %12083  ;;  %12093 = vrcp.f32 %v8967_v22  ;;  %v8968_v38 = vadd.f32 1.0, %v12082_v32  ;;  %v8877_v49 = vsub.f32 0.0, %v15163_v0  ;;  %v15171_v6 = vadd.f32 %v15125_v40, %v8706_v56 }
 0x7b3   : > { %12095 = vrcp.f32 %v8965_v62  ;;  %v8966_v45 = vadd.f32 1.0, %v12084_v17  ;;  %v8921_v12 = vmul.f32 1.442695, %v8879_v14  ;;  %v8880_v57 = vsub.f32 0.0, %v15167_v59 }
 0x7b4   : > { %12097 = vrcp.f32 %v8968_v38  ;;  %v8917_v42 = vmul.f32 1.442695, %v8877_v49  ;;  %v8878_v37 = vsub.f32 0.0, %v15171_v6 }
 0x7b5   : > { %12099 = vrcp.f32 %v8966_v45  ;;  %v8923_v2 = vmul.f32 1.442695, %v8880_v57 }
 0x7b6   : > { %12101 = vpow2.f32 %v8921_v12  ;;  %v8919_v52 = vmul.f32 1.442695, %v8878_v37  ;;  %v11144_v36 = vpop.f32.mrb[44].mxu1 }
 0x7b7   : > { %v12086_v50 = vpop.eup %12085  ;;  %12103 = vpow2.f32 %v8917_v42  ;;  %v15176_v5 = vadd.f32 %v11144_v36, %v15125_v40  ;;  %v8719_v19 = vpop.f32.mrb[45].mxu1 }
 0x7b8   : > { %v12088_v1 = vpop.eup %12087  ;;  %v8971_v58 = vadd.f32 1.0, %v12086_v50  ;;  %12105 = vpow2.f32 %v8923_v2  ;;  %v15179_v54 = vadd.f32 %v15125_v40, %v8719_v19  ;;  %v11145_v33 = vpop.f32.mrb[46].mxu1 }
 0x7b9   : > { %v12090_v8 = vpop.eup %12089  ;;  %v8969_v28 = vadd.f32 1.0, %v12088_v1  ;;  %12107 = vpow2.f32 %v8919_v52  ;;  %v8883_v18 = vsub.f32 0.0, %v15176_v5  ;;  %v15183_v21 = vadd.f32 %v11145_v33, %v15125_v40  ;;  %v8722_v41 = vpop.f32.mrb[47].mxu1 }
 0x7ba   : > { %v12092_v39 = vpop.eup %12091  ;;  %12109 = vrcp.f32 %v8971_v58  ;;  %v8972_v63 = vadd.f32 1.0, %v12090_v8  ;;  %v8881_v20 = vsub.f32 0.0, %v15179_v54  ;;  %v15187_v29 = vadd.f32 %v15125_v40, %v8722_v41 }
 0x7bb   : > { %12111 = vrcp.f32 %v8969_v28  ;;  %v8970_v31 = vadd.f32 1.0, %v12092_v39  ;;  %v8929_v25 = vmul.f32 1.442695, %v8883_v18  ;;  %v8884_v23 = vsub.f32 0.0, %v15183_v21 }
 0x7bc   : > { %v12094_v24 = vpop.eup %12093  ;;  %12113 = vrcp.f32 %v8972_v63  ;;  %v8925_v53 = vmul.f32 1.442695, %v8881_v20  ;;  %v8882_v11 = vsub.f32 0.0, %v15187_v29 }
 0x7bd   : > { %v12096_v47 = vpop.eup %12095  ;;  %12115 = vrcp.f32 %v8970_v31  ;;  %v8931_v44 = vmul.f32 1.442695, %v8884_v23  ;;  %v9031_v7 = vmul.f32 %v12094_v24, %v15128_v3 }
 0x7be   : > { %v12098_v46 = vpop.eup %12097  ;;  %12117 = vpow2.f32 %v8929_v25  ;;  %v8927_v61 = vmul.f32 1.442695, %v8882_v11  ;;  %v11148_v51 = vpop.f32.mrb[48].mxu1  ;;  %v9029_v27 = vmul.f32 %v12096_v47, %v15131_v15 }
 0x7bf   : > { %v12100_v13 = vpop.eup %12099  ;;  %v9032_v4 = vmul.f32 %v12098_v46, %v15135_v10  ;;  %12119 = vpow2.f32 %v8925_v53  ;;  %v15194_v35 = vadd.f32 %v11148_v51, %v15125_v40  ;;  %v8735_v26 = vpop.f32.mrb[49].mxu1 }
 0x7c0   : > { %v12102_v30 = vpop.eup %12101  ;;  %v9030_v22 = vmul.f32 %v12100_v13, %v15139_v16  ;;  %12121 = vpow2.f32 %v8931_v44  ;;  %v15199_v60 = vadd.f32 %v15125_v40, %v8735_v26  ;;  %v11149_v32 = vpop.f32.mrb[50].mxu1 }
 0x7c1   : > { %v12104_v62 = vpop.eup %12103  ;;  %v9062_v14 = vpack.c.bf16 %v9032_v4, %v9031_v7  ;;  %v8975_v3 = vadd.f32 1.0, %v12102_v30  ;;  %12123 = vpow2.f32 %v8927_v61  ;;  %v8887_v10 = vsub.f32 0.0, %v15194_v35  ;;  %v8738_v56 = vpop.f32.mrb[51].mxu1 }
 0x7c2   : > { %v12106_v17 = vpop.eup %12105  ;;  %v9061_v38 = vpack.c.bf16 %v9030_v22, %v9029_v27  ;;  %v8973_v49 = vadd.f32 1.0, %v12104_v62  ;;  %v8885_v45 = vsub.f32 0.0, %v15199_v60  ;;  %v15204_v15 = vadd.f32 %v11149_v32, %v15125_v40 }
 0x7c3   : > { %v12108_v16 = vpop.eup %12107  ;;  %12125 = vrcp.f32 %v8975_v3  ;;  %v8976_v12 = vadd.f32 1.0, %v12106_v17  ;;  %v8937_v57 = vmul.f32 1.442695, %v8887_v10  ;;  %v15207_v42 = vadd.f32 %v15125_v40, %v8738_v56 }
 0x7c4   : > { %v12110_v37 = vpop.eup %12109  ;;  %12127 = vrcp.f32 %v8973_v49  ;;  %v8974_v2 = vadd.f32 1.0, %v12108_v16  ;;  %v8933_v52 = vmul.f32 1.442695, %v8885_v45  ;;  %v8888_v36 = vsub.f32 0.0, %v15204_v15  ;;  %11164 = vmatprep.mubr.msk.bf16.mxu1 %vm390_vm1, %v9061_v38 }
 0x7c5   : > { %v12112_v50 = vpop.eup %12111  ;;  %12129 = vrcp.f32 %v8976_v12  ;;  %v8886_v19 = vsub.f32 0.0, %v15207_v42  ;;  %11165 = vmatmul.mubr.msk.bf16.vlgmr.msra.gmra.mrb[0].mxu1 %vm390_vm1, %v9062_v14  ;;  %v9035_v58 = vmul.f32 %v12110_v37, %v15144_v48 }
 0x7c6   : > { %v12114_v1 = vpop.eup %12113  ;;  %12131 = vrcp.f32 %v8974_v2  ;;  %v8939_v33 = vmul.f32 1.442695, %v8888_v36  ;;  %v11152_v8 = vpop.f32.mrb[52].mxu1  ;;  %v9033_v31 = vmul.f32 %v12112_v50, %v15147_v43 }
 0x7c7   : > { %v12116_v28 = vpop.eup %12115  ;;  %v9036_v18 = vmul.f32 %v12114_v1, %v15151_v34  ;;  %12133 = vpow2.f32 %v8937_v57  ;;  %v8935_v41 = vmul.f32 1.442695, %v8886_v19  ;;  %v15216_v39 = vadd.f32 %v11152_v8, %v15125_v40  ;;  %v8751_v63 = vpop.f32.mrb[53].mxu1 }
 0x7c8   : > { %v12118_v20 = vpop.eup %12117  ;;  %v9034_v25 = vmul.f32 %v12116_v28, %v15155_v55  ;;  %12135 = vpow2.f32 %v8933_v52  ;;  %v15221_v48 = vadd.f32 %v15125_v40, %v8751_v63  ;;  %v11153_v23 = vpop.f32.mrb[54].mxu1 }
 0x7c9   : > { %v12120_v24 = vpop.eup %12119  ;;  %v9064_v53 = vpack.c.bf16 %v9036_v18, %v9035_v58  ;;  %v8979_v11 = vadd.f32 1.0, %v12118_v20  ;;  %12137 = vpow2.f32 %v8939_v33  ;;  %v8891_v34 = vsub.f32 0.0, %v15216_v39  ;;  %v8754_v47 = vpop.f32.mrb[55].mxu1 }
 0x7ca   : > { %v12122_v44 = vpop.eup %12121  ;;  %v9063_v46 = vpack.c.bf16 %v9034_v25, %v9033_v31  ;;  %v8977_v61 = vadd.f32 1.0, %v12120_v24  ;;  %12139 = vpow2.f32 %v8935_v41  ;;  %v8889_v43 = vsub.f32 0.0, %v15221_v48 }
 0x7cb   : > { %v12124_v51 = vpop.eup %12123  ;;  %12141 = vrcp.f32 %v8979_v11  ;;  %v8980_v55 = vadd.f32 1.0, %v12122_v44  ;;  %v8945_v13 = vmul.f32 1.442695, %v8891_v34  ;;  %v15226_v7 = vadd.f32 %v11153_v23, %v15125_v40 }
 0x7cc   : > { %12143 = vrcp.f32 %v8977_v61  ;;  %v8978_v4 = vadd.f32 1.0, %v12124_v51  ;;  %v8941_v26 = vmul.f32 1.442695, %v8889_v43  ;;  %v15229_v30 = vadd.f32 %v15125_v40, %v8754_v47  ;;  %11168 = vmatprep.mubr.msk.bf16.mxu1 %vm390_vm1, %v9063_v46 }
 0x7cd   : > { %v12126_v27 = vpop.eup %12125  ;;  %12145 = vrcp.f32 %v8980_v55  ;;  %v8892_v22 = vsub.f32 0.0, %v15226_v7  ;;  %11169 = vmatmul.mubr.msk.bf16.gmra.mrb[4].mxu1 %vm390_vm1, %v9064_v53 }
 0x7ce   : > { %v12128_v32 = vpop.eup %12127  ;;  %v9039_v62 = vmul.f32 %v12126_v27, %v15160_v9  ;;  %12147 = vrcp.f32 %v8978_v4  ;;  %v8890_v14 = vsub.f32 0.0, %v15229_v30  ;;  %v11156_v3 = vpop.f32.mrb[56].mxu1 }
 0x7cf   : > { %v12130_v10 = vpop.eup %12129  ;;  %v9037_v56 = vmul.f32 %v12128_v32, %v15163_v0  ;;  %12149 = vpow2.f32 %v8945_v13  ;;  %v8947_v17 = vmul.f32 1.442695, %v8892_v22  ;;  %v15238_v38 = vadd.f32 %v11156_v3, %v15125_v40  ;;  %v8767_v49 = vpop.f32.mrb[57].mxu1 }
 0x7d0   : > { %v12132_v45 = vpop.eup %12131  ;;  %v9040_v16 = vmul.f32 %v12130_v10, %v15167_v59  ;;  %12151 = vpow2.f32 %v8941_v26  ;;  %v8943_v12 = vmul.f32 1.442695, %v8890_v14  ;;  %v15242_v9 = vadd.f32 %v15125_v40, %v8767_v49  ;;  %v11157_v57 = vpop.f32.mrb[58].mxu1 }
 0x7d1   : > { %v12134_v37 = vpop.eup %12133  ;;  %v9038_v2 = vmul.f32 %v12132_v45, %v15171_v6  ;;  %12153 = vpow2.f32 %v8947_v17  ;;  %v8895_v0 = vsub.f32 0.0, %v15238_v38  ;;  %v15247_v52 = vadd.f32 %v11157_v57, %v15125_v40  ;;  %v8770_v36 = vpop.f32.mrb[59].mxu1 }
 0x7d2   : > { %v12136_v50 = vpop.eup %12135  ;;  %v9066_v19 = vpack.c.bf16 %v9040_v16, %v9039_v62  ;;  %v8983_v1 = vadd.f32 1.0, %v12134_v37  ;;  %12155 = vpow2.f32 %v8943_v12  ;;  %v8893_v59 = vsub.f32 0.0, %v15242_v9 }
 0x7d3   : > { %v12138_v58 = vpop.eup %12137  ;;  %v9065_v33 = vpack.c.bf16 %v9038_v2, %v9037_v56  ;;  %v8981_v8 = vadd.f32 1.0, %v12136_v50  ;;  %v8896_v28 = vsub.f32 0.0, %v15247_v52  ;;  %v8953_v41 = vmul.f32 1.442695, %v8895_v0 }
 0x7d4   : > { %v12140_v18 = vpop.eup %12139  ;;  %12157 = vrcp.f32 %v8983_v1  ;;  %v8984_v6 = vadd.f32 1.0, %v12138_v58  ;;  %v15252_v63 = vadd.f32 %v15125_v40, %v8770_v36  ;;  %v8949_v25 = vmul.f32 1.442695, %v8893_v59 }
 0x7d5   : > { %v12142_v20 = vpop.eup %12141  ;;  %12159 = vrcp.f32 %v8981_v8  ;;  %v8982_v31 = vadd.f32 1.0, %v12140_v18  ;;  %11172 = vmatprep.mubr.msk.bf16.mxu1 %vm390_vm1, %v9065_v33  ;;  %v8955_v24 = vmul.f32 1.442695, %v8896_v28 }
 0x7d6   : > { %v12144_v23 = vpop.eup %12143  ;;  %12161 = vrcp.f32 %v8984_v6  ;;  %v8894_v53 = vsub.f32 0.0, %v15252_v63  ;;  %11173 = vmatmul.mubr.msk.bf16.gmra.mrb[8].mxu1 %vm390_vm1, %v9066_v19  ;;  %v11160_v11 = vpop.f32.mrb[60].mxu1  ;;  %v9043_v47 = vmul.f32 %v12142_v20, %v15176_v5 }
 0x7d7   : > { %v12146_v34 = vpop.eup %12145  ;;  %v9041_v44 = vmul.f32 %v12144_v23, %v15179_v54  ;;  %12163 = vrcp.f32 %v8982_v31  ;;  %v15260_v46 = vadd.f32 %v11160_v11, %v15125_v40  ;;  %v8783_v61 = vpop.f32.mrb[61].mxu1 }
 0x7d8   : > { %v12148_v43 = vpop.eup %12147  ;;  %v9044_v51 = vmul.f32 %v12146_v34, %v15183_v21  ;;  %12165 = vpow2.f32 %v8953_v41  ;;  %v8951_v55 = vmul.f32 1.442695, %v8894_v53  ;;  %v15264_v13 = vadd.f32 %v15125_v40, %v8783_v61  ;;  %v11161_v4 = vpop.f32.mrb[62].mxu1 }
 0x7d9   : > { %v12150_v26 = vpop.eup %12149  ;;  %v9042_v27 = vmul.f32 %v12148_v43, %v15187_v29  ;;  %12167 = vpow2.f32 %v8949_v25  ;;  %v8899_v5 = vsub.f32 0.0, %v15260_v46  ;;  %v15269_v54 = vadd.f32 %v11161_v4, %v15125_v40  ;;  %v8786_v22 = vpop.f32.mrb[63].mxu1 }
 0x7da   : > { %v12152_v32 = vpop.eup %12151  ;;  %v9068_v62 = vpack.c.bf16 %v9044_v51, %v9043_v47  ;;  %v8987_v14 = vadd.f32 1.0, %v12150_v26  ;;  %12169 = vpow2.f32 %v8955_v24  ;;  %v8897_v21 = vsub.f32 0.0, %v15264_v13 }
 0x7db   : > { %v12154_v3 = vpop.eup %12153  ;;  %v9067_v10 = vpack.c.bf16 %v9042_v27, %v9041_v44  ;;  %v8985_v56 = vadd.f32 1.0, %v12152_v32  ;;  %12171 = vpow2.f32 %v8951_v55  ;;  %v8961_v49 = vmul.f32 1.442695, %v8899_v5 }
 0x7dc   : > { %v12156_v17 = vpop.eup %12155  ;;  %12173 = vrcp.f32 %v8987_v14  ;;  %v8988_v29 = vadd.f32 1.0, %v12154_v3  ;;  %v8900_v45 = vsub.f32 0.0, %v15269_v54  ;;  %v8957_v12 = vmul.f32 1.442695, %v8897_v21 }
 0x7dd   : > { %12175 = vrcp.f32 %v8985_v56  ;;  %v8986_v16 = vadd.f32 1.0, %v12156_v17  ;;  %v15274_v57 = vadd.f32 %v15125_v40, %v8786_v22  ;;  %11176 = vmatprep.mubr.msk.bf16.mxu1 %vm390_vm1, %v9067_v10 }
 0x7de   : > { %v12158_v37 = vpop.eup %12157  ;;  %12177 = vrcp.f32 %v8988_v29  ;;  %v8963_v2 = vmul.f32 1.442695, %v8900_v45  ;;  %11177 = vmatmul.mubr.msk.bf16.gmra.mrb[12].mxu1 %vm390_vm1, %v9068_v62 }
 0x7df   : > { %v12160_v0 = vpop.eup %12159  ;;  %12179 = vrcp.f32 %v8986_v16  ;;  %v8898_v36 = vsub.f32 0.0, %v15274_v57  ;;  %v9047_v1 = vmul.f32 %v12158_v37, %v15194_v35  ;;  %v15306_v37 = vld [vmem:[%s15583_s10] ss:$0 sm:$0xff] }
 0x7e0   : > { %v12162_v50 = vpop.eup %12161  ;;  %12181 = vpow2.f32 %v8961_v49  ;;  %v9045_v33 = vmul.f32 %v12160_v0, %v15199_v60 }
 0x7e1   : > { %v12164_v19 = vpop.eup %12163  ;;  %v9048_v59 = vmul.f32 %v12162_v50, %v15204_v15  ;;  %12183 = vpow2.f32 %v8957_v12  ;;  %v8959_v40 = vmul.f32 1.442695, %v8898_v36  ;;  %v16008_v50 = vld [vmem:[#allocation32_spill] sm:$0xff] }
 0x7e2   : > { %v12166_v58 = vpop.eup %12165  ;;  %v9046_v8 = vmul.f32 %v12164_v19, %v15207_v42  ;;  %12185 = vpow2.f32 %v8963_v2  ;;  %v16006_v2 = vld [vmem:[#allocation30_spill] sm:$0xff] }
 0x7e3   : > { %v12168_v28 = vpop.eup %12167  ;;  %v9070_v18 = vpack.c.bf16 %v9048_v59, %v9047_v1  ;;  %v8991_v6 = vadd.f32 1.0, %v12166_v58  ;;  %12187 = vpow2.f32 %v8959_v40  ;;  %v16009_v40 = vld [vmem:[#allocation33_spill] sm:$0xff] }
 0x7e4   : > { %v12170_v41 = vpop.eup %12169  ;;  %v9069_v20 = vpack.c.bf16 %v9046_v8, %v9045_v33  ;;  %v8989_v31 = vadd.f32 1.0, %v12168_v28 }
 0x7e5   : > { %v12172_v25 = vpop.eup %12171  ;;  %12189 = vrcp.f32 %v8991_v6  ;;  %v8992_v35 = vadd.f32 1.0, %v12170_v41 }
 0x7e6   : > { %v12174_v23 = vpop.eup %12173  ;;  %12191 = vrcp.f32 %v8989_v31  ;;  %v8990_v15 = vadd.f32 1.0, %v12172_v25  ;;  %11180 = vmatprep.mubr.msk.bf16.mxu1 %vm390_vm1, %v9069_v20 }
 0x7e7   : > { %v12176_v24 = vpop.eup %12175  ;;  %12193 = vrcp.f32 %v8992_v35  ;;  %11181 = vmatmul.mubr.msk.bf16.gmra.mrb[16].mxu1 %vm390_vm1, %v9070_v18  ;;  %v9051_v53 = vmul.f32 %v12174_v23, %v15216_v39  ;;  %v16010_v23 = vld [vmem:[#allocation37_spill] sm:$0xff] }
 0x7e8   : > { %v12178_v60 = vpop.eup %12177  ;;  %12195 = vrcp.f32 %v8990_v15  ;;  %v9049_v47 = vmul.f32 %v12176_v24, %v15221_v48 }
 0x7e9   : > { %v12180_v42 = vpop.eup %12179  ;;  %v9052_v11 = vmul.f32 %v12178_v60, %v15226_v7 }
 0x7ea   : > { %v12182_v34 = vpop.eup %12181  ;;  %v9050_v44 = vmul.f32 %v12180_v42, %v15229_v30  ;;  %v16011_v42 = vld [vmem:[#allocation38_spill] sm:$0xff] }
 0x7eb   : > { %v12184_v61 = vpop.eup %12183  ;;  %v9072_v43 = vpack.c.bf16 %v9052_v11, %v9051_v53  ;;  %v8995_v51 = vadd.f32 1.0, %v12182_v34 }
 0x7ec   : > { %v12186_v55 = vpop.eup %12185  ;;  %v9071_v4 = vpack.c.bf16 %v9050_v44, %v9049_v47  ;;  %v8993_v26 = vadd.f32 1.0, %v12184_v61  ;;  %v16012_v47 = vld [vmem:[#allocation39_spill] sm:$0xff] }
 0x7ed   : > { %v12188_v27 = vpop.eup %12187  ;;  %12197 = vrcp.f32 %v8995_v51  ;;  %v8996_v5 = vadd.f32 1.0, %v12186_v55  ;;  %v16013_v51 = vld [vmem:[#allocation41_spill] sm:$0xff] }
 0x7ee   : > { %12199 = vrcp.f32 %v8993_v26  ;;  %v8994_v22 = vadd.f32 1.0, %v12188_v27  ;;  %11184 = vmatprep.mubr.msk.bf16.mxu1 %vm390_vm1, %v9071_v4 }
 0x7ef   : > { %v12190_v39 = vpop.eup %12189  ;;  %12201 = vrcp.f32 %v8996_v5  ;;  %11185 = vmatmul.mubr.msk.bf16.gmra.mrb[20].mxu1 %vm390_vm1, %v9072_v43 }
 0x7f0   : > { %v12192_v48 = vpop.eup %12191  ;;  %12203 = vrcp.f32 %v8994_v22  ;;  %v9055_v32 = vmul.f32 %v12190_v39, %v15238_v38 }
 0x7f1   : > { %v12194_v7 = vpop.eup %12193  ;;  %v9053_v14 = vmul.f32 %v12192_v48, %v15242_v9 }
 0x7f2   : > { %v12196_v30 = vpop.eup %12195  ;;  %v9056_v62 = vmul.f32 %v12194_v7, %v15247_v52 }
 0x7f3   : > { %v9054_v21 = vmul.f32 %v12196_v30, %v15252_v63 }
 0x7f4   : > { %v9074_v3 = vpack.c.bf16 %v9056_v62, %v9055_v32 }
 0x7f5   : > { %v9073_v10 = vpack.c.bf16 %v9054_v21, %v9053_v14  ;;  %v16014_v14 = vld [vmem:[#allocation43_spill] sm:$0xff] }
 0x7f7   : > { %v12198_v56 = vpop.eup %12197  ;;  %11188 = vmatprep.mubr.msk.bf16.mxu1 %vm390_vm1, %v9073_v10 }
 0x7f8   : > { %v12200_v17 = vpop.eup %12199  ;;  %11189 = vmatmul.mubr.msk.bf16.gmra.mrb[24].mxu1 %vm390_vm1, %v9074_v3  ;;  %v9059_v45 = vmul.f32 %v12198_v56, %v15260_v46  ;;  %v16015_v56 = vld [vmem:[#allocation44_spill] sm:$0xff] }
 0x7f9   : > { %v12202_v29 = vpop.eup %12201  ;;  %v9057_v52 = vmul.f32 %v12200_v17, %v15264_v13 }
 0x7fa   : > { %v12204_v49 = vpop.eup %12203  ;;  %v9060_v38 = vmul.f32 %v12202_v29, %v15269_v54  ;;  %v16007_v54 = vld [vmem:[#allocation31_spill] sm:$0xff] }
 0x7fb   : > { %v9058_v9 = vmul.f32 %v12204_v49, %v15274_v57 }
 0x7fc   : > { %v9076_v16 = vpack.c.bf16 %v9060_v38, %v9059_v45 }
 0x7fd   : > { %v9075_v63 = vpack.c.bf16 %v9058_v9, %v9057_v52  ;;  %v16016_v52 = vld [vmem:[#allocation45_spill] sm:$0xff] }
 0x7ff   : > { %11192 = vmatprep.mubr.msk.bf16.mxu1 %vm390_vm1, %v9075_v63 }
 0x800   : > { %11193 = vmatmul.mubr.msk.bf16.gmra.mrb[28].mxu1 %vm390_vm1, %v9076_v16  ;;  %vm9553_vm1 = vcmask 64512  }
 0x898   : > { %v11166_v12 = vpop.f32.mrb[0].mxu1 }
 0x899   : > { %v11196_v46 = vadd.f32 %v11166_v12, %v16006_v2  ;;  %v9163_v0 = vpop.f32.mrb[1].mxu1 }
 0x89a   : > { %v11197_v36 = vadd.f32 %v9163_v0, %v16007_v54  ;;  %v11167_v13 = vpop.f32.mrb[2].mxu1 }
 0x89b   : > { %v15311_v57 = vadd.f32 %v11196_v46, %v15306_v37  ;;  %v11198_v19 = vadd.f32 %v11167_v13, %v16008_v50  ;;  %v9166_v1 = vpop.f32.mrb[3].mxu1  ;;  %v16017_v46 = vld [vmem:[#allocation46_spill] sm:$0xff] }
 0x89c   : > { %v15315_v59 = vadd.f32 %v11197_v36, %v15306_v37  ;;  %v11199_v58 = vadd.f32 %v9166_v1, %v16009_v40 }
 0x89d   : > { %v9363_v33 = vsub.f32 0.0, %v15311_v57  ;;  %v15320_v8 = vadd.f32 %v11198_v19, %v15306_v37 }
 0x89e   : > { %v9361_v28 = vsub.f32 0.0, %v15315_v59  ;;  %v15324_v18 = vadd.f32 %v11199_v58, %v15306_v37 }
 0x89f   : > { %v9397_v6 = vmul.f32 1.442695, %v9363_v33  ;;  %v9364_v41 = vsub.f32 0.0, %v15320_v8 }
 0x8a0   : > { %v9393_v20 = vmul.f32 1.442695, %v9361_v28  ;;  %v9362_v31 = vsub.f32 0.0, %v15324_v18  ;;  %v11170_v25 = vpop.f32.mrb[4].mxu1 }
 0x8a1   : > { %12205 = vpow2.f32 %v9397_v6  ;;  %v9399_v35 = vmul.f32 1.442695, %v9364_v41  ;;  %v11200_v15 = vadd.f32 %v11170_v25, %v16010_v23  ;;  %v9179_v24 = vpop.f32.mrb[5].mxu1 }
 0x8a2   : > { %12207 = vpow2.f32 %v9393_v20  ;;  %v9395_v60 = vmul.f32 1.442695, %v9362_v31  ;;  %v11201_v53 = vadd.f32 %v9179_v24, %v16011_v42  ;;  %v11171_v11 = vpop.f32.mrb[6].mxu1  ;;  %v16018_v31 = vld [vmem:[#allocation47_spill] sm:$0xff]  ;;  %v16019_v24 = vld [vmem:[#allocation48_spill] sm:$0xff] }
 0x8a3   : > { %12209 = vpow2.f32 %v9399_v35  ;;  %v15331_v34 = vadd.f32 %v11200_v15, %v15306_v37  ;;  %v11202_v44 = vadd.f32 %v11171_v11, %v16012_v47  ;;  %v9182_v61 = vpop.f32.mrb[7].mxu1 }
 0x8a4   : > { %12211 = vpow2.f32 %v9395_v60  ;;  %v15335_v43 = vadd.f32 %v11201_v53, %v15306_v37  ;;  %v11203_v55 = vadd.f32 %v9182_v61, %v16013_v51 }
 0x8a5   : > { %v9367_v4 = vsub.f32 0.0, %v15331_v34  ;;  %v15340_v26 = vadd.f32 %v11202_v44, %v15306_v37  ;;  %v16020_v44 = vld [vmem:[#allocation49_spill] sm:$0xff] }
 0x8a6   : > { %v9365_v27 = vsub.f32 0.0, %v15335_v43  ;;  %v15344_v5 = vadd.f32 %v11203_v55, %v15306_v37 }
 0x8a7   : > { %v9405_v22 = vmul.f32 1.442695, %v9367_v4  ;;  %v9368_v39 = vsub.f32 0.0, %v15340_v26 }
 0x8a8   : > { %v9401_v48 = vmul.f32 1.442695, %v9365_v27  ;;  %v9366_v7 = vsub.f32 0.0, %v15344_v5 }
 0x8a9   : > { %12213 = vpow2.f32 %v9405_v22  ;;  %v9407_v30 = vmul.f32 1.442695, %v9368_v39  ;;  %v11174_v32 = vpop.f32.mrb[8].mxu1  ;;  %v16021_v22 = vld [vmem:[#allocation50_spill] sm:$0xff] }
 0x8aa   : > { %12215 = vpow2.f32 %v9401_v48  ;;  %v9403_v62 = vmul.f32 1.442695, %v9366_v7  ;;  %v11204_v21 = vadd.f32 %v11174_v32, %v16014_v14  ;;  %v9195_v3 = vpop.f32.mrb[9].mxu1 }
 0x8ab   : > { %v12206_v10 = vpop.eup %12205  ;;  %12217 = vpow2.f32 %v9407_v30  ;;  %v11205_v17 = vadd.f32 %v9195_v3, %v16015_v56  ;;  %v11175_v29 = vpop.f32.mrb[10].mxu1 }
 0x8ac   : > { %v12208_v49 = vpop.eup %12207  ;;  %v9459_v45 = vadd.f32 1.0, %v12206_v10  ;;  %12219 = vpow2.f32 %v9403_v62  ;;  %v15351_v38 = vadd.f32 %v11204_v21, %v15306_v37  ;;  %v11206_v9 = vadd.f32 %v11175_v29, %v16016_v52  ;;  %v9198_v16 = vpop.f32.mrb[11].mxu1 }
 0x8ad   : > { %v12210_v63 = vpop.eup %12209  ;;  %v9457_v12 = vadd.f32 1.0, %v12208_v49  ;;  %v15355_v2 = vadd.f32 %v11205_v17, %v15306_v37  ;;  %v11207_v0 = vadd.f32 %v9198_v16, %v16017_v46 }
 0x8ae   : > { %v12212_v54 = vpop.eup %12211  ;;  %12221 = vrcp.f32 %v9459_v45  ;;  %v9460_v36 = vadd.f32 1.0, %v12210_v63  ;;  %v9371_v13 = vsub.f32 0.0, %v15351_v38  ;;  %v15360_v50 = vadd.f32 %v11206_v9, %v15306_v37 }
 0x8af   : > { %12223 = vrcp.f32 %v9457_v12  ;;  %v9458_v19 = vadd.f32 1.0, %v12212_v54  ;;  %v9369_v1 = vsub.f32 0.0, %v15355_v2  ;;  %v15364_v40 = vadd.f32 %v11207_v0, %v15306_v37 }
 0x8b0   : > { %12225 = vrcp.f32 %v9460_v36  ;;  %v9413_v58 = vmul.f32 1.442695, %v9371_v13  ;;  %v9372_v33 = vsub.f32 0.0, %v15360_v50 }
 0x8b1   : > { %12227 = vrcp.f32 %v9458_v19  ;;  %v9409_v28 = vmul.f32 1.442695, %v9369_v1  ;;  %v9370_v6 = vsub.f32 0.0, %v15364_v40  ;;  %v11178_v41 = vpop.f32.mrb[12].mxu1  ;;  %v16023_v19 = vld [vmem:[#allocation52_spill] sm:$0xff] }
 0x8b2   : > { %12229 = vpow2.f32 %v9413_v58  ;;  %v9415_v20 = vmul.f32 1.442695, %v9372_v33  ;;  %v11208_v25 = vadd.f32 %v11178_v41, %v16018_v31  ;;  %v9211_v35 = vpop.f32.mrb[13].mxu1 }
 0x8b3   : > { %v12214_v23 = vpop.eup %12213  ;;  %12231 = vpow2.f32 %v9409_v28  ;;  %v9411_v15 = vmul.f32 1.442695, %v9370_v6  ;;  %v11209_v60 = vadd.f32 %v9211_v35, %v16019_v24  ;;  %v11179_v42 = vpop.f32.mrb[14].mxu1  ;;  %v16024_v6 = vld [vmem:[#allocation53_spill] sm:$0xff]  ;;  %v16025_v35 = vld [vmem:[#allocation54_spill] sm:$0xff] }
 0x8b4   : > { %v12216_v53 = vpop.eup %12215  ;;  %v9463_v11 = vadd.f32 1.0, %v12214_v23  ;;  %12233 = vpow2.f32 %v9415_v20  ;;  %v15371_v47 = vadd.f32 %v11208_v25, %v15306_v37  ;;  %v11210_v61 = vadd.f32 %v11179_v42, %v16020_v44  ;;  %v9214_v51 = vpop.f32.mrb[15].mxu1 }
 0x8b5   : > { %v12218_v55 = vpop.eup %12217  ;;  %v9461_v4 = vadd.f32 1.0, %v12216_v53  ;;  %12235 = vpow2.f32 %v9411_v15  ;;  %v15376_v27 = vadd.f32 %v11209_v60, %v15306_v37  ;;  %v11211_v39 = vadd.f32 %v9214_v51, %v16021_v22 }
 0x8b6   : > { %v12220_v48 = vpop.eup %12219  ;;  %12237 = vrcp.f32 %v9463_v11  ;;  %v9464_v7 = vadd.f32 1.0, %v12218_v55  ;;  %v9375_v30 = vsub.f32 0.0, %v15371_v47  ;;  %v15381_v32 = vadd.f32 %v11210_v61, %v15306_v37 }
 0x8b7   : > { %12239 = vrcp.f32 %v9461_v4  ;;  %v9462_v62 = vadd.f32 1.0, %v12220_v48  ;;  %v9373_v14 = vsub.f32 0.0, %v15376_v27  ;;  %v15385_v21 = vadd.f32 %v11211_v39, %v15306_v37 }
 0x8b8   : > { %v12222_v3 = vpop.eup %12221  ;;  %12241 = vrcp.f32 %v9464_v7  ;;  %v9421_v10 = vmul.f32 1.442695, %v9375_v30  ;;  %v9376_v56 = vsub.f32 0.0, %v15381_v32 }
 0x8b9   : > { %v12224_v17 = vpop.eup %12223  ;;  %v9523_v29 = vmul.f32 %v12222_v3, %v15311_v57  ;;  %12243 = vrcp.f32 %v9462_v62  ;;  %v9417_v49 = vmul.f32 1.442695, %v9373_v14  ;;  %v9374_v45 = vsub.f32 0.0, %v15385_v21  ;;  %v16022_v57 = vld [vmem:[#allocation51_spill] sm:$0xff] }
 0x8ba   : > { %v12226_v52 = vpop.eup %12225  ;;  %v9521_v9 = vmul.f32 %v12224_v17, %v15315_v59  ;;  %12245 = vpow2.f32 %v9421_v10  ;;  %v9423_v16 = vmul.f32 1.442695, %v9376_v56  ;;  %v11182_v63 = vpop.f32.mrb[16].mxu1  ;;  %v16026_v10 = vld [vmem:[#allocation55_spill] sm:$0xff] }
 0x8bb   : > { %v12228_v12 = vpop.eup %12227  ;;  %9556 = vst.msk [vmem:[%s15390_s27 + $0x10] sm:$0xff] %vm9553_vm1, %v9523_v29  ;;  %v9524_v46 = vmul.f32 %v12226_v52, %v15320_v8  ;;  %12247 = vpow2.f32 %v9417_v49  ;;  %v9419_v0 = vmul.f32 1.442695, %v9374_v45  ;;  %v11212_v54 = vadd.f32 %v11182_v63, %v16022_v57  ;;  %v9227_v36 = vpop.f32.mrb[17].mxu1  ;;  %v16027_v45 = vld [vmem:[#allocation56_spill] sm:$0xff] }
 0x8bc   : > { %v12230_v13 = vpop.eup %12229  ;;  %9554 = vst.msk [vmem:[%s15390_s27] sm:$0xff] %vm9553_vm1, %v9521_v9  ;;  %v9522_v59 = vmul.f32 %v12228_v12, %v15324_v18  ;;  %12249 = vpow2.f32 %v9423_v16  ;;  %v11213_v1 = vadd.f32 %v9227_v36, %v16023_v19  ;;  %v11183_v58 = vpop.f32.mrb[18].mxu1  ;;  %v16028_v12 = vld [vmem:[#allocation57_spill] sm:$0xff]  ;;  %v16029_v36 = vld [vmem:[#allocation58_spill] sm:$0xff] }
 0x8bd   : > { %v12232_v33 = vpop.eup %12231  ;;  %9557 = vst.msk [vmem:[%s15390_s27 + $0x18] sm:$0xff] %vm9553_vm1, %v9524_v46  ;;  %v9467_v28 = vadd.f32 1.0, %v12230_v13  ;;  %12251 = vpow2.f32 %v9419_v0  ;;  %v15407_v8 = vadd.f32 %v11212_v54, %v15306_v37  ;;  %v11214_v41 = vadd.f32 %v11183_v58, %v16024_v6  ;;  %v9230_v20 = vpop.f32.mrb[19].mxu1 }
 0x8be   : > { %v12234_v31 = vpop.eup %12233  ;;  %9555 = vst.msk [vmem:[%s15390_s27 + $0x8] sm:$0xff] %vm9553_vm1, %v9522_v59  ;;  %v9465_v25 = vadd.f32 1.0, %v12232_v33  ;;  %v15413_v18 = vadd.f32 %v11213_v1, %v15306_v37  ;;  %v11215_v23 = vadd.f32 %v9230_v20, %v16025_v35 }
 0x8bf   : > { %v12236_v15 = vpop.eup %12235  ;;  %12253 = vrcp.f32 %v9467_v28  ;;  %v9468_v24 = vadd.f32 1.0, %v12234_v31  ;;  %v9379_v60 = vsub.f32 0.0, %v15407_v8  ;;  %v15418_v42 = vadd.f32 %v11214_v41, %v15306_v37 }
 0x8c0   : > { %v12238_v53 = vpop.eup %12237  ;;  %12255 = vrcp.f32 %v9465_v25  ;;  %v9466_v11 = vadd.f32 1.0, %v12236_v15  ;;  %v9377_v44 = vsub.f32 0.0, %v15413_v18  ;;  %v15422_v61 = vadd.f32 %v11215_v23, %v15306_v37 }
 0x8c1   : > { %v12240_v51 = vpop.eup %12239  ;;  %v9527_v55 = vmul.f32 %v12238_v53, %v15331_v34  ;;  %12257 = vrcp.f32 %v9468_v24  ;;  %v9429_v4 = vmul.f32 1.442695, %v9379_v60  ;;  %v9380_v22 = vsub.f32 0.0, %v15418_v42 }
 0x8c2   : > { %v12242_v39 = vpop.eup %12241  ;;  %v9525_v48 = vmul.f32 %v12240_v51, %v15335_v43  ;;  %12259 = vrcp.f32 %v9466_v11  ;;  %v9425_v7 = vmul.f32 1.442695, %v9377_v44  ;;  %v9378_v30 = vsub.f32 0.0, %v15422_v61  ;;  %v11186_v62 = vpop.f32.mrb[20].mxu1 }
 0x8c3   : > { %v12244_v14 = vpop.eup %12243  ;;  %9560 = vst.msk [vmem:[%s15390_s27 + $0x30] sm:$0xff] %vm9553_vm1, %v9527_v55  ;;  %v9528_v3 = vmul.f32 %v12242_v39, %v15340_v26  ;;  %12261 = vpow2.f32 %v9429_v4  ;;  %v9431_v34 = vmul.f32 1.442695, %v9380_v22  ;;  %v11216_v56 = vadd.f32 %v11186_v62, %v16026_v10  ;;  %v9243_v17 = vpop.f32.mrb[21].mxu1 }
 0x8c4   : > { %v12246_v29 = vpop.eup %12245  ;;  %9558 = vst.msk [vmem:[%s15390_s27 + $0x20] sm:$0xff] %vm9553_vm1, %v9525_v48  ;;  %v9526_v43 = vmul.f32 %v12244_v14, %v15344_v5  ;;  %12263 = vpow2.f32 %v9425_v7  ;;  %v9427_v49 = vmul.f32 1.442695, %v9378_v30  ;;  %v11217_v52 = vadd.f32 %v9243_v17, %v16027_v45  ;;  %v11187_v9 = vpop.f32.mrb[22].mxu1  ;;  %v16031_v48 = vld [vmem:[#allocation60_spill] sm:$0xff] }
 0x8c5   : > { %v12248_v16 = vpop.eup %12247  ;;  %9561 = vst.msk [vmem:[%s15390_s27 + $0x38] sm:$0xff] %vm9553_vm1, %v9528_v3  ;;  %v9471_v26 = vadd.f32 1.0, %v12246_v29  ;;  %12265 = vpow2.f32 %v9431_v34  ;;  %v15439_v63 = vadd.f32 %v11216_v56, %v15306_v37  ;;  %v11218_v46 = vadd.f32 %v11187_v9, %v16028_v12  ;;  %v9246_v0 = vpop.f32.mrb[23].mxu1  ;;  %v16032_v3 = vld [vmem:[#allocation61_spill] sm:$0xff]  ;;  %v16033_v29 = vld [vmem:[#allocation62_spill] sm:$0xff] }
 0x8c6   : > { %v12250_v57 = vpop.eup %12249  ;;  %9559 = vst.msk [vmem:[%s15390_s27 + $0x28] sm:$0xff] %vm9553_vm1, %v9526_v43  ;;  %v9469_v5 = vadd.f32 1.0, %v12248_v16  ;;  %12267 = vpow2.f32 %v9427_v49  ;;  %v15445_v54 = vadd.f32 %v11217_v52, %v15306_v37  ;;  %v11219_v13 = vadd.f32 %v9246_v0, %v16029_v36 }
 0x8c7   : > { %v12252_v59 = vpop.eup %12251  ;;  %12269 = vrcp.f32 %v9471_v26  ;;  %v9472_v19 = vadd.f32 1.0, %v12250_v57  ;;  %v9383_v1 = vsub.f32 0.0, %v15439_v63  ;;  %v15450_v58 = vadd.f32 %v11218_v46, %v15306_v37 }
 0x8c8   : > { %12271 = vrcp.f32 %v9469_v5  ;;  %v9470_v33 = vadd.f32 1.0, %v12252_v59  ;;  %v9381_v28 = vsub.f32 0.0, %v15445_v54  ;;  %v15454_v6 = vadd.f32 %v11219_v13, %v15306_v37 }
 0x8c9   : > { %v12254_v41 = vpop.eup %12253  ;;  %12273 = vrcp.f32 %v9472_v19  ;;  %v9437_v20 = vmul.f32 1.442695, %v9383_v1  ;;  %v9384_v31 = vsub.f32 0.0, %v15450_v58 }
 0x8ca   : > { %v12256_v25 = vpop.eup %12255  ;;  %v9531_v35 = vmul.f32 %v12254_v41, %v15351_v38  ;;  %12275 = vrcp.f32 %v9470_v33  ;;  %v9433_v23 = vmul.f32 1.442695, %v9381_v28  ;;  %v9382_v15 = vsub.f32 0.0, %v15454_v6  ;;  %v16030_v38 = vld [vmem:[#allocation59_spill] sm:$0xff] }
 0x8cb   : > { %v12258_v24 = vpop.eup %12257  ;;  %v9529_v60 = vmul.f32 %v12256_v25, %v15355_v2  ;;  %12277 = vpow2.f32 %v9437_v20  ;;  %v9439_v53 = vmul.f32 1.442695, %v9384_v31  ;;  %v11190_v11 = vpop.f32.mrb[24].mxu1  ;;  %v16034_v20 = vld [vmem:[#allocation63_spill] sm:$0xff] }
 0x8cc   : > { %v12260_v44 = vpop.eup %12259  ;;  %9564 = vst.msk [vmem:[%s15390_s27 + $0x50] sm:$0xff] %vm9553_vm1, %v9531_v35  ;;  %v9532_v51 = vmul.f32 %v12258_v24, %v15360_v50  ;;  %12279 = vpow2.f32 %v9433_v23  ;;  %v9435_v55 = vmul.f32 1.442695, %v9382_v15  ;;  %v11220_v4 = vadd.f32 %v11190_v11, %v16030_v38  ;;  %v9259_v22 = vpop.f32.mrb[25].mxu1  ;;  %v16035_v15 = vld [vmem:[#allocation64_spill] sm:$0xff] }
 0x8cd   : > { %v12262_v39 = vpop.eup %12261  ;;  %9562 = vst.msk [vmem:[%s15390_s27 + $0x40] sm:$0xff] %vm9553_vm1, %v9529_v60  ;;  %v9530_v2 = vmul.f32 %v12260_v44, %v15364_v40  ;;  %12281 = vpow2.f32 %v9439_v53  ;;  %v11221_v7 = vadd.f32 %v9259_v22, %v16031_v48  ;;  %v11191_v30 = vpop.f32.mrb[26].mxu1  ;;  %v16036_v44 = vld [vmem:[#allocation65_spill] sm:$0xff]  ;;  %v16037_v22 = vld [vmem:[#allocation66_spill] sm:$0xff] }
 0x8ce   : > { %v12264_v62 = vpop.eup %12263  ;;  %9565 = vst.msk [vmem:[%s15390_s27 + $0x58] sm:$0xff] %vm9553_vm1, %v9532_v51  ;;  %v9475_v14 = vadd.f32 1.0, %v12262_v39  ;;  %12283 = vpow2.f32 %v9435_v55  ;;  %v15471_v50 = vadd.f32 %v11220_v4, %v15306_v37  ;;  %v11222_v34 = vadd.f32 %v11191_v30, %v16032_v3  ;;  %v9262_v10 = vpop.f32.mrb[27].mxu1 }
 0x8cf   : > { %v12266_v56 = vpop.eup %12265  ;;  %9563 = vst.msk [vmem:[%s15390_s27 + $0x48] sm:$0xff] %vm9553_vm1, %v9530_v2  ;;  %v9473_v17 = vadd.f32 1.0, %v12264_v62  ;;  %v15477_v40 = vadd.f32 %v11221_v7, %v15306_v37  ;;  %v11223_v43 = vadd.f32 %v9262_v10, %v16033_v29 }
 0x8d0   : > { %v12268_v49 = vpop.eup %12267  ;;  %12285 = vrcp.f32 %v9475_v14  ;;  %v9476_v45 = vadd.f32 1.0, %v12266_v56  ;;  %v9387_v52 = vsub.f32 0.0, %v15471_v50  ;;  %v15482_v9 = vadd.f32 %v11222_v34, %v15306_v37 }
 0x8d1   : > { %v12270_v16 = vpop.eup %12269  ;;  %12287 = vrcp.f32 %v9473_v17  ;;  %v9474_v26 = vadd.f32 1.0, %v12268_v49  ;;  %v9385_v12 = vsub.f32 0.0, %v15477_v40  ;;  %v15486_v46 = vadd.f32 %v11223_v43, %v15306_v37 }
 0x8d2   : > { %v12272_v0 = vpop.eup %12271  ;;  %v9535_v57 = vmul.f32 %v12270_v16, %v15371_v47  ;;  %12289 = vrcp.f32 %v9476_v45  ;;  %v9445_v5 = vmul.f32 1.442695, %v9387_v52  ;;  %v9388_v36 = vsub.f32 0.0, %v15482_v9 }
 0x8d3   : > { %v12274_v13 = vpop.eup %12273  ;;  %v9533_v59 = vmul.f32 %v12272_v0, %v15376_v27  ;;  %12291 = vrcp.f32 %v9474_v26  ;;  %v9441_v19 = vmul.f32 1.442695, %v9385_v12  ;;  %v9386_v1 = vsub.f32 0.0, %v15486_v46  ;;  %v11194_v33 = vpop.f32.mrb[28].mxu1 }
 0x8d4   : > { %v12276_v28 = vpop.eup %12275  ;;  %9568 = vst.msk [vmem:[%s15390_s27 + $0x70] sm:$0xff] %vm9553_vm1, %v9535_v57  ;;  %v9536_v41 = vmul.f32 %v12274_v13, %v15381_v32  ;;  %12293 = vpow2.f32 %v9445_v5  ;;  %v9447_v47 = vmul.f32 1.442695, %v9388_v36  ;;  %v11224_v31 = vadd.f32 %v11194_v33, %v16034_v20  ;;  %v9275_v25 = vpop.f32.mrb[29].mxu1 }
 0x8d5   : > { %v12278_v35 = vpop.eup %12277  ;;  %9566 = vst.msk [vmem:[%s15390_s27 + $0x60] sm:$0xff] %vm9553_vm1, %v9533_v59  ;;  %v9534_v27 = vmul.f32 %v12276_v28, %v15385_v21  ;;  %12295 = vpow2.f32 %v9441_v19  ;;  %v9443_v23 = vmul.f32 1.442695, %v9386_v1  ;;  %v11225_v24 = vadd.f32 %v9275_v25, %v16035_v15  ;;  %v11195_v60 = vpop.f32.mrb[30].mxu1 }
 0x8d6   : > { %v12280_v53 = vpop.eup %12279  ;;  %9569 = vst.msk [vmem:[%s15390_s27 + $0x78] sm:$0xff] %vm9553_vm1, %v9536_v41  ;;  %v9479_v32 = vadd.f32 1.0, %v12278_v35  ;;  %12297 = vpow2.f32 %v9447_v47  ;;  %v15503_v11 = vadd.f32 %v11224_v31, %v15306_v37  ;;  %v11226_v51 = vadd.f32 %v11195_v60, %v16036_v44  ;;  %v9278_v55 = vpop.f32.mrb[31].mxu1 }
 0x8d7   : > { %v12282_v38 = vpop.eup %12281  ;;  %9567 = vst.msk [vmem:[%s15390_s27 + $0x68] sm:$0xff] %vm9553_vm1, %v9534_v27  ;;  %v9477_v21 = vadd.f32 1.0, %v12280_v53  ;;  %12299 = vpow2.f32 %v9443_v23  ;;  %v15509_v4 = vadd.f32 %v11225_v24, %v15306_v37  ;;  %v11227_v39 = vadd.f32 %v9278_v55, %v16037_v22 }
 0x8d8   : > { %v12284_v2 = vpop.eup %12283  ;;  %12301 = vrcp.f32 %v9479_v32  ;;  %v9480_v48 = vadd.f32 1.0, %v12282_v38  ;;  %v9391_v7 = vsub.f32 0.0, %v15503_v11  ;;  %v15514_v30 = vadd.f32 %v11226_v51, %v15306_v37 }
 0x8d9   : > { %12303 = vrcp.f32 %v9477_v21  ;;  %v9478_v62 = vadd.f32 1.0, %v12284_v2  ;;  %v9389_v14 = vsub.f32 0.0, %v15509_v4  ;;  %v15518_v3 = vadd.f32 %v11227_v39, %v15306_v37 }
 0x8da   : > { %v12286_v34 = vpop.eup %12285  ;;  %12305 = vrcp.f32 %v9480_v48  ;;  %v9453_v10 = vmul.f32 1.442695, %v9391_v7  ;;  %v9392_v56 = vsub.f32 0.0, %v15514_v30 }
 0x8db   : > { %v12288_v17 = vpop.eup %12287  ;;  %v9539_v29 = vmul.f32 %v12286_v34, %v15407_v8  ;;  %12307 = vrcp.f32 %v9478_v62  ;;  %v9449_v43 = vmul.f32 1.442695, %v9389_v14  ;;  %v9390_v49 = vsub.f32 0.0, %v15518_v3 }
 0x8dc   : > { %v12290_v45 = vpop.eup %12289  ;;  %v9537_v52 = vmul.f32 %v12288_v17, %v15413_v18  ;;  %12309 = vpow2.f32 %v9453_v10  ;;  %v9455_v37 = vmul.f32 1.442695, %v9392_v56 }
 0x8dd   : > { %v12292_v16 = vpop.eup %12291  ;;  %9572 = vst.msk [vmem:[%s15390_s27 + $0x90] sm:$0xff] %vm9553_vm1, %v9539_v29  ;;  %v9540_v26 = vmul.f32 %v12290_v45, %v15418_v42  ;;  %12311 = vpow2.f32 %v9449_v43  ;;  %v9451_v12 = vmul.f32 1.442695, %v9390_v49 }
 0x8de   : > { %v12294_v0 = vpop.eup %12293  ;;  %9570 = vst.msk [vmem:[%s15390_s27 + $0x80] sm:$0xff] %vm9553_vm1, %v9537_v52  ;;  %v9538_v8 = vmul.f32 %v12292_v16, %v15422_v61  ;;  %12313 = vpow2.f32 %v9455_v37 }
 0x8df   : > { %v12296_v57 = vpop.eup %12295  ;;  %9573 = vst.msk [vmem:[%s15390_s27 + $0x98] sm:$0xff] %vm9553_vm1, %v9540_v26  ;;  %v9483_v18 = vadd.f32 1.0, %v12294_v0  ;;  %12315 = vpow2.f32 %v9451_v12 }
 0x8e0   : > { %v12298_v5 = vpop.eup %12297  ;;  %9571 = vst.msk [vmem:[%s15390_s27 + $0x88] sm:$0xff] %vm9553_vm1, %v9538_v8  ;;  %v9481_v36 = vadd.f32 1.0, %v12296_v57 }
 0x8e1   : > { %v12300_v13 = vpop.eup %12299  ;;  %12317 = vrcp.f32 %v9483_v18  ;;  %v9484_v42 = vadd.f32 1.0, %v12298_v5 }
 0x8e2   : > { %v12302_v59 = vpop.eup %12301  ;;  %12319 = vrcp.f32 %v9481_v36  ;;  %v9482_v19 = vadd.f32 1.0, %v12300_v13 }
 0x8e3   : > { %v12304_v61 = vpop.eup %12303  ;;  %v9543_v1 = vmul.f32 %v12302_v59, %v15439_v63  ;;  %12321 = vrcp.f32 %v9484_v42 }
 0x8e4   : > { %v12306_v33 = vpop.eup %12305  ;;  %v9541_v28 = vmul.f32 %v12304_v61, %v15445_v54  ;;  %12323 = vrcp.f32 %v9482_v19 }
 0x8e5   : > { %v12308_v41 = vpop.eup %12307  ;;  %9576 = vst.msk [vmem:[%s15390_s27 + $0xb0] sm:$0xff] %vm9553_vm1, %v9543_v1  ;;  %v9544_v47 = vmul.f32 %v12306_v33, %v15450_v58 }
 0x8e6   : > { %v12310_v20 = vpop.eup %12309  ;;  %9574 = vst.msk [vmem:[%s15390_s27 + $0xa0] sm:$0xff] %vm9553_vm1, %v9541_v28  ;;  %v9542_v31 = vmul.f32 %v12308_v41, %v15454_v6 }
 0x8e7   : > { %v12312_v25 = vpop.eup %12311  ;;  %9577 = vst.msk [vmem:[%s15390_s27 + $0xb8] sm:$0xff] %vm9553_vm1, %v9544_v47  ;;  %v9487_v35 = vadd.f32 1.0, %v12310_v20 }
 0x8e8   : > { %v12314_v63 = vpop.eup %12313  ;;  %9575 = vst.msk [vmem:[%s15390_s27 + $0xa8] sm:$0xff] %vm9553_vm1, %v9542_v31  ;;  %v9485_v54 = vadd.f32 1.0, %v12312_v25 }
 0x8e9   : > { %v12316_v27 = vpop.eup %12315  ;;  %12325 = vrcp.f32 %v9487_v35  ;;  %v9488_v23 = vadd.f32 1.0, %v12314_v63 }
 0x8ea   : > { %12327 = vrcp.f32 %v9485_v54  ;;  %v9486_v58 = vadd.f32 1.0, %v12316_v27 }
 0x8eb   : > { %v12318_v15 = vpop.eup %12317  ;;  %12329 = vrcp.f32 %v9488_v23 }
 0x8ec   : > { %v12320_v6 = vpop.eup %12319  ;;  %v9547_v24 = vmul.f32 %v12318_v15, %v15471_v50  ;;  %12331 = vrcp.f32 %v9486_v58 }
 0x8ed   : > { %v12322_v60 = vpop.eup %12321  ;;  %v9545_v53 = vmul.f32 %v12320_v6, %v15477_v40 }
 0x8ee   : > { %v12324_v32 = vpop.eup %12323  ;;  %9580 = vst.msk [vmem:[%s15390_s27 + $0xd0] sm:$0xff] %vm9553_vm1, %v9547_v24  ;;  %v9548_v44 = vmul.f32 %v12322_v60, %v15482_v9 }
 0x8ef   : > { %9578 = vst.msk [vmem:[%s15390_s27 + $0xc0] sm:$0xff] %vm9553_vm1, %v9545_v53  ;;  %v9546_v51 = vmul.f32 %v12324_v32, %v15486_v46 }
 0x8f0   : > { %9581 = vst.msk [vmem:[%s15390_s27 + $0xd8] sm:$0xff] %vm9553_vm1, %v9548_v44 }
 0x8f1   : > { %9579 = vst.msk [vmem:[%s15390_s27 + $0xc8] sm:$0xff] %vm9553_vm1, %v9546_v51 }
 0x8f3   : > { %v12326_v50 = vpop.eup %12325 }
 0x8f4   : > { %v12328_v55 = vpop.eup %12327  ;;  %v9551_v40 = vmul.f32 %v12326_v50, %v15503_v11 }
 0x8f5   : > { %v12330_v38 = vpop.eup %12329  ;;  %v9549_v21 = vmul.f32 %v12328_v55, %v15509_v4 }
 0x8f6   : > { %v12332_v22 = vpop.eup %12331  ;;  %9584 = vst.msk [vmem:[%s15390_s27 + $0xf0] sm:$0xff] %vm9553_vm1, %v9551_v40  ;;  %v9552_v9 = vmul.f32 %v12330_v38, %v15514_v30 }
 0x8f7   : > { %9582 = vst.msk [vmem:[%s15390_s27 + $0xe0] sm:$0xff] %vm9553_vm1, %v9549_v21  ;;  %v9550_v46 = vmul.f32 %v12332_v22, %v15518_v3 }
 0x8f8   : > { %9585 = vst.msk [vmem:[%s15390_s27 + $0xf8] sm:$0xff] %vm9553_vm1, %v9552_v9 }
 0x8f9   : > { %9583 = vst.msk [vmem:[%s15390_s27 + $0xe8] sm:$0xff] %vm9553_vm1, %v9550_v46 }
 0x8fa PF: > { %s21_s17 = sadd.s32 1, %s12370_s17  }
 0x8fb   : > { %p18_p4 = scmp.ge.s32.totalorder %s21_s17, 4  }
 0x8fd   :  { %20 = sbr.rel (!%p18_p4) target bundleno = 1 (0x1), region = 110 }

</bundles_post_ra>
